<compile_context>
chip_gen: v6e
topology: v6e:2x2x1
jax: 0.10.0
libtpu: 0.0.40
codegen_flags: <defaults>
</compile_context>

<pallas_src>
import functools
import numpy as np

import jax
import jax.numpy as jnp
from jax.experimental import pallas as pl
from jax.experimental.pallas import tpu as pltpu

MXU_DTYPE = jnp.bfloat16   # operand dtype for conv / linear matmuls (f32 accumulation)


def _sigmoid(x):
    return 1.0 / (1.0 + jnp.exp(-x))


# ---------------------------------------------------------------------------
# Pallas kernels
# ---------------------------------------------------------------------------

def _mm_kernel(a_ref, b_ref, bias_ref, o_ref, *, relu):
    acc = jnp.dot(a_ref[...], b_ref[...], preferred_element_type=jnp.float32)
    acc = acc + bias_ref[...]
    if relu:
        acc = jnp.maximum(acc, 0.0)
    o_ref[...] = acc


def matmul_bias_act(a, b, bias, relu=False, mxu_dtype=MXU_DTYPE):
    """(M,K) @ (K,N) + bias, optional ReLU.  Full-array blocks, no padding."""
    M, K = a.shape
    K2, N = b.shape
    assert K == K2
    a = a.astype(mxu_dtype)
    b = b.astype(mxu_dtype)
    bias2 = jnp.asarray(bias, jnp.float32).reshape(1, N)
    return pl.pallas_call(
        functools.partial(_mm_kernel, relu=relu),
        out_shape=jax.ShapeDtypeStruct((M, N), jnp.float32),
        grid=(1,),
        in_specs=[pl.BlockSpec((M, K), lambda i: (0, 0)),
                  pl.BlockSpec((K, N), lambda i: (0, 0)),
                  pl.BlockSpec((1, N), lambda i: (0, 0))],
        out_specs=pl.BlockSpec((M, N), lambda i: (0, 0)),
    )(a, b, bias2)


def _conv_kernel(pat_ref, w_ref, b_ref, *rest, relu, inorm, has_res):
    """One sample's conv-as-GEMM: (HW,K)@(K,C) + bias [+res] [ReLU] [InstanceNorm]."""
    if has_res:
        res_ref, o_ref = rest
    else:
        (o_ref,) = rest
    acc = jnp.dot(pat_ref[...], w_ref[...], preferred_element_type=jnp.float32)
    acc = acc + b_ref[...]
    if has_res:
        acc = acc + res_ref[...]
    if relu:
        acc = jnp.maximum(acc, 0.0)
    if inorm:   # nn.InstanceNorm2d(affine=False, eps=1e-5): per-sample, per-channel over H*W
        mean = jnp.mean(acc, axis=0, keepdims=True)
        var = jnp.mean(jnp.square(acc - mean), axis=0, keepdims=True)
        acc = (acc - mean) * jax.lax.rsqrt(var + 1e-5)
    o_ref[...] = acc


def conv_gemm(pat3, w2, bias, res3=None, relu=False, inorm=False, mxu_dtype=MXU_DTYPE):
    """pat3: (G, HW, K); w2: (K, C); bias: (C,); res3: (G, HW, C) or None."""
    G, HW, K = pat3.shape
    Kw, C = w2.shape
    assert K == Kw
    args = [pat3.astype(mxu_dtype), w2.astype(mxu_dtype),
            jnp.asarray(bias, jnp.float32).reshape(1, C)]
    in_specs = [pl.BlockSpec((None, HW, K), lambda g: (g, 0, 0)),
                pl.BlockSpec((K, C), lambda g: (0, 0)),       # weights resident in VMEM
                pl.BlockSpec((1, C), lambda g: (0, 0))]
    if res3 is not None:
        args.append(res3.astype(jnp.float32))
        in_specs.append(pl.BlockSpec((None, HW, C), lambda g: (g, 0, 0)))
    return pl.pallas_call(
        functools.partial(_conv_kernel, relu=relu, inorm=inorm, has_res=res3 is not None),
        out_shape=jax.ShapeDtypeStruct((G, HW, C), jnp.float32),
        grid=(G,),
        in_specs=in_specs,
        out_specs=pl.BlockSpec((None, HW, C), lambda g: (g, 0, 0)),
        compiler_params=pltpu.CompilerParams(dimension_semantics=("parallel",)),
    )(*args)


def _lstm_kernel(xp_ref, whh_ref, bhh_ref, hseq_ref, c_out_ref, h_scr, c_scr, *, H):
    t = pl.program_id(0)

    @pl.when(t == 0)
    def _():
        h_scr[...] = jnp.zeros_like(h_scr)
        c_scr[...] = jnp.zeros_like(c_scr)

    gates = (xp_ref[...]
             + jnp.dot(h_scr[...], whh_ref[...], preferred_element_type=jnp.float32)
             + bhh_ref[...])
    i_g = _sigmoid(gates[:, 0:H])
    f_g = _sigmoid(gates[:, H:2 * H])
    g_g = jnp.tanh(gates[:, 2 * H:3 * H])
    o_g = _sigmoid(gates[:, 3 * H:4 * H])
    c = f_g * c_scr[...] + i_g * g_g
    h = o_g * jnp.tanh(c)
    h_scr[...] = h
    c_scr[...] = c
    hseq_ref[...] = h
    c_out_ref[...] = c


def _lstm_layer(xproj_tm, Whh, bhh, B, T, H):
    bhh2 = jnp.asarray(bhh, jnp.float32).reshape(1, 4 * H)
    hseq, c_last = pl.pallas_call(
        functools.partial(_lstm_kernel, H=H),
        out_shape=(jax.ShapeDtypeStruct((T, B, H), jnp.float32),
                   jax.ShapeDtypeStruct((B, H), jnp.float32)),
        grid=(T,),
        in_specs=[pl.BlockSpec((None, B, 4 * H), lambda t: (t, 0, 0)),
                  pl.BlockSpec((H, 4 * H), lambda t: (0, 0)),     # resident weights
                  pl.BlockSpec((1, 4 * H), lambda t: (0, 0))],
        out_specs=[pl.BlockSpec((None, B, H), lambda t: (t, 0, 0)),
                   pl.BlockSpec((B, H), lambda t: (0, 0))],
        scratch_shapes=[pltpu.VMEM((B, H), jnp.float32),
                        pltpu.VMEM((B, H), jnp.float32)],
        compiler_params=pltpu.CompilerParams(dimension_semantics=("arbitrary",)),
    )(xproj_tm, Whh.astype(jnp.float32), bhh2)
    return hseq, c_last


def _rhn_kernel(x_ref, s_ref, wxt_ref, r_ref, b_ref, o_ref, *, H, depth):
    xproj = jnp.dot(x_ref[...], wxt_ref[...], preferred_element_type=jnp.float32)  # (B, 2H)
    s = s_ref[...]
    for l in range(depth):
        pre = jnp.dot(s, r_ref[l], preferred_element_type=jnp.float32) + b_ref[l]
        if l == 0:
            pre = pre + xproj
        hl = jnp.tanh(pre[:, 0:H])
        tl = _sigmoid(pre[:, H:2 * H])
        s = hl * tl + s * (1.0 - tl)
    o_ref[...] = s


def rhn_forward(layers, x, s0):
    # TODO(synk): RHNCell source not provided; standard depth-3 recurrent-highway cell.
    B, din = x.shape
    H = s0.shape[1]
    depth = len(layers)
    wxt = jnp.concatenate([layers[0]["Wh"], layers[0]["Wt"]], axis=1)                 # (din, 2H)
    r = jnp.stack([jnp.concatenate([lp["Rh"], lp["Rt"]], axis=1) for lp in layers])   # (D, H, 2H)
    b = jnp.stack([jnp.concatenate([lp["bh"], lp["bt"]]).reshape(1, 2 * H)
                   for lp in layers])                                                 # (D, 1, 2H)
    return pl.pallas_call(
        functools.partial(_rhn_kernel, H=H, depth=depth),
        out_shape=jax.ShapeDtypeStruct((B, H), jnp.float32),
        grid=(1,),
        in_specs=[pl.BlockSpec((B, din), lambda i: (0, 0)),
                  pl.BlockSpec((B, H), lambda i: (0, 0)),
                  pl.BlockSpec((din, 2 * H), lambda i: (0, 0)),
                  pl.BlockSpec((depth, H, 2 * H), lambda i: (0, 0, 0)),
                  pl.BlockSpec((depth, 1, 2 * H), lambda i: (0, 0, 0))],
        out_specs=pl.BlockSpec((B, H), lambda i: (0, 0)),
    )(x, s0, wxt, r, b)


# ---------------------------------------------------------------------------
# Layer helpers (im2col glue + Pallas GEMM)
# ---------------------------------------------------------------------------

def conv2d(x, p, relu=False, padding="same", residual=None, inorm=False):
    """utils.Conv2d equivalent ('same' padding by default, bias), with fused
    bias / residual-add / ReLU / InstanceNorm epilogue.  x: NHWC."""
    w, b = p["w"], p["b"]
    kh, kw, cin, cout = w.shape
    G, H, W, _ = x.shape
    if padding == "same":
        ph, pw = kh // 2, kw // 2
        xp = jnp.pad(x, ((0, 0), (ph, ph), (pw, pw), (0, 0)))
        Ho, Wo = H, W
    else:  # 'valid'
        xp = x
        Ho, Wo = H - kh + 1, W - kw + 1
    patches = []
    for dy in range(kh):
        for dx in range(kw):
            patches.append(xp[:, dy:dy + Ho, dx:dx + Wo, :])
    pat3 = jnp.concatenate(patches, axis=-1).reshape(G, Ho * Wo, kh * kw * cin)
    res3 = None
    if residual is not None:
        res3 = residual.reshape(G, Ho * Wo, cout)
    out3 = conv_gemm(pat3, w.reshape(kh * kw * cin, cout), b, res3=res3,
                     relu=relu, inorm=inorm)
    return out3.reshape(G, Ho, Wo, cout)


def linear(x, p, relu=False):
    return matmul_bias_act(x, p["w"], p["b"], relu=relu)


def maxpool2(x):
    G, H, W, C = x.shape
    return x.reshape(G, H // 2, 2, W // 2, 2, C).max(axis=(2, 4))


# ---------------------------------------------------------------------------
# Sub-modules
# ---------------------------------------------------------------------------

def unary_forward(p, x):
    y = conv2d(x, p["conv1"], relu=True)
    # conv2 + residual(x) + ReLU + InstanceNorm fused in one kernel epilogue
    return conv2d(y, p["conv2"], residual=x, relu=True, inorm=True)


def binary_forward(p, x1, x2):
    x = jnp.concatenate((x1, x2), axis=-1)
    x = conv2d(x, p["conv1"], relu=True)
    res = x
    x = conv2d(x, p["conv2"], relu=True)
    return conv2d(x, p["conv3"], residual=res, relu=True)


def fork_forward(p, x1, x2):
    x = jnp.concatenate((x1, x2), axis=-1)
    x = conv2d(x, p["conv1"], relu=True)
    res = x
    x = conv2d(x, p["conv2"], relu=True)
    x = conv2d(x, p["conv3"], residual=res, relu=True)
    return conv2d(x, p["conv4"])


def cnnfeats_forward(p, x):
    y = conv2d(x, p["conv1"], relu=True)
    y = conv2d(y, p["conv2"], residual=x, relu=True)
    y = maxpool2(y)
    y = conv2d(y, p["conv3"], padding="valid")
    G = y.shape[0]
    y = jnp.transpose(y, (0, 3, 1, 2)).reshape(G, -1)    # PyTorch NCHW flatten order
    y = linear(y, p["fc1"], relu=True)
    return linear(y, p["fc2"])


def lstm_forward(layers, x):
    """2-layer batch_first LSTM (PyTorch gate order i, f, g, o)."""
    B, T, _ = x.shape
    seq_tm = jnp.transpose(x, (1, 0, 2)).astype(jnp.float32)   # time-major (T, B, din)
    c_last = None
    for lp in layers:
        H = lp["Whh"].shape[0]
        din = lp["Wih"].shape[0]
        # whole-sequence input projection as one matmul (f32 on the recurrent path)
        xproj = matmul_bias_act(seq_tm.reshape(T * B, din), lp["Wih"], lp["bih"],
                                mxu_dtype=jnp.float32)
        seq_tm, c_last = _lstm_layer(xproj.reshape(T, B, 4 * H), lp["Whh"], lp["bhh"], B, T, H)
    h_last = seq_tm[-1]
    return jnp.transpose(seq_tm, (1, 0, 2)), (h_last, c_last)


# ---------------------------------------------------------------------------
# Parameter init (deterministic, synthetic)
# ---------------------------------------------------------------------------

class KeyGen:
    def __init__(self, key):
        self._key = key

    def __call__(self):
        self._key, sub = jax.random.split(self._key)
        return sub


def _uniform(key, shape, scale):
    return jax.random.uniform(key, shape, jnp.float32, -scale, scale)


def init_conv(kg, kh, kw, cin, cout):
    s = 1.0 / np.sqrt(cin * kh * kw)
    return {"w": _uniform(kg(), (kh, kw, cin, cout), s), "b": _uniform(kg(), (cout,), s)}


def init_linear(kg, din, dout):
    s = 1.0 / np.sqrt(din)
    return {"w": _uniform(kg(), (din, dout), s), "b": _uniform(kg(), (dout,), s)}


def init_cnnfeats(kg, h, num_classes):
    return {
        "conv1": init_conv(kg, 3, 3, h, h),
        "conv2": init_conv(kg, 3, 3, h, h),
        "conv3": init_conv(kg, 3, 3, h, h // 2),
        "fc1": init_linear(kg, (h // 2) * 5 * 5, 1024),
        "fc2": init_linear(kg, 1024, num_classes),
    }


def init_unary(kg, h):
    return {"conv1": init_conv(kg, 3, 3, h, h), "conv2": init_conv(kg, 3, 3, h, h)}


def init_binary(kg, h):
    return {"conv1": init_conv(kg, 1, 1, 2 * h, h),
            "conv2": init_conv(kg, 3, 3, h, h),
            "conv3": init_conv(kg, 3, 3, h, h)}


def init_fork(kg, h):
    return {"conv1": init_conv(kg, 1, 1, 2 * h, 6 * h),
            "conv2": init_conv(kg, 3, 3, 6 * h, 6 * h),
            "conv3": init_conv(kg, 3, 3, 6 * h, 6 * h),
            "conv4": init_conv(kg, 1, 1, 6 * h, h)}


def init_lstm_layer(kg, din, h):
    s = 1.0 / np.sqrt(h)
    return {"Wih": _uniform(kg(), (din, 4 * h), s),
            "Whh": _uniform(kg(), (h, 4 * h), s),
            "bih": _uniform(kg(), (4 * h,), s),
            "bhh": _uniform(kg(), (4 * h,), s)}


def init_rhn_layer(kg, din, h, first):
    s = 1.0 / np.sqrt(h)
    p = {"Rh": _uniform(kg(), (h, h), s), "Rt": _uniform(kg(), (h, h), s),
         "bh": _uniform(kg(), (h,), s), "bt": _uniform(kg(), (h,), s)}
    if first:
        p["Wh"] = _uniform(kg(), (din, h), s)
        p["Wt"] = _uniform(kg(), (din, h), s)
    return p


def init_npi(key, embedDim, hGen, hExe, qVocab, numUnary, numBinary, aVocab):
    kg = KeyGen(key)
    return {
        "embed": jax.random.normal(kg(), (qVocab, embedDim), jnp.float32),
        "encoder": [init_lstm_layer(kg, embedDim, hGen), init_lstm_layer(kg, hGen, hGen)],
        # TODO(synk): ExecutionEngine.CNN source not provided; stand-in conv 3->hExe @14x14.
        "cnn": init_conv(kg, 3, 3, 3, hExe),
        "controllerCNN": init_cnnfeats(kg, hExe, hExe),
        "classifier": init_cnnfeats(kg, hExe, aVocab),
        "rhn": [init_rhn_layer(kg, hExe, hGen, l == 0) for l in range(3)],
        "proj": init_linear(kg, hGen, numUnary + numBinary + 3),
        "fork": init_fork(kg, hExe),
        "cells": ([None] * 3
                  + [init_unary(kg, hExe) for _ in range(numUnary)]
                  + [init_binary(kg, hExe) for _ in range(numBinary)]),
    }


# ---------------------------------------------------------------------------
# NPI forward (trainable=True, human=False path) -- jit-specialized per program
# ---------------------------------------------------------------------------

@functools.partial(jax.jit, static_argnums=(4, 5))
def npi_forward(params, q, imgs_raw, ans, prog_t, pLen):
    del ans                              # not used by the reference forward
    prog = np.asarray(prog_t)            # concrete program, like prog.data.cpu().numpy()
    B = q.shape[0]

    x = jnp.take(params["embed"], q, axis=0)                   # (B, qLen, embedDim)
    _pred, (_hEnc, cEnc) = lstm_forward(params["encoder"], x)   # cEnc: (B, hGen)

    imgs = conv2d(imgs_raw, params["cnn"], relu=True)           # (B, 14, 14, hExe)
    origImgs = imgs

    mem = [None] * B
    outImgs = [None] * B
    progPreds = []

    for i in range(pLen):
        imgEmbed = cnnfeats_forward(params["controllerCNN"], imgs)   # (B, hExe)
        state = rhn_forward(params["rhn"], imgEmbed, cEnc)           # (B, hGen)
        pPred = linear(state, params["proj"])                        # (B, numCells)
        progPreds.append(pPred)

        p = [int(v) for v in prog[:, i].ravel().tolist()]

        # Group batch rows by cell so each cell runs once on its sub-batch.
        groups = {}
        for j, pj in enumerate(p):
            if pj == 1:
                key = ("fork",)
            elif pj > 32:
                key = ("binary", pj, mem[j] is not None)
            elif pj < 3:
                key = ("iden",)
            else:
                key = ("unary", pj)
            groups.setdefault(key, []).append(j)

        results = [None] * B
        new_mem = list(mem)
        for key, idxs in groups.items():
            sub = jnp.concatenate([imgs[j:j + 1] for j in idxs], axis=0)
            kind = key[0]
            if kind == "fork":
                for j in idxs:
                    new_mem[j] = imgs[j:j + 1]
                osub = jnp.concatenate([origImgs[j:j + 1] for j in idxs], axis=0)
                out = fork_forward(params["fork"], sub, osub)
            elif kind == "binary":
                pj, has_mem = key[1], key[2]
                if has_mem:
                    memsub = jnp.concatenate([mem[j] for j in idxs], axis=0)
                    out = binary_forward(params["cells"][pj], memsub, sub)
                else:
                    out = sub
            elif kind == "iden":
                out = sub
            else:  # unary
                out = unary_forward(params["cells"][key[1]], sub)
            for k, j in enumerate(idxs):
                results[j] = out[k:k + 1]
        mem = new_mem
        imgs = jnp.concatenate(results, axis=0)

        for j in range(B):
            if outImgs[j] is None and (p[j] == 0 or i == pLen - 1):
                outImgs[j] = imgs[j]

    progPreds = jnp.stack(progPreds, axis=1)                   # (B, pLen, numCells)
    out = jnp.stack(outImgs, axis=0)                           # (B, 14, 14, hExe)
    a = cnnfeats_forward(params["classifier"], out)            # (B, aVocab)
    return progPreds, a


# ---------------------------------------------------------------------------
# Main
# ---------------------------------------------------------------------------

if __name__ == "__main__":
    embedDim, hGen, hExe = 16, 32, 8
    qLen, qVocab = 6, 20
    numUnary, numBinary = 30, 2      # binaries at cell indices 33, 34 (matches `pj > 32`)
    pLen, aVocab = 3, 10
    B = 2

    key = jax.random.PRNGKey(0)
    kparam, kq, kimg = jax.random.split(key, 3)
    params = init_npi(kparam, embedDim, hGen, hExe, qVocab, numUnary, numBinary, aVocab)

    q = jax.random.randint(kq, (B, qLen), 0, qVocab)
    imgs = jax.random.normal(kimg, (B, 14, 14, 3), jnp.float32)   # NHWC raw images
    # program covers: fork (1), binary w/ mem (33), Iden+early-out (0),
    # unary (3), binary w/o mem (34), Iden at last step (2).
    prog = np.array([[1, 33, 0], [3, 34, 2]], dtype=np.int32)
    prog_t = tuple(map(tuple, prog.tolist()))                     # static for jit
    ans = np.zeros((B,), dtype=np.int32)                          # unused in forward

    progPreds, a = npi_forward(params, q, imgs, ans, prog_t, pLen)
    (progPreds, a) = jax.block_until_ready((progPreds, a))

    assert progPreds.shape == (B, pLen, numUnary + numBinary + 3)
    assert a.shape == (B, aVocab)
    assert np.all(np.isfinite(np.asarray(progPreds))) and np.all(np.isfinite(np.asarray(a)))
    print("KERNEL_OK")
</pallas_src>

<mosaic_0001>
module attributes {stable_mosaic.version = 11 : i64} {
  func.func @_conv_kernel(%arg0: i32, %arg1: memref<1x196x27xbf16, #tpu.memory_space<vmem>>, %arg2: memref<27x8xbf16, #tpu.memory_space<vmem>>, %arg3: memref<1x8xf32, #tpu.memory_space<vmem>>, %arg4: memref<1x196x8xf32, #tpu.memory_space<vmem>>) attributes {dimension_semantics = [#tpu.dimension_semantics<parallel>], iteration_bounds = array<i64: 2>, scalar_prefetch = 0 : i64, scratch_operands = 0 : i64, tpu.core_type = #tpu.core_type<tc>, window_params = [{transform_indices = @transform_0, window_bounds = array<i64: 1, 196, 27>}, {pipeline_mode = #tpu.pipeline_mode<synchronous>, transform_indices = @transform_1, window_bounds = array<i64: 27, 8>}, {pipeline_mode = #tpu.pipeline_mode<synchronous>, transform_indices = @transform_2, window_bounds = array<i64: 1, 8>}, {transform_indices = @transform_3, window_bounds = array<i64: 1, 196, 8>}]} {
    %c0 = arith.constant 0 : index
    %c0_0 = arith.constant 0 : index
    %c0_1 = arith.constant 0 : index
    %0 = vector.load %arg1[%c0, %c0_0, %c0_1] : memref<1x196x27xbf16, #tpu.memory_space<vmem>>, vector<1x196x27xbf16>
    %1 = vector.shape_cast %0 : vector<1x196x27xbf16> to vector<196x27xbf16>
    %c0_2 = arith.constant 0 : index
    %c0_3 = arith.constant 0 : index
    %2 = vector.load %arg2[%c0_2, %c0_3] : memref<27x8xbf16, #tpu.memory_space<vmem>>, vector<27x8xbf16>
    %cst = arith.constant dense<0.000000e+00> : vector<196x8xf32>
    %3 = tpu.matmul %1, %2, %cst {dimension_numbers = #tpu.dot_dimension_numbers<[1], [0], [0], [1], [0, 0, 1, 1], [], []>} : vector<196x27xbf16>, vector<27x8xbf16>, vector<196x8xf32> -> vector<196x8xf32>
    %c0_4 = arith.constant 0 : index
    %c0_5 = arith.constant 0 : index
    %4 = vector.load %arg3[%c0_4, %c0_5] : memref<1x8xf32, #tpu.memory_space<vmem>>, vector<1x8xf32>
    %5 = vector.broadcast %4 : vector<1x8xf32> to vector<196x8xf32>
    %6 = arith.addf %3, %5 : vector<196x8xf32>
    %cst_6 = arith.constant 0.000000e+00 : f32
    %7 = vector.broadcast %cst_6 : f32 to vector<196x8xf32>
    %8 = arith.maximumf %6, %7 : vector<196x8xf32>
    %c0_7 = arith.constant 0 : index
    %c0_8 = arith.constant 0 : index
    %c0_9 = arith.constant 0 : index
    %9 = vector.load %arg4[%c0_7, %c0_8, %c0_9] : memref<1x196x8xf32, #tpu.memory_space<vmem>>, vector<1x196x8xf32>
    %10 = vector.shape_cast %9 : vector<1x196x8xf32> to vector<196x8xf32>
    %11 = vector.shape_cast %8 : vector<196x8xf32> to vector<1x196x8xf32>
    tpu.vector_store %arg4[%c0_7, %c0_8, %c0_9], %11 {strides = array<i32>} : memref<1x196x8xf32, #tpu.memory_space<vmem>>, vector<1x196x8xf32>,
    return
  }
  func.func @transform_0(%arg0: i32) -> (i32, i32, i32) {
    %c0_i32 = arith.constant 0 : i32
    %c0_i32_0 = arith.constant 0 : i32
    %c0_i32_1 = arith.constant 0 : i32
    return %arg0, %c0_i32, %c0_i32_0 : i32, i32, i32
  }
  func.func @transform_1(%arg0: i32) -> (i32, i32) {
    %c0_i32 = arith.constant 0 : i32
    %c0_i32_0 = arith.constant 0 : i32
    %c0_i32_1 = arith.constant 0 : i32
    return %c0_i32, %c0_i32_0 : i32, i32
  }
  func.func @transform_2(%arg0: i32) -> (i32, i32) {
    %c0_i32 = arith.constant 0 : i32
    %c0_i32_0 = arith.constant 0 : i32
    %c0_i32_1 = arith.constant 0 : i32
    return %c0_i32, %c0_i32_0 : i32, i32
  }
  func.func @transform_3(%arg0: i32) -> (i32, i32, i32) {
    %c0_i32 = arith.constant 0 : i32
    %c0_i32_0 = arith.constant 0 : i32
    %c0_i32_1 = arith.constant 0 : i32
    return %arg0, %c0_i32, %c0_i32_0 : i32, i32, i32
  }
}

module attributes {stable_mosaic.version = 11 : i64} {
  func.func @_conv_kernel(%arg0: i32, %arg1: memref<1x196x16xbf16, #tpu.memory_space<vmem>>, %arg2: memref<16x48xbf16, #tpu.memory_space<vmem>>, %arg3: memref<1x48xf32, #tpu.memory_space<vmem>>, %arg4: memref<1x196x48xf32, #tpu.memory_space<vmem>>) attributes {dimension_semantics = [#tpu.dimension_semantics<parallel>], iteration_bounds = array<i64: 1>, scalar_prefetch = 0 : i64, scratch_operands = 0 : i64, tpu.core_type = #tpu.core_type<tc>, window_params = [{transform_indices = @transform_0, window_bounds = array<i64: 1, 196, 16>}, {pipeline_mode = #tpu.pipeline_mode<synchronous>, transform_indices = @transform_1, window_bounds = array<i64: 16, 48>}, {pipeline_mode = #tpu.pipeline_mode<synchronous>, transform_indices = @transform_2, window_bounds = array<i64: 1, 48>}, {transform_indices = @transform_3, window_bounds = array<i64: 1, 196, 48>}]} {
    %c0 = arith.constant 0 : index
    %c0_0 = arith.constant 0 : index
    %c0_1 = arith.constant 0 : index
    %0 = vector.load %arg1[%c0, %c0_0, %c0_1] : memref<1x196x16xbf16, #tpu.memory_space<vmem>>, vector<1x196x16xbf16>
    %1 = vector.shape_cast %0 : vector<1x196x16xbf16> to vector<196x16xbf16>
    %c0_2 = arith.constant 0 : index
    %c0_3 = arith.constant 0 : index
    %2 = vector.load %arg2[%c0_2, %c0_3] : memref<16x48xbf16, #tpu.memory_space<vmem>>, vector<16x48xbf16>
    %cst = arith.constant dense<0.000000e+00> : vector<196x48xf32>
    %3 = tpu.matmul %1, %2, %cst {dimension_numbers = #tpu.dot_dimension_numbers<[1], [0], [0], [1], [0, 0, 1, 1], [], []>} : vector<196x16xbf16>, vector<16x48xbf16>, vector<196x48xf32> -> vector<196x48xf32>
    %c0_4 = arith.constant 0 : index
    %c0_5 = arith.constant 0 : index
    %4 = vector.load %arg3[%c0_4, %c0_5] : memref<1x48xf32, #tpu.memory_space<vmem>>, vector<1x48xf32>
    %5 = vector.broadcast %4 : vector<1x48xf32> to vector<196x48xf32>
    %6 = arith.addf %3, %5 : vector<196x48xf32>
    %cst_6 = arith.constant 0.000000e+00 : f32
    %7 = vector.broadcast %cst_6 : f32 to vector<196x48xf32>
    %8 = arith.maximumf %6, %7 : vector<196x48xf32>
    %c0_7 = arith.constant 0 : index
    %c0_8 = arith.constant 0 : index
    %c0_9 = arith.constant 0 : index
    %9 = vector.load %arg4[%c0_7, %c0_8, %c0_9] : memref<1x196x48xf32, #tpu.memory_space<vmem>>, vector<1x196x48xf32>
    %10 = vector.shape_cast %9 : vector<1x196x48xf32> to vector<196x48xf32>
    %11 = vector.shape_cast %8 : vector<196x48xf32> to vector<1x196x48xf32>
    tpu.vector_store %arg4[%c0_7, %c0_8, %c0_9], %11 {strides = array<i32>} : memref<1x196x48xf32, #tpu.memory_space<vmem>>, vector<1x196x48xf32>,
    return
  }
  func.func @transform_0(%arg0: i32) -> (i32, i32, i32) {
    %c0_i32 = arith.constant 0 : i32
    %c0_i32_0 = arith.constant 0 : i32
    %c0_i32_1 = arith.constant 0 : i32
    return %arg0, %c0_i32, %c0_i32_0 : i32, i32, i32
  }
  func.func @transform_1(%arg0: i32) -> (i32, i32) {
    %c0_i32 = arith.constant 0 : i32
    %c0_i32_0 = arith.constant 0 : i32
    %c0_i32_1 = arith.constant 0 : i32
    return %c0_i32, %c0_i32_0 : i32, i32
  }
  func.func @transform_2(%arg0: i32) -> (i32, i32) {
    %c0_i32 = arith.constant 0 : i32
    %c0_i32_0 = arith.constant 0 : i32
    %c0_i32_1 = arith.constant 0 : i32
    return %c0_i32, %c0_i32_0 : i32, i32
  }
  func.func @transform_3(%arg0: i32) -> (i32, i32, i32) {
    %c0_i32 = arith.constant 0 : i32
    %c0_i32_0 = arith.constant 0 : i32
    %c0_i32_1 = arith.constant 0 : i32
    return %arg0, %c0_i32, %c0_i32_0 : i32, i32, i32
  }
}

module attributes {stable_mosaic.version = 11 : i64} {
  func.func @_conv_kernel(%arg0: i32, %arg1: memref<1x196x432xbf16, #tpu.memory_space<vmem>>, %arg2: memref<432x48xbf16, #tpu.memory_space<vmem>>, %arg3: memref<1x48xf32, #tpu.memory_space<vmem>>, %arg4: memref<1x196x48xf32, #tpu.memory_space<vmem>>, %arg5: memref<1x196x48xf32, #tpu.memory_space<vmem>>) attributes {dimension_semantics = [#tpu.dimension_semantics<parallel>], iteration_bounds = array<i64: 1>, scalar_prefetch = 0 : i64, scratch_operands = 0 : i64, tpu.core_type = #tpu.core_type<tc>, window_params = [{transform_indices = @transform_0, window_bounds = array<i64: 1, 196, 432>}, {pipeline_mode = #tpu.pipeline_mode<synchronous>, transform_indices = @transform_1, window_bounds = array<i64: 432, 48>}, {pipeline_mode = #tpu.pipeline_mode<synchronous>, transform_indices = @transform_2, window_bounds = array<i64: 1, 48>}, {transform_indices = @transform_3, window_bounds = array<i64: 1, 196, 48>}, {transform_indices = @transform_4, window_bounds = array<i64: 1, 196, 48>}]} {
    %c0 = arith.constant 0 : index
    %c0_0 = arith.constant 0 : index
    %c0_1 = arith.constant 0 : index
    %0 = vector.load %arg1[%c0, %c0_0, %c0_1] : memref<1x196x432xbf16, #tpu.memory_space<vmem>>, vector<1x196x432xbf16>
    %1 = vector.shape_cast %0 : vector<1x196x432xbf16> to vector<196x432xbf16>
    %c0_2 = arith.constant 0 : index
    %c0_3 = arith.constant 0 : index
    %2 = vector.load %arg2[%c0_2, %c0_3] : memref<432x48xbf16, #tpu.memory_space<vmem>>, vector<432x48xbf16>
    %cst = arith.constant dense<0.000000e+00> : vector<196x48xf32>
    %3 = tpu.matmul %1, %2, %cst {dimension_numbers = #tpu.dot_dimension_numbers<[1], [0], [0], [1], [0, 0, 1, 1], [], []>} : vector<196x432xbf16>, vector<432x48xbf16>, vector<196x48xf32> -> vector<196x48xf32>
    %c0_4 = arith.constant 0 : index
    %c0_5 = arith.constant 0 : index
    %4 = vector.load %arg3[%c0_4, %c0_5] : memref<1x48xf32, #tpu.memory_space<vmem>>, vector<1x48xf32>
    %5 = vector.broadcast %4 : vector<1x48xf32> to vector<196x48xf32>
    %6 = arith.addf %3, %5 : vector<196x48xf32>
    %c0_6 = arith.constant 0 : index
    %c0_7 = arith.constant 0 : index
    %c0_8 = arith.constant 0 : index
    %7 = vector.load %arg4[%c0_6, %c0_7, %c0_8] : memref<1x196x48xf32, #tpu.memory_space<vmem>>, vector<1x196x48xf32>
    %8 = vector.shape_cast %7 : vector<1x196x48xf32> to vector<196x48xf32>
    %9 = arith.addf %6, %8 : vector<196x48xf32>
    %cst_9 = arith.constant 0.000000e+00 : f32
    %10 = vector.broadcast %cst_9 : f32 to vector<196x48xf32>
    %11 = arith.maximumf %9, %10 : vector<196x48xf32>
    %c0_10 = arith.constant 0 : index
    %c0_11 = arith.constant 0 : index
    %c0_12 = arith.constant 0 : index
    %12 = vector.load %arg5[%c0_10, %c0_11, %c0_12] : memref<1x196x48xf32, #tpu.memory_space<vmem>>, vector<1x196x48xf32>
    %13 = vector.shape_cast %12 : vector<1x196x48xf32> to vector<196x48xf32>
    %14 = vector.shape_cast %11 : vector<196x48xf32> to vector<1x196x48xf32>
    tpu.vector_store %arg5[%c0_10, %c0_11, %c0_12], %14 {strides = array<i32>} : memref<1x196x48xf32, #tpu.memory_space<vmem>>, vector<1x196x48xf32>,
    return
  }
  func.func @transform_0(%arg0: i32) -> (i32, i32, i32) {
    %c0_i32 = arith.constant 0 : i32
    %c0_i32_0 = arith.constant 0 : i32
    %c0_i32_1 = arith.constant 0 : i32
    return %arg0, %c0_i32, %c0_i32_0 : i32, i32, i32
  }
  func.func @transform_1(%arg0: i32) -> (i32, i32) {
    %c0_i32 = arith.constant 0 : i32
    %c0_i32_0 = arith.constant 0 : i32
    %c0_i32_1 = arith.constant 0 : i32
    return %c0_i32, %c0_i32_0 : i32, i32
  }
  func.func @transform_2(%arg0: i32) -> (i32, i32) {
    %c0_i32 = arith.constant 0 : i32
    %c0_i32_0 = arith.constant 0 : i32
    %c0_i32_1 = arith.constant 0 : i32
    return %c0_i32, %c0_i32_0 : i32, i32
  }
  func.func @transform_3(%arg0: i32) -> (i32, i32, i32) {
    %c0_i32 = arith.constant 0 : i32
    %c0_i32_0 = arith.constant 0 : i32
    %c0_i32_1 = arith.constant 0 : i32
    return %arg0, %c0_i32, %c0_i32_0 : i32, i32, i32
  }
  func.func @transform_4(%arg0: i32) -> (i32, i32, i32) {
    %c0_i32 = arith.constant 0 : i32
    %c0_i32_0 = arith.constant 0 : i32
    %c0_i32_1 = arith.constant 0 : i32
    return %arg0, %c0_i32, %c0_i32_0 : i32, i32, i32
  }
}

module attributes {stable_mosaic.version = 11 : i64} {
  func.func @_conv_kernel(%arg0: i32, %arg1: memref<1x196x432xbf16, #tpu.memory_space<vmem>>, %arg2: memref<432x48xbf16, #tpu.memory_space<vmem>>, %arg3: memref<1x48xf32, #tpu.memory_space<vmem>>, %arg4: memref<1x196x48xf32, #tpu.memory_space<vmem>>) attributes {dimension_semantics = [#tpu.dimension_semantics<parallel>], iteration_bounds = array<i64: 1>, scalar_prefetch = 0 : i64, scratch_operands = 0 : i64, tpu.core_type = #tpu.core_type<tc>, window_params = [{transform_indices = @transform_0, window_bounds = array<i64: 1, 196, 432>}, {pipeline_mode = #tpu.pipeline_mode<synchronous>, transform_indices = @transform_1, window_bounds = array<i64: 432, 48>}, {pipeline_mode = #tpu.pipeline_mode<synchronous>, transform_indices = @transform_2, window_bounds = array<i64: 1, 48>}, {transform_indices = @transform_3, window_bounds = array<i64: 1, 196, 48>}]} {
    %c0 = arith.constant 0 : index
    %c0_0 = arith.constant 0 : index
    %c0_1 = arith.constant 0 : index
    %0 = vector.load %arg1[%c0, %c0_0, %c0_1] : memref<1x196x432xbf16, #tpu.memory_space<vmem>>, vector<1x196x432xbf16>
    %1 = vector.shape_cast %0 : vector<1x196x432xbf16> to vector<196x432xbf16>
    %c0_2 = arith.constant 0 : index
    %c0_3 = arith.constant 0 : index
    %2 = vector.load %arg2[%c0_2, %c0_3] : memref<432x48xbf16, #tpu.memory_space<vmem>>, vector<432x48xbf16>
    %cst = arith.constant dense<0.000000e+00> : vector<196x48xf32>
    %3 = tpu.matmul %1, %2, %cst {dimension_numbers = #tpu.dot_dimension_numbers<[1], [0], [0], [1], [0, 0, 1, 1], [], []>} : vector<196x432xbf16>, vector<432x48xbf16>, vector<196x48xf32> -> vector<196x48xf32>
    %c0_4 = arith.constant 0 : index
    %c0_5 = arith.constant 0 : index
    %4 = vector.load %arg3[%c0_4, %c0_5] : memref<1x48xf32, #tpu.memory_space<vmem>>, vector<1x48xf32>
    %5 = vector.broadcast %4 : vector<1x48xf32> to vector<196x48xf32>
    %6 = arith.addf %3, %5 : vector<196x48xf32>
    %cst_6 = arith.constant 0.000000e+00 : f32
    %7 = vector.broadcast %cst_6 : f32 to vector<196x48xf32>
    %8 = arith.maximumf %6, %7 : vector<196x48xf32>
    %c0_7 = arith.constant 0 : index
    %c0_8 = arith.constant 0 : index
    %c0_9 = arith.constant 0 : index
    %9 = vector.load %arg4[%c0_7, %c0_8, %c0_9] : memref<1x196x48xf32, #tpu.memory_space<vmem>>, vector<1x196x48xf32>
    %10 = vector.shape_cast %9 : vector<1x196x48xf32> to vector<196x48xf32>
    %11 = vector.shape_cast %8 : vector<196x48xf32> to vector<1x196x48xf32>
    tpu.vector_store %arg4[%c0_7, %c0_8, %c0_9], %11 {strides = array<i32>} : memref<1x196x48xf32, #tpu.memory_space<vmem>>, vector<1x196x48xf32>,
    return
  }
  func.func @transform_0(%arg0: i32) -> (i32, i32, i32) {
    %c0_i32 = arith.constant 0 : i32
    %c0_i32_0 = arith.constant 0 : i32
    %c0_i32_1 = arith.constant 0 : i32
    return %arg0, %c0_i32, %c0_i32_0 : i32, i32, i32
  }
  func.func @transform_1(%arg0: i32) -> (i32, i32) {
    %c0_i32 = arith.constant 0 : i32
    %c0_i32_0 = arith.constant 0 : i32
    %c0_i32_1 = arith.constant 0 : i32
    return %c0_i32, %c0_i32_0 : i32, i32
  }
  func.func @transform_2(%arg0: i32) -> (i32, i32) {
    %c0_i32 = arith.constant 0 : i32
    %c0_i32_0 = arith.constant 0 : i32
    %c0_i32_1 = arith.constant 0 : i32
    return %c0_i32, %c0_i32_0 : i32, i32
  }
  func.func @transform_3(%arg0: i32) -> (i32, i32, i32) {
    %c0_i32 = arith.constant 0 : i32
    %c0_i32_0 = arith.constant 0 : i32
    %c0_i32_1 = arith.constant 0 : i32
    return %arg0, %c0_i32, %c0_i32_0 : i32, i32, i32
  }
}

module attributes {stable_mosaic.version = 11 : i64} {
  func.func @_conv_kernel(%arg0: i32, %arg1: memref<1x196x48xbf16, #tpu.memory_space<vmem>>, %arg2: memref<48x8xbf16, #tpu.memory_space<vmem>>, %arg3: memref<1x8xf32, #tpu.memory_space<vmem>>, %arg4: memref<1x196x8xf32, #tpu.memory_space<vmem>>) attributes {dimension_semantics = [#tpu.dimension_semantics<parallel>], iteration_bounds = array<i64: 1>, scalar_prefetch = 0 : i64, scratch_operands = 0 : i64, tpu.core_type = #tpu.core_type<tc>, window_params = [{transform_indices = @transform_0, window_bounds = array<i64: 1, 196, 48>}, {pipeline_mode = #tpu.pipeline_mode<synchronous>, transform_indices = @transform_1, window_bounds = array<i64: 48, 8>}, {pipeline_mode = #tpu.pipeline_mode<synchronous>, transform_indices = @transform_2, window_bounds = array<i64: 1, 8>}, {transform_indices = @transform_3, window_bounds = array<i64: 1, 196, 8>}]} {
    %c0 = arith.constant 0 : index
    %c0_0 = arith.constant 0 : index
    %c0_1 = arith.constant 0 : index
    %0 = vector.load %arg1[%c0, %c0_0, %c0_1] : memref<1x196x48xbf16, #tpu.memory_space<vmem>>, vector<1x196x48xbf16>
    %1 = vector.shape_cast %0 : vector<1x196x48xbf16> to vector<196x48xbf16>
    %c0_2 = arith.constant 0 : index
    %c0_3 = arith.constant 0 : index
    %2 = vector.load %arg2[%c0_2, %c0_3] : memref<48x8xbf16, #tpu.memory_space<vmem>>, vector<48x8xbf16>
    %cst = arith.constant dense<0.000000e+00> : vector<196x8xf32>
    %3 = tpu.matmul %1, %2, %cst {dimension_numbers = #tpu.dot_dimension_numbers<[1], [0], [0], [1], [0, 0, 1, 1], [], []>} : vector<196x48xbf16>, vector<48x8xbf16>, vector<196x8xf32> -> vector<196x8xf32>
    %c0_4 = arith.constant 0 : index
    %c0_5 = arith.constant 0 : index
    %4 = vector.load %arg3[%c0_4, %c0_5] : memref<1x8xf32, #tpu.memory_space<vmem>>, vector<1x8xf32>
    %5 = vector.broadcast %4 : vector<1x8xf32> to vector<196x8xf32>
    %6 = arith.addf %3, %5 : vector<196x8xf32>
    %c0_6 = arith.constant 0 : index
    %c0_7 = arith.constant 0 : index
    %c0_8 = arith.constant 0 : index
    %7 = vector.load %arg4[%c0_6, %c0_7, %c0_8] : memref<1x196x8xf32, #tpu.memory_space<vmem>>, vector<1x196x8xf32>
    %8 = vector.shape_cast %7 : vector<1x196x8xf32> to vector<196x8xf32>
    %9 = vector.shape_cast %6 : vector<196x8xf32> to vector<1x196x8xf32>
    tpu.vector_store %arg4[%c0_6, %c0_7, %c0_8], %9 {strides = array<i32>} : memref<1x196x8xf32, #tpu.memory_space<vmem>>, vector<1x196x8xf32>,
    return
  }
  func.func @transform_0(%arg0: i32) -> (i32, i32, i32) {
    %c0_i32 = arith.constant 0 : i32
    %c0_i32_0 = arith.constant 0 : i32
    %c0_i32_1 = arith.constant 0 : i32
    return %arg0, %c0_i32, %c0_i32_0 : i32, i32, i32
  }
  func.func @transform_1(%arg0: i32) -> (i32, i32) {
    %c0_i32 = arith.constant 0 : i32
    %c0_i32_0 = arith.constant 0 : i32
    %c0_i32_1 = arith.constant 0 : i32
    return %c0_i32, %c0_i32_0 : i32, i32
  }
  func.func @transform_2(%arg0: i32) -> (i32, i32) {
    %c0_i32 = arith.constant 0 : i32
    %c0_i32_0 = arith.constant 0 : i32
    %c0_i32_1 = arith.constant 0 : i32
    return %c0_i32, %c0_i32_0 : i32, i32
  }
  func.func @transform_3(%arg0: i32) -> (i32, i32, i32) {
    %c0_i32 = arith.constant 0 : i32
    %c0_i32_0 = arith.constant 0 : i32
    %c0_i32_1 = arith.constant 0 : i32
    return %arg0, %c0_i32, %c0_i32_0 : i32, i32, i32
  }
}

module attributes {stable_mosaic.version = 11 : i64} {
  func.func @_conv_kernel(%arg0: i32, %arg1: memref<1x196x16xbf16, #tpu.memory_space<vmem>>, %arg2: memref<16x8xbf16, #tpu.memory_space<vmem>>, %arg3: memref<1x8xf32, #tpu.memory_space<vmem>>, %arg4: memref<1x196x8xf32, #tpu.memory_space<vmem>>) attributes {dimension_semantics = [#tpu.dimension_semantics<parallel>], iteration_bounds = array<i64: 1>, scalar_prefetch = 0 : i64, scratch_operands = 0 : i64, tpu.core_type = #tpu.core_type<tc>, window_params = [{transform_indices = @transform_0, window_bounds = array<i64: 1, 196, 16>}, {pipeline_mode = #tpu.pipeline_mode<synchronous>, transform_indices = @transform_1, window_bounds = array<i64: 16, 8>}, {pipeline_mode = #tpu.pipeline_mode<synchronous>, transform_indices = @transform_2, window_bounds = array<i64: 1, 8>}, {transform_indices = @transform_3, window_bounds = array<i64: 1, 196, 8>}]} {
    %c0 = arith.constant 0 : index
    %c0_0 = arith.constant 0 : index
    %c0_1 = arith.constant 0 : index
    %0 = vector.load %arg1[%c0, %c0_0, %c0_1] : memref<1x196x16xbf16, #tpu.memory_space<vmem>>, vector<1x196x16xbf16>
    %1 = vector.shape_cast %0 : vector<1x196x16xbf16> to vector<196x16xbf16>
    %c0_2 = arith.constant 0 : index
    %c0_3 = arith.constant 0 : index
    %2 = vector.load %arg2[%c0_2, %c0_3] : memref<16x8xbf16, #tpu.memory_space<vmem>>, vector<16x8xbf16>
    %cst = arith.constant dense<0.000000e+00> : vector<196x8xf32>
    %3 = tpu.matmul %1, %2, %cst {dimension_numbers = #tpu.dot_dimension_numbers<[1], [0], [0], [1], [0, 0, 1, 1], [], []>} : vector<196x16xbf16>, vector<16x8xbf16>, vector<196x8xf32> -> vector<196x8xf32>
    %c0_4 = arith.constant 0 : index
    %c0_5 = arith.constant 0 : index
    %4 = vector.load %arg3[%c0_4, %c0_5] : memref<1x8xf32, #tpu.memory_space<vmem>>, vector<1x8xf32>
    %5 = vector.broadcast %4 : vector<1x8xf32> to vector<196x8xf32>
    %6 = arith.addf %3, %5 : vector<196x8xf32>
    %cst_6 = arith.constant 0.000000e+00 : f32
    %7 = vector.broadcast %cst_6 : f32 to vector<196x8xf32>
    %8 = arith.maximumf %6, %7 : vector<196x8xf32>
    %c0_7 = arith.constant 0 : index
    %c0_8 = arith.constant 0 : index
    %c0_9 = arith.constant 0 : index
    %9 = vector.load %arg4[%c0_7, %c0_8, %c0_9] : memref<1x196x8xf32, #tpu.memory_space<vmem>>, vector<1x196x8xf32>
    %10 = vector.shape_cast %9 : vector<1x196x8xf32> to vector<196x8xf32>
    %11 = vector.shape_cast %8 : vector<196x8xf32> to vector<1x196x8xf32>
    tpu.vector_store %arg4[%c0_7, %c0_8, %c0_9], %11 {strides = array<i32>} : memref<1x196x8xf32, #tpu.memory_space<vmem>>, vector<1x196x8xf32>,
    return
  }
  func.func @transform_0(%arg0: i32) -> (i32, i32, i32) {
    %c0_i32 = arith.constant 0 : i32
    %c0_i32_0 = arith.constant 0 : i32
    %c0_i32_1 = arith.constant 0 : i32
    return %arg0, %c0_i32, %c0_i32_0 : i32, i32, i32
  }
  func.func @transform_1(%arg0: i32) -> (i32, i32) {
    %c0_i32 = arith.constant 0 : i32
    %c0_i32_0 = arith.constant 0 : i32
    %c0_i32_1 = arith.constant 0 : i32
    return %c0_i32, %c0_i32_0 : i32, i32
  }
  func.func @transform_2(%arg0: i32) -> (i32, i32) {
    %c0_i32 = arith.constant 0 : i32
    %c0_i32_0 = arith.constant 0 : i32
    %c0_i32_1 = arith.constant 0 : i32
    return %c0_i32, %c0_i32_0 : i32, i32
  }
  func.func @transform_3(%arg0: i32) -> (i32, i32, i32) {
    %c0_i32 = arith.constant 0 : i32
    %c0_i32_0 = arith.constant 0 : i32
    %c0_i32_1 = arith.constant 0 : i32
    return %arg0, %c0_i32, %c0_i32_0 : i32, i32, i32
  }
}

module attributes {stable_mosaic.version = 11 : i64} {
  func.func @_conv_kernel(%arg0: i32, %arg1: memref<1x196x72xbf16, #tpu.memory_space<vmem>>, %arg2: memref<72x8xbf16, #tpu.memory_space<vmem>>, %arg3: memref<1x8xf32, #tpu.memory_space<vmem>>, %arg4: memref<1x196x8xf32, #tpu.memory_space<vmem>>, %arg5: memref<1x196x8xf32, #tpu.memory_space<vmem>>) attributes {dimension_semantics = [#tpu.dimension_semantics<parallel>], iteration_bounds = array<i64: 1>, scalar_prefetch = 0 : i64, scratch_operands = 0 : i64, tpu.core_type = #tpu.core_type<tc>, window_params = [{transform_indices = @transform_0, window_bounds = array<i64: 1, 196, 72>}, {pipeline_mode = #tpu.pipeline_mode<synchronous>, transform_indices = @transform_1, window_bounds = array<i64: 72, 8>}, {pipeline_mode = #tpu.pipeline_mode<synchronous>, transform_indices = @transform_2, window_bounds = array<i64: 1, 8>}, {transform_indices = @transform_3, window_bounds = array<i64: 1, 196, 8>}, {transform_indices = @transform_4, window_bounds = array<i64: 1, 196, 8>}]} {
    %c0 = arith.constant 0 : index
    %c0_0 = arith.constant 0 : index
    %c0_1 = arith.constant 0 : index
    %0 = vector.load %arg1[%c0, %c0_0, %c0_1] : memref<1x196x72xbf16, #tpu.memory_space<vmem>>, vector<1x196x72xbf16>
    %1 = vector.shape_cast %0 : vector<1x196x72xbf16> to vector<196x72xbf16>
    %c0_2 = arith.constant 0 : index
    %c0_3 = arith.constant 0 : index
    %2 = vector.load %arg2[%c0_2, %c0_3] : memref<72x8xbf16, #tpu.memory_space<vmem>>, vector<72x8xbf16>
    %cst = arith.constant dense<0.000000e+00> : vector<196x8xf32>
    %3 = tpu.matmul %1, %2, %cst {dimension_numbers = #tpu.dot_dimension_numbers<[1], [0], [0], [1], [0, 0, 1, 1], [], []>} : vector<196x72xbf16>, vector<72x8xbf16>, vector<196x8xf32> -> vector<196x8xf32>
    %c0_4 = arith.constant 0 : index
    %c0_5 = arith.constant 0 : index
    %4 = vector.load %arg3[%c0_4, %c0_5] : memref<1x8xf32, #tpu.memory_space<vmem>>, vector<1x8xf32>
    %5 = vector.broadcast %4 : vector<1x8xf32> to vector<196x8xf32>
    %6 = arith.addf %3, %5 : vector<196x8xf32>
    %c0_6 = arith.constant 0 : index
    %c0_7 = arith.constant 0 : index
    %c0_8 = arith.constant 0 : index
    %7 = vector.load %arg4[%c0_6, %c0_7, %c0_8] : memref<1x196x8xf32, #tpu.memory_space<vmem>>, vector<1x196x8xf32>
    %8 = vector.shape_cast %7 : vector<1x196x8xf32> to vector<196x8xf32>
    %9 = arith.addf %6, %8 : vector<196x8xf32>
    %cst_9 = arith.constant 0.000000e+00 : f32
    %10 = vector.broadcast %cst_9 : f32 to vector<196x8xf32>
    %11 = arith.maximumf %9, %10 : vector<196x8xf32>
    %c0_10 = arith.constant 0 : index
    %c0_11 = arith.constant 0 : index
    %c0_12 = arith.constant 0 : index
    %12 = vector.load %arg5[%c0_10, %c0_11, %c0_12] : memref<1x196x8xf32, #tpu.memory_space<vmem>>, vector<1x196x8xf32>
    %13 = vector.shape_cast %12 : vector<1x196x8xf32> to vector<196x8xf32>
    %14 = vector.shape_cast %11 : vector<196x8xf32> to vector<1x196x8xf32>
    tpu.vector_store %arg5[%c0_10, %c0_11, %c0_12], %14 {strides = array<i32>} : memref<1x196x8xf32, #tpu.memory_space<vmem>>, vector<1x196x8xf32>,
    return
  }
  func.func @transform_0(%arg0: i32) -> (i32, i32, i32) {
    %c0_i32 = arith.constant 0 : i32
    %c0_i32_0 = arith.constant 0 : i32
    %c0_i32_1 = arith.constant 0 : i32
    return %arg0, %c0_i32, %c0_i32_0 : i32, i32, i32
  }
  func.func @transform_1(%arg0: i32) -> (i32, i32) {
    %c0_i32 = arith.constant 0 : i32
    %c0_i32_0 = arith.constant 0 : i32
    %c0_i32_1 = arith.constant 0 : i32
    return %c0_i32, %c0_i32_0 : i32, i32
  }
  func.func @transform_2(%arg0: i32) -> (i32, i32) {
    %c0_i32 = arith.constant 0 : i32
    %c0_i32_0 = arith.constant 0 : i32
    %c0_i32_1 = arith.constant 0 : i32
    return %c0_i32, %c0_i32_0 : i32, i32
  }
  func.func @transform_3(%arg0: i32) -> (i32, i32, i32) {
    %c0_i32 = arith.constant 0 : i32
    %c0_i32_0 = arith.constant 0 : i32
    %c0_i32_1 = arith.constant 0 : i32
    return %arg0, %c0_i32, %c0_i32_0 : i32, i32, i32
  }
  func.func @transform_4(%arg0: i32) -> (i32, i32, i32) {
    %c0_i32 = arith.constant 0 : i32
    %c0_i32_0 = arith.constant 0 : i32
    %c0_i32_1 = arith.constant 0 : i32
    return %arg0, %c0_i32, %c0_i32_0 : i32, i32, i32
  }
}

module attributes {stable_mosaic.version = 11 : i64} {
  func.func @_conv_kernel(%arg0: i32, %arg1: memref<1x196x72xbf16, #tpu.memory_space<vmem>>, %arg2: memref<72x8xbf16, #tpu.memory_space<vmem>>, %arg3: memref<1x8xf32, #tpu.memory_space<vmem>>, %arg4: memref<1x196x8xf32, #tpu.memory_space<vmem>>) attributes {dimension_semantics = [#tpu.dimension_semantics<parallel>], iteration_bounds = array<i64: 1>, scalar_prefetch = 0 : i64, scratch_operands = 0 : i64, tpu.core_type = #tpu.core_type<tc>, window_params = [{transform_indices = @transform_0, window_bounds = array<i64: 1, 196, 72>}, {pipeline_mode = #tpu.pipeline_mode<synchronous>, transform_indices = @transform_1, window_bounds = array<i64: 72, 8>}, {pipeline_mode = #tpu.pipeline_mode<synchronous>, transform_indices = @transform_2, window_bounds = array<i64: 1, 8>}, {transform_indices = @transform_3, window_bounds = array<i64: 1, 196, 8>}]} {
    %c0 = arith.constant 0 : index
    %c0_0 = arith.constant 0 : index
    %c0_1 = arith.constant 0 : index
    %0 = vector.load %arg1[%c0, %c0_0, %c0_1] : memref<1x196x72xbf16, #tpu.memory_space<vmem>>, vector<1x196x72xbf16>
    %1 = vector.shape_cast %0 : vector<1x196x72xbf16> to vector<196x72xbf16>
    %c0_2 = arith.constant 0 : index
    %c0_3 = arith.constant 0 : index
    %2 = vector.load %arg2[%c0_2, %c0_3] : memref<72x8xbf16, #tpu.memory_space<vmem>>, vector<72x8xbf16>
    %cst = arith.constant dense<0.000000e+00> : vector<196x8xf32>
    %3 = tpu.matmul %1, %2, %cst {dimension_numbers = #tpu.dot_dimension_numbers<[1], [0], [0], [1], [0, 0, 1, 1], [], []>} : vector<196x72xbf16>, vector<72x8xbf16>, vector<196x8xf32> -> vector<196x8xf32>
    %c0_4 = arith.constant 0 : index
    %c0_5 = arith.constant 0 : index
    %4 = vector.load %arg3[%c0_4, %c0_5] : memref<1x8xf32, #tpu.memory_space<vmem>>, vector<1x8xf32>
    %5 = vector.broadcast %4 : vector<1x8xf32> to vector<196x8xf32>
    %6 = arith.addf %3, %5 : vector<196x8xf32>
    %cst_6 = arith.constant 0.000000e+00 : f32
    %7 = vector.broadcast %cst_6 : f32 to vector<196x8xf32>
    %8 = arith.maximumf %6, %7 : vector<196x8xf32>
    %c0_7 = arith.constant 0 : index
    %c0_8 = arith.constant 0 : index
    %c0_9 = arith.constant 0 : index
    %9 = vector.load %arg4[%c0_7, %c0_8, %c0_9] : memref<1x196x8xf32, #tpu.memory_space<vmem>>, vector<1x196x8xf32>
    %10 = vector.shape_cast %9 : vector<1x196x8xf32> to vector<196x8xf32>
    %11 = vector.shape_cast %8 : vector<196x8xf32> to vector<1x196x8xf32>
    tpu.vector_store %arg4[%c0_7, %c0_8, %c0_9], %11 {strides = array<i32>} : memref<1x196x8xf32, #tpu.memory_space<vmem>>, vector<1x196x8xf32>,
    return
  }
  func.func @transform_0(%arg0: i32) -> (i32, i32, i32) {
    %c0_i32 = arith.constant 0 : i32
    %c0_i32_0 = arith.constant 0 : i32
    %c0_i32_1 = arith.constant 0 : i32
    return %arg0, %c0_i32, %c0_i32_0 : i32, i32, i32
  }
  func.func @transform_1(%arg0: i32) -> (i32, i32) {
    %c0_i32 = arith.constant 0 : i32
    %c0_i32_0 = arith.constant 0 : i32
    %c0_i32_1 = arith.constant 0 : i32
    return %c0_i32, %c0_i32_0 : i32, i32
  }
  func.func @transform_2(%arg0: i32) -> (i32, i32) {
    %c0_i32 = arith.constant 0 : i32
    %c0_i32_0 = arith.constant 0 : i32
    %c0_i32_1 = arith.constant 0 : i32
    return %c0_i32, %c0_i32_0 : i32, i32
  }
  func.func @transform_3(%arg0: i32) -> (i32, i32, i32) {
    %c0_i32 = arith.constant 0 : i32
    %c0_i32_0 = arith.constant 0 : i32
    %c0_i32_1 = arith.constant 0 : i32
    return %arg0, %c0_i32, %c0_i32_0 : i32, i32, i32
  }
}

module attributes {stable_mosaic.version = 11 : i64} {
  func.func @_conv_kernel(%arg0: i32, %arg1: memref<1x196x72xbf16, #tpu.memory_space<vmem>>, %arg2: memref<72x8xbf16, #tpu.memory_space<vmem>>, %arg3: memref<1x8xf32, #tpu.memory_space<vmem>>, %arg4: memref<1x196x8xf32, #tpu.memory_space<vmem>>, %arg5: memref<1x196x8xf32, #tpu.memory_space<vmem>>) attributes {dimension_semantics = [#tpu.dimension_semantics<parallel>], iteration_bounds = array<i64: 1>, scalar_prefetch = 0 : i64, scratch_operands = 0 : i64, tpu.core_type = #tpu.core_type<tc>, window_params = [{transform_indices = @transform_0, window_bounds = array<i64: 1, 196, 72>}, {pipeline_mode = #tpu.pipeline_mode<synchronous>, transform_indices = @transform_1, window_bounds = array<i64: 72, 8>}, {pipeline_mode = #tpu.pipeline_mode<synchronous>, transform_indices = @transform_2, window_bounds = array<i64: 1, 8>}, {transform_indices = @transform_3, window_bounds = array<i64: 1, 196, 8>}, {transform_indices = @transform_4, window_bounds = array<i64: 1, 196, 8>}]} {
    %c0 = arith.constant 0 : index
    %c0_0 = arith.constant 0 : index
    %c0_1 = arith.constant 0 : index
    %0 = vector.load %arg1[%c0, %c0_0, %c0_1] : memref<1x196x72xbf16, #tpu.memory_space<vmem>>, vector<1x196x72xbf16>
    %1 = vector.shape_cast %0 : vector<1x196x72xbf16> to vector<196x72xbf16>
    %c0_2 = arith.constant 0 : index
    %c0_3 = arith.constant 0 : index
    %2 = vector.load %arg2[%c0_2, %c0_3] : memref<72x8xbf16, #tpu.memory_space<vmem>>, vector<72x8xbf16>
    %cst = arith.constant dense<0.000000e+00> : vector<196x8xf32>
    %3 = tpu.matmul %1, %2, %cst {dimension_numbers = #tpu.dot_dimension_numbers<[1], [0], [0], [1], [0, 0, 1, 1], [], []>} : vector<196x72xbf16>, vector<72x8xbf16>, vector<196x8xf32> -> vector<196x8xf32>
    %c0_4 = arith.constant 0 : index
    %c0_5 = arith.constant 0 : index
    %4 = vector.load %arg3[%c0_4, %c0_5] : memref<1x8xf32, #tpu.memory_space<vmem>>, vector<1x8xf32>
    %5 = vector.broadcast %4 : vector<1x8xf32> to vector<196x8xf32>
    %6 = arith.addf %3, %5 : vector<196x8xf32>
    %c0_6 = arith.constant 0 : index
    %c0_7 = arith.constant 0 : index
    %c0_8 = arith.constant 0 : index
    %7 = vector.load %arg4[%c0_6, %c0_7, %c0_8] : memref<1x196x8xf32, #tpu.memory_space<vmem>>, vector<1x196x8xf32>
    %8 = vector.shape_cast %7 : vector<1x196x8xf32> to vector<196x8xf32>
    %9 = arith.addf %6, %8 : vector<196x8xf32>
    %cst_9 = arith.constant 0.000000e+00 : f32
    %10 = vector.broadcast %cst_9 : f32 to vector<196x8xf32>
    %11 = arith.maximumf %9, %10 : vector<196x8xf32>
    %cst_10 = arith.constant dense<0.000000e+00> : vector<8xf32>
    %12 = vector.multi_reduction <add>, %11, %cst_10 [0] : vector<196x8xf32> to vector<8xf32>
    %13 = vector.shape_cast %12 : vector<8xf32> to vector<1x8xf32>
    %cst_11 = arith.constant 1.960000e+02 : f32
    %14 = vector.broadcast %cst_11 : f32 to vector<1x8xf32>
    %15 = arith.divf %13, %14 : vector<1x8xf32>
    %16 = vector.broadcast %15 : vector<1x8xf32> to vector<196x8xf32>
    %17 = arith.subf %11, %16 : vector<196x8xf32>
    %18 = arith.mulf %17, %17 : vector<196x8xf32>
    %cst_12 = arith.constant dense<0.000000e+00> : vector<8xf32>
    %19 = vector.multi_reduction <add>, %18, %cst_12 [0] : vector<196x8xf32> to vector<8xf32>
    %20 = vector.shape_cast %19 : vector<8xf32> to vector<1x8xf32>
    %cst_13 = arith.constant 1.960000e+02 : f32
    %21 = vector.broadcast %cst_13 : f32 to vector<1x8xf32>
    %22 = arith.divf %20, %21 : vector<1x8xf32>
    %23 = vector.broadcast %15 : vector<1x8xf32> to vector<196x8xf32>
    %24 = arith.subf %11, %23 : vector<196x8xf32>
    %cst_14 = arith.constant 9.99999974E-6 : f32
    %25 = vector.broadcast %cst_14 : f32 to vector<1x8xf32>
    %26 = arith.addf %22, %25 : vector<1x8xf32>
    %27 = math.rsqrt %26 : vector<1x8xf32>
    %28 = vector.broadcast %27 : vector<1x8xf32> to vector<196x8xf32>
    %29 = arith.mulf %24, %28 : vector<196x8xf32>
    %c0_15 = arith.constant 0 : index
    %c0_16 = arith.constant 0 : index
    %c0_17 = arith.constant 0 : index
    %30 = vector.load %arg5[%c0_15, %c0_16, %c0_17] : memref<1x196x8xf32, #tpu.memory_space<vmem>>, vector<1x196x8xf32>
    %31 = vector.shape_cast %30 : vector<1x196x8xf32> to vector<196x8xf32>
    %32 = vector.shape_cast %29 : vector<196x8xf32> to vector<1x196x8xf32>
    tpu.vector_store %arg5[%c0_15, %c0_16, %c0_17], %32 {strides = array<i32>} : memref<1x196x8xf32, #tpu.memory_space<vmem>>, vector<1x196x8xf32>,
    return
  }
  func.func @transform_0(%arg0: i32) -> (i32, i32, i32) {
    %c0_i32 = arith.constant 0 : i32
    %c0_i32_0 = arith.constant 0 : i32
    %c0_i32_1 = arith.constant 0 : i32
    return %arg0, %c0_i32, %c0_i32_0 : i32, i32, i32
  }
  func.func @transform_1(%arg0: i32) -> (i32, i32) {
    %c0_i32 = arith.constant 0 : i32
    %c0_i32_0 = arith.constant 0 : i32
    %c0_i32_1 = arith.constant 0 : i32
    return %c0_i32, %c0_i32_0 : i32, i32
  }
  func.func @transform_2(%arg0: i32) -> (i32, i32) {
    %c0_i32 = arith.constant 0 : i32
    %c0_i32_0 = arith.constant 0 : i32
    %c0_i32_1 = arith.constant 0 : i32
    return %c0_i32, %c0_i32_0 : i32, i32
  }
  func.func @transform_3(%arg0: i32) -> (i32, i32, i32) {
    %c0_i32 = arith.constant 0 : i32
    %c0_i32_0 = arith.constant 0 : i32
    %c0_i32_1 = arith.constant 0 : i32
    return %arg0, %c0_i32, %c0_i32_0 : i32, i32, i32
  }
  func.func @transform_4(%arg0: i32) -> (i32, i32, i32) {
    %c0_i32 = arith.constant 0 : i32
    %c0_i32_0 = arith.constant 0 : i32
    %c0_i32_1 = arith.constant 0 : i32
    return %arg0, %c0_i32, %c0_i32_0 : i32, i32, i32
  }
}

module attributes {stable_mosaic.version = 11 : i64} {
  func.func @_conv_kernel(%arg0: i32, %arg1: memref<1x196x72xbf16, #tpu.memory_space<vmem>>, %arg2: memref<72x8xbf16, #tpu.memory_space<vmem>>, %arg3: memref<1x8xf32, #tpu.memory_space<vmem>>, %arg4: memref<1x196x8xf32, #tpu.memory_space<vmem>>) attributes {dimension_semantics = [#tpu.dimension_semantics<parallel>], iteration_bounds = array<i64: 2>, scalar_prefetch = 0 : i64, scratch_operands = 0 : i64, tpu.core_type = #tpu.core_type<tc>, window_params = [{transform_indices = @transform_0, window_bounds = array<i64: 1, 196, 72>}, {pipeline_mode = #tpu.pipeline_mode<synchronous>, transform_indices = @transform_1, window_bounds = array<i64: 72, 8>}, {pipeline_mode = #tpu.pipeline_mode<synchronous>, transform_indices = @transform_2, window_bounds = array<i64: 1, 8>}, {transform_indices = @transform_3, window_bounds = array<i64: 1, 196, 8>}]} {
    %c0 = arith.constant 0 : index
    %c0_0 = arith.constant 0 : index
    %c0_1 = arith.constant 0 : index
    %0 = vector.load %arg1[%c0, %c0_0, %c0_1] : memref<1x196x72xbf16, #tpu.memory_space<vmem>>, vector<1x196x72xbf16>
    %1 = vector.shape_cast %0 : vector<1x196x72xbf16> to vector<196x72xbf16>
    %c0_2 = arith.constant 0 : index
    %c0_3 = arith.constant 0 : index
    %2 = vector.load %arg2[%c0_2, %c0_3] : memref<72x8xbf16, #tpu.memory_space<vmem>>, vector<72x8xbf16>
    %cst = arith.constant dense<0.000000e+00> : vector<196x8xf32>
    %3 = tpu.matmul %1, %2, %cst {dimension_numbers = #tpu.dot_dimension_numbers<[1], [0], [0], [1], [0, 0, 1, 1], [], []>} : vector<196x72xbf16>, vector<72x8xbf16>, vector<196x8xf32> -> vector<196x8xf32>
    %c0_4 = arith.constant 0 : index
    %c0_5 = arith.constant 0 : index
    %4 = vector.load %arg3[%c0_4, %c0_5] : memref<1x8xf32, #tpu.memory_space<vmem>>, vector<1x8xf32>
    %5 = vector.broadcast %4 : vector<1x8xf32> to vector<196x8xf32>
    %6 = arith.addf %3, %5 : vector<196x8xf32>
    %cst_6 = arith.constant 0.000000e+00 : f32
    %7 = vector.broadcast %cst_6 : f32 to vector<196x8xf32>
    %8 = arith.maximumf %6, %7 : vector<196x8xf32>
    %c0_7 = arith.constant 0 : index
    %c0_8 = arith.constant 0 : index
    %c0_9 = arith.constant 0 : index
    %9 = vector.load %arg4[%c0_7, %c0_8, %c0_9] : memref<1x196x8xf32, #tpu.memory_space<vmem>>, vector<1x196x8xf32>
    %10 = vector.shape_cast %9 : vector<1x196x8xf32> to vector<196x8xf32>
    %11 = vector.shape_cast %8 : vector<196x8xf32> to vector<1x196x8xf32>
    tpu.vector_store %arg4[%c0_7, %c0_8, %c0_9], %11 {strides = array<i32>} : memref<1x196x8xf32, #tpu.memory_space<vmem>>, vector<1x196x8xf32>,
    return
  }
  func.func @transform_0(%arg0: i32) -> (i32, i32, i32) {
    %c0_i32 = arith.constant 0 : i32
    %c0_i32_0 = arith.constant 0 : i32
    %c0_i32_1 = arith.constant 0 : i32
    return %arg0, %c0_i32, %c0_i32_0 : i32, i32, i32
  }
  func.func @transform_1(%arg0: i32) -> (i32, i32) {
    %c0_i32 = arith.constant 0 : i32
    %c0_i32_0 = arith.constant 0 : i32
    %c0_i32_1 = arith.constant 0 : i32
    return %c0_i32, %c0_i32_0 : i32, i32
  }
  func.func @transform_2(%arg0: i32) -> (i32, i32) {
    %c0_i32 = arith.constant 0 : i32
    %c0_i32_0 = arith.constant 0 : i32
    %c0_i32_1 = arith.constant 0 : i32
    return %c0_i32, %c0_i32_0 : i32, i32
  }
  func.func @transform_3(%arg0: i32) -> (i32, i32, i32) {
    %c0_i32 = arith.constant 0 : i32
    %c0_i32_0 = arith.constant 0 : i32
    %c0_i32_1 = arith.constant 0 : i32
    return %arg0, %c0_i32, %c0_i32_0 : i32, i32, i32
  }
}

module attributes {stable_mosaic.version = 11 : i64} {
  func.func @_conv_kernel(%arg0: i32, %arg1: memref<1x196x72xbf16, #tpu.memory_space<vmem>>, %arg2: memref<72x8xbf16, #tpu.memory_space<vmem>>, %arg3: memref<1x8xf32, #tpu.memory_space<vmem>>, %arg4: memref<1x196x8xf32, #tpu.memory_space<vmem>>, %arg5: memref<1x196x8xf32, #tpu.memory_space<vmem>>) attributes {dimension_semantics = [#tpu.dimension_semantics<parallel>], iteration_bounds = array<i64: 2>, scalar_prefetch = 0 : i64, scratch_operands = 0 : i64, tpu.core_type = #tpu.core_type<tc>, window_params = [{transform_indices = @transform_0, window_bounds = array<i64: 1, 196, 72>}, {pipeline_mode = #tpu.pipeline_mode<synchronous>, transform_indices = @transform_1, window_bounds = array<i64: 72, 8>}, {pipeline_mode = #tpu.pipeline_mode<synchronous>, transform_indices = @transform_2, window_bounds = array<i64: 1, 8>}, {transform_indices = @transform_3, window_bounds = array<i64: 1, 196, 8>}, {transform_indices = @transform_4, window_bounds = array<i64: 1, 196, 8>}]} {
    %c0 = arith.constant 0 : index
    %c0_0 = arith.constant 0 : index
    %c0_1 = arith.constant 0 : index
    %0 = vector.load %arg1[%c0, %c0_0, %c0_1] : memref<1x196x72xbf16, #tpu.memory_space<vmem>>, vector<1x196x72xbf16>
    %1 = vector.shape_cast %0 : vector<1x196x72xbf16> to vector<196x72xbf16>
    %c0_2 = arith.constant 0 : index
    %c0_3 = arith.constant 0 : index
    %2 = vector.load %arg2[%c0_2, %c0_3] : memref<72x8xbf16, #tpu.memory_space<vmem>>, vector<72x8xbf16>
    %cst = arith.constant dense<0.000000e+00> : vector<196x8xf32>
    %3 = tpu.matmul %1, %2, %cst {dimension_numbers = #tpu.dot_dimension_numbers<[1], [0], [0], [1], [0, 0, 1, 1], [], []>} : vector<196x72xbf16>, vector<72x8xbf16>, vector<196x8xf32> -> vector<196x8xf32>
    %c0_4 = arith.constant 0 : index
    %c0_5 = arith.constant 0 : index
    %4 = vector.load %arg3[%c0_4, %c0_5] : memref<1x8xf32, #tpu.memory_space<vmem>>, vector<1x8xf32>
    %5 = vector.broadcast %4 : vector<1x8xf32> to vector<196x8xf32>
    %6 = arith.addf %3, %5 : vector<196x8xf32>
    %c0_6 = arith.constant 0 : index
    %c0_7 = arith.constant 0 : index
    %c0_8 = arith.constant 0 : index
    %7 = vector.load %arg4[%c0_6, %c0_7, %c0_8] : memref<1x196x8xf32, #tpu.memory_space<vmem>>, vector<1x196x8xf32>
    %8 = vector.shape_cast %7 : vector<1x196x8xf32> to vector<196x8xf32>
    %9 = arith.addf %6, %8 : vector<196x8xf32>
    %cst_9 = arith.constant 0.000000e+00 : f32
    %10 = vector.broadcast %cst_9 : f32 to vector<196x8xf32>
    %11 = arith.maximumf %9, %10 : vector<196x8xf32>
    %c0_10 = arith.constant 0 : index
    %c0_11 = arith.constant 0 : index
    %c0_12 = arith.constant 0 : index
    %12 = vector.load %arg5[%c0_10, %c0_11, %c0_12] : memref<1x196x8xf32, #tpu.memory_space<vmem>>, vector<1x196x8xf32>
    %13 = vector.shape_cast %12 : vector<1x196x8xf32> to vector<196x8xf32>
    %14 = vector.shape_cast %11 : vector<196x8xf32> to vector<1x196x8xf32>
    tpu.vector_store %arg5[%c0_10, %c0_11, %c0_12], %14 {strides = array<i32>} : memref<1x196x8xf32, #tpu.memory_space<vmem>>, vector<1x196x8xf32>,
    return
  }
  func.func @transform_0(%arg0: i32) -> (i32, i32, i32) {
    %c0_i32 = arith.constant 0 : i32
    %c0_i32_0 = arith.constant 0 : i32
    %c0_i32_1 = arith.constant 0 : i32
    return %arg0, %c0_i32, %c0_i32_0 : i32, i32, i32
  }
  func.func @transform_1(%arg0: i32) -> (i32, i32) {
    %c0_i32 = arith.constant 0 : i32
    %c0_i32_0 = arith.constant 0 : i32
    %c0_i32_1 = arith.constant 0 : i32
    return %c0_i32, %c0_i32_0 : i32, i32
  }
  func.func @transform_2(%arg0: i32) -> (i32, i32) {
    %c0_i32 = arith.constant 0 : i32
    %c0_i32_0 = arith.constant 0 : i32
    %c0_i32_1 = arith.constant 0 : i32
    return %c0_i32, %c0_i32_0 : i32, i32
  }
  func.func @transform_3(%arg0: i32) -> (i32, i32, i32) {
    %c0_i32 = arith.constant 0 : i32
    %c0_i32_0 = arith.constant 0 : i32
    %c0_i32_1 = arith.constant 0 : i32
    return %arg0, %c0_i32, %c0_i32_0 : i32, i32, i32
  }
  func.func @transform_4(%arg0: i32) -> (i32, i32, i32) {
    %c0_i32 = arith.constant 0 : i32
    %c0_i32_0 = arith.constant 0 : i32
    %c0_i32_1 = arith.constant 0 : i32
    return %arg0, %c0_i32, %c0_i32_0 : i32, i32, i32
  }
}

module attributes {stable_mosaic.version = 11 : i64} {
  func.func @_conv_kernel(%arg0: i32, %arg1: memref<1x25x72xbf16, #tpu.memory_space<vmem>>, %arg2: memref<72x4xbf16, #tpu.memory_space<vmem>>, %arg3: memref<1x4xf32, #tpu.memory_space<vmem>>, %arg4: memref<1x25x4xf32, #tpu.memory_space<vmem>>) attributes {dimension_semantics = [#tpu.dimension_semantics<parallel>], iteration_bounds = array<i64: 2>, scalar_prefetch = 0 : i64, scratch_operands = 0 : i64, tpu.core_type = #tpu.core_type<tc>, window_params = [{transform_indices = @transform_0, window_bounds = array<i64: 1, 25, 72>}, {pipeline_mode = #tpu.pipeline_mode<synchronous>, transform_indices = @transform_1, window_bounds = array<i64: 72, 4>}, {pipeline_mode = #tpu.pipeline_mode<synchronous>, transform_indices = @transform_2, window_bounds = array<i64: 1, 4>}, {transform_indices = @transform_3, window_bounds = array<i64: 1, 25, 4>}]} {
    %c0 = arith.constant 0 : index
    %c0_0 = arith.constant 0 : index
    %c0_1 = arith.constant 0 : index
    %0 = vector.load %arg1[%c0, %c0_0, %c0_1] : memref<1x25x72xbf16, #tpu.memory_space<vmem>>, vector<1x25x72xbf16>
    %1 = vector.shape_cast %0 : vector<1x25x72xbf16> to vector<25x72xbf16>
    %c0_2 = arith.constant 0 : index
    %c0_3 = arith.constant 0 : index
    %2 = vector.load %arg2[%c0_2, %c0_3] : memref<72x4xbf16, #tpu.memory_space<vmem>>, vector<72x4xbf16>
    %cst = arith.constant dense<0.000000e+00> : vector<25x4xf32>
    %3 = tpu.matmul %1, %2, %cst {dimension_numbers = #tpu.dot_dimension_numbers<[1], [0], [0], [1], [0, 0, 1, 1], [], []>} : vector<25x72xbf16>, vector<72x4xbf16>, vector<25x4xf32> -> vector<25x4xf32>
    %c0_4 = arith.constant 0 : index
    %c0_5 = arith.constant 0 : index
    %4 = vector.load %arg3[%c0_4, %c0_5] : memref<1x4xf32, #tpu.memory_space<vmem>>, vector<1x4xf32>
    %5 = vector.broadcast %4 : vector<1x4xf32> to vector<25x4xf32>
    %6 = arith.addf %3, %5 : vector<25x4xf32>
    %c0_6 = arith.constant 0 : index
    %c0_7 = arith.constant 0 : index
    %c0_8 = arith.constant 0 : index
    %7 = vector.load %arg4[%c0_6, %c0_7, %c0_8] : memref<1x25x4xf32, #tpu.memory_space<vmem>>, vector<1x25x4xf32>
    %8 = vector.shape_cast %7 : vector<1x25x4xf32> to vector<25x4xf32>
    %9 = vector.shape_cast %6 : vector<25x4xf32> to vector<1x25x4xf32>
    tpu.vector_store %arg4[%c0_6, %c0_7, %c0_8], %9 {strides = array<i32>} : memref<1x25x4xf32, #tpu.memory_space<vmem>>, vector<1x25x4xf32>,
    return
  }
  func.func @transform_0(%arg0: i32) -> (i32, i32, i32) {
    %c0_i32 = arith.constant 0 : i32
    %c0_i32_0 = arith.constant 0 : i32
    %c0_i32_1 = arith.constant 0 : i32
    return %arg0, %c0_i32, %c0_i32_0 : i32, i32, i32
  }
  func.func @transform_1(%arg0: i32) -> (i32, i32) {
    %c0_i32 = arith.constant 0 : i32
    %c0_i32_0 = arith.constant 0 : i32
    %c0_i32_1 = arith.constant 0 : i32
    return %c0_i32, %c0_i32_0 : i32, i32
  }
  func.func @transform_2(%arg0: i32) -> (i32, i32) {
    %c0_i32 = arith.constant 0 : i32
    %c0_i32_0 = arith.constant 0 : i32
    %c0_i32_1 = arith.constant 0 : i32
    return %c0_i32, %c0_i32_0 : i32, i32
  }
  func.func @transform_3(%arg0: i32) -> (i32, i32, i32) {
    %c0_i32 = arith.constant 0 : i32
    %c0_i32_0 = arith.constant 0 : i32
    %c0_i32_1 = arith.constant 0 : i32
    return %arg0, %c0_i32, %c0_i32_0 : i32, i32, i32
  }
}

module attributes {stable_mosaic.version = 11 : i64} {
  func.func @_mm_kernel(%arg0: i32, %arg1: memref<2x100xbf16, #tpu.memory_space<vmem>>, %arg2: memref<100x1024xbf16, #tpu.memory_space<vmem>>, %arg3: memref<1x1024xf32, #tpu.memory_space<vmem>>, %arg4: memref<2x1024xf32, #tpu.memory_space<vmem>>) attributes {dimension_semantics = [#tpu.dimension_semantics<arbitrary>], iteration_bounds = array<i64: 1>, scalar_prefetch = 0 : i64, scratch_operands = 0 : i64, tpu.core_type = #tpu.core_type<tc>, window_params = [{pipeline_mode = #tpu.pipeline_mode<synchronous>, transform_indices = @transform_0, window_bounds = array<i64: 2, 100>}, {pipeline_mode = #tpu.pipeline_mode<synchronous>, transform_indices = @transform_1, window_bounds = array<i64: 100, 1024>}, {pipeline_mode = #tpu.pipeline_mode<synchronous>, transform_indices = @transform_2, window_bounds = array<i64: 1, 1024>}, {pipeline_mode = #tpu.pipeline_mode<synchronous>, transform_indices = @transform_3, window_bounds = array<i64: 2, 1024>}]} {
    %c0 = arith.constant 0 : index
    %c0_0 = arith.constant 0 : index
    %0 = vector.load %arg1[%c0, %c0_0] : memref<2x100xbf16, #tpu.memory_space<vmem>>, vector<2x100xbf16>
    %c0_1 = arith.constant 0 : index
    %c0_2 = arith.constant 0 : index
    %1 = vector.load %arg2[%c0_1, %c0_2] : memref<100x1024xbf16, #tpu.memory_space<vmem>>, vector<100x1024xbf16>
    %cst = arith.constant dense<0.000000e+00> : vector<2x1024xf32>
    %2 = tpu.matmul %0, %1, %cst {dimension_numbers = #tpu.dot_dimension_numbers<[1], [0], [0], [1], [0, 0, 1, 1], [], []>} : vector<2x100xbf16>, vector<100x1024xbf16>, vector<2x1024xf32> -> vector<2x1024xf32>
    %c0_3 = arith.constant 0 : index
    %c0_4 = arith.constant 0 : index
    %3 = vector.load %arg3[%c0_3, %c0_4] : memref<1x1024xf32, #tpu.memory_space<vmem>>, vector<1x1024xf32>
    %4 = vector.broadcast %3 : vector<1x1024xf32> to vector<2x1024xf32>
    %5 = arith.addf %2, %4 : vector<2x1024xf32>
    %cst_5 = arith.constant 0.000000e+00 : f32
    %6 = vector.broadcast %cst_5 : f32 to vector<2x1024xf32>
    %7 = arith.maximumf %5, %6 : vector<2x1024xf32>
    %c0_6 = arith.constant 0 : index
    %c0_7 = arith.constant 0 : index
    %8 = vector.load %arg4[%c0_6, %c0_7] : memref<2x1024xf32, #tpu.memory_space<vmem>>, vector<2x1024xf32>
    tpu.vector_store %arg4[%c0_6, %c0_7], %7 {strides = array<i32>} : memref<2x1024xf32, #tpu.memory_space<vmem>>, vector<2x1024xf32>,
    return
  }
  func.func @transform_0(%arg0: i32) -> (i32, i32) {
    %c0_i32 = arith.constant 0 : i32
    %c0_i32_0 = arith.constant 0 : i32
    %c0_i32_1 = arith.constant 0 : i32
    return %c0_i32, %c0_i32_0 : i32, i32
  }
  func.func @transform_1(%arg0: i32) -> (i32, i32) {
    %c0_i32 = arith.constant 0 : i32
    %c0_i32_0 = arith.constant 0 : i32
    %c0_i32_1 = arith.constant 0 : i32
    return %c0_i32, %c0_i32_0 : i32, i32
  }
  func.func @transform_2(%arg0: i32) -> (i32, i32) {
    %c0_i32 = arith.constant 0 : i32
    %c0_i32_0 = arith.constant 0 : i32
    %c0_i32_1 = arith.constant 0 : i32
    return %c0_i32, %c0_i32_0 : i32, i32
  }
  func.func @transform_3(%arg0: i32) -> (i32, i32) {
    %c0_i32 = arith.constant 0 : i32
    %c0_i32_0 = arith.constant 0 : i32
    %c0_i32_1 = arith.constant 0 : i32
    return %c0_i32, %c0_i32_0 : i32, i32
  }
}

module attributes {stable_mosaic.version = 11 : i64} {
  func.func @_mm_kernel(%arg0: i32, %arg1: memref<2x1024xbf16, #tpu.memory_space<vmem>>, %arg2: memref<1024x10xbf16, #tpu.memory_space<vmem>>, %arg3: memref<1x10xf32, #tpu.memory_space<vmem>>, %arg4: memref<2x10xf32, #tpu.memory_space<vmem>>) attributes {dimension_semantics = [#tpu.dimension_semantics<arbitrary>], iteration_bounds = array<i64: 1>, scalar_prefetch = 0 : i64, scratch_operands = 0 : i64, tpu.core_type = #tpu.core_type<tc>, window_params = [{pipeline_mode = #tpu.pipeline_mode<synchronous>, transform_indices = @transform_0, window_bounds = array<i64: 2, 1024>}, {pipeline_mode = #tpu.pipeline_mode<synchronous>, transform_indices = @transform_1, window_bounds = array<i64: 1024, 10>}, {pipeline_mode = #tpu.pipeline_mode<synchronous>, transform_indices = @transform_2, window_bounds = array<i64: 1, 10>}, {pipeline_mode = #tpu.pipeline_mode<synchronous>, transform_indices = @transform_3, window_bounds = array<i64: 2, 10>}]} {
    %c0 = arith.constant 0 : index
    %c0_0 = arith.constant 0 : index
    %0 = vector.load %arg1[%c0, %c0_0] : memref<2x1024xbf16, #tpu.memory_space<vmem>>, vector<2x1024xbf16>
    %c0_1 = arith.constant 0 : index
    %c0_2 = arith.constant 0 : index
    %1 = vector.load %arg2[%c0_1, %c0_2] : memref<1024x10xbf16, #tpu.memory_space<vmem>>, vector<1024x10xbf16>
    %cst = arith.constant dense<0.000000e+00> : vector<2x10xf32>
    %2 = tpu.matmul %0, %1, %cst {dimension_numbers = #tpu.dot_dimension_numbers<[1], [0], [0], [1], [0, 0, 1, 1], [], []>} : vector<2x1024xbf16>, vector<1024x10xbf16>, vector<2x10xf32> -> vector<2x10xf32>
    %c0_3 = arith.constant 0 : index
    %c0_4 = arith.constant 0 : index
    %3 = vector.load %arg3[%c0_3, %c0_4] : memref<1x10xf32, #tpu.memory_space<vmem>>, vector<1x10xf32>
    %4 = vector.broadcast %3 : vector<1x10xf32> to vector<2x10xf32>
    %5 = arith.addf %2, %4 : vector<2x10xf32>
    %c0_5 = arith.constant 0 : index
    %c0_6 = arith.constant 0 : index
    %6 = vector.load %arg4[%c0_5, %c0_6] : memref<2x10xf32, #tpu.memory_space<vmem>>, vector<2x10xf32>
    tpu.vector_store %arg4[%c0_5, %c0_6], %5 {strides = array<i32>} : memref<2x10xf32, #tpu.memory_space<vmem>>, vector<2x10xf32>,
    return
  }
  func.func @transform_0(%arg0: i32) -> (i32, i32) {
    %c0_i32 = arith.constant 0 : i32
    %c0_i32_0 = arith.constant 0 : i32
    %c0_i32_1 = arith.constant 0 : i32
    return %c0_i32, %c0_i32_0 : i32, i32
  }
  func.func @transform_1(%arg0: i32) -> (i32, i32) {
    %c0_i32 = arith.constant 0 : i32
    %c0_i32_0 = arith.constant 0 : i32
    %c0_i32_1 = arith.constant 0 : i32
    return %c0_i32, %c0_i32_0 : i32, i32
  }
  func.func @transform_2(%arg0: i32) -> (i32, i32) {
    %c0_i32 = arith.constant 0 : i32
    %c0_i32_0 = arith.constant 0 : i32
    %c0_i32_1 = arith.constant 0 : i32
    return %c0_i32, %c0_i32_0 : i32, i32
  }
  func.func @transform_3(%arg0: i32) -> (i32, i32) {
    %c0_i32 = arith.constant 0 : i32
    %c0_i32_0 = arith.constant 0 : i32
    %c0_i32_1 = arith.constant 0 : i32
    return %c0_i32, %c0_i32_0 : i32, i32
  }
}

module attributes {stable_mosaic.version = 11 : i64} {
  func.func @_mm_kernel(%arg0: i32, %arg1: memref<2x1024xbf16, #tpu.memory_space<vmem>>, %arg2: memref<1024x8xbf16, #tpu.memory_space<vmem>>, %arg3: memref<1x8xf32, #tpu.memory_space<vmem>>, %arg4: memref<2x8xf32, #tpu.memory_space<vmem>>) attributes {dimension_semantics = [#tpu.dimension_semantics<arbitrary>], iteration_bounds = array<i64: 1>, scalar_prefetch = 0 : i64, scratch_operands = 0 : i64, tpu.core_type = #tpu.core_type<tc>, window_params = [{pipeline_mode = #tpu.pipeline_mode<synchronous>, transform_indices = @transform_0, window_bounds = array<i64: 2, 1024>}, {pipeline_mode = #tpu.pipeline_mode<synchronous>, transform_indices = @transform_1, window_bounds = array<i64: 1024, 8>}, {pipeline_mode = #tpu.pipeline_mode<synchronous>, transform_indices = @transform_2, window_bounds = array<i64: 1, 8>}, {pipeline_mode = #tpu.pipeline_mode<synchronous>, transform_indices = @transform_3, window_bounds = array<i64: 2, 8>}]} {
    %c0 = arith.constant 0 : index
    %c0_0 = arith.constant 0 : index
    %0 = vector.load %arg1[%c0, %c0_0] : memref<2x1024xbf16, #tpu.memory_space<vmem>>, vector<2x1024xbf16>
    %c0_1 = arith.constant 0 : index
    %c0_2 = arith.constant 0 : index
    %1 = vector.load %arg2[%c0_1, %c0_2] : memref<1024x8xbf16, #tpu.memory_space<vmem>>, vector<1024x8xbf16>
    %cst = arith.constant dense<0.000000e+00> : vector<2x8xf32>
    %2 = tpu.matmul %0, %1, %cst {dimension_numbers = #tpu.dot_dimension_numbers<[1], [0], [0], [1], [0, 0, 1, 1], [], []>} : vector<2x1024xbf16>, vector<1024x8xbf16>, vector<2x8xf32> -> vector<2x8xf32>
    %c0_3 = arith.constant 0 : index
    %c0_4 = arith.constant 0 : index
    %3 = vector.load %arg3[%c0_3, %c0_4] : memref<1x8xf32, #tpu.memory_space<vmem>>, vector<1x8xf32>
    %4 = vector.broadcast %3 : vector<1x8xf32> to vector<2x8xf32>
    %5 = arith.addf %2, %4 : vector<2x8xf32>
    %c0_5 = arith.constant 0 : index
    %c0_6 = arith.constant 0 : index
    %6 = vector.load %arg4[%c0_5, %c0_6] : memref<2x8xf32, #tpu.memory_space<vmem>>, vector<2x8xf32>
    tpu.vector_store %arg4[%c0_5, %c0_6], %5 {strides = array<i32>} : memref<2x8xf32, #tpu.memory_space<vmem>>, vector<2x8xf32>,
    return
  }
  func.func @transform_0(%arg0: i32) -> (i32, i32) {
    %c0_i32 = arith.constant 0 : i32
    %c0_i32_0 = arith.constant 0 : i32
    %c0_i32_1 = arith.constant 0 : i32
    return %c0_i32, %c0_i32_0 : i32, i32
  }
  func.func @transform_1(%arg0: i32) -> (i32, i32) {
    %c0_i32 = arith.constant 0 : i32
    %c0_i32_0 = arith.constant 0 : i32
    %c0_i32_1 = arith.constant 0 : i32
    return %c0_i32, %c0_i32_0 : i32, i32
  }
  func.func @transform_2(%arg0: i32) -> (i32, i32) {
    %c0_i32 = arith.constant 0 : i32
    %c0_i32_0 = arith.constant 0 : i32
    %c0_i32_1 = arith.constant 0 : i32
    return %c0_i32, %c0_i32_0 : i32, i32
  }
  func.func @transform_3(%arg0: i32) -> (i32, i32) {
    %c0_i32 = arith.constant 0 : i32
    %c0_i32_0 = arith.constant 0 : i32
    %c0_i32_1 = arith.constant 0 : i32
    return %c0_i32, %c0_i32_0 : i32, i32
  }
}

module attributes {stable_mosaic.version = 11 : i64} {
  func.func @_mm_kernel(%arg0: i32, %arg1: memref<12x16xf32, #tpu.memory_space<vmem>>, %arg2: memref<16x128xf32, #tpu.memory_space<vmem>>, %arg3: memref<1x128xf32, #tpu.memory_space<vmem>>, %arg4: memref<12x128xf32, #tpu.memory_space<vmem>>) attributes {dimension_semantics = [#tpu.dimension_semantics<arbitrary>], iteration_bounds = array<i64: 1>, scalar_prefetch = 0 : i64, scratch_operands = 0 : i64, tpu.core_type = #tpu.core_type<tc>, window_params = [{pipeline_mode = #tpu.pipeline_mode<synchronous>, transform_indices = @transform_0, window_bounds = array<i64: 12, 16>}, {pipeline_mode = #tpu.pipeline_mode<synchronous>, transform_indices = @transform_1, window_bounds = array<i64: 16, 128>}, {pipeline_mode = #tpu.pipeline_mode<synchronous>, transform_indices = @transform_2, window_bounds = array<i64: 1, 128>}, {pipeline_mode = #tpu.pipeline_mode<synchronous>, transform_indices = @transform_3, window_bounds = array<i64: 12, 128>}]} {
    %c0 = arith.constant 0 : index
    %c0_0 = arith.constant 0 : index
    %0 = vector.load %arg1[%c0, %c0_0] : memref<12x16xf32, #tpu.memory_space<vmem>>, vector<12x16xf32>
    %c0_1 = arith.constant 0 : index
    %c0_2 = arith.constant 0 : index
    %1 = vector.load %arg2[%c0_1, %c0_2] : memref<16x128xf32, #tpu.memory_space<vmem>>, vector<16x128xf32>
    %cst = arith.constant dense<0.000000e+00> : vector<12x128xf32>
    %2 = tpu.matmul %0, %1, %cst {dimension_numbers = #tpu.dot_dimension_numbers<[1], [0], [0], [1], [0, 0, 1, 1], [], []>} : vector<12x16xf32>, vector<16x128xf32>, vector<12x128xf32> -> vector<12x128xf32>
    %c0_3 = arith.constant 0 : index
    %c0_4 = arith.constant 0 : index
    %3 = vector.load %arg3[%c0_3, %c0_4] : memref<1x128xf32, #tpu.memory_space<vmem>>, vector<1x128xf32>
    %4 = vector.broadcast %3 : vector<1x128xf32> to vector<12x128xf32>
    %5 = arith.addf %2, %4 : vector<12x128xf32>
    %c0_5 = arith.constant 0 : index
    %c0_6 = arith.constant 0 : index
    %6 = vector.load %arg4[%c0_5, %c0_6] : memref<12x128xf32, #tpu.memory_space<vmem>>, vector<12x128xf32>
    tpu.vector_store %arg4[%c0_5, %c0_6], %5 {strides = array<i32>} : memref<12x128xf32, #tpu.memory_space<vmem>>, vector<12x128xf32>,
    return
  }
  func.func @transform_0(%arg0: i32) -> (i32, i32) {
    %c0_i32 = arith.constant 0 : i32
    %c0_i32_0 = arith.constant 0 : i32
    %c0_i32_1 = arith.constant 0 : i32
    return %c0_i32, %c0_i32_0 : i32, i32
  }
  func.func @transform_1(%arg0: i32) -> (i32, i32) {
    %c0_i32 = arith.constant 0 : i32
    %c0_i32_0 = arith.constant 0 : i32
    %c0_i32_1 = arith.constant 0 : i32
    return %c0_i32, %c0_i32_0 : i32, i32
  }
  func.func @transform_2(%arg0: i32) -> (i32, i32) {
    %c0_i32 = arith.constant 0 : i32
    %c0_i32_0 = arith.constant 0 : i32
    %c0_i32_1 = arith.constant 0 : i32
    return %c0_i32, %c0_i32_0 : i32, i32
  }
  func.func @transform_3(%arg0: i32) -> (i32, i32) {
    %c0_i32 = arith.constant 0 : i32
    %c0_i32_0 = arith.constant 0 : i32
    %c0_i32_1 = arith.constant 0 : i32
    return %c0_i32, %c0_i32_0 : i32, i32
  }
}

module attributes {stable_mosaic.version = 11 : i64} {
  func.func @_lstm_kernel(%arg0: i32, %arg1: memref<1x2x128xf32, #tpu.memory_space<vmem>>, %arg2: memref<32x128xf32, #tpu.memory_space<vmem>>, %arg3: memref<1x128xf32, #tpu.memory_space<vmem>>, %arg4: memref<1x2x32xf32, #tpu.memory_space<vmem>>, %arg5: memref<2x32xf32, #tpu.memory_space<vmem>>, %arg6: memref<2x32xf32, #tpu.memory_space<vmem>>, %arg7: memref<2x32xf32, #tpu.memory_space<vmem>>) attributes {dimension_semantics = [#tpu.dimension_semantics<arbitrary>], iteration_bounds = array<i64: 6>, scalar_prefetch = 0 : i64, scratch_operands = 2 : i64, tpu.core_type = #tpu.core_type<tc>, window_params = [{transform_indices = @transform_0, window_bounds = array<i64: 1, 2, 128>}, {pipeline_mode = #tpu.pipeline_mode<synchronous>, transform_indices = @transform_1, window_bounds = array<i64: 32, 128>}, {pipeline_mode = #tpu.pipeline_mode<synchronous>, transform_indices = @transform_2, window_bounds = array<i64: 1, 128>}, {transform_indices = @transform_3, window_bounds = array<i64: 1, 2, 32>}, {pipeline_mode = #tpu.pipeline_mode<synchronous>, transform_indices = @transform_4, window_bounds = array<i64: 2, 32>}]} {
    %c0_i32 = arith.constant 0 : i32
    %0 = arith.cmpi eq, %arg0, %c0_i32 : i32
    %1 = arith.extui %0 : i1 to i32
    %c0_i32_0 = arith.constant 0 : i32
    %2 = arith.cmpi ne, %1, %c0_i32_0 : i32
    scf.if %2 {
      %cst_29 = arith.constant 0.000000e+00 : f32
      %50 = vector.broadcast %cst_29 : f32 to vector<2x32xf32>
      %c0_30 = arith.constant 0 : index
      %c0_31 = arith.constant 0 : index
      %51 = vector.load %arg6[%c0_30, %c0_31] : memref<2x32xf32, #tpu.memory_space<vmem>>, vector<2x32xf32>
      tpu.vector_store %arg6[%c0_30, %c0_31], %50 {strides = array<i32>} : memref<2x32xf32, #tpu.memory_space<vmem>>, vector<2x32xf32>,
      %cst_32 = arith.constant 0.000000e+00 : f32
      %52 = vector.broadcast %cst_32 : f32 to vector<2x32xf32>
      %c0_33 = arith.constant 0 : index
      %c0_34 = arith.constant 0 : index
      %53 = vector.load %arg7[%c0_33, %c0_34] : memref<2x32xf32, #tpu.memory_space<vmem>>, vector<2x32xf32>
      tpu.vector_store %arg7[%c0_33, %c0_34], %52 {strides = array<i32>} : memref<2x32xf32, #tpu.memory_space<vmem>>, vector<2x32xf32>,
    } else {
    }
    %c0 = arith.constant 0 : index
    %c0_1 = arith.constant 0 : index
    %c0_2 = arith.constant 0 : index
    %3 = vector.load %arg1[%c0, %c0_1, %c0_2] : memref<1x2x128xf32, #tpu.memory_space<vmem>>, vector<1x2x128xf32>
    %4 = vector.shape_cast %3 : vector<1x2x128xf32> to vector<2x128xf32>
    %c0_3 = arith.constant 0 : index
    %c0_4 = arith.constant 0 : index
    %5 = vector.load %arg6[%c0_3, %c0_4] : memref<2x32xf32, #tpu.memory_space<vmem>>, vector<2x32xf32>
    %c0_5 = arith.constant 0 : index
    %c0_6 = arith.constant 0 : index
    %6 = vector.load %arg2[%c0_5, %c0_6] : memref<32x128xf32, #tpu.memory_space<vmem>>, vector<32x128xf32>
    %cst = arith.constant dense<0.000000e+00> : vector<2x128xf32>
    %7 = tpu.matmul %5, %6, %cst {dimension_numbers = #tpu.dot_dimension_numbers<[1], [0], [0], [1], [0, 0, 1, 1], [], []>} : vector<2x32xf32>, vector<32x128xf32>, vector<2x128xf32> -> vector<2x128xf32>
    %8 = arith.addf %4, %7 : vector<2x128xf32>
    %c0_7 = arith.constant 0 : index
    %c0_8 = arith.constant 0 : index
    %9 = vector.load %arg3[%c0_7, %c0_8] : memref<1x128xf32, #tpu.memory_space<vmem>>, vector<1x128xf32>
    %10 = vector.broadcast %9 : vector<1x128xf32> to vector<2x128xf32>
    %11 = arith.addf %8, %10 : vector<2x128xf32>
    %12 = vector.extract_strided_slice %11 {offsets = [0, 0], sizes = [2, 32], strides = [1, 1]} : vector<2x128xf32> to vector<2x32xf32>
    %cst_9 = arith.constant 0.000000e+00 : f32
    %13 = vector.broadcast %cst_9 : f32 to vector<2x32xf32>
    %14 = arith.subf %13, %12 : vector<2x32xf32>
    %15 = math.exp %14 : vector<2x32xf32>
    %cst_10 = arith.constant 1.000000e+00 : f32
    %16 = vector.broadcast %cst_10 : f32 to vector<2x32xf32>
    %17 = arith.addf %16, %15 : vector<2x32xf32>
    %cst_11 = arith.constant 1.000000e+00 : f32
    %18 = vector.broadcast %cst_11 : f32 to vector<2x32xf32>
    %19 = arith.divf %18, %17 : vector<2x32xf32>
    %20 = vector.extract_strided_slice %11 {offsets = [0, 32], sizes = [2, 32], strides = [1, 1]} : vector<2x128xf32> to vector<2x32xf32>
    %cst_12 = arith.constant 0.000000e+00 : f32
    %21 = vector.broadcast %cst_12 : f32 to vector<2x32xf32>
    %22 = arith.subf %21, %20 : vector<2x32xf32>
    %23 = math.exp %22 : vector<2x32xf32>
    %cst_13 = arith.constant 1.000000e+00 : f32
    %24 = vector.broadcast %cst_13 : f32 to vector<2x32xf32>
    %25 = arith.addf %24, %23 : vector<2x32xf32>
    %cst_14 = arith.constant 1.000000e+00 : f32
    %26 = vector.broadcast %cst_14 : f32 to vector<2x32xf32>
    %27 = arith.divf %26, %25 : vector<2x32xf32>
    %28 = vector.extract_strided_slice %11 {offsets = [0, 64], sizes = [2, 32], strides = [1, 1]} : vector<2x128xf32> to vector<2x32xf32>
    %29 = math.tanh %28 : vector<2x32xf32>
    %30 = vector.extract_strided_slice %11 {offsets = [0, 96], sizes = [2, 32], strides = [1, 1]} : vector<2x128xf32> to vector<2x32xf32>
    %cst_15 = arith.constant 0.000000e+00 : f32
    %31 = vector.broadcast %cst_15 : f32 to vector<2x32xf32>
    %32 = arith.subf %31, %30 : vector<2x32xf32>
    %33 = math.exp %32 : vector<2x32xf32>
    %cst_16 = arith.constant 1.000000e+00 : f32
    %34 = vector.broadcast %cst_16 : f32 to vector<2x32xf32>
    %35 = arith.addf %34, %33 : vector<2x32xf32>
    %cst_17 = arith.constant 1.000000e+00 : f32
    %36 = vector.broadcast %cst_17 : f32 to vector<2x32xf32>
    %37 = arith.divf %36, %35 : vector<2x32xf32>
    %c0_18 = arith.constant 0 : index
    %c0_19 = arith.constant 0 : index
    %38 = vector.load %arg7[%c0_18, %c0_19] : memref<2x32xf32, #tpu.memory_space<vmem>>, vector<2x32xf32>
    %39 = arith.mulf %27, %38 : vector<2x32xf32>
    %40 = arith.mulf %19, %29 : vector<2x32xf32>
    %41 = arith.addf %39, %40 : vector<2x32xf32>
    %42 = math.tanh %41 : vector<2x32xf32>
    %43 = arith.mulf %37, %42 : vector<2x32xf32>
    %c0_20 = arith.constant 0 : index
    %c0_21 = arith.constant 0 : index
    %44 = vector.load %arg6[%c0_20, %c0_21] : memref<2x32xf32, #tpu.memory_space<vmem>>, vector<2x32xf32>
    tpu.vector_store %arg6[%c0_20, %c0_21], %43 {strides = array<i32>} : memref<2x32xf32, #tpu.memory_space<vmem>>, vector<2x32xf32>,
    %c0_22 = arith.constant 0 : index
    %c0_23 = arith.constant 0 : index
    %45 = vector.load %arg7[%c0_22, %c0_23] : memref<2x32xf32, #tpu.memory_space<vmem>>, vector<2x32xf32>
    tpu.vector_store %arg7[%c0_22, %c0_23], %41 {strides = array<i32>} : memref<2x32xf32, #tpu.memory_space<vmem>>, vector<2x32xf32>,
    %c0_24 = arith.constant 0 : index
    %c0_25 = arith.constant 0 : index
    %c0_26 = arith.constant 0 : index
    %46 = vector.load %arg4[%c0_24, %c0_25, %c0_26] : memref<1x2x32xf32, #tpu.memory_space<vmem>>, vector<1x2x32xf32>
    %47 = vector.shape_cast %46 : vector<1x2x32xf32> to vector<2x32xf32>
    %48 = vector.shape_cast %43 : vector<2x32xf32> to vector<1x2x32xf32>
    tpu.vector_store %arg4[%c0_24, %c0_25, %c0_26], %48 {strides = array<i32>} : memref<1x2x32xf32, #tpu.memory_space<vmem>>, vector<1x2x32xf32>,
    %c0_27 = arith.constant 0 : index
    %c0_28 = arith.constant 0 : index
    %49 = vector.load %arg5[%c0_27, %c0_28] : memref<2x32xf32, #tpu.memory_space<vmem>>, vector<2x32xf32>
    tpu.vector_store %arg5[%c0_27, %c0_28], %41 {strides = array<i32>} : memref<2x32xf32, #tpu.memory_space<vmem>>, vector<2x32xf32>,
    return
  }
  func.func @transform_0(%arg0: i32) -> (i32, i32, i32) {
    %c0_i32 = arith.constant 0 : i32
    %c0_i32_0 = arith.constant 0 : i32
    %c0_i32_1 = arith.constant 0 : i32
    return %arg0, %c0_i32, %c0_i32_0 : i32, i32, i32
  }
  func.func @transform_1(%arg0: i32) -> (i32, i32) {
    %c0_i32 = arith.constant 0 : i32
    %c0_i32_0 = arith.constant 0 : i32
    %c0_i32_1 = arith.constant 0 : i32
    return %c0_i32, %c0_i32_0 : i32, i32
  }
  func.func @transform_2(%arg0: i32) -> (i32, i32) {
    %c0_i32 = arith.constant 0 : i32
    %c0_i32_0 = arith.constant 0 : i32
    %c0_i32_1 = arith.constant 0 : i32
    return %c0_i32, %c0_i32_0 : i32, i32
  }
  func.func @transform_3(%arg0: i32) -> (i32, i32, i32) {
    %c0_i32 = arith.constant 0 : i32
    %c0_i32_0 = arith.constant 0 : i32
    %c0_i32_1 = arith.constant 0 : i32
    return %arg0, %c0_i32, %c0_i32_0 : i32, i32, i32
  }
  func.func @transform_4(%arg0: i32) -> (i32, i32) {
    %c0_i32 = arith.constant 0 : i32
    %c0_i32_0 = arith.constant 0 : i32
    %c0_i32_1 = arith.constant 0 : i32
    return %c0_i32, %c0_i32_0 : i32, i32
  }
}

module attributes {stable_mosaic.version = 11 : i64} {
  func.func @_mm_kernel(%arg0: i32, %arg1: memref<12x32xf32, #tpu.memory_space<vmem>>, %arg2: memref<32x128xf32, #tpu.memory_space<vmem>>, %arg3: memref<1x128xf32, #tpu.memory_space<vmem>>, %arg4: memref<12x128xf32, #tpu.memory_space<vmem>>) attributes {dimension_semantics = [#tpu.dimension_semantics<arbitrary>], iteration_bounds = array<i64: 1>, scalar_prefetch = 0 : i64, scratch_operands = 0 : i64, tpu.core_type = #tpu.core_type<tc>, window_params = [{pipeline_mode = #tpu.pipeline_mode<synchronous>, transform_indices = @transform_0, window_bounds = array<i64: 12, 32>}, {pipeline_mode = #tpu.pipeline_mode<synchronous>, transform_indices = @transform_1, window_bounds = array<i64: 32, 128>}, {pipeline_mode = #tpu.pipeline_mode<synchronous>, transform_indices = @transform_2, window_bounds = array<i64: 1, 128>}, {pipeline_mode = #tpu.pipeline_mode<synchronous>, transform_indices = @transform_3, window_bounds = array<i64: 12, 128>}]} {
    %c0 = arith.constant 0 : index
    %c0_0 = arith.constant 0 : index
    %0 = vector.load %arg1[%c0, %c0_0] : memref<12x32xf32, #tpu.memory_space<vmem>>, vector<12x32xf32>
    %c0_1 = arith.constant 0 : index
    %c0_2 = arith.constant 0 : index
    %1 = vector.load %arg2[%c0_1, %c0_2] : memref<32x128xf32, #tpu.memory_space<vmem>>, vector<32x128xf32>
    %cst = arith.constant dense<0.000000e+00> : vector<12x128xf32>
    %2 = tpu.matmul %0, %1, %cst {dimension_numbers = #tpu.dot_dimension_numbers<[1], [0], [0], [1], [0, 0, 1, 1], [], []>} : vector<12x32xf32>, vector<32x128xf32>, vector<12x128xf32> -> vector<12x128xf32>
    %c0_3 = arith.constant 0 : index
    %c0_4 = arith.constant 0 : index
    %3 = vector.load %arg3[%c0_3, %c0_4] : memref<1x128xf32, #tpu.memory_space<vmem>>, vector<1x128xf32>
    %4 = vector.broadcast %3 : vector<1x128xf32> to vector<12x128xf32>
    %5 = arith.addf %2, %4 : vector<12x128xf32>
    %c0_5 = arith.constant 0 : index
    %c0_6 = arith.constant 0 : index
    %6 = vector.load %arg4[%c0_5, %c0_6] : memref<12x128xf32, #tpu.memory_space<vmem>>, vector<12x128xf32>
    tpu.vector_store %arg4[%c0_5, %c0_6], %5 {strides = array<i32>} : memref<12x128xf32, #tpu.memory_space<vmem>>, vector<12x128xf32>,
    return
  }
  func.func @transform_0(%arg0: i32) -> (i32, i32) {
    %c0_i32 = arith.constant 0 : i32
    %c0_i32_0 = arith.constant 0 : i32
    %c0_i32_1 = arith.constant 0 : i32
    return %c0_i32, %c0_i32_0 : i32, i32
  }
  func.func @transform_1(%arg0: i32) -> (i32, i32) {
    %c0_i32 = arith.constant 0 : i32
    %c0_i32_0 = arith.constant 0 : i32
    %c0_i32_1 = arith.constant 0 : i32
    return %c0_i32, %c0_i32_0 : i32, i32
  }
  func.func @transform_2(%arg0: i32) -> (i32, i32) {
    %c0_i32 = arith.constant 0 : i32
    %c0_i32_0 = arith.constant 0 : i32
    %c0_i32_1 = arith.constant 0 : i32
    return %c0_i32, %c0_i32_0 : i32, i32
  }
  func.func @transform_3(%arg0: i32) -> (i32, i32) {
    %c0_i32 = arith.constant 0 : i32
    %c0_i32_0 = arith.constant 0 : i32
    %c0_i32_1 = arith.constant 0 : i32
    return %c0_i32, %c0_i32_0 : i32, i32
  }
}

module attributes {stable_mosaic.version = 11 : i64} {
  func.func @_lstm_kernel(%arg0: i32, %arg1: memref<1x2x128xf32, #tpu.memory_space<vmem>>, %arg2: memref<32x128xf32, #tpu.memory_space<vmem>>, %arg3: memref<1x128xf32, #tpu.memory_space<vmem>>, %arg4: memref<1x2x32xf32, #tpu.memory_space<vmem>>, %arg5: memref<2x32xf32, #tpu.memory_space<vmem>>, %arg6: memref<2x32xf32, #tpu.memory_space<vmem>>, %arg7: memref<2x32xf32, #tpu.memory_space<vmem>>) attributes {dimension_semantics = [#tpu.dimension_semantics<arbitrary>], iteration_bounds = array<i64: 6>, scalar_prefetch = 0 : i64, scratch_operands = 2 : i64, tpu.core_type = #tpu.core_type<tc>, window_params = [{transform_indices = @transform_0, window_bounds = array<i64: 1, 2, 128>}, {pipeline_mode = #tpu.pipeline_mode<synchronous>, transform_indices = @transform_1, window_bounds = array<i64: 32, 128>}, {pipeline_mode = #tpu.pipeline_mode<synchronous>, transform_indices = @transform_2, window_bounds = array<i64: 1, 128>}, {transform_indices = @transform_3, window_bounds = array<i64: 1, 2, 32>}, {pipeline_mode = #tpu.pipeline_mode<synchronous>, transform_indices = @transform_4, window_bounds = array<i64: 2, 32>}]} {
    %c0_i32 = arith.constant 0 : i32
    %0 = arith.cmpi eq, %arg0, %c0_i32 : i32
    %1 = arith.extui %0 : i1 to i32
    %c0_i32_0 = arith.constant 0 : i32
    %2 = arith.cmpi ne, %1, %c0_i32_0 : i32
    scf.if %2 {
      %cst_29 = arith.constant 0.000000e+00 : f32
      %50 = vector.broadcast %cst_29 : f32 to vector<2x32xf32>
      %c0_30 = arith.constant 0 : index
      %c0_31 = arith.constant 0 : index
      %51 = vector.load %arg6[%c0_30, %c0_31] : memref<2x32xf32, #tpu.memory_space<vmem>>, vector<2x32xf32>
      tpu.vector_store %arg6[%c0_30, %c0_31], %50 {strides = array<i32>} : memref<2x32xf32, #tpu.memory_space<vmem>>, vector<2x32xf32>,
      %cst_32 = arith.constant 0.000000e+00 : f32
      %52 = vector.broadcast %cst_32 : f32 to vector<2x32xf32>
      %c0_33 = arith.constant 0 : index
      %c0_34 = arith.constant 0 : index
      %53 = vector.load %arg7[%c0_33, %c0_34] : memref<2x32xf32, #tpu.memory_space<vmem>>, vector<2x32xf32>
      tpu.vector_store %arg7[%c0_33, %c0_34], %52 {strides = array<i32>} : memref<2x32xf32, #tpu.memory_space<vmem>>, vector<2x32xf32>,
    } else {
    }
    %c0 = arith.constant 0 : index
    %c0_1 = arith.constant 0 : index
    %c0_2 = arith.constant 0 : index
    %3 = vector.load %arg1[%c0, %c0_1, %c0_2] : memref<1x2x128xf32, #tpu.memory_space<vmem>>, vector<1x2x128xf32>
    %4 = vector.shape_cast %3 : vector<1x2x128xf32> to vector<2x128xf32>
    %c0_3 = arith.constant 0 : index
    %c0_4 = arith.constant 0 : index
    %5 = vector.load %arg6[%c0_3, %c0_4] : memref<2x32xf32, #tpu.memory_space<vmem>>, vector<2x32xf32>
    %c0_5 = arith.constant 0 : index
    %c0_6 = arith.constant 0 : index
    %6 = vector.load %arg2[%c0_5, %c0_6] : memref<32x128xf32, #tpu.memory_space<vmem>>, vector<32x128xf32>
    %cst = arith.constant dense<0.000000e+00> : vector<2x128xf32>
    %7 = tpu.matmul %5, %6, %cst {dimension_numbers = #tpu.dot_dimension_numbers<[1], [0], [0], [1], [0, 0, 1, 1], [], []>} : vector<2x32xf32>, vector<32x128xf32>, vector<2x128xf32> -> vector<2x128xf32>
    %8 = arith.addf %4, %7 : vector<2x128xf32>
    %c0_7 = arith.constant 0 : index
    %c0_8 = arith.constant 0 : index
    %9 = vector.load %arg3[%c0_7, %c0_8] : memref<1x128xf32, #tpu.memory_space<vmem>>, vector<1x128xf32>
    %10 = vector.broadcast %9 : vector<1x128xf32> to vector<2x128xf32>
    %11 = arith.addf %8, %10 : vector<2x128xf32>
    %12 = vector.extract_strided_slice %11 {offsets = [0, 0], sizes = [2, 32], strides = [1, 1]} : vector<2x128xf32> to vector<2x32xf32>
    %cst_9 = arith.constant 0.000000e+00 : f32
    %13 = vector.broadcast %cst_9 : f32 to vector<2x32xf32>
    %14 = arith.subf %13, %12 : vector<2x32xf32>
    %15 = math.exp %14 : vector<2x32xf32>
    %cst_10 = arith.constant 1.000000e+00 : f32
    %16 = vector.broadcast %cst_10 : f32 to vector<2x32xf32>
    %17 = arith.addf %16, %15 : vector<2x32xf32>
    %cst_11 = arith.constant 1.000000e+00 : f32
    %18 = vector.broadcast %cst_11 : f32 to vector<2x32xf32>
    %19 = arith.divf %18, %17 : vector<2x32xf32>
    %20 = vector.extract_strided_slice %11 {offsets = [0, 32], sizes = [2, 32], strides = [1, 1]} : vector<2x128xf32> to vector<2x32xf32>
    %cst_12 = arith.constant 0.000000e+00 : f32
    %21 = vector.broadcast %cst_12 : f32 to vector<2x32xf32>
    %22 = arith.subf %21, %20 : vector<2x32xf32>
    %23 = math.exp %22 : vector<2x32xf32>
    %cst_13 = arith.constant 1.000000e+00 : f32
    %24 = vector.broadcast %cst_13 : f32 to vector<2x32xf32>
    %25 = arith.addf %24, %23 : vector<2x32xf32>
    %cst_14 = arith.constant 1.000000e+00 : f32
    %26 = vector.broadcast %cst_14 : f32 to vector<2x32xf32>
    %27 = arith.divf %26, %25 : vector<2x32xf32>
    %28 = vector.extract_strided_slice %11 {offsets = [0, 64], sizes = [2, 32], strides = [1, 1]} : vector<2x128xf32> to vector<2x32xf32>
    %29 = math.tanh %28 : vector<2x32xf32>
    %30 = vector.extract_strided_slice %11 {offsets = [0, 96], sizes = [2, 32], strides = [1, 1]} : vector<2x128xf32> to vector<2x32xf32>
    %cst_15 = arith.constant 0.000000e+00 : f32
    %31 = vector.broadcast %cst_15 : f32 to vector<2x32xf32>
    %32 = arith.subf %31, %30 : vector<2x32xf32>
    %33 = math.exp %32 : vector<2x32xf32>
    %cst_16 = arith.constant 1.000000e+00 : f32
    %34 = vector.broadcast %cst_16 : f32 to vector<2x32xf32>
    %35 = arith.addf %34, %33 : vector<2x32xf32>
    %cst_17 = arith.constant 1.000000e+00 : f32
    %36 = vector.broadcast %cst_17 : f32 to vector<2x32xf32>
    %37 = arith.divf %36, %35 : vector<2x32xf32>
    %c0_18 = arith.constant 0 : index
    %c0_19 = arith.constant 0 : index
    %38 = vector.load %arg7[%c0_18, %c0_19] : memref<2x32xf32, #tpu.memory_space<vmem>>, vector<2x32xf32>
    %39 = arith.mulf %27, %38 : vector<2x32xf32>
    %40 = arith.mulf %19, %29 : vector<2x32xf32>
    %41 = arith.addf %39, %40 : vector<2x32xf32>
    %42 = math.tanh %41 : vector<2x32xf32>
    %43 = arith.mulf %37, %42 : vector<2x32xf32>
    %c0_20 = arith.constant 0 : index
    %c0_21 = arith.constant 0 : index
    %44 = vector.load %arg6[%c0_20, %c0_21] : memref<2x32xf32, #tpu.memory_space<vmem>>, vector<2x32xf32>
    tpu.vector_store %arg6[%c0_20, %c0_21], %43 {strides = array<i32>} : memref<2x32xf32, #tpu.memory_space<vmem>>, vector<2x32xf32>,
    %c0_22 = arith.constant 0 : index
    %c0_23 = arith.constant 0 : index
    %45 = vector.load %arg7[%c0_22, %c0_23] : memref<2x32xf32, #tpu.memory_space<vmem>>, vector<2x32xf32>
    tpu.vector_store %arg7[%c0_22, %c0_23], %41 {strides = array<i32>} : memref<2x32xf32, #tpu.memory_space<vmem>>, vector<2x32xf32>,
    %c0_24 = arith.constant 0 : index
    %c0_25 = arith.constant 0 : index
    %c0_26 = arith.constant 0 : index
    %46 = vector.load %arg4[%c0_24, %c0_25, %c0_26] : memref<1x2x32xf32, #tpu.memory_space<vmem>>, vector<1x2x32xf32>
    %47 = vector.shape_cast %46 : vector<1x2x32xf32> to vector<2x32xf32>
    %48 = vector.shape_cast %43 : vector<2x32xf32> to vector<1x2x32xf32>
    tpu.vector_store %arg4[%c0_24, %c0_25, %c0_26], %48 {strides = array<i32>} : memref<1x2x32xf32, #tpu.memory_space<vmem>>, vector<1x2x32xf32>,
    %c0_27 = arith.constant 0 : index
    %c0_28 = arith.constant 0 : index
    %49 = vector.load %arg5[%c0_27, %c0_28] : memref<2x32xf32, #tpu.memory_space<vmem>>, vector<2x32xf32>
    tpu.vector_store %arg5[%c0_27, %c0_28], %41 {strides = array<i32>} : memref<2x32xf32, #tpu.memory_space<vmem>>, vector<2x32xf32>,
    return
  }
  func.func @transform_0(%arg0: i32) -> (i32, i32, i32) {
    %c0_i32 = arith.constant 0 : i32
    %c0_i32_0 = arith.constant 0 : i32
    %c0_i32_1 = arith.constant 0 : i32
    return %arg0, %c0_i32, %c0_i32_0 : i32, i32, i32
  }
  func.func @transform_1(%arg0: i32) -> (i32, i32) {
    %c0_i32 = arith.constant 0 : i32
    %c0_i32_0 = arith.constant 0 : i32
    %c0_i32_1 = arith.constant 0 : i32
    return %c0_i32, %c0_i32_0 : i32, i32
  }
  func.func @transform_2(%arg0: i32) -> (i32, i32) {
    %c0_i32 = arith.constant 0 : i32
    %c0_i32_0 = arith.constant 0 : i32
    %c0_i32_1 = arith.constant 0 : i32
    return %c0_i32, %c0_i32_0 : i32, i32
  }
  func.func @transform_3(%arg0: i32) -> (i32, i32, i32) {
    %c0_i32 = arith.constant 0 : i32
    %c0_i32_0 = arith.constant 0 : i32
    %c0_i32_1 = arith.constant 0 : i32
    return %arg0, %c0_i32, %c0_i32_0 : i32, i32, i32
  }
  func.func @transform_4(%arg0: i32) -> (i32, i32) {
    %c0_i32 = arith.constant 0 : i32
    %c0_i32_0 = arith.constant 0 : i32
    %c0_i32_1 = arith.constant 0 : i32
    return %c0_i32, %c0_i32_0 : i32, i32
  }
}

module attributes {stable_mosaic.version = 11 : i64} {
  func.func @_rhn_kernel(%arg0: i32, %arg1: memref<2x8xf32, #tpu.memory_space<vmem>>, %arg2: memref<2x32xf32, #tpu.memory_space<vmem>>, %arg3: memref<8x64xf32, #tpu.memory_space<vmem>>, %arg4: memref<3x32x64xf32, #tpu.memory_space<vmem>>, %arg5: memref<3x1x64xf32, #tpu.memory_space<vmem>>, %arg6: memref<2x32xf32, #tpu.memory_space<vmem>>) attributes {dimension_semantics = [#tpu.dimension_semantics<arbitrary>], iteration_bounds = array<i64: 1>, scalar_prefetch = 0 : i64, scratch_operands = 0 : i64, tpu.core_type = #tpu.core_type<tc>, window_params = [{pipeline_mode = #tpu.pipeline_mode<synchronous>, transform_indices = @transform_0, window_bounds = array<i64: 2, 8>}, {pipeline_mode = #tpu.pipeline_mode<synchronous>, transform_indices = @transform_1, window_bounds = array<i64: 2, 32>}, {pipeline_mode = #tpu.pipeline_mode<synchronous>, transform_indices = @transform_2, window_bounds = array<i64: 8, 64>}, {pipeline_mode = #tpu.pipeline_mode<synchronous>, transform_indices = @transform_3, window_bounds = array<i64: 3, 32, 64>}, {pipeline_mode = #tpu.pipeline_mode<synchronous>, transform_indices = @transform_4, window_bounds = array<i64: 3, 1, 64>}, {pipeline_mode = #tpu.pipeline_mode<synchronous>, transform_indices = @transform_5, window_bounds = array<i64: 2, 32>}]} {
    %c0 = arith.constant 0 : index
    %c0_0 = arith.constant 0 : index
    %0 = vector.load %arg1[%c0, %c0_0] : memref<2x8xf32, #tpu.memory_space<vmem>>, vector<2x8xf32>
    %c0_1 = arith.constant 0 : index
    %c0_2 = arith.constant 0 : index
    %1 = vector.load %arg3[%c0_1, %c0_2] : memref<8x64xf32, #tpu.memory_space<vmem>>, vector<8x64xf32>
    %cst = arith.constant dense<0.000000e+00> : vector<2x64xf32>
    %2 = tpu.matmul %0, %1, %cst {dimension_numbers = #tpu.dot_dimension_numbers<[1], [0], [0], [1], [0, 0, 1, 1], [], []>} : vector<2x8xf32>, vector<8x64xf32>, vector<2x64xf32> -> vector<2x64xf32>
    %c0_3 = arith.constant 0 : index
    %c0_4 = arith.constant 0 : index
    %3 = vector.load %arg2[%c0_3, %c0_4] : memref<2x32xf32, #tpu.memory_space<vmem>>, vector<2x32xf32>
    %c0_5 = arith.constant 0 : index
    %c0_6 = arith.constant 0 : index
    %c0_7 = arith.constant 0 : index
    %4 = vector.load %arg4[%c0_5, %c0_6, %c0_7] : memref<3x32x64xf32, #tpu.memory_space<vmem>>, vector<1x32x64xf32>
    %5 = vector.shape_cast %4 : vector<1x32x64xf32> to vector<32x64xf32>
    %cst_8 = arith.constant dense<0.000000e+00> : vector<2x64xf32>
    %6 = tpu.matmul %3, %5, %cst_8 {dimension_numbers = #tpu.dot_dimension_numbers<[1], [0], [0], [1], [0, 0, 1, 1], [], []>} : vector<2x32xf32>, vector<32x64xf32>, vector<2x64xf32> -> vector<2x64xf32>
    %c0_9 = arith.constant 0 : index
    %c0_10 = arith.constant 0 : index
    %c0_11 = arith.constant 0 : index
    %7 = vector.load %arg5[%c0_9, %c0_10, %c0_11] : memref<3x1x64xf32, #tpu.memory_space<vmem>>, vector<1x1x64xf32>
    %8 = vector.shape_cast %7 : vector<1x1x64xf32> to vector<1x64xf32>
    %9 = vector.broadcast %8 : vector<1x64xf32> to vector<2x64xf32>
    %10 = arith.addf %6, %9 : vector<2x64xf32>
    %11 = arith.addf %10, %2 : vector<2x64xf32>
    %12 = vector.extract_strided_slice %11 {offsets = [0, 0], sizes = [2, 32], strides = [1, 1]} : vector<2x64xf32> to vector<2x32xf32>
    %13 = math.tanh %12 : vector<2x32xf32>
    %14 = vector.extract_strided_slice %11 {offsets = [0, 32], sizes = [2, 32], strides = [1, 1]} : vector<2x64xf32> to vector<2x32xf32>
    %cst_12 = arith.constant 0.000000e+00 : f32
    %15 = vector.broadcast %cst_12 : f32 to vector<2x32xf32>
    %16 = arith.subf %15, %14 : vector<2x32xf32>
    %17 = math.exp %16 : vector<2x32xf32>
    %cst_13 = arith.constant 1.000000e+00 : f32
    %18 = vector.broadcast %cst_13 : f32 to vector<2x32xf32>
    %19 = arith.addf %18, %17 : vector<2x32xf32>
    %cst_14 = arith.constant 1.000000e+00 : f32
    %20 = vector.broadcast %cst_14 : f32 to vector<2x32xf32>
    %21 = arith.divf %20, %19 : vector<2x32xf32>
    %22 = arith.mulf %13, %21 : vector<2x32xf32>
    %cst_15 = arith.constant 1.000000e+00 : f32
    %23 = vector.broadcast %cst_15 : f32 to vector<2x32xf32>
    %24 = arith.subf %23, %21 : vector<2x32xf32>
    %25 = arith.mulf %3, %24 : vector<2x32xf32>
    %26 = arith.addf %22, %25 : vector<2x32xf32>
    %c1 = arith.constant 1 : index
    %c0_16 = arith.constant 0 : index
    %c0_17 = arith.constant 0 : index
    %27 = vector.load %arg4[%c1, %c0_16, %c0_17] : memref<3x32x64xf32, #tpu.memory_space<vmem>>, vector<1x32x64xf32>
    %28 = vector.shape_cast %27 : vector<1x32x64xf32> to vector<32x64xf32>
    %cst_18 = arith.constant dense<0.000000e+00> : vector<2x64xf32>
    %29 = tpu.matmul %26, %28, %cst_18 {dimension_numbers = #tpu.dot_dimension_numbers<[1], [0], [0], [1], [0, 0, 1, 1], [], []>} : vector<2x32xf32>, vector<32x64xf32>, vector<2x64xf32> -> vector<2x64xf32>
    %c1_19 = arith.constant 1 : index
    %c0_20 = arith.constant 0 : index
    %c0_21 = arith.constant 0 : index
    %30 = vector.load %arg5[%c1_19, %c0_20, %c0_21] : memref<3x1x64xf32, #tpu.memory_space<vmem>>, vector<1x1x64xf32>
    %31 = vector.shape_cast %30 : vector<1x1x64xf32> to vector<1x64xf32>
    %32 = vector.broadcast %31 : vector<1x64xf32> to vector<2x64xf32>
    %33 = arith.addf %29, %32 : vector<2x64xf32>
    %34 = vector.extract_strided_slice %33 {offsets = [0, 0], sizes = [2, 32], strides = [1, 1]} : vector<2x64xf32> to vector<2x32xf32>
    %35 = math.tanh %34 : vector<2x32xf32>
    %36 = vector.extract_strided_slice %33 {offsets = [0, 32], sizes = [2, 32], strides = [1, 1]} : vector<2x64xf32> to vector<2x32xf32>
    %cst_22 = arith.constant 0.000000e+00 : f32
    %37 = vector.broadcast %cst_22 : f32 to vector<2x32xf32>
    %38 = arith.subf %37, %36 : vector<2x32xf32>
    %39 = math.exp %38 : vector<2x32xf32>
    %cst_23 = arith.constant 1.000000e+00 : f32
    %40 = vector.broadcast %cst_23 : f32 to vector<2x32xf32>
    %41 = arith.addf %40, %39 : vector<2x32xf32>
    %cst_24 = arith.constant 1.000000e+00 : f32
    %42 = vector.broadcast %cst_24 : f32 to vector<2x32xf32>
    %43 = arith.divf %42, %41 : vector<2x32xf32>
    %44 = arith.mulf %35, %43 : vector<2x32xf32>
    %cst_25 = arith.constant 1.000000e+00 : f32
    %45 = vector.broadcast %cst_25 : f32 to vector<2x32xf32>
    %46 = arith.subf %45, %43 : vector<2x32xf32>
    %47 = arith.mulf %26, %46 : vector<2x32xf32>
    %48 = arith.addf %44, %47 : vector<2x32xf32>
    %c2 = arith.constant 2 : index
    %c0_26 = arith.constant 0 : index
    %c0_27 = arith.constant 0 : index
    %49 = vector.load %arg4[%c2, %c0_26, %c0_27] : memref<3x32x64xf32, #tpu.memory_space<vmem>>, vector<1x32x64xf32>
    %50 = vector.shape_cast %49 : vector<1x32x64xf32> to vector<32x64xf32>
    %cst_28 = arith.constant dense<0.000000e+00> : vector<2x64xf32>
    %51 = tpu.matmul %48, %50, %cst_28 {dimension_numbers = #tpu.dot_dimension_numbers<[1], [0], [0], [1], [0, 0, 1, 1], [], []>} : vector<2x32xf32>, vector<32x64xf32>, vector<2x64xf32> -> vector<2x64xf32>
    %c2_29 = arith.constant 2 : index
    %c0_30 = arith.constant 0 : index
    %c0_31 = arith.constant 0 : index
    %52 = vector.load %arg5[%c2_29, %c0_30, %c0_31] : memref<3x1x64xf32, #tpu.memory_space<vmem>>, vector<1x1x64xf32>
    %53 = vector.shape_cast %52 : vector<1x1x64xf32> to vector<1x64xf32>
    %54 = vector.broadcast %53 : vector<1x64xf32> to vector<2x64xf32>
    %55 = arith.addf %51, %54 : vector<2x64xf32>
    %56 = vector.extract_strided_slice %55 {offsets = [0, 0], sizes = [2, 32], strides = [1, 1]} : vector<2x64xf32> to vector<2x32xf32>
    %57 = math.tanh %56 : vector<2x32xf32>
    %58 = vector.extract_strided_slice %55 {offsets = [0, 32], sizes = [2, 32], strides = [1, 1]} : vector<2x64xf32> to vector<2x32xf32>
    %cst_32 = arith.constant 0.000000e+00 : f32
    %59 = vector.broadcast %cst_32 : f32 to vector<2x32xf32>
    %60 = arith.subf %59, %58 : vector<2x32xf32>
    %61 = math.exp %60 : vector<2x32xf32>
    %cst_33 = arith.constant 1.000000e+00 : f32
    %62 = vector.broadcast %cst_33 : f32 to vector<2x32xf32>
    %63 = arith.addf %62, %61 : vector<2x32xf32>
    %cst_34 = arith.constant 1.000000e+00 : f32
    %64 = vector.broadcast %cst_34 : f32 to vector<2x32xf32>
    %65 = arith.divf %64, %63 : vector<2x32xf32>
    %66 = arith.mulf %57, %65 : vector<2x32xf32>
    %cst_35 = arith.constant 1.000000e+00 : f32
    %67 = vector.broadcast %cst_35 : f32 to vector<2x32xf32>
    %68 = arith.subf %67, %65 : vector<2x32xf32>
    %69 = arith.mulf %48, %68 : vector<2x32xf32>
    %70 = arith.addf %66, %69 : vector<2x32xf32>
    %c0_36 = arith.constant 0 : index
    %c0_37 = arith.constant 0 : index
    %71 = vector.load %arg6[%c0_36, %c0_37] : memref<2x32xf32, #tpu.memory_space<vmem>>, vector<2x32xf32>
    tpu.vector_store %arg6[%c0_36, %c0_37], %70 {strides = array<i32>} : memref<2x32xf32, #tpu.memory_space<vmem>>, vector<2x32xf32>,
    return
  }
  func.func @transform_0(%arg0: i32) -> (i32, i32) {
    %c0_i32 = arith.constant 0 : i32
    %c0_i32_0 = arith.constant 0 : i32
    %c0_i32_1 = arith.constant 0 : i32
    return %c0_i32, %c0_i32_0 : i32, i32
  }
  func.func @transform_1(%arg0: i32) -> (i32, i32) {
    %c0_i32 = arith.constant 0 : i32
    %c0_i32_0 = arith.constant 0 : i32
    %c0_i32_1 = arith.constant 0 : i32
    return %c0_i32, %c0_i32_0 : i32, i32
  }
  func.func @transform_2(%arg0: i32) -> (i32, i32) {
    %c0_i32 = arith.constant 0 : i32
    %c0_i32_0 = arith.constant 0 : i32
    %c0_i32_1 = arith.constant 0 : i32
    return %c0_i32, %c0_i32_0 : i32, i32
  }
  func.func @transform_3(%arg0: i32) -> (i32, i32, i32) {
    %c0_i32 = arith.constant 0 : i32
    %c0_i32_0 = arith.constant 0 : i32
    %c0_i32_1 = arith.constant 0 : i32
    %c0_i32_2 = arith.constant 0 : i32
    return %c0_i32, %c0_i32_0, %c0_i32_1 : i32, i32, i32
  }
  func.func @transform_4(%arg0: i32) -> (i32, i32, i32) {
    %c0_i32 = arith.constant 0 : i32
    %c0_i32_0 = arith.constant 0 : i32
    %c0_i32_1 = arith.constant 0 : i32
    %c0_i32_2 = arith.constant 0 : i32
    return %c0_i32, %c0_i32_0, %c0_i32_1 : i32, i32, i32
  }
  func.func @transform_5(%arg0: i32) -> (i32, i32) {
    %c0_i32 = arith.constant 0 : i32
    %c0_i32_0 = arith.constant 0 : i32
    %c0_i32_1 = arith.constant 0 : i32
    return %c0_i32, %c0_i32_0 : i32, i32
  }
}

module attributes {stable_mosaic.version = 11 : i64} {
  func.func @_mm_kernel(%arg0: i32, %arg1: memref<2x32xbf16, #tpu.memory_space<vmem>>, %arg2: memref<32x35xbf16, #tpu.memory_space<vmem>>, %arg3: memref<1x35xf32, #tpu.memory_space<vmem>>, %arg4: memref<2x35xf32, #tpu.memory_space<vmem>>) attributes {dimension_semantics = [#tpu.dimension_semantics<arbitrary>], iteration_bounds = array<i64: 1>, scalar_prefetch = 0 : i64, scratch_operands = 0 : i64, tpu.core_type = #tpu.core_type<tc>, window_params = [{pipeline_mode = #tpu.pipeline_mode<synchronous>, transform_indices = @transform_0, window_bounds = array<i64: 2, 32>}, {pipeline_mode = #tpu.pipeline_mode<synchronous>, transform_indices = @transform_1, window_bounds = array<i64: 32, 35>}, {pipeline_mode = #tpu.pipeline_mode<synchronous>, transform_indices = @transform_2, window_bounds = array<i64: 1, 35>}, {pipeline_mode = #tpu.pipeline_mode<synchronous>, transform_indices = @transform_3, window_bounds = array<i64: 2, 35>}]} {
    %c0 = arith.constant 0 : index
    %c0_0 = arith.constant 0 : index
    %0 = vector.load %arg1[%c0, %c0_0] : memref<2x32xbf16, #tpu.memory_space<vmem>>, vector<2x32xbf16>
    %c0_1 = arith.constant 0 : index
    %c0_2 = arith.constant 0 : index
    %1 = vector.load %arg2[%c0_1, %c0_2] : memref<32x35xbf16, #tpu.memory_space<vmem>>, vector<32x35xbf16>
    %cst = arith.constant dense<0.000000e+00> : vector<2x35xf32>
    %2 = tpu.matmul %0, %1, %cst {dimension_numbers = #tpu.dot_dimension_numbers<[1], [0], [0], [1], [0, 0, 1, 1], [], []>} : vector<2x32xbf16>, vector<32x35xbf16>, vector<2x35xf32> -> vector<2x35xf32>
    %c0_3 = arith.constant 0 : index
    %c0_4 = arith.constant 0 : index
    %3 = vector.load %arg3[%c0_3, %c0_4] : memref<1x35xf32, #tpu.memory_space<vmem>>, vector<1x35xf32>
    %4 = vector.broadcast %3 : vector<1x35xf32> to vector<2x35xf32>
    %5 = arith.addf %2, %4 : vector<2x35xf32>
    %c0_5 = arith.constant 0 : index
    %c0_6 = arith.constant 0 : index
    %6 = vector.load %arg4[%c0_5, %c0_6] : memref<2x35xf32, #tpu.memory_space<vmem>>, vector<2x35xf32>
    tpu.vector_store %arg4[%c0_5, %c0_6], %5 {strides = array<i32>} : memref<2x35xf32, #tpu.memory_space<vmem>>, vector<2x35xf32>,
    return
  }
  func.func @transform_0(%arg0: i32) -> (i32, i32) {
    %c0_i32 = arith.constant 0 : i32
    %c0_i32_0 = arith.constant 0 : i32
    %c0_i32_1 = arith.constant 0 : i32
    return %c0_i32, %c0_i32_0 : i32, i32
  }
  func.func @transform_1(%arg0: i32) -> (i32, i32) {
    %c0_i32 = arith.constant 0 : i32
    %c0_i32_0 = arith.constant 0 : i32
    %c0_i32_1 = arith.constant 0 : i32
    return %c0_i32, %c0_i32_0 : i32, i32
  }
  func.func @transform_2(%arg0: i32) -> (i32, i32) {
    %c0_i32 = arith.constant 0 : i32
    %c0_i32_0 = arith.constant 0 : i32
    %c0_i32_1 = arith.constant 0 : i32
    return %c0_i32, %c0_i32_0 : i32, i32
  }
  func.func @transform_3(%arg0: i32) -> (i32, i32) {
    %c0_i32 = arith.constant 0 : i32
    %c0_i32_0 = arith.constant 0 : i32
    %c0_i32_1 = arith.constant 0 : i32
    return %c0_i32, %c0_i32_0 : i32, i32
  }
}

</mosaic_0001>

<bundles_post_ra>
// kernel: npi_forward.44
= control target key start
LH: loop header
LB: loop body
LE: loop exit
PB: predicated region body
PF: predicated region fallthrough
CT: control target
= control target key end

     0   :  { %s744_s12 = smov 0   ;;  %s893_s0 = inlined_call_operand.vmem [shape: bf16[2,196,27], index: 0, kind: input, shape index: {}]   ;;  %s894_s1 = inlined_call_operand.vmem [shape: bf16[27,8], index: 1, kind: input, shape index: {}]   ;;  %s895_s2 = inlined_call_operand.vmem [shape: f32[1,8], index: 2, kind: input, shape index: {}]   ;;  %s896_s3 = inlined_call_operand.vmem [shape: f32[2,196,8], index: 3, kind: output, shape index: {}]  }
   0x1 LB: > { %s572_s13 = sadd.s32 4294967295, %s719_s12   ;;  %p576_p0 = scmp.ge.s32.totalorder %s719_s12, 1  ;;  %s719_s12 = sphi %s744_s12, %s13_s12  }
   0x2   : > { %p137_p1 = scmp.lt.s32.totalorder %s719_s12, 3 }
   0x4   : > { %p138_p2 = pnand %p576_p0, %p137_p1 }
   0x5   : > { %p161_p3 = scmp.lt.s32.totalorder (!%p138_p2), %s572_s13, 1 }
   0x6   : > { %141 = sbr.rel (%p138_p2) target bundleno = 273 (0x111), region = 32 }
   0xb   : > { %vm322_vm0 = vcmask 1044480   ;;  %v721_v0 = vmov 0.0   ;;  %v698_v1 = vld [vmem:[%s894_s1 + $0x8] sm:$0x3f]   ;;  %vm323_vm1 = vcmask 1045504   ;;  %v722_v2 = vmov 65535  }
   0xc   : > { %625 = vmatprep.subr.bf16.mxu0 %v721_v0  ;;  %681 = vmatprep.subr.bf16.mxu1 %v721_v0  ;;  %v324_v3 = vsel %vm322_vm0, 4294967295, %v722_v2  ;;  %vm723_vm2 = vmmov 0   ;;  %s898_s13 = smov (!%p161_p3, %s572_s13), 1  ;;  %v699_v6 = vld [vmem:[%s894_s1] sm:$0xff]   ;;  %vm282_vm3 = vcmask 220160   ;;  %vm490_vm4 = vcmask 64512  }
   0xd   : > { %v325_v4 = vsel %vm323_vm1, %v324_v3, 0  ;;  %629 = vmatprep.mubr.msk.bf16.mxu0 %vm723_vm2, %v721_v0  ;;  %657 = vmatprep.mubr.msk.bf16.mxu1 %vm723_vm2, %v721_v0  ;;  %s685_s18 = smul.u32 100, %s898_s13  ;;  %v809_v20 = vld [vmem:[%s895_s2] ss:$0 sm:$0xff]  ;;  %vm515_vm5 = vcmask 60416  }
   0xe   : > { %v327_v5 = vand.u32 %v698_v1, %v325_v4  ;;  %s686_s22 = smul.u32 200, %s898_s13 }
   0xf   : > { %s766_s21 = scalar_lea.vmem %s893_s0, %s685_s18 }
  0x10   : > { %626 = vmatpush3.bf16.msra.mxu0 %v327_v5  ;;  %683 = vmatpush3.bf16.msra.mxu1 %v327_v5  ;;  %v700_v7 = vld [vmem:[%s766_s21] sm:$0xff]   ;;  %v701_v8 = vld [vmem:[%s766_s21 + $0x38] sm:$0xff]   ;;  %v702_v9 = vld [vmem:[%s766_s21 + $0x8] sm:$0xff]   ;;  %s816_s27 = scalar_lea.vmem %s896_s3, %s686_s22 }
  0x11   : > { %627 = vmatprep.subr.bf16.mxu0 %v721_v0  ;;  %682 = vmatprep.subr.bf16.mxu1 %v721_v0  ;;  %v703_v10 = vld [vmem:[%s766_s21 + $0x40] sm:$0xff]   ;;  %v704_v11 = vld [vmem:[%s766_s21 + $0x10] sm:$0xff]   ;;  %v705_v12 = vld [vmem:[%s766_s21 + $0x48] sm:$0xff]  }
  0x12   : > { %v706_v13 = vld [vmem:[%s766_s21 + $0x18] sm:$0xff]   ;;  %v707_v14 = vld [vmem:[%s766_s21 + $0x50] sm:$0xff]   ;;  %v708_v15 = vld [vmem:[%s766_s21 + $0x20] sm:$0xff]  }
  0x13   : > { %v709_v16 = vld [vmem:[%s766_s21 + $0x58] sm:$0xff]   ;;  %v710_v17 = vld [vmem:[%s766_s21 + $0x28] sm:$0xff]   ;;  %v711_v18 = vld [vmem:[%s766_s21 + $0x60] ss:$0 sps:$4 sm:$0x33]  }
  0x14   : > { %628 = vmatpush3.bf16.msra.mxu0 %v699_v6  ;;  %684 = vmatpush3.bf16.msra.mxu1 %v699_v6  ;;  %v712_v19 = vld [vmem:[%s766_s21 + $0x30] sm:$0xff]  }
  0x17   : > { %630 = vmatmul.mubr.msk.bf16.vlgmr.msra.gmra.mxu0 %vm282_vm3, %v700_v7  ;;  %658 = vmatmul.mubr.msk.bf16.vlgmr.msra.gmra.mxu1 %vm282_vm3, %v701_v8 }
  0x18   : > { %633 = vmatprep.mubr.msk.bf16.mxu0 %vm723_vm2, %v721_v0  ;;  %661 = vmatprep.mubr.msk.bf16.mxu1 %vm723_vm2, %v721_v0 }
  0x1f   : > { %634 = vmatmul.mubr.msk.bf16.gmra.mxu0 %vm282_vm3, %v702_v9  ;;  %662 = vmatmul.mubr.msk.bf16.gmra.mxu1 %vm282_vm3, %v703_v10 }
  0x20   : > { %637 = vmatprep.mubr.msk.bf16.mxu0 %vm723_vm2, %v721_v0  ;;  %665 = vmatprep.mubr.msk.bf16.mxu1 %vm723_vm2, %v721_v0 }
  0x27   : > { %638 = vmatmul.mubr.msk.bf16.gmra.mxu0 %vm282_vm3, %v704_v11  ;;  %666 = vmatmul.mubr.msk.bf16.gmra.mxu1 %vm282_vm3, %v705_v12 }
  0x28   : > { %641 = vmatprep.mubr.msk.bf16.mxu0 %vm723_vm2, %v721_v0  ;;  %669 = vmatprep.mubr.msk.bf16.mxu1 %vm723_vm2, %v721_v0 }
  0x2f   : > { %642 = vmatmul.mubr.msk.bf16.gmra.mxu0 %vm282_vm3, %v706_v13  ;;  %670 = vmatmul.mubr.msk.bf16.gmra.mxu1 %vm282_vm3, %v707_v14 }
  0x30   : > { %645 = vmatprep.mubr.msk.bf16.mxu0 %vm723_vm2, %v721_v0  ;;  %673 = vmatprep.mubr.msk.bf16.mxu1 %vm723_vm2, %v721_v0 }
  0x37   : > { %646 = vmatmul.mubr.msk.bf16.gmra.mxu0 %vm282_vm3, %v708_v15  ;;  %674 = vmatmul.mubr.msk.bf16.gmra.mxu1 %vm282_vm3, %v709_v16 }
  0x38   : > { %649 = vmatprep.mubr.msk.bf16.mxu0 %vm723_vm2, %v721_v0  ;;  %677 = vmatprep.mubr.msk.bf16.mxu1 %vm723_vm2, %v721_v0 }
  0x3f   : > { %650 = vmatmul.mubr.msk.bf16.gmra.mxu0 %vm282_vm3, %v710_v17  ;;  %678 = vmatmul.mubr.msk.bf16.gmra.mxu1 %vm282_vm3, %v711_v18 }
  0x40   : > { %653 = vmatprep.mubr.msk.bf16.mxu0 %vm723_vm2, %v721_v0 }
  0x47   : > { %654 = vmatmul.mubr.msk.bf16.gmra.mxu0 %vm282_vm3, %v712_v19 }
  0xd7   : > { %v363_v21 = vpop.f32.mrf.mxu0  ;;  %v419_v22 = vpop.f32.mrf.mxu1 }
  0xd8   : > { %v364_v23 = vadd.f32 %v809_v20, %v363_v21  ;;  %v420_v24 = vadd.f32 %v809_v20, %v419_v22 }
  0xd9   : > { %v631_v25 = vpop.f32.mrf.mxu0  ;;  %v659_v26 = vpop.f32.mrf.mxu1 }
  0xda   : > { %v465_v27 = vmax.f32 %v364_v23, 0.0  ;;  %v479_v28 = vmax.f32 %v420_v24, 0.0 }
  0xdb   : > { %v366_v29 = vpop.f32.mrf.mxu0  ;;  %v422_v30 = vpop.f32.mrf.mxu1 }
  0xdc   : > { %491 = vst.msk [vmem:[%s816_s27] sm:$0xff] %vm490_vm4, %v465_v27  ;;  %v367_v31 = vadd.f32 %v809_v20, %v366_v29  ;;  %505 = vst.msk [vmem:[%s816_s27 + $0x70] sm:$0xff] %vm490_vm4, %v479_v28  ;;  %v423_v32 = vadd.f32 %v809_v20, %v422_v30 }
  0xdd   : > { %v632_v33 = vpop.f32.mrf.mxu0  ;;  %v660_v34 = vpop.f32.mrf.mxu1 }
  0xde   : > { %v466_v35 = vmax.f32 %v367_v31, 0.0  ;;  %v480_v36 = vmax.f32 %v423_v32, 0.0 }
  0xdf   : > { %v371_v37 = vpop.f32.mrf.mxu0  ;;  %v427_v38 = vpop.f32.mrf.mxu1 }
  0xe0   : > { %492 = vst.msk [vmem:[%s816_s27 + $0x8] sm:$0xff] %vm490_vm4, %v466_v35  ;;  %v372_v39 = vadd.f32 %v809_v20, %v371_v37  ;;  %506 = vst.msk [vmem:[%s816_s27 + $0x78] sm:$0xff] %vm490_vm4, %v480_v36  ;;  %v428_v40 = vadd.f32 %v809_v20, %v427_v38 }
  0xe1   : > { %v635_v41 = vpop.f32.mrf.mxu0  ;;  %v663_v42 = vpop.f32.mrf.mxu1 }
  0xe2   : > { %v467_v43 = vmax.f32 %v372_v39, 0.0  ;;  %v481_v44 = vmax.f32 %v428_v40, 0.0 }
  0xe3   : > { %v374_v45 = vpop.f32.mrf.mxu0  ;;  %v430_v46 = vpop.f32.mrf.mxu1 }
  0xe4   : > { %493 = vst.msk [vmem:[%s816_s27 + $0x10] sm:$0xff] %vm490_vm4, %v467_v43  ;;  %v375_v47 = vadd.f32 %v809_v20, %v374_v45  ;;  %507 = vst.msk [vmem:[%s816_s27 + $0x80] sm:$0xff] %vm490_vm4, %v481_v44  ;;  %v431_v48 = vadd.f32 %v809_v20, %v430_v46 }
  0xe5   : > { %v636_v49 = vpop.f32.mrf.mxu0  ;;  %v664_v50 = vpop.f32.mrf.mxu1 }
  0xe6   : > { %v468_v51 = vmax.f32 %v375_v47, 0.0  ;;  %v482_v52 = vmax.f32 %v431_v48, 0.0 }
  0xe7   : > { %v379_v53 = vpop.f32.mrf.mxu0  ;;  %v435_v54 = vpop.f32.mrf.mxu1 }
  0xe8   : > { %494 = vst.msk [vmem:[%s816_s27 + $0x18] sm:$0xff] %vm490_vm4, %v468_v51  ;;  %v380_v55 = vadd.f32 %v809_v20, %v379_v53  ;;  %508 = vst.msk [vmem:[%s816_s27 + $0x88] sm:$0xff] %vm490_vm4, %v482_v52  ;;  %v436_v56 = vadd.f32 %v809_v20, %v435_v54 }
  0xe9   : > { %v639_v57 = vpop.f32.mrf.mxu0  ;;  %v667_v58 = vpop.f32.mrf.mxu1 }
  0xea   : > { %v469_v59 = vmax.f32 %v380_v55, 0.0  ;;  %v483_v60 = vmax.f32 %v436_v56, 0.0 }
  0xeb   : > { %v382_v61 = vpop.f32.mrf.mxu0  ;;  %v438_v62 = vpop.f32.mrf.mxu1 }
  0xec   : > { %495 = vst.msk [vmem:[%s816_s27 + $0x20] sm:$0xff] %vm490_vm4, %v469_v59  ;;  %v383_v63 = vadd.f32 %v809_v20, %v382_v61  ;;  %509 = vst.msk [vmem:[%s816_s27 + $0x90] sm:$0xff] %vm490_vm4, %v483_v60  ;;  %v439_v0 = vadd.f32 %v809_v20, %v438_v62 }
  0xed   : > { %v640_v1 = vpop.f32.mrf.mxu0  ;;  %v668_v2 = vpop.f32.mrf.mxu1 }
  0xee   : > { %v470_v3 = vmax.f32 %v383_v63, 0.0  ;;  %v484_v4 = vmax.f32 %v439_v0, 0.0 }
  0xef   : > { %v387_v5 = vpop.f32.mrf.mxu0  ;;  %v443_v6 = vpop.f32.mrf.mxu1 }
  0xf0   : > { %496 = vst.msk [vmem:[%s816_s27 + $0x28] sm:$0xff] %vm490_vm4, %v470_v3  ;;  %v388_v7 = vadd.f32 %v809_v20, %v387_v5  ;;  %510 = vst.msk [vmem:[%s816_s27 + $0x98] sm:$0xff] %vm490_vm4, %v484_v4  ;;  %v444_v8 = vadd.f32 %v809_v20, %v443_v6 }
  0xf1   : > { %v643_v9 = vpop.f32.mrf.mxu0  ;;  %v671_v10 = vpop.f32.mrf.mxu1 }
  0xf2   : > { %v471_v11 = vmax.f32 %v388_v7, 0.0  ;;  %v485_v12 = vmax.f32 %v444_v8, 0.0 }
  0xf3   : > { %v390_v13 = vpop.f32.mrf.mxu0  ;;  %v446_v14 = vpop.f32.mrf.mxu1 }
  0xf4   : > { %497 = vst.msk [vmem:[%s816_s27 + $0x30] sm:$0xff] %vm490_vm4, %v471_v11  ;;  %v391_v15 = vadd.f32 %v809_v20, %v390_v13  ;;  %511 = vst.msk [vmem:[%s816_s27 + $0xa0] sm:$0xff] %vm490_vm4, %v485_v12  ;;  %v447_v16 = vadd.f32 %v809_v20, %v446_v14 }
  0xf5   : > { %v644_v17 = vpop.f32.mrf.mxu0  ;;  %v672_v18 = vpop.f32.mrf.mxu1 }
  0xf6   : > { %v472_v19 = vmax.f32 %v391_v15, 0.0  ;;  %v486_v21 = vmax.f32 %v447_v16, 0.0 }
  0xf7   : > { %v395_v22 = vpop.f32.mrf.mxu0  ;;  %v451_v23 = vpop.f32.mrf.mxu1 }
  0xf8   : > { %498 = vst.msk [vmem:[%s816_s27 + $0x38] sm:$0xff] %vm490_vm4, %v472_v19  ;;  %v396_v24 = vadd.f32 %v809_v20, %v395_v22  ;;  %512 = vst.msk [vmem:[%s816_s27 + $0xa8] sm:$0xff] %vm490_vm4, %v486_v21  ;;  %v452_v25 = vadd.f32 %v809_v20, %v451_v23 }
  0xf9   : > { %v647_v26 = vpop.f32.mrf.mxu0  ;;  %v675_v27 = vpop.f32.mrf.mxu1 }
  0xfa   : > { %v473_v28 = vmax.f32 %v396_v24, 0.0  ;;  %v487_v29 = vmax.f32 %v452_v25, 0.0 }
  0xfb   : > { %v398_v30 = vpop.f32.mrf.mxu0  ;;  %v454_v31 = vpop.f32.mrf.mxu1 }
  0xfc   : > { %499 = vst.msk [vmem:[%s816_s27 + $0x40] sm:$0xff] %vm490_vm4, %v473_v28  ;;  %v399_v32 = vadd.f32 %v809_v20, %v398_v30  ;;  %513 = vst.msk [vmem:[%s816_s27 + $0xb0] sm:$0xff] %vm490_vm4, %v487_v29  ;;  %v455_v33 = vadd.f32 %v809_v20, %v454_v31 }
  0xfd   : > { %v648_v34 = vpop.f32.mrf.mxu0  ;;  %v676_v35 = vpop.f32.mrf.mxu1 }
  0xfe   : > { %v474_v36 = vmax.f32 %v399_v32, 0.0  ;;  %v488_v37 = vmax.f32 %v455_v33, 0.0 }
  0xff   : > { %v403_v38 = vpop.f32.mrf.mxu0  ;;  %v459_v39 = vpop.f32.mrf.mxu1 }
 0x100   : > { %500 = vst.msk [vmem:[%s816_s27 + $0x48] sm:$0xff] %vm490_vm4, %v474_v36  ;;  %v404_v40 = vadd.f32 %v809_v20, %v403_v38  ;;  %514 = vst.msk [vmem:[%s816_s27 + $0xb8] sm:$0xff] %vm490_vm4, %v488_v37  ;;  %v460_v41 = vadd.f32 %v809_v20, %v459_v39 }
 0x101   : > { %v651_v42 = vpop.f32.mrf.mxu0  ;;  %v679_v43 = vpop.f32.mrf.mxu1 }
 0x102   : > { %v475_v44 = vmax.f32 %v404_v40, 0.0  ;;  %v489_v45 = vmax.f32 %v460_v41, 0.0 }
 0x103   : > { %v406_v46 = vpop.f32.mrf.mxu0  ;;  %v462_v47 = vpop.f32.mrf.mxu1 }
 0x104   : > { %501 = vst.msk [vmem:[%s816_s27 + $0x50] sm:$0xff] %vm490_vm4, %v475_v44  ;;  %v407_v48 = vadd.f32 %v809_v20, %v406_v46 }
 0x105   : > { %516 = vst.msk [vmem:[%s816_s27 + $0xc0] sm:$0xf] %vm515_vm5, %v489_v45  ;;  %v652_v49 = vpop.f32.mrf.mxu0  ;;  %v680_v50 = vpop.f32.mrf.mxu1 }
 0x106   : > { %v476_v51 = vmax.f32 %v407_v48, 0.0 }
 0x107   : > { %v411_v52 = vpop.f32.mrf.mxu0 }
 0x108   : > { %502 = vst.msk [vmem:[%s816_s27 + $0x58] sm:$0xff] %vm490_vm4, %v476_v51  ;;  %v412_v53 = vadd.f32 %v809_v20, %v411_v52 }
 0x109   : > { %v655_v54 = vpop.f32.mrf.mxu0 }
 0x10a   : > { %v477_v55 = vmax.f32 %v412_v53, 0.0 }
 0x10b   : > { %v414_v56 = vpop.f32.mrf.mxu0 }
 0x10c   : > { %503 = vst.msk [vmem:[%s816_s27 + $0x60] sm:$0xff] %vm490_vm4, %v477_v55  ;;  %v415_v57 = vadd.f32 %v809_v20, %v414_v56 }
 0x10d   : > { %v656_v58 = vpop.f32.mrf.mxu0 }
 0x10e   : > { %v478_v59 = vmax.f32 %v415_v57, 0.0 }
 0x110   : > { %504 = vst.msk [vmem:[%s816_s27 + $0x68] sm:$0xff] %vm490_vm4, %v478_v59 }
 0x111 PF: > { %s13_s12 = sadd.s32 1, %s719_s12  }
 0x112   : > { %p10_p4 = scmp.ge.s32.totalorder %s13_s12, 4  }
 0x114   :  { %12 = sbr.rel (!%p10_p4) target bundleno = 1 (0x1), region = 62 }

// kernel: npi_forward.52
= control target key start
LH: loop header
LB: loop body
LE: loop exit
PB: predicated region body
PF: predicated region fallthrough
CT: control target
= control target key end

     0   :  { %v464_v0 = vmov 0.0   ;;  %vm465_vm0 = vmmov 0   ;;  %vm118_vm1 = vcmask 130048   ;;  %vm319_vm2 = vcmask 392192   ;;  %s683_s1 = inlined_call_operand.vmem [shape: bf16[16,48], index: 1, kind: input, shape index: {}]   ;;  %s684_s0 = inlined_call_operand.vmem [shape: bf16[1,196,16], index: 0, kind: input, shape index: {}]   ;;  %s685_s2 = inlined_call_operand.vmem [shape: f32[1,48], index: 2, kind: input, shape index: {}]   ;;  %s686_s3 = inlined_call_operand.vmem [shape: f32[1,196,48], index: 3, kind: output, shape index: {}]  }
   0x1   :  { %392 = vmatprep.subr.bf16.mxu0 %v464_v0  ;;  %v450_v1 = vld [vmem:[%s683_s1] sm:$0xff]   ;;  %394 = vmatprep.mubr.msk.bf16.mxu0 %vm465_vm0, %v464_v0  ;;  %v452_v3 = vld [vmem:[%s684_s0 + $0x38] sm:$0xff]   ;;  %v453_v4 = vld [vmem:[%s684_s0 + $0x8] sm:$0xff]   ;;  %vm344_vm3 = vcmask 388096  }
   0x2   :  { %v451_v2 = vld [vmem:[%s684_s0] sm:$0xff]   ;;  %446 = vmatprep.subr.bf16.mxu1 %v464_v0  ;;  %422 = vmatprep.mubr.msk.bf16.mxu1 %vm465_vm0, %v464_v0  ;;  %v455_v6 = vld [vmem:[%s684_s0 + $0x10] sm:$0xff]   ;;  %v456_v7 = vld [vmem:[%s684_s0 + $0x48] sm:$0xff]  }
   0x3   :  { %393 = vmatpush3.bf16.msra.mxu0 %v450_v1  ;;  %447 = vmatpush3.bf16.msra.mxu1 %v450_v1  ;;  %v454_v5 = vld [vmem:[%s684_s0 + $0x40] sm:$0xff]   ;;  %v457_v8 = vld [vmem:[%s684_s0 + $0x18] sm:$0xff]   ;;  %v458_v9 = vld [vmem:[%s684_s0 + $0x50] sm:$0xff]  }
   0x4   :  { %v459_v10 = vld [vmem:[%s684_s0 + $0x20] sm:$0xff]   ;;  %v460_v11 = vld [vmem:[%s684_s0 + $0x58] sm:$0xff]   ;;  %v461_v12 = vld [vmem:[%s684_s0 + $0x28] sm:$0xff]  }
   0x5   :  { %v462_v13 = vld [vmem:[%s684_s0 + $0x60] ss:$0 sps:$4 sm:$0x33]   ;;  %v463_v14 = vld [vmem:[%s684_s0 + $0x30] sm:$0xff]  }
   0x6   :  { %395 = vmatmul.mubr.msk.bf16.vlgmr.msra.gmra.mxu0 %vm118_vm1, %v451_v2  ;;  %423 = vmatmul.mubr.msk.bf16.vlgmr.msra.gmra.mxu1 %vm118_vm1, %v452_v3  ;;  %v557_v15 = vld [vmem:[%s685_s2] ss:$0 sm:$0xff] }
   0x7   :  { %398 = vmatprep.mubr.msk.bf16.mxu0 %vm465_vm0, %v464_v0  ;;  %426 = vmatprep.mubr.msk.bf16.mxu1 %vm465_vm0, %v464_v0 }
   0xe   :  { %399 = vmatmul.mubr.msk.bf16.gmra.mxu0 %vm118_vm1, %v453_v4  ;;  %427 = vmatmul.mubr.msk.bf16.gmra.mxu1 %vm118_vm1, %v454_v5 }
   0xf   :  { %402 = vmatprep.mubr.msk.bf16.mxu0 %vm465_vm0, %v464_v0  ;;  %430 = vmatprep.mubr.msk.bf16.mxu1 %vm465_vm0, %v464_v0 }
  0x16   :  { %403 = vmatmul.mubr.msk.bf16.gmra.mxu0 %vm118_vm1, %v455_v6  ;;  %431 = vmatmul.mubr.msk.bf16.gmra.mxu1 %vm118_vm1, %v456_v7 }
  0x17   :  { %406 = vmatprep.mubr.msk.bf16.mxu0 %vm465_vm0, %v464_v0  ;;  %434 = vmatprep.mubr.msk.bf16.mxu1 %vm465_vm0, %v464_v0 }
  0x1e   :  { %407 = vmatmul.mubr.msk.bf16.gmra.mxu0 %vm118_vm1, %v457_v8  ;;  %435 = vmatmul.mubr.msk.bf16.gmra.mxu1 %vm118_vm1, %v458_v9 }
  0x1f   :  { %410 = vmatprep.mubr.msk.bf16.mxu0 %vm465_vm0, %v464_v0  ;;  %438 = vmatprep.mubr.msk.bf16.mxu1 %vm465_vm0, %v464_v0 }
  0x26   :  { %411 = vmatmul.mubr.msk.bf16.gmra.mxu0 %vm118_vm1, %v459_v10  ;;  %439 = vmatmul.mubr.msk.bf16.gmra.mxu1 %vm118_vm1, %v460_v11 }
  0x27   :  { %414 = vmatprep.mubr.msk.bf16.mxu0 %vm465_vm0, %v464_v0  ;;  %442 = vmatprep.mubr.msk.bf16.mxu1 %vm465_vm0, %v464_v0 }
  0x2e   :  { %415 = vmatmul.mubr.msk.bf16.gmra.mxu0 %vm118_vm1, %v461_v12  ;;  %443 = vmatmul.mubr.msk.bf16.gmra.mxu1 %vm118_vm1, %v462_v13 }
  0x2f   :  { %418 = vmatprep.mubr.msk.bf16.mxu0 %vm465_vm0, %v464_v0 }
  0x36   :  { %419 = vmatmul.mubr.msk.bf16.gmra.mxu0 %vm118_vm1, %v463_v14 }
  0xc6   :  { %v192_v16 = vpop.f32.mrf.mxu0  ;;  %v248_v17 = vpop.f32.mrf.mxu1 }
  0xc7   :  { %v193_v18 = vadd.f32 %v557_v15, %v192_v16  ;;  %v249_v19 = vadd.f32 %v557_v15, %v248_v17 }
  0xc8   :  { %v396_v20 = vpop.f32.mrf.mxu0  ;;  %v424_v21 = vpop.f32.mrf.mxu1 }
  0xc9   :  { %v294_v22 = vmax.f32 %v193_v18, 0.0  ;;  %v308_v23 = vmax.f32 %v249_v19, 0.0 }
  0xca   :  { %v195_v24 = vpop.f32.mrf.mxu0  ;;  %v251_v25 = vpop.f32.mrf.mxu1 }
  0xcb   :  { %320 = vst.msk [vmem:[%s686_s3] sm:$0xff] %vm319_vm2, %v294_v22  ;;  %v196_v26 = vadd.f32 %v557_v15, %v195_v24  ;;  %334 = vst.msk [vmem:[%s686_s3 + $0x70] sm:$0xff] %vm319_vm2, %v308_v23  ;;  %v252_v27 = vadd.f32 %v557_v15, %v251_v25 }
  0xcc   :  { %v397_v28 = vpop.f32.mrf.mxu0  ;;  %v425_v29 = vpop.f32.mrf.mxu1 }
  0xcd   :  { %v295_v30 = vmax.f32 %v196_v26, 0.0  ;;  %v309_v31 = vmax.f32 %v252_v27, 0.0 }
  0xce   :  { %v200_v32 = vpop.f32.mrf.mxu0  ;;  %v256_v33 = vpop.f32.mrf.mxu1 }
  0xcf   :  { %321 = vst.msk [vmem:[%s686_s3 + $0x8] sm:$0xff] %vm319_vm2, %v295_v30  ;;  %v201_v34 = vadd.f32 %v557_v15, %v200_v32  ;;  %335 = vst.msk [vmem:[%s686_s3 + $0x78] sm:$0xff] %vm319_vm2, %v309_v31  ;;  %v257_v35 = vadd.f32 %v557_v15, %v256_v33 }
  0xd0   :  { %v400_v36 = vpop.f32.mrf.mxu0  ;;  %v428_v37 = vpop.f32.mrf.mxu1 }
  0xd1   :  { %v296_v38 = vmax.f32 %v201_v34, 0.0  ;;  %v310_v39 = vmax.f32 %v257_v35, 0.0 }
  0xd2   :  { %v203_v40 = vpop.f32.mrf.mxu0  ;;  %v259_v41 = vpop.f32.mrf.mxu1 }
  0xd3   :  { %322 = vst.msk [vmem:[%s686_s3 + $0x10] sm:$0xff] %vm319_vm2, %v296_v38  ;;  %v204_v42 = vadd.f32 %v557_v15, %v203_v40  ;;  %336 = vst.msk [vmem:[%s686_s3 + $0x80] sm:$0xff] %vm319_vm2, %v310_v39  ;;  %v260_v43 = vadd.f32 %v557_v15, %v259_v41 }
  0xd4   :  { %v401_v44 = vpop.f32.mrf.mxu0  ;;  %v429_v45 = vpop.f32.mrf.mxu1 }
  0xd5   :  { %v297_v46 = vmax.f32 %v204_v42, 0.0  ;;  %v311_v47 = vmax.f32 %v260_v43, 0.0 }
  0xd6   :  { %v208_v48 = vpop.f32.mrf.mxu0  ;;  %v264_v49 = vpop.f32.mrf.mxu1 }
  0xd7   :  { %323 = vst.msk [vmem:[%s686_s3 + $0x18] sm:$0xff] %vm319_vm2, %v297_v46  ;;  %v209_v50 = vadd.f32 %v557_v15, %v208_v48  ;;  %337 = vst.msk [vmem:[%s686_s3 + $0x88] sm:$0xff] %vm319_vm2, %v311_v47  ;;  %v265_v51 = vadd.f32 %v557_v15, %v264_v49 }
  0xd8   :  { %v404_v52 = vpop.f32.mrf.mxu0  ;;  %v432_v53 = vpop.f32.mrf.mxu1 }
  0xd9   :  { %v298_v54 = vmax.f32 %v209_v50, 0.0  ;;  %v312_v55 = vmax.f32 %v265_v51, 0.0 }
  0xda   :  { %v211_v56 = vpop.f32.mrf.mxu0  ;;  %v267_v57 = vpop.f32.mrf.mxu1 }
  0xdb   :  { %324 = vst.msk [vmem:[%s686_s3 + $0x20] sm:$0xff] %vm319_vm2, %v298_v54  ;;  %v212_v58 = vadd.f32 %v557_v15, %v211_v56  ;;  %338 = vst.msk [vmem:[%s686_s3 + $0x90] sm:$0xff] %vm319_vm2, %v312_v55  ;;  %v268_v59 = vadd.f32 %v557_v15, %v267_v57 }
  0xdc   :  { %v405_v60 = vpop.f32.mrf.mxu0  ;;  %v433_v61 = vpop.f32.mrf.mxu1 }
  0xdd   :  { %v299_v62 = vmax.f32 %v212_v58, 0.0  ;;  %v313_v63 = vmax.f32 %v268_v59, 0.0 }
  0xde   :  { %v216_v0 = vpop.f32.mrf.mxu0  ;;  %v272_v1 = vpop.f32.mrf.mxu1 }
  0xdf   :  { %325 = vst.msk [vmem:[%s686_s3 + $0x28] sm:$0xff] %vm319_vm2, %v299_v62  ;;  %v217_v2 = vadd.f32 %v557_v15, %v216_v0  ;;  %339 = vst.msk [vmem:[%s686_s3 + $0x98] sm:$0xff] %vm319_vm2, %v313_v63  ;;  %v273_v3 = vadd.f32 %v557_v15, %v272_v1 }
  0xe0   :  { %v408_v4 = vpop.f32.mrf.mxu0  ;;  %v436_v5 = vpop.f32.mrf.mxu1 }
  0xe1   :  { %v300_v6 = vmax.f32 %v217_v2, 0.0  ;;  %v314_v7 = vmax.f32 %v273_v3, 0.0 }
  0xe2   :  { %v219_v8 = vpop.f32.mrf.mxu0  ;;  %v275_v9 = vpop.f32.mrf.mxu1 }
  0xe3   :  { %326 = vst.msk [vmem:[%s686_s3 + $0x30] sm:$0xff] %vm319_vm2, %v300_v6  ;;  %v220_v10 = vadd.f32 %v557_v15, %v219_v8  ;;  %340 = vst.msk [vmem:[%s686_s3 + $0xa0] sm:$0xff] %vm319_vm2, %v314_v7  ;;  %v276_v11 = vadd.f32 %v557_v15, %v275_v9 }
  0xe4   :  { %v409_v12 = vpop.f32.mrf.mxu0  ;;  %v437_v13 = vpop.f32.mrf.mxu1 }
  0xe5   :  { %v301_v14 = vmax.f32 %v220_v10, 0.0  ;;  %v315_v16 = vmax.f32 %v276_v11, 0.0 }
  0xe6   :  { %v224_v17 = vpop.f32.mrf.mxu0  ;;  %v280_v18 = vpop.f32.mrf.mxu1 }
  0xe7   :  { %327 = vst.msk [vmem:[%s686_s3 + $0x38] sm:$0xff] %vm319_vm2, %v301_v14  ;;  %v225_v19 = vadd.f32 %v557_v15, %v224_v17  ;;  %341 = vst.msk [vmem:[%s686_s3 + $0xa8] sm:$0xff] %vm319_vm2, %v315_v16  ;;  %v281_v20 = vadd.f32 %v557_v15, %v280_v18 }
  0xe8   :  { %v412_v21 = vpop.f32.mrf.mxu0  ;;  %v440_v22 = vpop.f32.mrf.mxu1 }
  0xe9   :  { %v302_v23 = vmax.f32 %v225_v19, 0.0  ;;  %v316_v24 = vmax.f32 %v281_v20, 0.0 }
  0xea   :  { %v227_v25 = vpop.f32.mrf.mxu0  ;;  %v283_v26 = vpop.f32.mrf.mxu1 }
  0xeb   :  { %328 = vst.msk [vmem:[%s686_s3 + $0x40] sm:$0xff] %vm319_vm2, %v302_v23  ;;  %v228_v27 = vadd.f32 %v557_v15, %v227_v25  ;;  %342 = vst.msk [vmem:[%s686_s3 + $0xb0] sm:$0xff] %vm319_vm2, %v316_v24  ;;  %v284_v28 = vadd.f32 %v557_v15, %v283_v26 }
  0xec   :  { %v413_v29 = vpop.f32.mrf.mxu0  ;;  %v441_v30 = vpop.f32.mrf.mxu1 }
  0xed   :  { %v303_v31 = vmax.f32 %v228_v27, 0.0  ;;  %v317_v32 = vmax.f32 %v284_v28, 0.0 }
  0xee   :  { %v232_v33 = vpop.f32.mrf.mxu0  ;;  %v288_v34 = vpop.f32.mrf.mxu1 }
  0xef   :  { %329 = vst.msk [vmem:[%s686_s3 + $0x48] sm:$0xff] %vm319_vm2, %v303_v31  ;;  %v233_v35 = vadd.f32 %v557_v15, %v232_v33  ;;  %343 = vst.msk [vmem:[%s686_s3 + $0xb8] sm:$0xff] %vm319_vm2, %v317_v32  ;;  %v289_v36 = vadd.f32 %v557_v15, %v288_v34 }
  0xf0   :  { %v416_v37 = vpop.f32.mrf.mxu0  ;;  %v444_v38 = vpop.f32.mrf.mxu1 }
  0xf1   :  { %v304_v39 = vmax.f32 %v233_v35, 0.0  ;;  %v318_v40 = vmax.f32 %v289_v36, 0.0 }
  0xf2   :  { %v235_v41 = vpop.f32.mrf.mxu0  ;;  %v291_v42 = vpop.f32.mrf.mxu1 }
  0xf3   :  { %330 = vst.msk [vmem:[%s686_s3 + $0x50] sm:$0xff] %vm319_vm2, %v304_v39  ;;  %v236_v43 = vadd.f32 %v557_v15, %v235_v41 }
  0xf4   :  { %345 = vst.msk [vmem:[%s686_s3 + $0xc0] sm:$0xf] %vm344_vm3, %v318_v40  ;;  %v417_v44 = vpop.f32.mrf.mxu0  ;;  %v445_v45 = vpop.f32.mrf.mxu1 }
  0xf5   :  { %v305_v46 = vmax.f32 %v236_v43, 0.0 }
  0xf6   :  { %v240_v47 = vpop.f32.mrf.mxu0 }
  0xf7   :  { %331 = vst.msk [vmem:[%s686_s3 + $0x58] sm:$0xff] %vm319_vm2, %v305_v46  ;;  %v241_v48 = vadd.f32 %v557_v15, %v240_v47 }
  0xf8   :  { %v420_v49 = vpop.f32.mrf.mxu0 }
  0xf9   :  { %v306_v50 = vmax.f32 %v241_v48, 0.0 }
  0xfa   :  { %v243_v51 = vpop.f32.mrf.mxu0 }
  0xfb   :  { %332 = vst.msk [vmem:[%s686_s3 + $0x60] sm:$0xff] %vm319_vm2, %v306_v50  ;;  %v244_v52 = vadd.f32 %v557_v15, %v243_v51 }
  0xfc   :  { %v421_v53 = vpop.f32.mrf.mxu0 }
  0xfd   :  { %v307_v54 = vmax.f32 %v244_v52, 0.0 }
  0xff   :  { %333 = vst.msk [vmem:[%s686_s3 + $0x68] sm:$0xff] %vm319_vm2, %v307_v54 }

// kernel: npi_forward.53
= control target key start
LH: loop header
LB: loop body
LE: loop exit
PB: predicated region body
PF: predicated region fallthrough
CT: control target
= control target key end

     0   :  { %v1187_v0 = vmov 0   ;;  %vm529_vm0 = vcmask 392192   ;;  %vm890_vm1 = vcmask 388096   ;;  %s1592_s1 = inlined_call_operand.vmem [shape: bf16[432,48], index: 1, kind: input, shape index: {}]   ;;  %s1593_s0 = inlined_call_operand.vmem [shape: bf16[1,196,432], index: 0, kind: input, shape index: {}]   ;;  %s1594_s2 = inlined_call_operand.vmem [shape: f32[1,48], index: 2, kind: input, shape index: {}]   ;;  %s1595_s3 = inlined_call_operand.vmem [shape: f32[1,196,48], index: 3, kind: output, shape index: {}]  }
   0x1   :  { %705 = vmatprep.subr.bf16.mxu1 %v1187_v0  ;;  %v1084_v1 = vld [vmem:[%s1592_s1 + $0x78] sm:$0xff]   ;;  %v1087_v4 = vld [vmem:[%s1592_s1 + $0x70] sm:$0xff]   ;;  %v1090_v7 = vld [vmem:[%s1592_s1 + $0x68] sm:$0xff]  }
   0x2   :  { %v1085_v2 = vld [vmem:[%s1592_s1 + $0xb8] sm:$0xff]   ;;  %989 = vmatprep.subr.bf16.mxu0 %v1084_v1  ;;  %v1088_v5 = vld [vmem:[%s1592_s1 + $0xb0] sm:$0xff]   ;;  %v1091_v8 = vld [vmem:[%s1592_s1 + $0xa8] sm:$0xff]  }
   0x3   :  { %v1086_v3 = vld [vmem:[%s1592_s1 + $0x38] sm:$0xff]   ;;  %706 = vmatpush1.bf16.msra.mxu1 %v1085_v2  ;;  %v1089_v6 = vld [vmem:[%s1592_s1 + $0x30] sm:$0xff]   ;;  %v1092_v9 = vld [vmem:[%s1592_s1 + $0x28] sm:$0xff]  }
   0x4   :  { %990 = vmatpush3.bf16.msra.mxu0 %v1086_v3  ;;  %707 = vmatprep.subr.bf16.mxu1 %v1187_v0  ;;  %v1093_v10 = vld [vmem:[%s1592_s1 + $0x60] sm:$0xff]   ;;  %v1096_v13 = vld [vmem:[%s1592_s1 + $0x58] sm:$0xff]   ;;  %v1099_v16 = vld [vmem:[%s1592_s1 + $0x50] sm:$0xff]  }
   0x5   :  { %991 = vmatprep.subr.bf16.mxu0 %v1087_v4  ;;  %v1094_v11 = vld [vmem:[%s1592_s1 + $0xa0] sm:$0xff]   ;;  %v1097_v14 = vld [vmem:[%s1592_s1 + $0x98] sm:$0xff]   ;;  %v1100_v17 = vld [vmem:[%s1592_s1 + $0x90] sm:$0xff]  }
   0x6   :  { %v1095_v12 = vld [vmem:[%s1592_s1 + $0x20] sm:$0xff]   ;;  %v1098_v15 = vld [vmem:[%s1592_s1 + $0x18] sm:$0xff]   ;;  %v1101_v18 = vld [vmem:[%s1592_s1 + $0x10] sm:$0xff]  }
   0x7   :  { %708 = vmatpush1.bf16.msra.mxu1 %v1088_v5  ;;  %v1102_v19 = vld [vmem:[%s1592_s1 + $0x48] sm:$0xff]   ;;  %v1105_v22 = vld [vmem:[%s1592_s1 + $0x40] sm:$0xff]   ;;  %v1111_v28 = vld [vmem:[%s1592_s1 + $0xd0] sm:$0xff]  }
   0x8   :  { %992 = vmatpush3.bf16.msra.mxu0 %v1089_v6  ;;  %709 = vmatprep.subr.bf16.mxu1 %v1187_v0  ;;  %v1103_v20 = vld [vmem:[%s1592_s1 + $0x88] sm:$0xff]   ;;  %v1110_v23 = vld [vmem:[%s1593_s0 + $0x4] ss:$16 sps:$4 sm:$0xff]   ;;  %v1108_v26 = vld [vmem:[%s1593_s0] ss:$16 sps:$4 sm:$0xff]  }
   0x9   :  { %993 = vmatprep.subr.bf16.mxu0 %v1090_v7  ;;  %v1104_v21 = vld [vmem:[%s1592_s1 + $0x8] sm:$0xff]   ;;  %v1106_v24 = vld [vmem:[%s1592_s1 + $0x80] sm:$0xff]   ;;  %601 = vmatprep.mubr.bf16.mxu0 %v1110_v23 }
   0xa   :  { %v1107_v25 = vld [vmem:[%s1592_s1] sm:$0xff]   ;;  %v1119_v27 = vld [vmem:[%s1593_s0 + $0xc] ss:$16 sps:$4 sm:$0xff]   ;;  %v1117_v34 = vld [vmem:[%s1593_s0 + $0x8] ss:$16 sps:$4 sm:$0xff]  }
   0xb   :  { %710 = vmatpush1.bf16.msra.mxu1 %v1091_v8  ;;  %v1113_v29 = vld [vmem:[%s1593_s0 + $0x24] ss:$16 sps:$4 sm:$0xff]   ;;  %976 = vmatprep.mubr.msk.bf16.mxu1 %vm529_vm0, %v1119_v27  ;;  %v1112_v30 = vld [vmem:[%s1592_s1 + $0xc8] sm:$0xff]   ;;  %v1115_v31 = vld [vmem:[%s1593_s0 + $0x20] ss:$16 sps:$4 sm:$0xff]  }
   0xc   :  { %994 = vmatpush3.bf16.msra.mxu0 %v1092_v9  ;;  %711 = vmatprep.subr.bf16.mxu1 %v1187_v0  ;;  %v1116_v32 = vld [vmem:[%s1592_s1 + $0xc0] sm:$0xff]   ;;  %v1123_v35 = vld [vmem:[%s1593_s0 + $0x2c] ss:$16 sps:$4 sm:$0xff]   ;;  %v1125_v38 = vld [vmem:[%s1593_s0 + $0x28] ss:$16 sps:$4 sm:$0xff]  }
   0xd   :  { %995 = vmatprep.subr.bf16.mxu0 %v1093_v10  ;;  %v1120_v33 = vld [vmem:[%s1593_s0 + $0x44] ss:$16 sps:$4 sm:$0xff]   ;;  %v1122_v36 = vld [vmem:[%s1593_s0 + $0x40] ss:$16 sps:$4 sm:$0xff]   ;;  %v1129_v39 = vld [vmem:[%s1593_s0 + $0x4c] ss:$16 sps:$4 sm:$0xff]  }
   0xe   :  { %v1126_v37 = vld [vmem:[%s1593_s0 + $0x64] ss:$16 sps:$4 sm:$0xff]   ;;  %v1128_v40 = vld [vmem:[%s1593_s0 + $0x60] ss:$16 sps:$4 sm:$0xff]   ;;  %v1131_v42 = vld [vmem:[%s1593_s0 + $0x48] ss:$16 sps:$4 sm:$0xff]  }
   0xf   :  { %712 = vmatpush1.bf16.msra.mxu1 %v1094_v11  ;;  %v1132_v41 = vld [vmem:[%s1593_s0 + $0x84] ss:$16 sps:$4 sm:$0xff]   ;;  %v1135_v43 = vld [vmem:[%s1593_s0 + $0x6c] ss:$16 sps:$4 sm:$0xff]   ;;  %v1134_v44 = vld [vmem:[%s1593_s0 + $0x80] ss:$16 sps:$4 sm:$0xff]  }
  0x10   :  { %996 = vmatpush3.bf16.msra.mxu0 %v1095_v12  ;;  %713 = vmatprep.subr.bf16.mxu1 %v1187_v0  ;;  %v1138_v45 = vld [vmem:[%s1593_s0 + $0xa4] ss:$16 sps:$4 sm:$0xff]   ;;  %v1137_v46 = vld [vmem:[%s1593_s0 + $0x68] ss:$16 sps:$4 sm:$0xff]   ;;  %v1141_v47 = vld [vmem:[%s1593_s0 + $0x8c] ss:$16 sps:$4 sm:$0xff]  }
  0x11   :  { %997 = vmatprep.subr.bf16.mxu0 %v1096_v13  ;;  %v1140_v48 = vld [vmem:[%s1593_s0 + $0xa0] ss:$16 sps:$4 sm:$0xff]   ;;  %v1144_v49 = vld [vmem:[%s1593_s0 + $0xc4] ss:$16 sps:$4 sm:$0xff]   ;;  %v1143_v50 = vld [vmem:[%s1593_s0 + $0x88] ss:$16 sps:$4 sm:$0xff]  }
  0x12   :  { %v1147_v51 = vld [vmem:[%s1593_s0 + $0xac] ss:$16 sps:$4 sm:$0xff]   ;;  %v1146_v52 = vld [vmem:[%s1593_s0 + $0xc0] ss:$16 sps:$4 sm:$0xff]   ;;  %v1150_v53 = vld [vmem:[%s1593_s0 + $0xe4] ss:$16 sps:$4 sm:$0xff]  }
  0x13   :  { %714 = vmatpush1.bf16.msra.mxu1 %v1097_v14  ;;  %v1149_v54 = vld [vmem:[%s1593_s0 + $0xa8] ss:$16 sps:$4 sm:$0xff]   ;;  %v1153_v55 = vld [vmem:[%s1593_s0 + $0xcc] ss:$16 sps:$4 sm:$0xff]   ;;  %v1152_v56 = vld [vmem:[%s1593_s0 + $0xe0] ss:$16 sps:$4 sm:$0xff]  }
  0x14   :  { %998 = vmatpush3.bf16.msra.mxu0 %v1098_v15  ;;  %715 = vmatprep.subr.bf16.mxu1 %v1187_v0  ;;  %v1156_v57 = vld [vmem:[%s1593_s0 + $0x104] ss:$16 sps:$4 sm:$0xff]   ;;  %v1155_v58 = vld [vmem:[%s1593_s0 + $0xc8] ss:$16 sps:$4 sm:$0xff]   ;;  %v1159_v59 = vld [vmem:[%s1593_s0 + $0xec] ss:$16 sps:$4 sm:$0xff]  }
  0x15   :  { %999 = vmatprep.subr.bf16.mxu0 %v1099_v16  ;;  %v1158_v60 = vld [vmem:[%s1593_s0 + $0x100] ss:$16 sps:$4 sm:$0xff]   ;;  %v1162_v61 = vld [vmem:[%s1593_s0 + $0x124] ss:$16 sps:$4 sm:$0xff]   ;;  %v1161_v62 = vld [vmem:[%s1593_s0 + $0xe8] ss:$16 sps:$4 sm:$0xff]  }
  0x16   :  { %v1165_v63 = vld [vmem:[%s1593_s0 + $0x10c] ss:$16 sps:$4 sm:$0xff]   ;;  %v1168_v1 = vld [vmem:[%s1593_s0 + $0x144] ss:$16 sps:$4 sm:$0xff]   ;;  %v1167_v2 = vld [vmem:[%s1593_s0 + $0x108] ss:$16 sps:$4 sm:$0xff]  }
  0x17   :  { %716 = vmatpush1.bf16.msra.mxu1 %v1100_v17  ;;  %v1171_v3 = vld [vmem:[%s1593_s0 + $0x12c] ss:$16 sps:$4 sm:$0xff]   ;;  %v1170_v4 = vld [vmem:[%s1593_s0 + $0x140] ss:$16 sps:$4 sm:$0xff]   ;;  %v1174_v5 = vld [vmem:[%s1593_s0 + $0x164] ss:$16 sps:$4 sm:$0xff]  }
  0x18   :  { %1000 = vmatpush3.bf16.msra.mxu0 %v1101_v18  ;;  %717 = vmatprep.subr.bf16.mxu1 %v1187_v0  ;;  %v1173_v6 = vld [vmem:[%s1593_s0 + $0x128] ss:$16 sps:$4 sm:$0xff]   ;;  %v1177_v7 = vld [vmem:[%s1593_s0 + $0x14c] ss:$16 sps:$4 sm:$0xff]   ;;  %v63_v8 = vld [vmem:[%s1593_s0 + $0x180] sm:$0x33] }
  0x19   :  { %1001 = vmatprep.subr.bf16.mxu0 %v1102_v19  ;;  %v1176_v9 = vld [vmem:[%s1593_s0 + $0x160] ss:$16 sps:$4 sm:$0xff]   ;;  %v946_v10 = vcombine.high %v63_v8, %v63_v8  ;;  %v1179_v11 = vld [vmem:[%s1593_s0 + $0x148] ss:$16 sps:$4 sm:$0xff]   ;;  %v1182_v12 = vld [vmem:[%s1593_s0 + $0x16c] ss:$16 sps:$4 sm:$0xff]   ;;  %v945_v13 = vcombine.low %v63_v8, %v63_v8 }
  0x1a   :  { %v64_v14 = vld [vmem:[%s1593_s0 + $0x188] sm:$0x33] }
  0x1b   :  { %718 = vmatpush1.bf16.msra.mxu1 %v1103_v20  ;;  %v1184_v15 = vld [vmem:[%s1593_s0 + $0x168] ss:$16 sps:$4 sm:$0xff]   ;;  %v948_v16 = vcombine.high %v64_v14, %v64_v14  ;;  %v947_v17 = vcombine.low %v64_v14, %v64_v14 }
  0x1c   :  { %1002 = vmatpush3.bf16.msra.mxu0 %v1104_v21  ;;  %719 = vmatprep.subr.bf16.mxu1 %v1187_v0 }
  0x1d   :  { %1003 = vmatprep.subr.bf16.mxu0 %v1105_v22  ;;  %v1466_v22 = vld [vmem:[%s1594_s2] ss:$0 sm:$0xff] }
  0x1f   :  { %720 = vmatpush1.bf16.msra.mxu1 %v1106_v24 }
  0x20   :  { %1004 = vmatpush3.bf16.msra.mxu0 %v1107_v25  ;;  %731 = vmatprep.subr.bf16.mxu1 %v1187_v0 }
  0x23   :  { %602 = vmatmul.mubr.bf16.vlgmr.msra.gmra.mxu0 %v1108_v26  ;;  %732 = vmatpush2.bf16.msra.mxu1 %v1111_v28 }
  0x24   :  { %733 = vmatprep.subr.bf16.mxu1 %v1187_v0  ;;  %609 = vmatprep.mubr.bf16.mxu0 %v1113_v29 }
  0x27   :  { %734 = vmatpush2.bf16.msra.mxu1 %v1112_v30 }
  0x28   :  { %735 = vmatprep.subr.bf16.mxu1 %v1187_v0  ;;  %v1164_v0 = vld [vmem:[%s1593_s0 + $0x120] ss:$16 sps:$4 sm:$0xff]  }
  0x2b   :  { %610 = vmatmul.mubr.bf16.gmra.mxu0 %v1115_v31  ;;  %736 = vmatpush2.bf16.msra.mxu1 %v1116_v32 }
  0x2c   :  { %617 = vmatprep.mubr.bf16.mxu0 %v1120_v33 }
  0x2e   :  { %738 = vmatmul.mubr.bf16.vlgmr.msra.gmra.mxu1 %v1117_v34 }
  0x2f   :  { %977 = vmatprep.mubr.msk.bf16.mxu1 %vm529_vm0, %v1123_v35 }
  0x33   :  { %618 = vmatmul.mubr.bf16.gmra.mxu0 %v1122_v36 }
  0x34   :  { %625 = vmatprep.mubr.bf16.mxu0 %v1126_v37 }
  0x36   :  { %746 = vmatmul.mubr.bf16.gmra.mxu1 %v1125_v38 }
  0x37   :  { %978 = vmatprep.mubr.msk.bf16.mxu1 %vm529_vm0, %v1129_v39 }
  0x3b   :  { %626 = vmatmul.mubr.bf16.gmra.mxu0 %v1128_v40 }
  0x3c   :  { %633 = vmatprep.mubr.bf16.mxu0 %v1132_v41 }
  0x3e   :  { %754 = vmatmul.mubr.bf16.gmra.mxu1 %v1131_v42 }
  0x3f   :  { %979 = vmatprep.mubr.msk.bf16.mxu1 %vm529_vm0, %v1135_v43 }
  0x43   :  { %634 = vmatmul.mubr.bf16.gmra.mxu0 %v1134_v44 }
  0x44   :  { %641 = vmatprep.mubr.bf16.mxu0 %v1138_v45 }
  0x46   :  { %762 = vmatmul.mubr.bf16.gmra.mxu1 %v1137_v46 }
  0x47   :  { %980 = vmatprep.mubr.msk.bf16.mxu1 %vm529_vm0, %v1141_v47 }
  0x4b   :  { %642 = vmatmul.mubr.bf16.gmra.mxu0 %v1140_v48 }
  0x4c   :  { %649 = vmatprep.mubr.bf16.mxu0 %v1144_v49 }
  0x4e   :  { %770 = vmatmul.mubr.bf16.gmra.mxu1 %v1143_v50 }
  0x4f   :  { %981 = vmatprep.mubr.msk.bf16.mxu1 %vm529_vm0, %v1147_v51 }
  0x53   :  { %650 = vmatmul.mubr.bf16.gmra.mxu0 %v1146_v52 }
  0x54   :  { %657 = vmatprep.mubr.bf16.mxu0 %v1150_v53 }
  0x56   :  { %778 = vmatmul.mubr.bf16.gmra.mxu1 %v1149_v54 }
  0x57   :  { %982 = vmatprep.mubr.msk.bf16.mxu1 %vm529_vm0, %v1153_v55 }
  0x5b   :  { %658 = vmatmul.mubr.bf16.gmra.mxu0 %v1152_v56 }
  0x5c   :  { %665 = vmatprep.mubr.bf16.mxu0 %v1156_v57 }
  0x5e   :  { %786 = vmatmul.mubr.bf16.gmra.mxu1 %v1155_v58 }
  0x5f   :  { %983 = vmatprep.mubr.msk.bf16.mxu1 %vm529_vm0, %v1159_v59 }
  0x63   :  { %666 = vmatmul.mubr.bf16.gmra.mxu0 %v1158_v60 }
  0x64   :  { %673 = vmatprep.mubr.bf16.mxu0 %v1162_v61 }
  0x66   :  { %794 = vmatmul.mubr.bf16.gmra.mxu1 %v1161_v62 }
  0x67   :  { %984 = vmatprep.mubr.msk.bf16.mxu1 %vm529_vm0, %v1165_v63 }
  0x6b   :  { %674 = vmatmul.mubr.bf16.gmra.mxu0 %v1164_v0 }
  0x6c   :  { %681 = vmatprep.mubr.bf16.mxu0 %v1168_v1 }
  0x6e   :  { %802 = vmatmul.mubr.bf16.gmra.mxu1 %v1167_v2 }
  0x6f   :  { %985 = vmatprep.mubr.msk.bf16.mxu1 %vm529_vm0, %v1171_v3 }
  0x73   :  { %682 = vmatmul.mubr.bf16.gmra.mxu0 %v1170_v4 }
  0x74   :  { %689 = vmatprep.mubr.bf16.mxu0 %v1174_v5 }
  0x76   :  { %810 = vmatmul.mubr.bf16.gmra.mxu1 %v1173_v6 }
  0x77   :  { %986 = vmatprep.mubr.msk.bf16.mxu1 %vm529_vm0, %v1177_v7 }
  0x7b   :  { %690 = vmatmul.mubr.bf16.gmra.mxu0 %v1176_v9 }
  0x7c   :  { %697 = vmatprep.mubr.bf16.mxu0 %v946_v10 }
  0x7e   :  { %818 = vmatmul.mubr.bf16.gmra.mxu1 %v1179_v11 }
  0x7f   :  { %987 = vmatprep.mubr.msk.bf16.mxu1 %vm529_vm0, %v1182_v12 }
  0x83   :  { %698 = vmatmul.mubr.bf16.gmra.mxu0 %v945_v13 }
  0x86   :  { %826 = vmatmul.mubr.bf16.gmra.mxu1 %v1184_v15 }
  0x87   :  { %988 = vmatprep.mubr.msk.bf16.mxu1 %vm529_vm0, %v948_v16 }
  0x8e   :  { %834 = vmatmul.mubr.bf16.gmra.mxu1 %v947_v17 }
  0xe3   :  { %v1005_v18 = vpop.f32.mrf.mxu0 }
  0xe5   :  { %v1006_v19 = vpop.f32.mrf.mxu0 }
  0xe6   :  { %v1007_v20 = vadd.f32 %v1006_v19, %v1005_v18 }
  0xe7   :  { %v1008_v21 = vpop.f32.mrf.mxu0 }
  0xe8   :  { %v604_v25 = vadd.f32 %v1007_v20, %v1466_v22 }
  0xe9   :  { %v1009_v23 = vpop.f32.mrf.mxu0 }
  0xea   :  { %v1010_v26 = vadd.f32 %v1009_v23, %v1008_v21 }
  0xeb   :  { %v1011_v24 = vpop.f32.mrf.mxu0 }
  0xec   :  { %v607_v35 = vadd.f32 %v1010_v26, %v1466_v22 }
  0xed   :  { %v1012_v27 = vpop.f32.mrf.mxu0 }
  0xee   :  { %v739_v28 = vpop.f32.mrf.mxu1  ;;  %v1013_v29 = vadd.f32 %v1012_v27, %v1011_v24 }
  0xef   :  { %v740_v30 = vadd.f32 %v739_v28, %v604_v25  ;;  %v1014_v31 = vpop.f32.mrf.mxu0 }
  0xf0   :  { %v741_v32 = vpop.f32.mrf.mxu1  ;;  %v612_v39 = vadd.f32 %v1013_v29, %v1466_v22 }
  0xf1   :  { %v841_v33 = vmax.f32 %v740_v30, 0.0  ;;  %v1015_v34 = vpop.f32.mrf.mxu0 }
  0xf2   :  { %v742_v36 = vpop.f32.mrf.mxu1  ;;  %v1016_v41 = vadd.f32 %v1015_v34, %v1014_v31 }
  0xf3   :  { %866 = vst.msk [vmem:[%s1595_s3] sm:$0xff] %vm529_vm0, %v841_v33  ;;  %v743_v37 = vadd.f32 %v742_v36, %v607_v35  ;;  %v1017_v38 = vpop.f32.mrf.mxu0 }
  0xf4   :  { %v744_v40 = vpop.f32.mrf.mxu1  ;;  %v615_v51 = vadd.f32 %v1016_v41, %v1466_v22 }
  0xf5   :  { %v842_v42 = vmax.f32 %v743_v37, 0.0  ;;  %v1018_v43 = vpop.f32.mrf.mxu0 }
  0xf6   :  { %v747_v44 = vpop.f32.mrf.mxu1  ;;  %v1019_v45 = vadd.f32 %v1018_v43, %v1017_v38 }
  0xf7   :  { %867 = vst.msk [vmem:[%s1595_s3 + $0x8] sm:$0xff] %vm529_vm0, %v842_v42  ;;  %v748_v46 = vadd.f32 %v747_v44, %v612_v39  ;;  %v1020_v47 = vpop.f32.mrf.mxu0 }
  0xf8   :  { %v749_v48 = vpop.f32.mrf.mxu1  ;;  %v620_v55 = vadd.f32 %v1019_v45, %v1466_v22 }
  0xf9   :  { %v843_v49 = vmax.f32 %v748_v46, 0.0  ;;  %v1021_v50 = vpop.f32.mrf.mxu0 }
  0xfa   :  { %v750_v52 = vpop.f32.mrf.mxu1  ;;  %v1022_v57 = vadd.f32 %v1021_v50, %v1020_v47 }
  0xfb   :  { %868 = vst.msk [vmem:[%s1595_s3 + $0x10] sm:$0xff] %vm529_vm0, %v843_v49  ;;  %v751_v53 = vadd.f32 %v750_v52, %v615_v51  ;;  %v1023_v54 = vpop.f32.mrf.mxu0 }
  0xfc   :  { %v752_v56 = vpop.f32.mrf.mxu1  ;;  %v623_v3 = vadd.f32 %v1022_v57, %v1466_v22 }
  0xfd   :  { %v844_v58 = vmax.f32 %v751_v53, 0.0  ;;  %v1024_v59 = vpop.f32.mrf.mxu0 }
  0xfe   :  { %v755_v60 = vpop.f32.mrf.mxu1  ;;  %v1025_v61 = vadd.f32 %v1024_v59, %v1023_v54 }
  0xff   :  { %869 = vst.msk [vmem:[%s1595_s3 + $0x18] sm:$0xff] %vm529_vm0, %v844_v58  ;;  %v756_v62 = vadd.f32 %v755_v60, %v620_v55  ;;  %v1026_v63 = vpop.f32.mrf.mxu0 }
 0x100   :  { %v757_v0 = vpop.f32.mrf.mxu1  ;;  %v628_v7 = vadd.f32 %v1025_v61, %v1466_v22 }
 0x101   :  { %v845_v1 = vmax.f32 %v756_v62, 0.0  ;;  %v1027_v2 = vpop.f32.mrf.mxu0 }
 0x102   :  { %v758_v4 = vpop.f32.mrf.mxu1  ;;  %v1028_v9 = vadd.f32 %v1027_v2, %v1026_v63 }
 0x103   :  { %870 = vst.msk [vmem:[%s1595_s3 + $0x20] sm:$0xff] %vm529_vm0, %v845_v1  ;;  %v759_v5 = vadd.f32 %v758_v4, %v623_v3  ;;  %v1029_v6 = vpop.f32.mrf.mxu0 }
 0x104   :  { %v760_v8 = vpop.f32.mrf.mxu1  ;;  %v631_v19 = vadd.f32 %v1028_v9, %v1466_v22 }
 0x105   :  { %v846_v10 = vmax.f32 %v759_v5, 0.0  ;;  %v1030_v11 = vpop.f32.mrf.mxu0 }
 0x106   :  { %v763_v12 = vpop.f32.mrf.mxu1  ;;  %v1031_v13 = vadd.f32 %v1030_v11, %v1029_v6 }
 0x107   :  { %871 = vst.msk [vmem:[%s1595_s3 + $0x28] sm:$0xff] %vm529_vm0, %v846_v10  ;;  %v764_v14 = vadd.f32 %v763_v12, %v628_v7  ;;  %v1032_v15 = vpop.f32.mrf.mxu0 }
 0x108   :  { %v765_v16 = vpop.f32.mrf.mxu1  ;;  %v636_v24 = vadd.f32 %v1031_v13, %v1466_v22 }
 0x109   :  { %v847_v17 = vmax.f32 %v764_v14, 0.0  ;;  %v1033_v18 = vpop.f32.mrf.mxu0 }
 0x10a   :  { %v766_v20 = vpop.f32.mrf.mxu1  ;;  %v1034_v26 = vadd.f32 %v1033_v18, %v1032_v15 }
 0x10b   :  { %872 = vst.msk [vmem:[%s1595_s3 + $0x30] sm:$0xff] %vm529_vm0, %v847_v17  ;;  %v767_v21 = vadd.f32 %v766_v20, %v631_v19  ;;  %v1035_v23 = vpop.f32.mrf.mxu0 }
 0x10c   :  { %v768_v25 = vpop.f32.mrf.mxu1  ;;  %v639_v36 = vadd.f32 %v1034_v26, %v1466_v22 }
 0x10d   :  { %v848_v27 = vmax.f32 %v767_v21, 0.0  ;;  %v1036_v28 = vpop.f32.mrf.mxu0 }
 0x10e   :  { %v771_v29 = vpop.f32.mrf.mxu1  ;;  %v1037_v30 = vadd.f32 %v1036_v28, %v1035_v23 }
 0x10f   :  { %873 = vst.msk [vmem:[%s1595_s3 + $0x38] sm:$0xff] %vm529_vm0, %v848_v27  ;;  %v772_v31 = vadd.f32 %v771_v29, %v636_v24  ;;  %v1038_v32 = vpop.f32.mrf.mxu0 }
 0x110   :  { %v773_v33 = vpop.f32.mrf.mxu1  ;;  %v644_v40 = vadd.f32 %v1037_v30, %v1466_v22 }
 0x111   :  { %v849_v34 = vmax.f32 %v772_v31, 0.0  ;;  %v1039_v35 = vpop.f32.mrf.mxu0 }
 0x112   :  { %v774_v37 = vpop.f32.mrf.mxu1  ;;  %v1040_v42 = vadd.f32 %v1039_v35, %v1038_v32 }
 0x113   :  { %874 = vst.msk [vmem:[%s1595_s3 + $0x40] sm:$0xff] %vm529_vm0, %v849_v34  ;;  %v775_v38 = vadd.f32 %v774_v37, %v639_v36  ;;  %v1041_v39 = vpop.f32.mrf.mxu0 }
 0x114   :  { %v776_v41 = vpop.f32.mrf.mxu1  ;;  %v647_v52 = vadd.f32 %v1040_v42, %v1466_v22 }
 0x115   :  { %v850_v43 = vmax.f32 %v775_v38, 0.0  ;;  %v1042_v44 = vpop.f32.mrf.mxu0 }
 0x116   :  { %v779_v45 = vpop.f32.mrf.mxu1  ;;  %v1043_v46 = vadd.f32 %v1042_v44, %v1041_v39 }
 0x117   :  { %875 = vst.msk [vmem:[%s1595_s3 + $0x48] sm:$0xff] %vm529_vm0, %v850_v43  ;;  %v780_v47 = vadd.f32 %v779_v45, %v644_v40  ;;  %v1044_v48 = vpop.f32.mrf.mxu0 }
 0x118   :  { %v781_v49 = vpop.f32.mrf.mxu1  ;;  %v652_v56 = vadd.f32 %v1043_v46, %v1466_v22 }
 0x119   :  { %v851_v50 = vmax.f32 %v780_v47, 0.0  ;;  %v1045_v51 = vpop.f32.mrf.mxu0 }
 0x11a   :  { %v782_v53 = vpop.f32.mrf.mxu1  ;;  %v1046_v58 = vadd.f32 %v1045_v51, %v1044_v48 }
 0x11b   :  { %876 = vst.msk [vmem:[%s1595_s3 + $0x50] sm:$0xff] %vm529_vm0, %v851_v50  ;;  %v783_v54 = vadd.f32 %v782_v53, %v647_v52  ;;  %v1047_v55 = vpop.f32.mrf.mxu0 }
 0x11c   :  { %v784_v57 = vpop.f32.mrf.mxu1  ;;  %v655_v4 = vadd.f32 %v1046_v58, %v1466_v22 }
 0x11d   :  { %v852_v59 = vmax.f32 %v783_v54, 0.0  ;;  %v1048_v60 = vpop.f32.mrf.mxu0 }
 0x11e   :  { %v787_v61 = vpop.f32.mrf.mxu1  ;;  %v1049_v62 = vadd.f32 %v1048_v60, %v1047_v55 }
 0x11f   :  { %877 = vst.msk [vmem:[%s1595_s3 + $0x58] sm:$0xff] %vm529_vm0, %v852_v59  ;;  %v788_v63 = vadd.f32 %v787_v61, %v652_v56  ;;  %v1050_v0 = vpop.f32.mrf.mxu0 }
 0x120   :  { %v789_v1 = vpop.f32.mrf.mxu1  ;;  %v660_v8 = vadd.f32 %v1049_v62, %v1466_v22 }
 0x121   :  { %v853_v2 = vmax.f32 %v788_v63, 0.0  ;;  %v1051_v3 = vpop.f32.mrf.mxu0 }
 0x122   :  { %v790_v5 = vpop.f32.mrf.mxu1  ;;  %v1052_v10 = vadd.f32 %v1051_v3, %v1050_v0 }
 0x123   :  { %878 = vst.msk [vmem:[%s1595_s3 + $0x60] sm:$0xff] %vm529_vm0, %v853_v2  ;;  %v791_v6 = vadd.f32 %v790_v5, %v655_v4  ;;  %v1053_v7 = vpop.f32.mrf.mxu0 }
 0x124   :  { %v792_v9 = vpop.f32.mrf.mxu1  ;;  %v663_v20 = vadd.f32 %v1052_v10, %v1466_v22 }
 0x125   :  { %v854_v11 = vmax.f32 %v791_v6, 0.0  ;;  %v1054_v12 = vpop.f32.mrf.mxu0 }
 0x126   :  { %v795_v13 = vpop.f32.mrf.mxu1  ;;  %v1055_v14 = vadd.f32 %v1054_v12, %v1053_v7 }
 0x127   :  { %879 = vst.msk [vmem:[%s1595_s3 + $0x68] sm:$0xff] %vm529_vm0, %v854_v11  ;;  %v796_v15 = vadd.f32 %v795_v13, %v660_v8  ;;  %v1056_v16 = vpop.f32.mrf.mxu0 }
 0x128   :  { %v797_v17 = vpop.f32.mrf.mxu1  ;;  %v668_v25 = vadd.f32 %v1055_v14, %v1466_v22 }
 0x129   :  { %v855_v18 = vmax.f32 %v796_v15, 0.0  ;;  %v1057_v19 = vpop.f32.mrf.mxu0 }
 0x12a   :  { %v798_v21 = vpop.f32.mrf.mxu1  ;;  %v1058_v27 = vadd.f32 %v1057_v19, %v1056_v16 }
 0x12b   :  { %880 = vst.msk [vmem:[%s1595_s3 + $0x70] sm:$0xff] %vm529_vm0, %v855_v18  ;;  %v799_v23 = vadd.f32 %v798_v21, %v663_v20  ;;  %v1059_v24 = vpop.f32.mrf.mxu0 }
 0x12c   :  { %v800_v26 = vpop.f32.mrf.mxu1  ;;  %v671_v37 = vadd.f32 %v1058_v27, %v1466_v22 }
 0x12d   :  { %v856_v28 = vmax.f32 %v799_v23, 0.0  ;;  %v1060_v29 = vpop.f32.mrf.mxu0 }
 0x12e   :  { %v803_v30 = vpop.f32.mrf.mxu1  ;;  %v1061_v31 = vadd.f32 %v1060_v29, %v1059_v24 }
 0x12f   :  { %881 = vst.msk [vmem:[%s1595_s3 + $0x78] sm:$0xff] %vm529_vm0, %v856_v28  ;;  %v804_v32 = vadd.f32 %v803_v30, %v668_v25  ;;  %v1062_v33 = vpop.f32.mrf.mxu0 }
 0x130   :  { %v805_v34 = vpop.f32.mrf.mxu1  ;;  %v676_v41 = vadd.f32 %v1061_v31, %v1466_v22 }
 0x131   :  { %v857_v35 = vmax.f32 %v804_v32, 0.0  ;;  %v1063_v36 = vpop.f32.mrf.mxu0 }
 0x132   :  { %v806_v38 = vpop.f32.mrf.mxu1  ;;  %v1064_v43 = vadd.f32 %v1063_v36, %v1062_v33 }
 0x133   :  { %882 = vst.msk [vmem:[%s1595_s3 + $0x80] sm:$0xff] %vm529_vm0, %v857_v35  ;;  %v807_v39 = vadd.f32 %v806_v38, %v671_v37  ;;  %v1065_v40 = vpop.f32.mrf.mxu0 }
 0x134   :  { %v808_v42 = vpop.f32.mrf.mxu1  ;;  %v679_v53 = vadd.f32 %v1064_v43, %v1466_v22 }
 0x135   :  { %v858_v44 = vmax.f32 %v807_v39, 0.0  ;;  %v1066_v45 = vpop.f32.mrf.mxu0 }
 0x136   :  { %v811_v46 = vpop.f32.mrf.mxu1  ;;  %v1067_v47 = vadd.f32 %v1066_v45, %v1065_v40 }
 0x137   :  { %883 = vst.msk [vmem:[%s1595_s3 + $0x88] sm:$0xff] %vm529_vm0, %v858_v44  ;;  %v812_v48 = vadd.f32 %v811_v46, %v676_v41  ;;  %v1068_v49 = vpop.f32.mrf.mxu0 }
 0x138   :  { %v813_v50 = vpop.f32.mrf.mxu1  ;;  %v684_v57 = vadd.f32 %v1067_v47, %v1466_v22 }
 0x139   :  { %v859_v51 = vmax.f32 %v812_v48, 0.0  ;;  %v1069_v52 = vpop.f32.mrf.mxu0 }
 0x13a   :  { %v814_v54 = vpop.f32.mrf.mxu1  ;;  %v1070_v59 = vadd.f32 %v1069_v52, %v1068_v49 }
 0x13b   :  { %884 = vst.msk [vmem:[%s1595_s3 + $0x90] sm:$0xff] %vm529_vm0, %v859_v51  ;;  %v815_v55 = vadd.f32 %v814_v54, %v679_v53  ;;  %v1071_v56 = vpop.f32.mrf.mxu0 }
 0x13c   :  { %v816_v58 = vpop.f32.mrf.mxu1  ;;  %v687_v5 = vadd.f32 %v1070_v59, %v1466_v22 }
 0x13d   :  { %v860_v60 = vmax.f32 %v815_v55, 0.0  ;;  %v1072_v61 = vpop.f32.mrf.mxu0 }
 0x13e   :  { %v819_v62 = vpop.f32.mrf.mxu1  ;;  %v1073_v63 = vadd.f32 %v1072_v61, %v1071_v56 }
 0x13f   :  { %885 = vst.msk [vmem:[%s1595_s3 + $0x98] sm:$0xff] %vm529_vm0, %v860_v60  ;;  %v820_v0 = vadd.f32 %v819_v62, %v684_v57  ;;  %v1074_v1 = vpop.f32.mrf.mxu0 }
 0x140   :  { %v821_v2 = vpop.f32.mrf.mxu1  ;;  %v692_v9 = vadd.f32 %v1073_v63, %v1466_v22 }
 0x141   :  { %v861_v3 = vmax.f32 %v820_v0, 0.0  ;;  %v1075_v4 = vpop.f32.mrf.mxu0 }
 0x142   :  { %v822_v6 = vpop.f32.mrf.mxu1  ;;  %v1076_v11 = vadd.f32 %v1075_v4, %v1074_v1 }
 0x143   :  { %886 = vst.msk [vmem:[%s1595_s3 + $0xa0] sm:$0xff] %vm529_vm0, %v861_v3  ;;  %v823_v7 = vadd.f32 %v822_v6, %v687_v5  ;;  %v1077_v8 = vpop.f32.mrf.mxu0 }
 0x144   :  { %v824_v10 = vpop.f32.mrf.mxu1  ;;  %v695_v21 = vadd.f32 %v1076_v11, %v1466_v22 }
 0x145   :  { %v862_v12 = vmax.f32 %v823_v7, 0.0  ;;  %v1078_v13 = vpop.f32.mrf.mxu0 }
 0x146   :  { %v827_v14 = vpop.f32.mrf.mxu1  ;;  %v1079_v15 = vadd.f32 %v1078_v13, %v1077_v8 }
 0x147   :  { %887 = vst.msk [vmem:[%s1595_s3 + $0xa8] sm:$0xff] %vm529_vm0, %v862_v12  ;;  %v828_v16 = vadd.f32 %v827_v14, %v692_v9  ;;  %v1080_v17 = vpop.f32.mrf.mxu0 }
 0x148   :  { %v829_v18 = vpop.f32.mrf.mxu1  ;;  %v700_v25 = vadd.f32 %v1079_v15, %v1466_v22 }
 0x149   :  { %v863_v19 = vmax.f32 %v828_v16, 0.0  ;;  %v1081_v20 = vpop.f32.mrf.mxu0 }
 0x14a   :  { %v830_v23 = vpop.f32.mrf.mxu1 }
 0x14b   :  { %888 = vst.msk [vmem:[%s1595_s3 + $0xb0] sm:$0xff] %vm529_vm0, %v863_v19  ;;  %v831_v24 = vadd.f32 %v830_v23, %v695_v21 }
 0x14c   :  { %v832_v26 = vpop.f32.mrf.mxu1 }
 0x14d   :  { %v864_v27 = vmax.f32 %v831_v24, 0.0 }
 0x14e   :  { %v835_v28 = vpop.f32.mrf.mxu1 }
 0x14f   :  { %889 = vst.msk [vmem:[%s1595_s3 + $0xb8] sm:$0xff] %vm529_vm0, %v864_v27  ;;  %v836_v29 = vadd.f32 %v835_v28, %v700_v25 }
 0x150   :  { %v837_v30 = vpop.f32.mrf.mxu1 }
 0x151   :  { %v865_v31 = vmax.f32 %v836_v29, 0.0 }
 0x152   :  { %v838_v32 = vpop.f32.mrf.mxu1 }
 0x153   :  { %891 = vst.msk [vmem:[%s1595_s3 + $0xc0] sm:$0xf] %vm890_vm1, %v865_v31 }
 0x154   :  { %v839_v33 = vpop.f32.mrf.mxu1 }

// kernel: npi_forward.54
= control target key start
LH: loop header
LB: loop body
LE: loop exit
PB: predicated region body
PF: predicated region fallthrough
CT: control target
= control target key end

     0   :  { %v1240_v0 = vmov 0   ;;  %vm532_vm0 = vcmask 392192   ;;  %vm943_vm1 = vcmask 388096   ;;  %s1725_s1 = inlined_call_operand.vmem [shape: bf16[432,48], index: 1, kind: input, shape index: {}]   ;;  %s1726_s0 = inlined_call_operand.vmem [shape: bf16[1,196,432], index: 0, kind: input, shape index: {}]   ;;  %s1727_s2 = inlined_call_operand.vmem [shape: f32[1,48], index: 2, kind: input, shape index: {}]   ;;  %s1728_s3 = inlined_call_operand.vmem [shape: f32[1,196,48], index: 3, kind: input, shape index: {}]   ;;  %s1729_s4 = inlined_call_operand.vmem [shape: f32[1,196,48], index: 4, kind: output, shape index: {}]  }
   0x1   :  { %708 = vmatprep.subr.bf16.mxu1 %v1240_v0  ;;  %v1137_v1 = vld [vmem:[%s1725_s1 + $0x78] sm:$0xff]   ;;  %v1140_v4 = vld [vmem:[%s1725_s1 + $0x70] sm:$0xff]   ;;  %v1143_v7 = vld [vmem:[%s1725_s1 + $0x68] sm:$0xff]  }
   0x2   :  { %v1138_v2 = vld [vmem:[%s1725_s1 + $0xb8] sm:$0xff]   ;;  %1042 = vmatprep.subr.bf16.mxu0 %v1137_v1  ;;  %v1141_v5 = vld [vmem:[%s1725_s1 + $0xb0] sm:$0xff]   ;;  %v1144_v8 = vld [vmem:[%s1725_s1 + $0xa8] sm:$0xff]  }
   0x3   :  { %v1139_v3 = vld [vmem:[%s1725_s1 + $0x38] sm:$0xff]   ;;  %709 = vmatpush1.bf16.msra.mxu1 %v1138_v2  ;;  %v1142_v6 = vld [vmem:[%s1725_s1 + $0x30] sm:$0xff]   ;;  %v1145_v9 = vld [vmem:[%s1725_s1 + $0x28] sm:$0xff]  }
   0x4   :  { %1043 = vmatpush3.bf16.msra.mxu0 %v1139_v3  ;;  %710 = vmatprep.subr.bf16.mxu1 %v1240_v0  ;;  %v1146_v10 = vld [vmem:[%s1725_s1 + $0x60] sm:$0xff]   ;;  %v1149_v13 = vld [vmem:[%s1725_s1 + $0x58] sm:$0xff]   ;;  %v1152_v16 = vld [vmem:[%s1725_s1 + $0x50] sm:$0xff]  }
   0x5   :  { %1044 = vmatprep.subr.bf16.mxu0 %v1140_v4  ;;  %v1147_v11 = vld [vmem:[%s1725_s1 + $0xa0] sm:$0xff]   ;;  %v1150_v14 = vld [vmem:[%s1725_s1 + $0x98] sm:$0xff]   ;;  %v1153_v17 = vld [vmem:[%s1725_s1 + $0x90] sm:$0xff]  }
   0x6   :  { %v1148_v12 = vld [vmem:[%s1725_s1 + $0x20] sm:$0xff]   ;;  %v1151_v15 = vld [vmem:[%s1725_s1 + $0x18] sm:$0xff]   ;;  %v1154_v18 = vld [vmem:[%s1725_s1 + $0x10] sm:$0xff]  }
   0x7   :  { %711 = vmatpush1.bf16.msra.mxu1 %v1141_v5  ;;  %v1155_v19 = vld [vmem:[%s1725_s1 + $0x48] sm:$0xff]   ;;  %v1158_v22 = vld [vmem:[%s1725_s1 + $0x40] sm:$0xff]   ;;  %v1164_v28 = vld [vmem:[%s1725_s1 + $0xd0] sm:$0xff]  }
   0x8   :  { %1045 = vmatpush3.bf16.msra.mxu0 %v1142_v6  ;;  %712 = vmatprep.subr.bf16.mxu1 %v1240_v0  ;;  %v1156_v20 = vld [vmem:[%s1725_s1 + $0x88] sm:$0xff]   ;;  %v1163_v23 = vld [vmem:[%s1726_s0 + $0x4] ss:$16 sps:$4 sm:$0xff]   ;;  %v1161_v26 = vld [vmem:[%s1726_s0] ss:$16 sps:$4 sm:$0xff]  }
   0x9   :  { %1046 = vmatprep.subr.bf16.mxu0 %v1143_v7  ;;  %v1157_v21 = vld [vmem:[%s1725_s1 + $0x8] sm:$0xff]   ;;  %v1159_v24 = vld [vmem:[%s1725_s1 + $0x80] sm:$0xff]   ;;  %604 = vmatprep.mubr.bf16.mxu0 %v1163_v23 }
   0xa   :  { %v1160_v25 = vld [vmem:[%s1725_s1] sm:$0xff]   ;;  %v1172_v27 = vld [vmem:[%s1726_s0 + $0xc] ss:$16 sps:$4 sm:$0xff]   ;;  %v1170_v34 = vld [vmem:[%s1726_s0 + $0x8] ss:$16 sps:$4 sm:$0xff]  }
   0xb   :  { %713 = vmatpush1.bf16.msra.mxu1 %v1144_v8  ;;  %v1166_v29 = vld [vmem:[%s1726_s0 + $0x24] ss:$16 sps:$4 sm:$0xff]   ;;  %1029 = vmatprep.mubr.msk.bf16.mxu1 %vm532_vm0, %v1172_v27  ;;  %v1165_v30 = vld [vmem:[%s1725_s1 + $0xc8] sm:$0xff]   ;;  %v1168_v31 = vld [vmem:[%s1726_s0 + $0x20] ss:$16 sps:$4 sm:$0xff]  }
   0xc   :  { %1047 = vmatpush3.bf16.msra.mxu0 %v1145_v9  ;;  %714 = vmatprep.subr.bf16.mxu1 %v1240_v0  ;;  %v1169_v32 = vld [vmem:[%s1725_s1 + $0xc0] sm:$0xff]   ;;  %v1176_v35 = vld [vmem:[%s1726_s0 + $0x2c] ss:$16 sps:$4 sm:$0xff]   ;;  %v1178_v38 = vld [vmem:[%s1726_s0 + $0x28] ss:$16 sps:$4 sm:$0xff]  }
   0xd   :  { %1048 = vmatprep.subr.bf16.mxu0 %v1146_v10  ;;  %v1173_v33 = vld [vmem:[%s1726_s0 + $0x44] ss:$16 sps:$4 sm:$0xff]   ;;  %v1175_v36 = vld [vmem:[%s1726_s0 + $0x40] ss:$16 sps:$4 sm:$0xff]   ;;  %v1182_v39 = vld [vmem:[%s1726_s0 + $0x4c] ss:$16 sps:$4 sm:$0xff]  }
   0xe   :  { %v1179_v37 = vld [vmem:[%s1726_s0 + $0x64] ss:$16 sps:$4 sm:$0xff]   ;;  %v1181_v40 = vld [vmem:[%s1726_s0 + $0x60] ss:$16 sps:$4 sm:$0xff]   ;;  %v1184_v42 = vld [vmem:[%s1726_s0 + $0x48] ss:$16 sps:$4 sm:$0xff]  }
   0xf   :  { %715 = vmatpush1.bf16.msra.mxu1 %v1147_v11  ;;  %v1185_v41 = vld [vmem:[%s1726_s0 + $0x84] ss:$16 sps:$4 sm:$0xff]   ;;  %v1188_v43 = vld [vmem:[%s1726_s0 + $0x6c] ss:$16 sps:$4 sm:$0xff]   ;;  %v1187_v44 = vld [vmem:[%s1726_s0 + $0x80] ss:$16 sps:$4 sm:$0xff]  }
  0x10   :  { %1049 = vmatpush3.bf16.msra.mxu0 %v1148_v12  ;;  %716 = vmatprep.subr.bf16.mxu1 %v1240_v0  ;;  %v1191_v45 = vld [vmem:[%s1726_s0 + $0xa4] ss:$16 sps:$4 sm:$0xff]   ;;  %v1190_v46 = vld [vmem:[%s1726_s0 + $0x68] ss:$16 sps:$4 sm:$0xff]   ;;  %v1194_v47 = vld [vmem:[%s1726_s0 + $0x8c] ss:$16 sps:$4 sm:$0xff]  }
  0x11   :  { %1050 = vmatprep.subr.bf16.mxu0 %v1149_v13  ;;  %v1193_v48 = vld [vmem:[%s1726_s0 + $0xa0] ss:$16 sps:$4 sm:$0xff]   ;;  %v1197_v49 = vld [vmem:[%s1726_s0 + $0xc4] ss:$16 sps:$4 sm:$0xff]   ;;  %v1196_v50 = vld [vmem:[%s1726_s0 + $0x88] ss:$16 sps:$4 sm:$0xff]  }
  0x12   :  { %v1200_v51 = vld [vmem:[%s1726_s0 + $0xac] ss:$16 sps:$4 sm:$0xff]   ;;  %v1199_v52 = vld [vmem:[%s1726_s0 + $0xc0] ss:$16 sps:$4 sm:$0xff]   ;;  %v1203_v53 = vld [vmem:[%s1726_s0 + $0xe4] ss:$16 sps:$4 sm:$0xff]  }
  0x13   :  { %717 = vmatpush1.bf16.msra.mxu1 %v1150_v14  ;;  %v1202_v54 = vld [vmem:[%s1726_s0 + $0xa8] ss:$16 sps:$4 sm:$0xff]   ;;  %v1206_v55 = vld [vmem:[%s1726_s0 + $0xcc] ss:$16 sps:$4 sm:$0xff]   ;;  %v1205_v56 = vld [vmem:[%s1726_s0 + $0xe0] ss:$16 sps:$4 sm:$0xff]  }
  0x14   :  { %1051 = vmatpush3.bf16.msra.mxu0 %v1151_v15  ;;  %718 = vmatprep.subr.bf16.mxu1 %v1240_v0  ;;  %v1209_v57 = vld [vmem:[%s1726_s0 + $0x104] ss:$16 sps:$4 sm:$0xff]   ;;  %v1208_v58 = vld [vmem:[%s1726_s0 + $0xc8] ss:$16 sps:$4 sm:$0xff]   ;;  %v1212_v59 = vld [vmem:[%s1726_s0 + $0xec] ss:$16 sps:$4 sm:$0xff]  }
  0x15   :  { %1052 = vmatprep.subr.bf16.mxu0 %v1152_v16  ;;  %v1211_v60 = vld [vmem:[%s1726_s0 + $0x100] ss:$16 sps:$4 sm:$0xff]   ;;  %v1215_v61 = vld [vmem:[%s1726_s0 + $0x124] ss:$16 sps:$4 sm:$0xff]   ;;  %v1214_v62 = vld [vmem:[%s1726_s0 + $0xe8] ss:$16 sps:$4 sm:$0xff]  }
  0x16   :  { %v1218_v63 = vld [vmem:[%s1726_s0 + $0x10c] ss:$16 sps:$4 sm:$0xff]   ;;  %v1221_v1 = vld [vmem:[%s1726_s0 + $0x144] ss:$16 sps:$4 sm:$0xff]   ;;  %v1220_v2 = vld [vmem:[%s1726_s0 + $0x108] ss:$16 sps:$4 sm:$0xff]  }
  0x17   :  { %719 = vmatpush1.bf16.msra.mxu1 %v1153_v17  ;;  %v1224_v3 = vld [vmem:[%s1726_s0 + $0x12c] ss:$16 sps:$4 sm:$0xff]   ;;  %v1223_v4 = vld [vmem:[%s1726_s0 + $0x140] ss:$16 sps:$4 sm:$0xff]   ;;  %v1227_v5 = vld [vmem:[%s1726_s0 + $0x164] ss:$16 sps:$4 sm:$0xff]  }
  0x18   :  { %1053 = vmatpush3.bf16.msra.mxu0 %v1154_v18  ;;  %720 = vmatprep.subr.bf16.mxu1 %v1240_v0  ;;  %v1226_v6 = vld [vmem:[%s1726_s0 + $0x128] ss:$16 sps:$4 sm:$0xff]   ;;  %v1230_v7 = vld [vmem:[%s1726_s0 + $0x14c] ss:$16 sps:$4 sm:$0xff]   ;;  %v66_v8 = vld [vmem:[%s1726_s0 + $0x180] sm:$0x33] }
  0x19   :  { %1054 = vmatprep.subr.bf16.mxu0 %v1155_v19  ;;  %v1229_v9 = vld [vmem:[%s1726_s0 + $0x160] ss:$16 sps:$4 sm:$0xff]   ;;  %v999_v10 = vcombine.high %v66_v8, %v66_v8  ;;  %v1232_v11 = vld [vmem:[%s1726_s0 + $0x148] ss:$16 sps:$4 sm:$0xff]   ;;  %v1235_v12 = vld [vmem:[%s1726_s0 + $0x16c] ss:$16 sps:$4 sm:$0xff]   ;;  %v998_v13 = vcombine.low %v66_v8, %v66_v8 }
  0x1a   :  { %v67_v14 = vld [vmem:[%s1726_s0 + $0x188] sm:$0x33]  ;;  %v1524_v23 = vld [vmem:[%s1727_s2] ss:$0 sm:$0xff] }
  0x1b   :  { %721 = vmatpush1.bf16.msra.mxu1 %v1156_v20  ;;  %v1237_v15 = vld [vmem:[%s1726_s0 + $0x168] ss:$16 sps:$4 sm:$0xff]   ;;  %v1001_v16 = vcombine.high %v67_v14, %v67_v14  ;;  %v1000_v17 = vcombine.low %v67_v14, %v67_v14 }
  0x1c   :  { %1055 = vmatpush3.bf16.msra.mxu0 %v1157_v21  ;;  %722 = vmatprep.subr.bf16.mxu1 %v1240_v0  ;;  %v849_v14 = vld [vmem:[%s1728_s3 + $0x28] sm:$0xff] }
  0x1d   :  { %1056 = vmatprep.subr.bf16.mxu0 %v1158_v22 }
  0x1f   :  { %723 = vmatpush1.bf16.msra.mxu1 %v1159_v24 }
  0x20   :  { %1057 = vmatpush3.bf16.msra.mxu0 %v1160_v25  ;;  %734 = vmatprep.subr.bf16.mxu1 %v1240_v0 }
  0x23   :  { %605 = vmatmul.mubr.bf16.vlgmr.msra.gmra.mxu0 %v1161_v26  ;;  %735 = vmatpush2.bf16.msra.mxu1 %v1164_v28 }
  0x24   :  { %736 = vmatprep.subr.bf16.mxu1 %v1240_v0  ;;  %612 = vmatprep.mubr.bf16.mxu0 %v1166_v29  ;;  %v844_v29 = vld [vmem:[%s1728_s3] sm:$0xff] }
  0x27   :  { %737 = vmatpush2.bf16.msra.mxu1 %v1165_v30 }
  0x28   :  { %738 = vmatprep.subr.bf16.mxu1 %v1240_v0  ;;  %v1217_v0 = vld [vmem:[%s1726_s0 + $0x120] ss:$16 sps:$4 sm:$0xff]  }
  0x2b   :  { %613 = vmatmul.mubr.bf16.gmra.mxu0 %v1168_v31  ;;  %739 = vmatpush2.bf16.msra.mxu1 %v1169_v32 }
  0x2c   :  { %620 = vmatprep.mubr.bf16.mxu0 %v1173_v33 }
  0x2e   :  { %741 = vmatmul.mubr.bf16.vlgmr.msra.gmra.mxu1 %v1170_v34 }
  0x2f   :  { %1030 = vmatprep.mubr.msk.bf16.mxu1 %vm532_vm0, %v1176_v35 }
  0x33   :  { %621 = vmatmul.mubr.bf16.gmra.mxu0 %v1175_v36 }
  0x34   :  { %628 = vmatprep.mubr.bf16.mxu0 %v1179_v37 }
  0x36   :  { %749 = vmatmul.mubr.bf16.gmra.mxu1 %v1178_v38  ;;  %v845_v38 = vld [vmem:[%s1728_s3 + $0x8] sm:$0xff] }
  0x37   :  { %1031 = vmatprep.mubr.msk.bf16.mxu1 %vm532_vm0, %v1182_v39 }
  0x3b   :  { %629 = vmatmul.mubr.bf16.gmra.mxu0 %v1181_v40 }
  0x3c   :  { %636 = vmatprep.mubr.bf16.mxu0 %v1185_v41 }
  0x3e   :  { %757 = vmatmul.mubr.bf16.gmra.mxu1 %v1184_v42 }
  0x3f   :  { %1032 = vmatprep.mubr.msk.bf16.mxu1 %vm532_vm0, %v1188_v43 }
  0x43   :  { %637 = vmatmul.mubr.bf16.gmra.mxu0 %v1187_v44 }
  0x44   :  { %644 = vmatprep.mubr.bf16.mxu0 %v1191_v45 }
  0x46   :  { %765 = vmatmul.mubr.bf16.gmra.mxu1 %v1190_v46 }
  0x47   :  { %1033 = vmatprep.mubr.msk.bf16.mxu1 %vm532_vm0, %v1194_v47 }
  0x4b   :  { %645 = vmatmul.mubr.bf16.gmra.mxu0 %v1193_v48  ;;  %v846_v48 = vld [vmem:[%s1728_s3 + $0x10] sm:$0xff] }
  0x4c   :  { %652 = vmatprep.mubr.bf16.mxu0 %v1197_v49 }
  0x4e   :  { %773 = vmatmul.mubr.bf16.gmra.mxu1 %v1196_v50 }
  0x4f   :  { %1034 = vmatprep.mubr.msk.bf16.mxu1 %vm532_vm0, %v1200_v51 }
  0x53   :  { %653 = vmatmul.mubr.bf16.gmra.mxu0 %v1199_v52 }
  0x54   :  { %660 = vmatprep.mubr.bf16.mxu0 %v1203_v53 }
  0x56   :  { %781 = vmatmul.mubr.bf16.gmra.mxu1 %v1202_v54 }
  0x57   :  { %1035 = vmatprep.mubr.msk.bf16.mxu1 %vm532_vm0, %v1206_v55 }
  0x5b   :  { %661 = vmatmul.mubr.bf16.gmra.mxu0 %v1205_v56 }
  0x5c   :  { %668 = vmatprep.mubr.bf16.mxu0 %v1209_v57 }
  0x5e   :  { %789 = vmatmul.mubr.bf16.gmra.mxu1 %v1208_v58  ;;  %v847_v58 = vld [vmem:[%s1728_s3 + $0x18] sm:$0xff] }
  0x5f   :  { %1036 = vmatprep.mubr.msk.bf16.mxu1 %vm532_vm0, %v1212_v59 }
  0x63   :  { %669 = vmatmul.mubr.bf16.gmra.mxu0 %v1211_v60 }
  0x64   :  { %676 = vmatprep.mubr.bf16.mxu0 %v1215_v61 }
  0x66   :  { %797 = vmatmul.mubr.bf16.gmra.mxu1 %v1214_v62 }
  0x67   :  { %1037 = vmatprep.mubr.msk.bf16.mxu1 %vm532_vm0, %v1218_v63 }
  0x6b   :  { %677 = vmatmul.mubr.bf16.gmra.mxu0 %v1217_v0 }
  0x6c   :  { %684 = vmatprep.mubr.bf16.mxu0 %v1221_v1 }
  0x6e   :  { %805 = vmatmul.mubr.bf16.gmra.mxu1 %v1220_v2 }
  0x6f   :  { %1038 = vmatprep.mubr.msk.bf16.mxu1 %vm532_vm0, %v1224_v3 }
  0x73   :  { %685 = vmatmul.mubr.bf16.gmra.mxu0 %v1223_v4  ;;  %v848_v4 = vld [vmem:[%s1728_s3 + $0x20] sm:$0xff] }
  0x74   :  { %692 = vmatprep.mubr.bf16.mxu0 %v1227_v5 }
  0x76   :  { %813 = vmatmul.mubr.bf16.gmra.mxu1 %v1226_v6 }
  0x77   :  { %1039 = vmatprep.mubr.msk.bf16.mxu1 %vm532_vm0, %v1230_v7 }
  0x7b   :  { %693 = vmatmul.mubr.bf16.gmra.mxu0 %v1229_v9 }
  0x7c   :  { %700 = vmatprep.mubr.bf16.mxu0 %v999_v10 }
  0x7e   :  { %821 = vmatmul.mubr.bf16.gmra.mxu1 %v1232_v11 }
  0x7f   :  { %1040 = vmatprep.mubr.msk.bf16.mxu1 %vm532_vm0, %v1235_v12 }
  0x83   :  { %701 = vmatmul.mubr.bf16.gmra.mxu0 %v998_v13 }
  0x86   :  { %829 = vmatmul.mubr.bf16.gmra.mxu1 %v1237_v15 }
  0x87   :  { %1041 = vmatprep.mubr.msk.bf16.mxu1 %vm532_vm0, %v1001_v16 }
  0x8e   :  { %837 = vmatmul.mubr.bf16.gmra.mxu1 %v1000_v17 }
  0xe3   :  { %v1058_v18 = vpop.f32.mrf.mxu0 }
  0xe5   :  { %v1059_v19 = vpop.f32.mrf.mxu0 }
  0xe6   :  { %v1060_v21 = vadd.f32 %v1059_v19, %v1058_v18 }
  0xe7   :  { %v1061_v20 = vpop.f32.mrf.mxu0 }
  0xe8   :  { %v607_v27 = vadd.f32 %v1060_v21, %v1524_v23 }
  0xe9   :  { %v1062_v22 = vpop.f32.mrf.mxu0 }
  0xea   :  { %v1063_v25 = vadd.f32 %v1062_v22, %v1061_v20 }
  0xeb   :  { %v1064_v24 = vpop.f32.mrf.mxu0 }
  0xec   :  { %v610_v36 = vadd.f32 %v1063_v25, %v1524_v23  ;;  %v850_v25 = vld [vmem:[%s1728_s3 + $0x30] sm:$0xff] }
  0xed   :  { %v1065_v26 = vpop.f32.mrf.mxu0 }
  0xee   :  { %v742_v28 = vpop.f32.mrf.mxu1  ;;  %v1066_v33 = vadd.f32 %v1065_v26, %v1064_v24 }
  0xef   :  { %v743_v30 = vadd.f32 %v742_v28, %v607_v27  ;;  %v1067_v31 = vpop.f32.mrf.mxu0 }
  0xf0   :  { %v744_v32 = vpop.f32.mrf.mxu1  ;;  %v615_v46 = vadd.f32 %v1066_v33, %v1524_v23 }
  0xf1   :  { %v869_v34 = vadd.f32 %v844_v29, %v743_v30  ;;  %v1068_v35 = vpop.f32.mrf.mxu0 }
  0xf2   :  { %v745_v37 = vpop.f32.mrf.mxu1  ;;  %v1069_v43 = vadd.f32 %v1068_v35, %v1067_v31  ;;  %v851_v35 = vld [vmem:[%s1728_s3 + $0x38] sm:$0xff] }
  0xf3   :  { %v894_v39 = vmax.f32 %v869_v34, 0.0  ;;  %v746_v40 = vadd.f32 %v745_v37, %v610_v36  ;;  %v1070_v41 = vpop.f32.mrf.mxu0 }
  0xf4   :  { %v747_v42 = vpop.f32.mrf.mxu1  ;;  %v618_v56 = vadd.f32 %v1069_v43, %v1524_v23 }
  0xf5   :  { %919 = vst.msk [vmem:[%s1729_s4] sm:$0xff] %vm532_vm0, %v894_v39  ;;  %v870_v44 = vadd.f32 %v845_v38, %v746_v40  ;;  %v1071_v45 = vpop.f32.mrf.mxu0 }
  0xf6   :  { %v750_v47 = vpop.f32.mrf.mxu1  ;;  %v1072_v53 = vadd.f32 %v1071_v45, %v1070_v41  ;;  %v852_v45 = vld [vmem:[%s1728_s3 + $0x40] sm:$0xff] }
  0xf7   :  { %v895_v49 = vmax.f32 %v870_v44, 0.0  ;;  %v751_v50 = vadd.f32 %v750_v47, %v615_v46  ;;  %v1073_v51 = vpop.f32.mrf.mxu0 }
  0xf8   :  { %v752_v52 = vpop.f32.mrf.mxu1  ;;  %v623_v2 = vadd.f32 %v1072_v53, %v1524_v23 }
  0xf9   :  { %920 = vst.msk [vmem:[%s1729_s4 + $0x8] sm:$0xff] %vm532_vm0, %v895_v49  ;;  %v871_v54 = vadd.f32 %v846_v48, %v751_v50  ;;  %v1074_v55 = vpop.f32.mrf.mxu0 }
  0xfa   :  { %v753_v57 = vpop.f32.mrf.mxu1  ;;  %v1075_v63 = vadd.f32 %v1074_v55, %v1073_v51  ;;  %v853_v55 = vld [vmem:[%s1728_s3 + $0x48] sm:$0xff] }
  0xfb   :  { %v896_v59 = vmax.f32 %v871_v54, 0.0  ;;  %v754_v60 = vadd.f32 %v753_v57, %v618_v56  ;;  %v1076_v61 = vpop.f32.mrf.mxu0 }
  0xfc   :  { %v755_v62 = vpop.f32.mrf.mxu1  ;;  %v626_v12 = vadd.f32 %v1075_v63, %v1524_v23 }
  0xfd   :  { %921 = vst.msk [vmem:[%s1729_s4 + $0x10] sm:$0xff] %vm532_vm0, %v896_v59  ;;  %v872_v0 = vadd.f32 %v847_v58, %v754_v60  ;;  %v1077_v1 = vpop.f32.mrf.mxu0 }
  0xfe   :  { %v758_v3 = vpop.f32.mrf.mxu1  ;;  %v1078_v9 = vadd.f32 %v1077_v1, %v1076_v61  ;;  %v854_v1 = vld [vmem:[%s1728_s3 + $0x50] sm:$0xff] }
  0xff   :  { %v897_v5 = vmax.f32 %v872_v0, 0.0  ;;  %v759_v6 = vadd.f32 %v758_v3, %v623_v2  ;;  %v1079_v7 = vpop.f32.mrf.mxu0 }
 0x100   :  { %v760_v8 = vpop.f32.mrf.mxu1  ;;  %v631_v22 = vadd.f32 %v1078_v9, %v1524_v23 }
 0x101   :  { %922 = vst.msk [vmem:[%s1729_s4 + $0x18] sm:$0xff] %vm532_vm0, %v897_v5  ;;  %v873_v10 = vadd.f32 %v848_v4, %v759_v6  ;;  %v1080_v11 = vpop.f32.mrf.mxu0 }
 0x102   :  { %v761_v13 = vpop.f32.mrf.mxu1  ;;  %v1081_v19 = vadd.f32 %v1080_v11, %v1079_v7  ;;  %v855_v11 = vld [vmem:[%s1728_s3 + $0x58] sm:$0xff] }
 0x103   :  { %v898_v15 = vmax.f32 %v873_v10, 0.0  ;;  %v762_v16 = vadd.f32 %v761_v13, %v626_v12  ;;  %v1082_v17 = vpop.f32.mrf.mxu0 }
 0x104   :  { %v763_v18 = vpop.f32.mrf.mxu1  ;;  %v634_v33 = vadd.f32 %v1081_v19, %v1524_v23 }
 0x105   :  { %923 = vst.msk [vmem:[%s1729_s4 + $0x20] sm:$0xff] %vm532_vm0, %v898_v15  ;;  %v874_v20 = vadd.f32 %v849_v14, %v762_v16  ;;  %v1083_v21 = vpop.f32.mrf.mxu0 }
 0x106   :  { %v766_v24 = vpop.f32.mrf.mxu1  ;;  %v1084_v30 = vadd.f32 %v1083_v21, %v1082_v17  ;;  %v856_v21 = vld [vmem:[%s1728_s3 + $0x60] sm:$0xff] }
 0x107   :  { %v899_v26 = vmax.f32 %v874_v20, 0.0  ;;  %v767_v27 = vadd.f32 %v766_v24, %v631_v22  ;;  %v1085_v28 = vpop.f32.mrf.mxu0 }
 0x108   :  { %v768_v29 = vpop.f32.mrf.mxu1  ;;  %v639_v43 = vadd.f32 %v1084_v30, %v1524_v23 }
 0x109   :  { %924 = vst.msk [vmem:[%s1729_s4 + $0x28] sm:$0xff] %vm532_vm0, %v899_v26  ;;  %v875_v31 = vadd.f32 %v850_v25, %v767_v27  ;;  %v1086_v32 = vpop.f32.mrf.mxu0 }
 0x10a   :  { %v769_v34 = vpop.f32.mrf.mxu1  ;;  %v1087_v40 = vadd.f32 %v1086_v32, %v1085_v28  ;;  %v857_v32 = vld [vmem:[%s1728_s3 + $0x68] sm:$0xff] }
 0x10b   :  { %v900_v36 = vmax.f32 %v875_v31, 0.0  ;;  %v770_v37 = vadd.f32 %v769_v34, %v634_v33  ;;  %v1088_v38 = vpop.f32.mrf.mxu0 }
 0x10c   :  { %v771_v39 = vpop.f32.mrf.mxu1  ;;  %v642_v53 = vadd.f32 %v1087_v40, %v1524_v23 }
 0x10d   :  { %925 = vst.msk [vmem:[%s1729_s4 + $0x30] sm:$0xff] %vm532_vm0, %v900_v36  ;;  %v876_v41 = vadd.f32 %v851_v35, %v770_v37  ;;  %v1089_v42 = vpop.f32.mrf.mxu0 }
 0x10e   :  { %v774_v44 = vpop.f32.mrf.mxu1  ;;  %v1090_v50 = vadd.f32 %v1089_v42, %v1088_v38  ;;  %v858_v42 = vld [vmem:[%s1728_s3 + $0x70] sm:$0xff] }
 0x10f   :  { %v901_v46 = vmax.f32 %v876_v41, 0.0  ;;  %v775_v47 = vadd.f32 %v774_v44, %v639_v43  ;;  %v1091_v48 = vpop.f32.mrf.mxu0 }
 0x110   :  { %v776_v49 = vpop.f32.mrf.mxu1  ;;  %v647_v63 = vadd.f32 %v1090_v50, %v1524_v23 }
 0x111   :  { %926 = vst.msk [vmem:[%s1729_s4 + $0x38] sm:$0xff] %vm532_vm0, %v901_v46  ;;  %v877_v51 = vadd.f32 %v852_v45, %v775_v47  ;;  %v1092_v52 = vpop.f32.mrf.mxu0 }
 0x112   :  { %v777_v54 = vpop.f32.mrf.mxu1  ;;  %v1093_v60 = vadd.f32 %v1092_v52, %v1091_v48  ;;  %v859_v52 = vld [vmem:[%s1728_s3 + $0x78] sm:$0xff] }
 0x113   :  { %v902_v56 = vmax.f32 %v877_v51, 0.0  ;;  %v778_v57 = vadd.f32 %v777_v54, %v642_v53  ;;  %v1094_v58 = vpop.f32.mrf.mxu0 }
 0x114   :  { %v779_v59 = vpop.f32.mrf.mxu1  ;;  %v650_v9 = vadd.f32 %v1093_v60, %v1524_v23 }
 0x115   :  { %927 = vst.msk [vmem:[%s1729_s4 + $0x40] sm:$0xff] %vm532_vm0, %v902_v56  ;;  %v878_v61 = vadd.f32 %v853_v55, %v778_v57  ;;  %v1095_v62 = vpop.f32.mrf.mxu0 }
 0x116   :  { %v782_v0 = vpop.f32.mrf.mxu1  ;;  %v1096_v6 = vadd.f32 %v1095_v62, %v1094_v58  ;;  %v860_v62 = vld [vmem:[%s1728_s3 + $0x80] sm:$0xff] }
 0x117   :  { %v903_v2 = vmax.f32 %v878_v61, 0.0  ;;  %v783_v3 = vadd.f32 %v782_v0, %v647_v63  ;;  %v1097_v4 = vpop.f32.mrf.mxu0 }
 0x118   :  { %v784_v5 = vpop.f32.mrf.mxu1  ;;  %v655_v19 = vadd.f32 %v1096_v6, %v1524_v23 }
 0x119   :  { %928 = vst.msk [vmem:[%s1729_s4 + $0x48] sm:$0xff] %vm532_vm0, %v903_v2  ;;  %v879_v7 = vadd.f32 %v854_v1, %v783_v3  ;;  %v1098_v8 = vpop.f32.mrf.mxu0 }
 0x11a   :  { %v785_v10 = vpop.f32.mrf.mxu1  ;;  %v1099_v16 = vadd.f32 %v1098_v8, %v1097_v4  ;;  %v861_v8 = vld [vmem:[%s1728_s3 + $0x88] sm:$0xff] }
 0x11b   :  { %v904_v12 = vmax.f32 %v879_v7, 0.0  ;;  %v786_v13 = vadd.f32 %v785_v10, %v650_v9  ;;  %v1100_v14 = vpop.f32.mrf.mxu0 }
 0x11c   :  { %v787_v15 = vpop.f32.mrf.mxu1  ;;  %v658_v30 = vadd.f32 %v1099_v16, %v1524_v23 }
 0x11d   :  { %929 = vst.msk [vmem:[%s1729_s4 + $0x50] sm:$0xff] %vm532_vm0, %v904_v12  ;;  %v880_v17 = vadd.f32 %v855_v11, %v786_v13  ;;  %v1101_v18 = vpop.f32.mrf.mxu0 }
 0x11e   :  { %v790_v20 = vpop.f32.mrf.mxu1  ;;  %v1102_v27 = vadd.f32 %v1101_v18, %v1100_v14  ;;  %v862_v18 = vld [vmem:[%s1728_s3 + $0x90] sm:$0xff] }
 0x11f   :  { %v905_v22 = vmax.f32 %v880_v17, 0.0  ;;  %v791_v24 = vadd.f32 %v790_v20, %v655_v19  ;;  %v1103_v25 = vpop.f32.mrf.mxu0 }
 0x120   :  { %v792_v26 = vpop.f32.mrf.mxu1  ;;  %v663_v40 = vadd.f32 %v1102_v27, %v1524_v23 }
 0x121   :  { %930 = vst.msk [vmem:[%s1729_s4 + $0x58] sm:$0xff] %vm532_vm0, %v905_v22  ;;  %v881_v28 = vadd.f32 %v856_v21, %v791_v24  ;;  %v1104_v29 = vpop.f32.mrf.mxu0 }
 0x122   :  { %v793_v31 = vpop.f32.mrf.mxu1  ;;  %v1105_v37 = vadd.f32 %v1104_v29, %v1103_v25  ;;  %v863_v29 = vld [vmem:[%s1728_s3 + $0x98] sm:$0xff] }
 0x123   :  { %v906_v33 = vmax.f32 %v881_v28, 0.0  ;;  %v794_v34 = vadd.f32 %v793_v31, %v658_v30  ;;  %v1106_v35 = vpop.f32.mrf.mxu0 }
 0x124   :  { %v795_v36 = vpop.f32.mrf.mxu1  ;;  %v666_v50 = vadd.f32 %v1105_v37, %v1524_v23 }
 0x125   :  { %931 = vst.msk [vmem:[%s1729_s4 + $0x60] sm:$0xff] %vm532_vm0, %v906_v33  ;;  %v882_v38 = vadd.f32 %v857_v32, %v794_v34  ;;  %v1107_v39 = vpop.f32.mrf.mxu0 }
 0x126   :  { %v798_v41 = vpop.f32.mrf.mxu1  ;;  %v1108_v47 = vadd.f32 %v1107_v39, %v1106_v35  ;;  %v864_v39 = vld [vmem:[%s1728_s3 + $0xa0] sm:$0xff] }
 0x127   :  { %v907_v43 = vmax.f32 %v882_v38, 0.0  ;;  %v799_v44 = vadd.f32 %v798_v41, %v663_v40  ;;  %v1109_v45 = vpop.f32.mrf.mxu0 }
 0x128   :  { %v800_v46 = vpop.f32.mrf.mxu1  ;;  %v671_v60 = vadd.f32 %v1108_v47, %v1524_v23 }
 0x129   :  { %932 = vst.msk [vmem:[%s1729_s4 + $0x68] sm:$0xff] %vm532_vm0, %v907_v43  ;;  %v883_v48 = vadd.f32 %v858_v42, %v799_v44  ;;  %v1110_v49 = vpop.f32.mrf.mxu0 }
 0x12a   :  { %v801_v51 = vpop.f32.mrf.mxu1  ;;  %v1111_v57 = vadd.f32 %v1110_v49, %v1109_v45  ;;  %v865_v49 = vld [vmem:[%s1728_s3 + $0xa8] sm:$0xff] }
 0x12b   :  { %v908_v53 = vmax.f32 %v883_v48, 0.0  ;;  %v802_v54 = vadd.f32 %v801_v51, %v666_v50  ;;  %v1112_v55 = vpop.f32.mrf.mxu0 }
 0x12c   :  { %v803_v56 = vpop.f32.mrf.mxu1  ;;  %v674_v6 = vadd.f32 %v1111_v57, %v1524_v23 }
 0x12d   :  { %933 = vst.msk [vmem:[%s1729_s4 + $0x70] sm:$0xff] %vm532_vm0, %v908_v53  ;;  %v884_v58 = vadd.f32 %v859_v52, %v802_v54  ;;  %v1113_v59 = vpop.f32.mrf.mxu0 }
 0x12e   :  { %v806_v61 = vpop.f32.mrf.mxu1  ;;  %v1114_v3 = vadd.f32 %v1113_v59, %v1112_v55  ;;  %v866_v59 = vld [vmem:[%s1728_s3 + $0xb0] sm:$0xff] }
 0x12f   :  { %v909_v63 = vmax.f32 %v884_v58, 0.0  ;;  %v807_v0 = vadd.f32 %v806_v61, %v671_v60  ;;  %v1115_v1 = vpop.f32.mrf.mxu0 }
 0x130   :  { %v808_v2 = vpop.f32.mrf.mxu1  ;;  %v679_v16 = vadd.f32 %v1114_v3, %v1524_v23 }
 0x131   :  { %934 = vst.msk [vmem:[%s1729_s4 + $0x78] sm:$0xff] %vm532_vm0, %v909_v63  ;;  %v885_v4 = vadd.f32 %v860_v62, %v807_v0  ;;  %v1116_v5 = vpop.f32.mrf.mxu0 }
 0x132   :  { %v809_v7 = vpop.f32.mrf.mxu1  ;;  %v1117_v13 = vadd.f32 %v1116_v5, %v1115_v1  ;;  %v867_v5 = vld [vmem:[%s1728_s3 + $0xb8] sm:$0xff] }
 0x133   :  { %v910_v9 = vmax.f32 %v885_v4, 0.0  ;;  %v810_v10 = vadd.f32 %v809_v7, %v674_v6  ;;  %v1118_v11 = vpop.f32.mrf.mxu0 }
 0x134   :  { %v811_v12 = vpop.f32.mrf.mxu1  ;;  %v682_v27 = vadd.f32 %v1117_v13, %v1524_v23 }
 0x135   :  { %935 = vst.msk [vmem:[%s1729_s4 + $0x80] sm:$0xff] %vm532_vm0, %v910_v9  ;;  %v886_v14 = vadd.f32 %v861_v8, %v810_v10  ;;  %v1119_v15 = vpop.f32.mrf.mxu0  ;;  %v868_v12 = vld [vmem:[%s1728_s3 + $0xc0] sm:$0xf] }
 0x136   :  { %v814_v17 = vpop.f32.mrf.mxu1  ;;  %v1120_v24 = vadd.f32 %v1119_v15, %v1118_v11 }
 0x137   :  { %v911_v19 = vmax.f32 %v886_v14, 0.0  ;;  %v815_v20 = vadd.f32 %v814_v17, %v679_v16  ;;  %v1121_v21 = vpop.f32.mrf.mxu0 }
 0x138   :  { %v816_v22 = vpop.f32.mrf.mxu1  ;;  %v687_v37 = vadd.f32 %v1120_v24, %v1524_v23 }
 0x139   :  { %936 = vst.msk [vmem:[%s1729_s4 + $0x88] sm:$0xff] %vm532_vm0, %v911_v19  ;;  %v887_v25 = vadd.f32 %v862_v18, %v815_v20  ;;  %v1122_v26 = vpop.f32.mrf.mxu0 }
 0x13a   :  { %v817_v28 = vpop.f32.mrf.mxu1  ;;  %v1123_v34 = vadd.f32 %v1122_v26, %v1121_v21 }
 0x13b   :  { %v912_v30 = vmax.f32 %v887_v25, 0.0  ;;  %v818_v31 = vadd.f32 %v817_v28, %v682_v27  ;;  %v1124_v32 = vpop.f32.mrf.mxu0 }
 0x13c   :  { %v819_v33 = vpop.f32.mrf.mxu1  ;;  %v690_v47 = vadd.f32 %v1123_v34, %v1524_v23 }
 0x13d   :  { %937 = vst.msk [vmem:[%s1729_s4 + $0x90] sm:$0xff] %vm532_vm0, %v912_v30  ;;  %v888_v35 = vadd.f32 %v863_v29, %v818_v31  ;;  %v1125_v36 = vpop.f32.mrf.mxu0 }
 0x13e   :  { %v822_v38 = vpop.f32.mrf.mxu1  ;;  %v1126_v44 = vadd.f32 %v1125_v36, %v1124_v32 }
 0x13f   :  { %v913_v40 = vmax.f32 %v888_v35, 0.0  ;;  %v823_v41 = vadd.f32 %v822_v38, %v687_v37  ;;  %v1127_v42 = vpop.f32.mrf.mxu0 }
 0x140   :  { %v824_v43 = vpop.f32.mrf.mxu1  ;;  %v695_v57 = vadd.f32 %v1126_v44, %v1524_v23 }
 0x141   :  { %938 = vst.msk [vmem:[%s1729_s4 + $0x98] sm:$0xff] %vm532_vm0, %v913_v40  ;;  %v889_v45 = vadd.f32 %v864_v39, %v823_v41  ;;  %v1128_v46 = vpop.f32.mrf.mxu0 }
 0x142   :  { %v825_v48 = vpop.f32.mrf.mxu1  ;;  %v1129_v54 = vadd.f32 %v1128_v46, %v1127_v42 }
 0x143   :  { %v914_v50 = vmax.f32 %v889_v45, 0.0  ;;  %v826_v51 = vadd.f32 %v825_v48, %v690_v47  ;;  %v1130_v52 = vpop.f32.mrf.mxu0 }
 0x144   :  { %v827_v53 = vpop.f32.mrf.mxu1  ;;  %v698_v3 = vadd.f32 %v1129_v54, %v1524_v23 }
 0x145   :  { %939 = vst.msk [vmem:[%s1729_s4 + $0xa0] sm:$0xff] %vm532_vm0, %v914_v50  ;;  %v890_v55 = vadd.f32 %v865_v49, %v826_v51  ;;  %v1131_v56 = vpop.f32.mrf.mxu0 }
 0x146   :  { %v830_v58 = vpop.f32.mrf.mxu1  ;;  %v1132_v0 = vadd.f32 %v1131_v56, %v1130_v52 }
 0x147   :  { %v915_v60 = vmax.f32 %v890_v55, 0.0  ;;  %v831_v61 = vadd.f32 %v830_v58, %v695_v57  ;;  %v1133_v62 = vpop.f32.mrf.mxu0 }
 0x148   :  { %v832_v63 = vpop.f32.mrf.mxu1  ;;  %v703_v10 = vadd.f32 %v1132_v0, %v1524_v23 }
 0x149   :  { %940 = vst.msk [vmem:[%s1729_s4 + $0xa8] sm:$0xff] %vm532_vm0, %v915_v60  ;;  %v891_v1 = vadd.f32 %v866_v59, %v831_v61  ;;  %v1134_v2 = vpop.f32.mrf.mxu0 }
 0x14a   :  { %v833_v4 = vpop.f32.mrf.mxu1 }
 0x14b   :  { %v916_v6 = vmax.f32 %v891_v1, 0.0  ;;  %v834_v7 = vadd.f32 %v833_v4, %v698_v3 }
 0x14c   :  { %v835_v8 = vpop.f32.mrf.mxu1 }
 0x14d   :  { %941 = vst.msk [vmem:[%s1729_s4 + $0xb0] sm:$0xff] %vm532_vm0, %v916_v6  ;;  %v892_v9 = vadd.f32 %v867_v5, %v834_v7 }
 0x14e   :  { %v838_v11 = vpop.f32.mrf.mxu1 }
 0x14f   :  { %v917_v13 = vmax.f32 %v892_v9, 0.0  ;;  %v839_v14 = vadd.f32 %v838_v11, %v703_v10 }
 0x150   :  { %v840_v15 = vpop.f32.mrf.mxu1 }
 0x151   :  { %942 = vst.msk [vmem:[%s1729_s4 + $0xb8] sm:$0xff] %vm532_vm0, %v917_v13  ;;  %v893_v16 = vadd.f32 %v868_v12, %v839_v14 }
 0x152   :  { %v841_v17 = vpop.f32.mrf.mxu1 }
 0x153   :  { %v918_v18 = vmax.f32 %v893_v16, 0.0 }
 0x154   :  { %v842_v19 = vpop.f32.mrf.mxu1 }
 0x155   :  { %944 = vst.msk [vmem:[%s1729_s4 + $0xc0] sm:$0xf] %vm943_vm1, %v918_v18 }

// kernel: npi_forward.55
= control target key start
LH: loop header
LB: loop body
LE: loop exit
PB: predicated region body
PF: predicated region fallthrough
CT: control target
= control target key end

     0   :  { %v469_v0 = vmov 0.0   ;;  %vm470_vm0 = vmmov 0   ;;  %vm134_vm1 = vcmask 392192   ;;  %vm310_vm2 = vcmask 64512   ;;  %s694_s1 = inlined_call_operand.vmem [shape: bf16[48,8], index: 1, kind: input, shape index: {}]   ;;  %s695_s0 = inlined_call_operand.vmem [shape: bf16[1,196,48], index: 0, kind: input, shape index: {}]   ;;  %s696_s2 = inlined_call_operand.vmem [shape: f32[1,8], index: 2, kind: input, shape index: {}]   ;;  %s697_s3 = inlined_call_operand.vmem [shape: f32[1,196,8], index: 3, kind: output, shape index: {}]  }
   0x1   :  { %387 = vmatprep.subr.bf16.mxu0 %v469_v0  ;;  %v453_v1 = vld [vmem:[%s694_s1 + $0x10] sm:$0xff]   ;;  %445 = vmatprep.subr.bf16.mxu1 %v469_v0  ;;  %v454_v2 = vld [vmem:[%s694_s1 + $0x8] sm:$0xff]   ;;  %v455_v3 = vld [vmem:[%s694_s1] sm:$0xff]   ;;  %vm335_vm3 = vcmask 60416  }
   0x2   :  { %393 = vmatprep.mubr.msk.bf16.mxu0 %vm470_vm0, %v469_v0  ;;  %421 = vmatprep.mubr.msk.bf16.mxu1 %vm470_vm0, %v469_v0  ;;  %v456_v4 = vld [vmem:[%s695_s0] sm:$0xff]   ;;  %v457_v5 = vld [vmem:[%s695_s0 + $0x38] sm:$0xff]   ;;  %v458_v6 = vld [vmem:[%s695_s0 + $0x8] sm:$0xff]  }
   0x3   :  { %388 = vmatpush3.bf16.msra.mxu0 %v453_v1  ;;  %448 = vmatpush3.bf16.msra.mxu1 %v453_v1  ;;  %v459_v7 = vld [vmem:[%s695_s0 + $0x40] sm:$0xff]   ;;  %v460_v8 = vld [vmem:[%s695_s0 + $0x10] sm:$0xff]   ;;  %v461_v9 = vld [vmem:[%s695_s0 + $0x48] sm:$0xff]  }
   0x4   :  { %389 = vmatprep.subr.bf16.mxu0 %v469_v0  ;;  %446 = vmatprep.subr.bf16.mxu1 %v469_v0  ;;  %v462_v10 = vld [vmem:[%s695_s0 + $0x18] sm:$0xff]   ;;  %v463_v11 = vld [vmem:[%s695_s0 + $0x50] sm:$0xff]   ;;  %v464_v12 = vld [vmem:[%s695_s0 + $0x20] sm:$0xff]  }
   0x5   :  { %v465_v13 = vld [vmem:[%s695_s0 + $0x58] sm:$0xff]   ;;  %v466_v14 = vld [vmem:[%s695_s0 + $0x28] sm:$0xff]   ;;  %v467_v15 = vld [vmem:[%s695_s0 + $0x60] ss:$0 sps:$4 sm:$0x33]  }
   0x6   :  { %v468_v16 = vld [vmem:[%s695_s0 + $0x30] sm:$0xff]   ;;  %v568_v17 = vld [vmem:[%s696_s2] ss:$0 sm:$0xff] }
   0x7   :  { %390 = vmatpush3.bf16.msra.mxu0 %v454_v2  ;;  %449 = vmatpush3.bf16.msra.mxu1 %v454_v2 }
   0x8   :  { %391 = vmatprep.subr.bf16.mxu0 %v469_v0  ;;  %447 = vmatprep.subr.bf16.mxu1 %v469_v0 }
   0xb   :  { %392 = vmatpush3.bf16.msra.mxu0 %v455_v3  ;;  %450 = vmatpush3.bf16.msra.mxu1 %v455_v3 }
   0xe   :  { %394 = vmatmul.mubr.msk.bf16.vlgmr.msra.gmra.mxu0 %vm134_vm1, %v456_v4  ;;  %422 = vmatmul.mubr.msk.bf16.vlgmr.msra.gmra.mxu1 %vm134_vm1, %v457_v5 }
   0xf   :  { %397 = vmatprep.mubr.msk.bf16.mxu0 %vm470_vm0, %v469_v0  ;;  %425 = vmatprep.mubr.msk.bf16.mxu1 %vm470_vm0, %v469_v0 }
  0x16   :  { %398 = vmatmul.mubr.msk.bf16.gmra.mxu0 %vm134_vm1, %v458_v6  ;;  %426 = vmatmul.mubr.msk.bf16.gmra.mxu1 %vm134_vm1, %v459_v7 }
  0x17   :  { %401 = vmatprep.mubr.msk.bf16.mxu0 %vm470_vm0, %v469_v0  ;;  %429 = vmatprep.mubr.msk.bf16.mxu1 %vm470_vm0, %v469_v0 }
  0x1e   :  { %402 = vmatmul.mubr.msk.bf16.gmra.mxu0 %vm134_vm1, %v460_v8  ;;  %430 = vmatmul.mubr.msk.bf16.gmra.mxu1 %vm134_vm1, %v461_v9 }
  0x1f   :  { %405 = vmatprep.mubr.msk.bf16.mxu0 %vm470_vm0, %v469_v0  ;;  %433 = vmatprep.mubr.msk.bf16.mxu1 %vm470_vm0, %v469_v0 }
  0x26   :  { %406 = vmatmul.mubr.msk.bf16.gmra.mxu0 %vm134_vm1, %v462_v10  ;;  %434 = vmatmul.mubr.msk.bf16.gmra.mxu1 %vm134_vm1, %v463_v11 }
  0x27   :  { %409 = vmatprep.mubr.msk.bf16.mxu0 %vm470_vm0, %v469_v0  ;;  %437 = vmatprep.mubr.msk.bf16.mxu1 %vm470_vm0, %v469_v0 }
  0x2e   :  { %410 = vmatmul.mubr.msk.bf16.gmra.mxu0 %vm134_vm1, %v464_v12  ;;  %438 = vmatmul.mubr.msk.bf16.gmra.mxu1 %vm134_vm1, %v465_v13 }
  0x2f   :  { %413 = vmatprep.mubr.msk.bf16.mxu0 %vm470_vm0, %v469_v0  ;;  %441 = vmatprep.mubr.msk.bf16.mxu1 %vm470_vm0, %v469_v0 }
  0x36   :  { %414 = vmatmul.mubr.msk.bf16.gmra.mxu0 %vm134_vm1, %v466_v14  ;;  %442 = vmatmul.mubr.msk.bf16.gmra.mxu1 %vm134_vm1, %v467_v15 }
  0x37   :  { %417 = vmatprep.mubr.msk.bf16.mxu0 %vm470_vm0, %v469_v0 }
  0x3e   :  { %418 = vmatmul.mubr.msk.bf16.gmra.mxu0 %vm134_vm1, %v468_v16 }
  0xce   :  { %v208_v18 = vpop.f32.mrf.mxu0  ;;  %v264_v19 = vpop.f32.mrf.mxu1 }
  0xcf   :  { %v209_v20 = vadd.f32 %v568_v17, %v208_v18  ;;  %v265_v21 = vadd.f32 %v568_v17, %v264_v19 }
  0xd0   :  { %v395_v22 = vpop.f32.mrf.mxu0  ;;  %v423_v23 = vpop.f32.mrf.mxu1 }
  0xd1   :  { %311 = vst.msk [vmem:[%s697_s3] sm:$0xff] %vm310_vm2, %v209_v20  ;;  %325 = vst.msk [vmem:[%s697_s3 + $0x70] sm:$0xff] %vm310_vm2, %v265_v21 }
  0xd2   :  { %v211_v24 = vpop.f32.mrf.mxu0  ;;  %v267_v25 = vpop.f32.mrf.mxu1 }
  0xd3   :  { %v212_v26 = vadd.f32 %v568_v17, %v211_v24  ;;  %v268_v27 = vadd.f32 %v568_v17, %v267_v25 }
  0xd4   :  { %v396_v28 = vpop.f32.mrf.mxu0  ;;  %v424_v29 = vpop.f32.mrf.mxu1 }
  0xd5   :  { %312 = vst.msk [vmem:[%s697_s3 + $0x8] sm:$0xff] %vm310_vm2, %v212_v26  ;;  %326 = vst.msk [vmem:[%s697_s3 + $0x78] sm:$0xff] %vm310_vm2, %v268_v27 }
  0xd6   :  { %v216_v30 = vpop.f32.mrf.mxu0  ;;  %v272_v31 = vpop.f32.mrf.mxu1 }
  0xd7   :  { %v217_v32 = vadd.f32 %v568_v17, %v216_v30  ;;  %v273_v33 = vadd.f32 %v568_v17, %v272_v31 }
  0xd8   :  { %v399_v34 = vpop.f32.mrf.mxu0  ;;  %v427_v35 = vpop.f32.mrf.mxu1 }
  0xd9   :  { %313 = vst.msk [vmem:[%s697_s3 + $0x10] sm:$0xff] %vm310_vm2, %v217_v32  ;;  %327 = vst.msk [vmem:[%s697_s3 + $0x80] sm:$0xff] %vm310_vm2, %v273_v33 }
  0xda   :  { %v219_v36 = vpop.f32.mrf.mxu0  ;;  %v275_v37 = vpop.f32.mrf.mxu1 }
  0xdb   :  { %v220_v38 = vadd.f32 %v568_v17, %v219_v36  ;;  %v276_v39 = vadd.f32 %v568_v17, %v275_v37 }
  0xdc   :  { %v400_v40 = vpop.f32.mrf.mxu0  ;;  %v428_v41 = vpop.f32.mrf.mxu1 }
  0xdd   :  { %314 = vst.msk [vmem:[%s697_s3 + $0x18] sm:$0xff] %vm310_vm2, %v220_v38  ;;  %328 = vst.msk [vmem:[%s697_s3 + $0x88] sm:$0xff] %vm310_vm2, %v276_v39 }
  0xde   :  { %v224_v42 = vpop.f32.mrf.mxu0  ;;  %v280_v43 = vpop.f32.mrf.mxu1 }
  0xdf   :  { %v225_v44 = vadd.f32 %v568_v17, %v224_v42  ;;  %v281_v45 = vadd.f32 %v568_v17, %v280_v43 }
  0xe0   :  { %v403_v46 = vpop.f32.mrf.mxu0  ;;  %v431_v47 = vpop.f32.mrf.mxu1 }
  0xe1   :  { %315 = vst.msk [vmem:[%s697_s3 + $0x20] sm:$0xff] %vm310_vm2, %v225_v44  ;;  %329 = vst.msk [vmem:[%s697_s3 + $0x90] sm:$0xff] %vm310_vm2, %v281_v45 }
  0xe2   :  { %v227_v48 = vpop.f32.mrf.mxu0  ;;  %v283_v49 = vpop.f32.mrf.mxu1 }
  0xe3   :  { %v228_v50 = vadd.f32 %v568_v17, %v227_v48  ;;  %v284_v51 = vadd.f32 %v568_v17, %v283_v49 }
  0xe4   :  { %v404_v52 = vpop.f32.mrf.mxu0  ;;  %v432_v53 = vpop.f32.mrf.mxu1 }
  0xe5   :  { %316 = vst.msk [vmem:[%s697_s3 + $0x28] sm:$0xff] %vm310_vm2, %v228_v50  ;;  %330 = vst.msk [vmem:[%s697_s3 + $0x98] sm:$0xff] %vm310_vm2, %v284_v51 }
  0xe6   :  { %v232_v54 = vpop.f32.mrf.mxu0  ;;  %v288_v55 = vpop.f32.mrf.mxu1 }
  0xe7   :  { %v233_v56 = vadd.f32 %v568_v17, %v232_v54  ;;  %v289_v57 = vadd.f32 %v568_v17, %v288_v55 }
  0xe8   :  { %v407_v58 = vpop.f32.mrf.mxu0  ;;  %v435_v59 = vpop.f32.mrf.mxu1 }
  0xe9   :  { %317 = vst.msk [vmem:[%s697_s3 + $0x30] sm:$0xff] %vm310_vm2, %v233_v56  ;;  %331 = vst.msk [vmem:[%s697_s3 + $0xa0] sm:$0xff] %vm310_vm2, %v289_v57 }
  0xea   :  { %v235_v60 = vpop.f32.mrf.mxu0  ;;  %v291_v61 = vpop.f32.mrf.mxu1 }
  0xeb   :  { %v236_v62 = vadd.f32 %v568_v17, %v235_v60  ;;  %v292_v63 = vadd.f32 %v568_v17, %v291_v61 }
  0xec   :  { %v408_v0 = vpop.f32.mrf.mxu0  ;;  %v436_v1 = vpop.f32.mrf.mxu1 }
  0xed   :  { %318 = vst.msk [vmem:[%s697_s3 + $0x38] sm:$0xff] %vm310_vm2, %v236_v62  ;;  %332 = vst.msk [vmem:[%s697_s3 + $0xa8] sm:$0xff] %vm310_vm2, %v292_v63 }
  0xee   :  { %v240_v2 = vpop.f32.mrf.mxu0  ;;  %v296_v3 = vpop.f32.mrf.mxu1 }
  0xef   :  { %v241_v4 = vadd.f32 %v568_v17, %v240_v2  ;;  %v297_v5 = vadd.f32 %v568_v17, %v296_v3 }
  0xf0   :  { %v411_v6 = vpop.f32.mrf.mxu0  ;;  %v439_v7 = vpop.f32.mrf.mxu1 }
  0xf1   :  { %319 = vst.msk [vmem:[%s697_s3 + $0x40] sm:$0xff] %vm310_vm2, %v241_v4  ;;  %333 = vst.msk [vmem:[%s697_s3 + $0xb0] sm:$0xff] %vm310_vm2, %v297_v5 }
  0xf2   :  { %v243_v8 = vpop.f32.mrf.mxu0  ;;  %v299_v9 = vpop.f32.mrf.mxu1 }
  0xf3   :  { %v244_v10 = vadd.f32 %v568_v17, %v243_v8  ;;  %v300_v11 = vadd.f32 %v568_v17, %v299_v9 }
  0xf4   :  { %v412_v12 = vpop.f32.mrf.mxu0  ;;  %v440_v13 = vpop.f32.mrf.mxu1 }
  0xf5   :  { %320 = vst.msk [vmem:[%s697_s3 + $0x48] sm:$0xff] %vm310_vm2, %v244_v10  ;;  %334 = vst.msk [vmem:[%s697_s3 + $0xb8] sm:$0xff] %vm310_vm2, %v300_v11 }
  0xf6   :  { %v248_v14 = vpop.f32.mrf.mxu0  ;;  %v304_v15 = vpop.f32.mrf.mxu1 }
  0xf7   :  { %v249_v16 = vadd.f32 %v568_v17, %v248_v14  ;;  %v305_v18 = vadd.f32 %v568_v17, %v304_v15 }
  0xf8   :  { %v415_v19 = vpop.f32.mrf.mxu0  ;;  %v443_v20 = vpop.f32.mrf.mxu1 }
  0xf9   :  { %321 = vst.msk [vmem:[%s697_s3 + $0x50] sm:$0xff] %vm310_vm2, %v249_v16 }
  0xfa   :  { %336 = vst.msk [vmem:[%s697_s3 + $0xc0] sm:$0xf] %vm335_vm3, %v305_v18  ;;  %v251_v21 = vpop.f32.mrf.mxu0  ;;  %v307_v22 = vpop.f32.mrf.mxu1 }
  0xfb   :  { %v252_v23 = vadd.f32 %v568_v17, %v251_v21 }
  0xfc   :  { %v416_v24 = vpop.f32.mrf.mxu0  ;;  %v444_v25 = vpop.f32.mrf.mxu1 }
  0xfd   :  { %322 = vst.msk [vmem:[%s697_s3 + $0x58] sm:$0xff] %vm310_vm2, %v252_v23 }
  0xfe   :  { %v256_v26 = vpop.f32.mrf.mxu0 }
  0xff   :  { %v257_v27 = vadd.f32 %v568_v17, %v256_v26 }
 0x100   :  { %v419_v28 = vpop.f32.mrf.mxu0 }
 0x101   :  { %323 = vst.msk [vmem:[%s697_s3 + $0x60] sm:$0xff] %vm310_vm2, %v257_v27 }
 0x102   :  { %v259_v29 = vpop.f32.mrf.mxu0 }
 0x103   :  { %v260_v30 = vadd.f32 %v568_v17, %v259_v29 }
 0x104   :  { %v420_v31 = vpop.f32.mrf.mxu0 }
 0x105   :  { %324 = vst.msk [vmem:[%s697_s3 + $0x68] sm:$0xff] %vm310_vm2, %v260_v30 }

// kernel: npi_forward.65
= control target key start
LH: loop header
LB: loop body
LE: loop exit
PB: predicated region body
PF: predicated region fallthrough
CT: control target
= control target key end

     0   :  { %v464_v0 = vmov 0.0   ;;  %vm465_vm0 = vmmov 0   ;;  %vm118_vm1 = vcmask 130048   ;;  %vm319_vm2 = vcmask 64512   ;;  %s683_s1 = inlined_call_operand.vmem [shape: bf16[16,8], index: 1, kind: input, shape index: {}]   ;;  %s684_s0 = inlined_call_operand.vmem [shape: bf16[1,196,16], index: 0, kind: input, shape index: {}]   ;;  %s685_s2 = inlined_call_operand.vmem [shape: f32[1,8], index: 2, kind: input, shape index: {}]   ;;  %s686_s3 = inlined_call_operand.vmem [shape: f32[1,196,8], index: 3, kind: output, shape index: {}]  }
   0x1   :  { %392 = vmatprep.subr.bf16.mxu0 %v464_v0  ;;  %v450_v1 = vld [vmem:[%s683_s1] sm:$0xff]   ;;  %394 = vmatprep.mubr.msk.bf16.mxu0 %vm465_vm0, %v464_v0  ;;  %v452_v3 = vld [vmem:[%s684_s0 + $0x38] sm:$0xff]   ;;  %v453_v4 = vld [vmem:[%s684_s0 + $0x8] sm:$0xff]   ;;  %vm344_vm3 = vcmask 60416  }
   0x2   :  { %v451_v2 = vld [vmem:[%s684_s0] sm:$0xff]   ;;  %446 = vmatprep.subr.bf16.mxu1 %v464_v0  ;;  %422 = vmatprep.mubr.msk.bf16.mxu1 %vm465_vm0, %v464_v0  ;;  %v455_v6 = vld [vmem:[%s684_s0 + $0x10] sm:$0xff]   ;;  %v456_v7 = vld [vmem:[%s684_s0 + $0x48] sm:$0xff]  }
   0x3   :  { %393 = vmatpush3.bf16.msra.mxu0 %v450_v1  ;;  %447 = vmatpush3.bf16.msra.mxu1 %v450_v1  ;;  %v454_v5 = vld [vmem:[%s684_s0 + $0x40] sm:$0xff]   ;;  %v457_v8 = vld [vmem:[%s684_s0 + $0x18] sm:$0xff]   ;;  %v458_v9 = vld [vmem:[%s684_s0 + $0x50] sm:$0xff]  }
   0x4   :  { %v459_v10 = vld [vmem:[%s684_s0 + $0x20] sm:$0xff]   ;;  %v460_v11 = vld [vmem:[%s684_s0 + $0x58] sm:$0xff]   ;;  %v461_v12 = vld [vmem:[%s684_s0 + $0x28] sm:$0xff]  }
   0x5   :  { %v462_v13 = vld [vmem:[%s684_s0 + $0x60] ss:$0 sps:$4 sm:$0x33]   ;;  %v463_v14 = vld [vmem:[%s684_s0 + $0x30] sm:$0xff]  }
   0x6   :  { %395 = vmatmul.mubr.msk.bf16.vlgmr.msra.gmra.mxu0 %vm118_vm1, %v451_v2  ;;  %423 = vmatmul.mubr.msk.bf16.vlgmr.msra.gmra.mxu1 %vm118_vm1, %v452_v3  ;;  %v557_v15 = vld [vmem:[%s685_s2] ss:$0 sm:$0xff] }
   0x7   :  { %398 = vmatprep.mubr.msk.bf16.mxu0 %vm465_vm0, %v464_v0  ;;  %426 = vmatprep.mubr.msk.bf16.mxu1 %vm465_vm0, %v464_v0 }
   0xe   :  { %399 = vmatmul.mubr.msk.bf16.gmra.mxu0 %vm118_vm1, %v453_v4  ;;  %427 = vmatmul.mubr.msk.bf16.gmra.mxu1 %vm118_vm1, %v454_v5 }
   0xf   :  { %402 = vmatprep.mubr.msk.bf16.mxu0 %vm465_vm0, %v464_v0  ;;  %430 = vmatprep.mubr.msk.bf16.mxu1 %vm465_vm0, %v464_v0 }
  0x16   :  { %403 = vmatmul.mubr.msk.bf16.gmra.mxu0 %vm118_vm1, %v455_v6  ;;  %431 = vmatmul.mubr.msk.bf16.gmra.mxu1 %vm118_vm1, %v456_v7 }
  0x17   :  { %406 = vmatprep.mubr.msk.bf16.mxu0 %vm465_vm0, %v464_v0  ;;  %434 = vmatprep.mubr.msk.bf16.mxu1 %vm465_vm0, %v464_v0 }
  0x1e   :  { %407 = vmatmul.mubr.msk.bf16.gmra.mxu0 %vm118_vm1, %v457_v8  ;;  %435 = vmatmul.mubr.msk.bf16.gmra.mxu1 %vm118_vm1, %v458_v9 }
  0x1f   :  { %410 = vmatprep.mubr.msk.bf16.mxu0 %vm465_vm0, %v464_v0  ;;  %438 = vmatprep.mubr.msk.bf16.mxu1 %vm465_vm0, %v464_v0 }
  0x26   :  { %411 = vmatmul.mubr.msk.bf16.gmra.mxu0 %vm118_vm1, %v459_v10  ;;  %439 = vmatmul.mubr.msk.bf16.gmra.mxu1 %vm118_vm1, %v460_v11 }
  0x27   :  { %414 = vmatprep.mubr.msk.bf16.mxu0 %vm465_vm0, %v464_v0  ;;  %442 = vmatprep.mubr.msk.bf16.mxu1 %vm465_vm0, %v464_v0 }
  0x2e   :  { %415 = vmatmul.mubr.msk.bf16.gmra.mxu0 %vm118_vm1, %v461_v12  ;;  %443 = vmatmul.mubr.msk.bf16.gmra.mxu1 %vm118_vm1, %v462_v13 }
  0x2f   :  { %418 = vmatprep.mubr.msk.bf16.mxu0 %vm465_vm0, %v464_v0 }
  0x36   :  { %419 = vmatmul.mubr.msk.bf16.gmra.mxu0 %vm118_vm1, %v463_v14 }
  0xc6   :  { %v192_v16 = vpop.f32.mrf.mxu0  ;;  %v248_v17 = vpop.f32.mrf.mxu1 }
  0xc7   :  { %v193_v18 = vadd.f32 %v557_v15, %v192_v16  ;;  %v249_v19 = vadd.f32 %v557_v15, %v248_v17 }
  0xc8   :  { %v396_v20 = vpop.f32.mrf.mxu0  ;;  %v424_v21 = vpop.f32.mrf.mxu1 }
  0xc9   :  { %v294_v22 = vmax.f32 %v193_v18, 0.0  ;;  %v308_v23 = vmax.f32 %v249_v19, 0.0 }
  0xca   :  { %v195_v24 = vpop.f32.mrf.mxu0  ;;  %v251_v25 = vpop.f32.mrf.mxu1 }
  0xcb   :  { %320 = vst.msk [vmem:[%s686_s3] sm:$0xff] %vm319_vm2, %v294_v22  ;;  %v196_v26 = vadd.f32 %v557_v15, %v195_v24  ;;  %334 = vst.msk [vmem:[%s686_s3 + $0x70] sm:$0xff] %vm319_vm2, %v308_v23  ;;  %v252_v27 = vadd.f32 %v557_v15, %v251_v25 }
  0xcc   :  { %v397_v28 = vpop.f32.mrf.mxu0  ;;  %v425_v29 = vpop.f32.mrf.mxu1 }
  0xcd   :  { %v295_v30 = vmax.f32 %v196_v26, 0.0  ;;  %v309_v31 = vmax.f32 %v252_v27, 0.0 }
  0xce   :  { %v200_v32 = vpop.f32.mrf.mxu0  ;;  %v256_v33 = vpop.f32.mrf.mxu1 }
  0xcf   :  { %321 = vst.msk [vmem:[%s686_s3 + $0x8] sm:$0xff] %vm319_vm2, %v295_v30  ;;  %v201_v34 = vadd.f32 %v557_v15, %v200_v32  ;;  %335 = vst.msk [vmem:[%s686_s3 + $0x78] sm:$0xff] %vm319_vm2, %v309_v31  ;;  %v257_v35 = vadd.f32 %v557_v15, %v256_v33 }
  0xd0   :  { %v400_v36 = vpop.f32.mrf.mxu0  ;;  %v428_v37 = vpop.f32.mrf.mxu1 }
  0xd1   :  { %v296_v38 = vmax.f32 %v201_v34, 0.0  ;;  %v310_v39 = vmax.f32 %v257_v35, 0.0 }
  0xd2   :  { %v203_v40 = vpop.f32.mrf.mxu0  ;;  %v259_v41 = vpop.f32.mrf.mxu1 }
  0xd3   :  { %322 = vst.msk [vmem:[%s686_s3 + $0x10] sm:$0xff] %vm319_vm2, %v296_v38  ;;  %v204_v42 = vadd.f32 %v557_v15, %v203_v40  ;;  %336 = vst.msk [vmem:[%s686_s3 + $0x80] sm:$0xff] %vm319_vm2, %v310_v39  ;;  %v260_v43 = vadd.f32 %v557_v15, %v259_v41 }
  0xd4   :  { %v401_v44 = vpop.f32.mrf.mxu0  ;;  %v429_v45 = vpop.f32.mrf.mxu1 }
  0xd5   :  { %v297_v46 = vmax.f32 %v204_v42, 0.0  ;;  %v311_v47 = vmax.f32 %v260_v43, 0.0 }
  0xd6   :  { %v208_v48 = vpop.f32.mrf.mxu0  ;;  %v264_v49 = vpop.f32.mrf.mxu1 }
  0xd7   :  { %323 = vst.msk [vmem:[%s686_s3 + $0x18] sm:$0xff] %vm319_vm2, %v297_v46  ;;  %v209_v50 = vadd.f32 %v557_v15, %v208_v48  ;;  %337 = vst.msk [vmem:[%s686_s3 + $0x88] sm:$0xff] %vm319_vm2, %v311_v47  ;;  %v265_v51 = vadd.f32 %v557_v15, %v264_v49 }
  0xd8   :  { %v404_v52 = vpop.f32.mrf.mxu0  ;;  %v432_v53 = vpop.f32.mrf.mxu1 }
  0xd9   :  { %v298_v54 = vmax.f32 %v209_v50, 0.0  ;;  %v312_v55 = vmax.f32 %v265_v51, 0.0 }
  0xda   :  { %v211_v56 = vpop.f32.mrf.mxu0  ;;  %v267_v57 = vpop.f32.mrf.mxu1 }
  0xdb   :  { %324 = vst.msk [vmem:[%s686_s3 + $0x20] sm:$0xff] %vm319_vm2, %v298_v54  ;;  %v212_v58 = vadd.f32 %v557_v15, %v211_v56  ;;  %338 = vst.msk [vmem:[%s686_s3 + $0x90] sm:$0xff] %vm319_vm2, %v312_v55  ;;  %v268_v59 = vadd.f32 %v557_v15, %v267_v57 }
  0xdc   :  { %v405_v60 = vpop.f32.mrf.mxu0  ;;  %v433_v61 = vpop.f32.mrf.mxu1 }
  0xdd   :  { %v299_v62 = vmax.f32 %v212_v58, 0.0  ;;  %v313_v63 = vmax.f32 %v268_v59, 0.0 }
  0xde   :  { %v216_v0 = vpop.f32.mrf.mxu0  ;;  %v272_v1 = vpop.f32.mrf.mxu1 }
  0xdf   :  { %325 = vst.msk [vmem:[%s686_s3 + $0x28] sm:$0xff] %vm319_vm2, %v299_v62  ;;  %v217_v2 = vadd.f32 %v557_v15, %v216_v0  ;;  %339 = vst.msk [vmem:[%s686_s3 + $0x98] sm:$0xff] %vm319_vm2, %v313_v63  ;;  %v273_v3 = vadd.f32 %v557_v15, %v272_v1 }
  0xe0   :  { %v408_v4 = vpop.f32.mrf.mxu0  ;;  %v436_v5 = vpop.f32.mrf.mxu1 }
  0xe1   :  { %v300_v6 = vmax.f32 %v217_v2, 0.0  ;;  %v314_v7 = vmax.f32 %v273_v3, 0.0 }
  0xe2   :  { %v219_v8 = vpop.f32.mrf.mxu0  ;;  %v275_v9 = vpop.f32.mrf.mxu1 }
  0xe3   :  { %326 = vst.msk [vmem:[%s686_s3 + $0x30] sm:$0xff] %vm319_vm2, %v300_v6  ;;  %v220_v10 = vadd.f32 %v557_v15, %v219_v8  ;;  %340 = vst.msk [vmem:[%s686_s3 + $0xa0] sm:$0xff] %vm319_vm2, %v314_v7  ;;  %v276_v11 = vadd.f32 %v557_v15, %v275_v9 }
  0xe4   :  { %v409_v12 = vpop.f32.mrf.mxu0  ;;  %v437_v13 = vpop.f32.mrf.mxu1 }
  0xe5   :  { %v301_v14 = vmax.f32 %v220_v10, 0.0  ;;  %v315_v16 = vmax.f32 %v276_v11, 0.0 }
  0xe6   :  { %v224_v17 = vpop.f32.mrf.mxu0  ;;  %v280_v18 = vpop.f32.mrf.mxu1 }
  0xe7   :  { %327 = vst.msk [vmem:[%s686_s3 + $0x38] sm:$0xff] %vm319_vm2, %v301_v14  ;;  %v225_v19 = vadd.f32 %v557_v15, %v224_v17  ;;  %341 = vst.msk [vmem:[%s686_s3 + $0xa8] sm:$0xff] %vm319_vm2, %v315_v16  ;;  %v281_v20 = vadd.f32 %v557_v15, %v280_v18 }
  0xe8   :  { %v412_v21 = vpop.f32.mrf.mxu0  ;;  %v440_v22 = vpop.f32.mrf.mxu1 }
  0xe9   :  { %v302_v23 = vmax.f32 %v225_v19, 0.0  ;;  %v316_v24 = vmax.f32 %v281_v20, 0.0 }
  0xea   :  { %v227_v25 = vpop.f32.mrf.mxu0  ;;  %v283_v26 = vpop.f32.mrf.mxu1 }
  0xeb   :  { %328 = vst.msk [vmem:[%s686_s3 + $0x40] sm:$0xff] %vm319_vm2, %v302_v23  ;;  %v228_v27 = vadd.f32 %v557_v15, %v227_v25  ;;  %342 = vst.msk [vmem:[%s686_s3 + $0xb0] sm:$0xff] %vm319_vm2, %v316_v24  ;;  %v284_v28 = vadd.f32 %v557_v15, %v283_v26 }
  0xec   :  { %v413_v29 = vpop.f32.mrf.mxu0  ;;  %v441_v30 = vpop.f32.mrf.mxu1 }
  0xed   :  { %v303_v31 = vmax.f32 %v228_v27, 0.0  ;;  %v317_v32 = vmax.f32 %v284_v28, 0.0 }
  0xee   :  { %v232_v33 = vpop.f32.mrf.mxu0  ;;  %v288_v34 = vpop.f32.mrf.mxu1 }
  0xef   :  { %329 = vst.msk [vmem:[%s686_s3 + $0x48] sm:$0xff] %vm319_vm2, %v303_v31  ;;  %v233_v35 = vadd.f32 %v557_v15, %v232_v33  ;;  %343 = vst.msk [vmem:[%s686_s3 + $0xb8] sm:$0xff] %vm319_vm2, %v317_v32  ;;  %v289_v36 = vadd.f32 %v557_v15, %v288_v34 }
  0xf0   :  { %v416_v37 = vpop.f32.mrf.mxu0  ;;  %v444_v38 = vpop.f32.mrf.mxu1 }
  0xf1   :  { %v304_v39 = vmax.f32 %v233_v35, 0.0  ;;  %v318_v40 = vmax.f32 %v289_v36, 0.0 }
  0xf2   :  { %v235_v41 = vpop.f32.mrf.mxu0  ;;  %v291_v42 = vpop.f32.mrf.mxu1 }
  0xf3   :  { %330 = vst.msk [vmem:[%s686_s3 + $0x50] sm:$0xff] %vm319_vm2, %v304_v39  ;;  %v236_v43 = vadd.f32 %v557_v15, %v235_v41 }
  0xf4   :  { %345 = vst.msk [vmem:[%s686_s3 + $0xc0] sm:$0xf] %vm344_vm3, %v318_v40  ;;  %v417_v44 = vpop.f32.mrf.mxu0  ;;  %v445_v45 = vpop.f32.mrf.mxu1 }
  0xf5   :  { %v305_v46 = vmax.f32 %v236_v43, 0.0 }
  0xf6   :  { %v240_v47 = vpop.f32.mrf.mxu0 }
  0xf7   :  { %331 = vst.msk [vmem:[%s686_s3 + $0x58] sm:$0xff] %vm319_vm2, %v305_v46  ;;  %v241_v48 = vadd.f32 %v557_v15, %v240_v47 }
  0xf8   :  { %v420_v49 = vpop.f32.mrf.mxu0 }
  0xf9   :  { %v306_v50 = vmax.f32 %v241_v48, 0.0 }
  0xfa   :  { %v243_v51 = vpop.f32.mrf.mxu0 }
  0xfb   :  { %332 = vst.msk [vmem:[%s686_s3 + $0x60] sm:$0xff] %vm319_vm2, %v306_v50  ;;  %v244_v52 = vadd.f32 %v557_v15, %v243_v51 }
  0xfc   :  { %v421_v53 = vpop.f32.mrf.mxu0 }
  0xfd   :  { %v307_v54 = vmax.f32 %v244_v52, 0.0 }
  0xff   :  { %333 = vst.msk [vmem:[%s686_s3 + $0x68] sm:$0xff] %vm319_vm2, %v307_v54 }

// kernel: npi_forward.67
= control target key start
LH: loop header
LB: loop body
LE: loop exit
PB: predicated region body
PF: predicated region fallthrough
CT: control target
= control target key end

     0   :  { %vm189_vm0 = vcmask 1043456   ;;  %v577_v0 = vmov 0.0   ;;  %vm578_vm1 = vmmov 0   ;;  %vm149_vm2 = vcmask 588800   ;;  %s911_s1 = inlined_call_operand.vmem [shape: bf16[72,8], index: 1, kind: input, shape index: {}]   ;;  %s912_s0 = inlined_call_operand.vmem [shape: bf16[1,196,72], index: 0, kind: input, shape index: {}]   ;;  %s913_s2 = inlined_call_operand.vmem [shape: f32[1,8], index: 2, kind: input, shape index: {}]   ;;  %s914_s3 = inlined_call_operand.vmem [shape: f32[1,196,8], index: 3, kind: input, shape index: {}]   ;;  %s915_s4 = inlined_call_operand.vmem [shape: f32[1,196,8], index: 4, kind: output, shape index: {}]  }
   0x1   :  { %485 = vmatprep.subr.bf16.mxu0 %v577_v0  ;;  %v559_v1 = vld [vmem:[%s911_s1 + $0x20] ss:$0 sps:$4 sm:$0xff]   ;;  %547 = vmatprep.subr.bf16.mxu1 %v577_v0  ;;  %v560_v3 = vld [vmem:[%s911_s1 + $0x18] sm:$0xff]   ;;  %v561_v4 = vld [vmem:[%s911_s1 + $0x10] sm:$0xff]   ;;  %vm404_vm3 = vcmask 64512   ;;  %vm429_vm4 = vcmask 60416  }
   0x2   :  { %495 = vmatprep.mubr.msk.bf16.mxu0 %vm578_vm1, %v577_v0  ;;  %523 = vmatprep.mubr.msk.bf16.mxu1 %vm578_vm1, %v577_v0  ;;  %v191_v2 = vsel %vm189_vm0, %v559_v1, 0  ;;  %v562_v5 = vld [vmem:[%s911_s1 + $0x8] sm:$0xff]   ;;  %v563_v6 = vld [vmem:[%s911_s1] sm:$0xff]   ;;  %v565_v8 = vld [vmem:[%s912_s0 + $0x38] sm:$0xff]  }
   0x3   :  { %486 = vmatpush3.bf16.msra.mxu0 %v191_v2  ;;  %552 = vmatpush3.bf16.msra.mxu1 %v191_v2  ;;  %v564_v7 = vld [vmem:[%s912_s0] sm:$0xff]   ;;  %v566_v9 = vld [vmem:[%s912_s0 + $0x8] sm:$0xff]   ;;  %v568_v11 = vld [vmem:[%s912_s0 + $0x10] sm:$0xff]  }
   0x4   :  { %487 = vmatprep.subr.bf16.mxu0 %v577_v0  ;;  %548 = vmatprep.subr.bf16.mxu1 %v577_v0  ;;  %v567_v10 = vld [vmem:[%s912_s0 + $0x40] sm:$0xff]   ;;  %v569_v12 = vld [vmem:[%s912_s0 + $0x48] sm:$0xff]   ;;  %v570_v13 = vld [vmem:[%s912_s0 + $0x18] sm:$0xff]  }
   0x5   :  { %v571_v14 = vld [vmem:[%s912_s0 + $0x50] sm:$0xff]   ;;  %v572_v15 = vld [vmem:[%s912_s0 + $0x20] sm:$0xff]   ;;  %v573_v16 = vld [vmem:[%s912_s0 + $0x58] sm:$0xff]  }
   0x6   :  { %v574_v17 = vld [vmem:[%s912_s0 + $0x28] sm:$0xff]   ;;  %v575_v18 = vld [vmem:[%s912_s0 + $0x60] ss:$0 sps:$4 sm:$0x33]   ;;  %v576_v19 = vld [vmem:[%s912_s0 + $0x30] sm:$0xff]  }
   0x7   :  { %488 = vmatpush3.bf16.msra.mxu0 %v560_v3  ;;  %553 = vmatpush3.bf16.msra.mxu1 %v560_v3  ;;  %v710_v20 = vld [vmem:[%s913_s2] ss:$0 sm:$0xff]  ;;  %v343_v24 = vld [vmem:[%s914_s3 + $0x70] sm:$0xff]  ;;  %v330_v32 = vld [vmem:[%s914_s3 + $0x8] sm:$0xff] }
   0x8   :  { %489 = vmatprep.subr.bf16.mxu0 %v577_v0  ;;  %549 = vmatprep.subr.bf16.mxu1 %v577_v0  ;;  %v329_v22 = vld [vmem:[%s914_s3] sm:$0xff]  ;;  %v344_v34 = vld [vmem:[%s914_s3 + $0x78] sm:$0xff]  ;;  %v331_v44 = vld [vmem:[%s914_s3 + $0x10] sm:$0xff] }
   0x9   :  { %v345_v46 = vld [vmem:[%s914_s3 + $0x80] sm:$0xff]  ;;  %v332_v56 = vld [vmem:[%s914_s3 + $0x18] sm:$0xff]  ;;  %v346_v58 = vld [vmem:[%s914_s3 + $0x88] sm:$0xff] }
   0xb   :  { %490 = vmatpush3.bf16.msra.mxu0 %v561_v4  ;;  %554 = vmatpush3.bf16.msra.mxu1 %v561_v4  ;;  %v333_v4 = vld [vmem:[%s914_s3 + $0x20] sm:$0xff] }
   0xc   :  { %491 = vmatprep.subr.bf16.mxu0 %v577_v0  ;;  %550 = vmatprep.subr.bf16.mxu1 %v577_v0 }
   0xf   :  { %492 = vmatpush3.bf16.msra.mxu0 %v562_v5  ;;  %555 = vmatpush3.bf16.msra.mxu1 %v562_v5 }
  0x10   :  { %493 = vmatprep.subr.bf16.mxu0 %v577_v0  ;;  %551 = vmatprep.subr.bf16.mxu1 %v577_v0 }
  0x13   :  { %494 = vmatpush3.bf16.msra.mxu0 %v563_v6  ;;  %556 = vmatpush3.bf16.msra.mxu1 %v563_v6  ;;  %v347_v6 = vld [vmem:[%s914_s3 + $0x90] sm:$0xff] }
  0x16   :  { %496 = vmatmul.mubr.msk.bf16.vlgmr.msra.gmra.mxu0 %vm149_vm2, %v564_v7  ;;  %524 = vmatmul.mubr.msk.bf16.vlgmr.msra.gmra.mxu1 %vm149_vm2, %v565_v8 }
  0x17   :  { %499 = vmatprep.mubr.msk.bf16.mxu0 %vm578_vm1, %v577_v0  ;;  %527 = vmatprep.mubr.msk.bf16.mxu1 %vm578_vm1, %v577_v0 }
  0x1e   :  { %500 = vmatmul.mubr.msk.bf16.gmra.mxu0 %vm149_vm2, %v566_v9  ;;  %528 = vmatmul.mubr.msk.bf16.gmra.mxu1 %vm149_vm2, %v567_v10 }
  0x1f   :  { %503 = vmatprep.mubr.msk.bf16.mxu0 %vm578_vm1, %v577_v0  ;;  %531 = vmatprep.mubr.msk.bf16.mxu1 %vm578_vm1, %v577_v0 }
  0x26   :  { %504 = vmatmul.mubr.msk.bf16.gmra.mxu0 %vm149_vm2, %v568_v11  ;;  %532 = vmatmul.mubr.msk.bf16.gmra.mxu1 %vm149_vm2, %v569_v12 }
  0x27   :  { %507 = vmatprep.mubr.msk.bf16.mxu0 %vm578_vm1, %v577_v0  ;;  %535 = vmatprep.mubr.msk.bf16.mxu1 %vm578_vm1, %v577_v0 }
  0x2e   :  { %508 = vmatmul.mubr.msk.bf16.gmra.mxu0 %vm149_vm2, %v570_v13  ;;  %536 = vmatmul.mubr.msk.bf16.gmra.mxu1 %vm149_vm2, %v571_v14 }
  0x2f   :  { %511 = vmatprep.mubr.msk.bf16.mxu0 %vm578_vm1, %v577_v0  ;;  %539 = vmatprep.mubr.msk.bf16.mxu1 %vm578_vm1, %v577_v0 }
  0x36   :  { %512 = vmatmul.mubr.msk.bf16.gmra.mxu0 %vm149_vm2, %v572_v15  ;;  %540 = vmatmul.mubr.msk.bf16.gmra.mxu1 %vm149_vm2, %v573_v16  ;;  %v334_v16 = vld [vmem:[%s914_s3 + $0x28] sm:$0xff] }
  0x37   :  { %515 = vmatprep.mubr.msk.bf16.mxu0 %vm578_vm1, %v577_v0  ;;  %543 = vmatprep.mubr.msk.bf16.mxu1 %vm578_vm1, %v577_v0 }
  0x3e   :  { %516 = vmatmul.mubr.msk.bf16.gmra.mxu0 %vm149_vm2, %v574_v17  ;;  %544 = vmatmul.mubr.msk.bf16.gmra.mxu1 %vm149_vm2, %v575_v18  ;;  %v348_v18 = vld [vmem:[%s914_s3 + $0x98] sm:$0xff] }
  0x3f   :  { %519 = vmatprep.mubr.msk.bf16.mxu0 %vm578_vm1, %v577_v0 }
  0x46   :  { %520 = vmatmul.mubr.msk.bf16.gmra.mxu0 %vm149_vm2, %v576_v19 }
  0xd6   :  { %v227_v21 = vpop.f32.mrf.mxu0  ;;  %v283_v23 = vpop.f32.mrf.mxu1 }
  0xd7   :  { %v228_v25 = vadd.f32 %v710_v20, %v227_v21  ;;  %v284_v26 = vadd.f32 %v710_v20, %v283_v23 }
  0xd8   :  { %v497_v27 = vpop.f32.mrf.mxu0  ;;  %v525_v28 = vpop.f32.mrf.mxu1 }
  0xd9   :  { %v354_v29 = vadd.f32 %v329_v22, %v228_v25  ;;  %v368_v30 = vadd.f32 %v343_v24, %v284_v26 }
  0xda   :  { %v230_v31 = vpop.f32.mrf.mxu0  ;;  %v286_v33 = vpop.f32.mrf.mxu1 }
  0xdb   :  { %v379_v35 = vmax.f32 %v354_v29, 0.0  ;;  %v231_v36 = vadd.f32 %v710_v20, %v230_v31  ;;  %v393_v37 = vmax.f32 %v368_v30, 0.0  ;;  %v287_v38 = vadd.f32 %v710_v20, %v286_v33  ;;  %v335_v29 = vld [vmem:[%s914_s3 + $0x30] sm:$0xff]  ;;  %v349_v31 = vld [vmem:[%s914_s3 + $0xa0] sm:$0xff] }
  0xdc   :  { %v498_v39 = vpop.f32.mrf.mxu0  ;;  %v526_v40 = vpop.f32.mrf.mxu1 }
  0xdd   :  { %405 = vst.msk [vmem:[%s915_s4] sm:$0xff] %vm404_vm3, %v379_v35  ;;  %v355_v41 = vadd.f32 %v330_v32, %v231_v36  ;;  %419 = vst.msk [vmem:[%s915_s4 + $0x70] sm:$0xff] %vm404_vm3, %v393_v37  ;;  %v369_v42 = vadd.f32 %v344_v34, %v287_v38 }
  0xde   :  { %v235_v43 = vpop.f32.mrf.mxu0  ;;  %v291_v45 = vpop.f32.mrf.mxu1 }
  0xdf   :  { %v380_v47 = vmax.f32 %v355_v41, 0.0  ;;  %v236_v48 = vadd.f32 %v710_v20, %v235_v43  ;;  %v394_v49 = vmax.f32 %v369_v42, 0.0  ;;  %v292_v50 = vadd.f32 %v710_v20, %v291_v45  ;;  %v336_v41 = vld [vmem:[%s914_s3 + $0x38] sm:$0xff]  ;;  %v350_v43 = vld [vmem:[%s914_s3 + $0xa8] sm:$0xff] }
  0xe0   :  { %v501_v51 = vpop.f32.mrf.mxu0  ;;  %v529_v52 = vpop.f32.mrf.mxu1 }
  0xe1   :  { %406 = vst.msk [vmem:[%s915_s4 + $0x8] sm:$0xff] %vm404_vm3, %v380_v47  ;;  %v356_v53 = vadd.f32 %v331_v44, %v236_v48  ;;  %420 = vst.msk [vmem:[%s915_s4 + $0x78] sm:$0xff] %vm404_vm3, %v394_v49  ;;  %v370_v54 = vadd.f32 %v345_v46, %v292_v50 }
  0xe2   :  { %v238_v55 = vpop.f32.mrf.mxu0  ;;  %v294_v57 = vpop.f32.mrf.mxu1 }
  0xe3   :  { %v381_v59 = vmax.f32 %v356_v53, 0.0  ;;  %v239_v60 = vadd.f32 %v710_v20, %v238_v55  ;;  %v395_v61 = vmax.f32 %v370_v54, 0.0  ;;  %v295_v62 = vadd.f32 %v710_v20, %v294_v57  ;;  %v337_v53 = vld [vmem:[%s914_s3 + $0x40] sm:$0xff]  ;;  %v351_v55 = vld [vmem:[%s914_s3 + $0xb0] sm:$0xff] }
  0xe4   :  { %v502_v63 = vpop.f32.mrf.mxu0  ;;  %v530_v0 = vpop.f32.mrf.mxu1 }
  0xe5   :  { %407 = vst.msk [vmem:[%s915_s4 + $0x10] sm:$0xff] %vm404_vm3, %v381_v59  ;;  %v357_v1 = vadd.f32 %v332_v56, %v239_v60  ;;  %421 = vst.msk [vmem:[%s915_s4 + $0x80] sm:$0xff] %vm404_vm3, %v395_v61  ;;  %v371_v2 = vadd.f32 %v346_v58, %v295_v62 }
  0xe6   :  { %v243_v3 = vpop.f32.mrf.mxu0  ;;  %v299_v5 = vpop.f32.mrf.mxu1 }
  0xe7   :  { %v382_v7 = vmax.f32 %v357_v1, 0.0  ;;  %v244_v8 = vadd.f32 %v710_v20, %v243_v3  ;;  %v396_v9 = vmax.f32 %v371_v2, 0.0  ;;  %v300_v10 = vadd.f32 %v710_v20, %v299_v5  ;;  %v338_v1 = vld [vmem:[%s914_s3 + $0x48] sm:$0xff]  ;;  %v352_v3 = vld [vmem:[%s914_s3 + $0xb8] sm:$0xff] }
  0xe8   :  { %v505_v11 = vpop.f32.mrf.mxu0  ;;  %v533_v12 = vpop.f32.mrf.mxu1 }
  0xe9   :  { %408 = vst.msk [vmem:[%s915_s4 + $0x18] sm:$0xff] %vm404_vm3, %v382_v7  ;;  %v358_v13 = vadd.f32 %v333_v4, %v244_v8  ;;  %422 = vst.msk [vmem:[%s915_s4 + $0x88] sm:$0xff] %vm404_vm3, %v396_v9  ;;  %v372_v14 = vadd.f32 %v347_v6, %v300_v10 }
  0xea   :  { %v246_v15 = vpop.f32.mrf.mxu0  ;;  %v302_v17 = vpop.f32.mrf.mxu1 }
  0xeb   :  { %v383_v19 = vmax.f32 %v358_v13, 0.0  ;;  %v247_v21 = vadd.f32 %v710_v20, %v246_v15  ;;  %v397_v22 = vmax.f32 %v372_v14, 0.0  ;;  %v303_v23 = vadd.f32 %v710_v20, %v302_v17  ;;  %v339_v13 = vld [vmem:[%s914_s3 + $0x50] sm:$0xff]  ;;  %v353_v15 = vld [vmem:[%s914_s3 + $0xc0] sm:$0xf] }
  0xec   :  { %v506_v24 = vpop.f32.mrf.mxu0  ;;  %v534_v25 = vpop.f32.mrf.mxu1 }
  0xed   :  { %409 = vst.msk [vmem:[%s915_s4 + $0x20] sm:$0xff] %vm404_vm3, %v383_v19  ;;  %v359_v26 = vadd.f32 %v334_v16, %v247_v21  ;;  %423 = vst.msk [vmem:[%s915_s4 + $0x90] sm:$0xff] %vm404_vm3, %v397_v22  ;;  %v373_v27 = vadd.f32 %v348_v18, %v303_v23 }
  0xee   :  { %v251_v28 = vpop.f32.mrf.mxu0  ;;  %v307_v30 = vpop.f32.mrf.mxu1 }
  0xef   :  { %v384_v32 = vmax.f32 %v359_v26, 0.0  ;;  %v252_v33 = vadd.f32 %v710_v20, %v251_v28  ;;  %v398_v34 = vmax.f32 %v373_v27, 0.0  ;;  %v308_v35 = vadd.f32 %v710_v20, %v307_v30  ;;  %v340_v26 = vld [vmem:[%s914_s3 + $0x58] sm:$0xff] }
  0xf0   :  { %v509_v36 = vpop.f32.mrf.mxu0  ;;  %v537_v37 = vpop.f32.mrf.mxu1 }
  0xf1   :  { %410 = vst.msk [vmem:[%s915_s4 + $0x28] sm:$0xff] %vm404_vm3, %v384_v32  ;;  %v360_v38 = vadd.f32 %v335_v29, %v252_v33  ;;  %424 = vst.msk [vmem:[%s915_s4 + $0x98] sm:$0xff] %vm404_vm3, %v398_v34  ;;  %v374_v39 = vadd.f32 %v349_v31, %v308_v35  ;;  %v341_v35 = vld [vmem:[%s914_s3 + $0x60] sm:$0xff] }
  0xf2   :  { %v254_v40 = vpop.f32.mrf.mxu0  ;;  %v310_v42 = vpop.f32.mrf.mxu1 }
  0xf3   :  { %v385_v44 = vmax.f32 %v360_v38, 0.0  ;;  %v255_v45 = vadd.f32 %v710_v20, %v254_v40  ;;  %v399_v46 = vmax.f32 %v374_v39, 0.0  ;;  %v311_v47 = vadd.f32 %v710_v20, %v310_v42 }
  0xf4   :  { %v510_v48 = vpop.f32.mrf.mxu0  ;;  %v538_v49 = vpop.f32.mrf.mxu1 }
  0xf5   :  { %411 = vst.msk [vmem:[%s915_s4 + $0x30] sm:$0xff] %vm404_vm3, %v385_v44  ;;  %v361_v50 = vadd.f32 %v336_v41, %v255_v45  ;;  %425 = vst.msk [vmem:[%s915_s4 + $0xa0] sm:$0xff] %vm404_vm3, %v399_v46  ;;  %v375_v51 = vadd.f32 %v350_v43, %v311_v47  ;;  %v342_v41 = vld [vmem:[%s914_s3 + $0x68] sm:$0xff] }
  0xf6   :  { %v259_v52 = vpop.f32.mrf.mxu0  ;;  %v315_v54 = vpop.f32.mrf.mxu1 }
  0xf7   :  { %v386_v56 = vmax.f32 %v361_v50, 0.0  ;;  %v260_v57 = vadd.f32 %v710_v20, %v259_v52  ;;  %v400_v58 = vmax.f32 %v375_v51, 0.0  ;;  %v316_v59 = vadd.f32 %v710_v20, %v315_v54 }
  0xf8   :  { %v513_v60 = vpop.f32.mrf.mxu0  ;;  %v541_v61 = vpop.f32.mrf.mxu1 }
  0xf9   :  { %412 = vst.msk [vmem:[%s915_s4 + $0x38] sm:$0xff] %vm404_vm3, %v386_v56  ;;  %v362_v62 = vadd.f32 %v337_v53, %v260_v57  ;;  %426 = vst.msk [vmem:[%s915_s4 + $0xa8] sm:$0xff] %vm404_vm3, %v400_v58  ;;  %v376_v63 = vadd.f32 %v351_v55, %v316_v59 }
  0xfa   :  { %v262_v0 = vpop.f32.mrf.mxu0  ;;  %v318_v2 = vpop.f32.mrf.mxu1 }
  0xfb   :  { %v387_v4 = vmax.f32 %v362_v62, 0.0  ;;  %v263_v5 = vadd.f32 %v710_v20, %v262_v0  ;;  %v401_v6 = vmax.f32 %v376_v63, 0.0  ;;  %v319_v7 = vadd.f32 %v710_v20, %v318_v2 }
  0xfc   :  { %v514_v8 = vpop.f32.mrf.mxu0  ;;  %v542_v9 = vpop.f32.mrf.mxu1 }
  0xfd   :  { %413 = vst.msk [vmem:[%s915_s4 + $0x40] sm:$0xff] %vm404_vm3, %v387_v4  ;;  %v363_v10 = vadd.f32 %v338_v1, %v263_v5  ;;  %427 = vst.msk [vmem:[%s915_s4 + $0xb0] sm:$0xff] %vm404_vm3, %v401_v6  ;;  %v377_v11 = vadd.f32 %v352_v3, %v319_v7 }
  0xfe   :  { %v267_v12 = vpop.f32.mrf.mxu0  ;;  %v323_v14 = vpop.f32.mrf.mxu1 }
  0xff   :  { %v388_v16 = vmax.f32 %v363_v10, 0.0  ;;  %v268_v17 = vadd.f32 %v710_v20, %v267_v12  ;;  %v402_v18 = vmax.f32 %v377_v11, 0.0  ;;  %v324_v19 = vadd.f32 %v710_v20, %v323_v14 }
 0x100   :  { %v517_v21 = vpop.f32.mrf.mxu0  ;;  %v545_v22 = vpop.f32.mrf.mxu1 }
 0x101   :  { %414 = vst.msk [vmem:[%s915_s4 + $0x48] sm:$0xff] %vm404_vm3, %v388_v16  ;;  %v364_v23 = vadd.f32 %v339_v13, %v268_v17  ;;  %428 = vst.msk [vmem:[%s915_s4 + $0xb8] sm:$0xff] %vm404_vm3, %v402_v18  ;;  %v378_v24 = vadd.f32 %v353_v15, %v324_v19 }
 0x102   :  { %v270_v25 = vpop.f32.mrf.mxu0  ;;  %v326_v27 = vpop.f32.mrf.mxu1 }
 0x103   :  { %v389_v28 = vmax.f32 %v364_v23, 0.0  ;;  %v271_v29 = vadd.f32 %v710_v20, %v270_v25  ;;  %v403_v30 = vmax.f32 %v378_v24, 0.0 }
 0x104   :  { %v518_v31 = vpop.f32.mrf.mxu0  ;;  %v546_v32 = vpop.f32.mrf.mxu1 }
 0x105   :  { %415 = vst.msk [vmem:[%s915_s4 + $0x50] sm:$0xff] %vm404_vm3, %v389_v28  ;;  %v365_v33 = vadd.f32 %v340_v26, %v271_v29 }
 0x106   :  { %430 = vst.msk [vmem:[%s915_s4 + $0xc0] sm:$0xf] %vm429_vm4, %v403_v30  ;;  %v275_v34 = vpop.f32.mrf.mxu0 }
 0x107   :  { %v390_v36 = vmax.f32 %v365_v33, 0.0  ;;  %v276_v37 = vadd.f32 %v710_v20, %v275_v34 }
 0x108   :  { %v521_v38 = vpop.f32.mrf.mxu0 }
 0x109   :  { %416 = vst.msk [vmem:[%s915_s4 + $0x58] sm:$0xff] %vm404_vm3, %v390_v36  ;;  %v366_v39 = vadd.f32 %v341_v35, %v276_v37 }
 0x10a   :  { %v278_v40 = vpop.f32.mrf.mxu0 }
 0x10b   :  { %v391_v42 = vmax.f32 %v366_v39, 0.0  ;;  %v279_v43 = vadd.f32 %v710_v20, %v278_v40 }
 0x10c   :  { %v522_v44 = vpop.f32.mrf.mxu0 }
 0x10d   :  { %417 = vst.msk [vmem:[%s915_s4 + $0x60] sm:$0xff] %vm404_vm3, %v391_v42  ;;  %v367_v45 = vadd.f32 %v342_v41, %v279_v43 }
 0x10f   :  { %v392_v46 = vmax.f32 %v367_v45, 0.0 }
 0x111   :  { %418 = vst.msk [vmem:[%s915_s4 + $0x68] sm:$0xff] %vm404_vm3, %v392_v46 }

// kernel: npi_forward.66
= control target key start
LH: loop header
LB: loop body
LE: loop exit
PB: predicated region body
PF: predicated region fallthrough
CT: control target
= control target key end

     0   :  { %vm186_vm0 = vcmask 1043456   ;;  %v524_v0 = vmov 0.0   ;;  %vm525_vm1 = vmmov 0   ;;  %vm146_vm2 = vcmask 588800   ;;  %s778_s1 = inlined_call_operand.vmem [shape: bf16[72,8], index: 1, kind: input, shape index: {}]   ;;  %s779_s0 = inlined_call_operand.vmem [shape: bf16[1,196,72], index: 0, kind: input, shape index: {}]   ;;  %s780_s2 = inlined_call_operand.vmem [shape: f32[1,8], index: 2, kind: input, shape index: {}]   ;;  %s781_s3 = inlined_call_operand.vmem [shape: f32[1,196,8], index: 3, kind: output, shape index: {}]  }
   0x1   :  { %432 = vmatprep.subr.bf16.mxu0 %v524_v0  ;;  %v506_v1 = vld [vmem:[%s778_s1 + $0x20] ss:$0 sps:$4 sm:$0xff]   ;;  %494 = vmatprep.subr.bf16.mxu1 %v524_v0  ;;  %v507_v3 = vld [vmem:[%s778_s1 + $0x18] sm:$0xff]   ;;  %v508_v4 = vld [vmem:[%s778_s1 + $0x10] sm:$0xff]   ;;  %vm351_vm3 = vcmask 64512   ;;  %vm376_vm4 = vcmask 60416  }
   0x2   :  { %442 = vmatprep.mubr.msk.bf16.mxu0 %vm525_vm1, %v524_v0  ;;  %470 = vmatprep.mubr.msk.bf16.mxu1 %vm525_vm1, %v524_v0  ;;  %v188_v2 = vsel %vm186_vm0, %v506_v1, 0  ;;  %v509_v5 = vld [vmem:[%s778_s1 + $0x8] sm:$0xff]   ;;  %v510_v6 = vld [vmem:[%s778_s1] sm:$0xff]   ;;  %v512_v8 = vld [vmem:[%s779_s0 + $0x38] sm:$0xff]  }
   0x3   :  { %433 = vmatpush3.bf16.msra.mxu0 %v188_v2  ;;  %499 = vmatpush3.bf16.msra.mxu1 %v188_v2  ;;  %v511_v7 = vld [vmem:[%s779_s0] sm:$0xff]   ;;  %v513_v9 = vld [vmem:[%s779_s0 + $0x8] sm:$0xff]   ;;  %v515_v11 = vld [vmem:[%s779_s0 + $0x10] sm:$0xff]  }
   0x4   :  { %434 = vmatprep.subr.bf16.mxu0 %v524_v0  ;;  %495 = vmatprep.subr.bf16.mxu1 %v524_v0  ;;  %v514_v10 = vld [vmem:[%s779_s0 + $0x40] sm:$0xff]   ;;  %v516_v12 = vld [vmem:[%s779_s0 + $0x48] sm:$0xff]   ;;  %v517_v13 = vld [vmem:[%s779_s0 + $0x18] sm:$0xff]  }
   0x5   :  { %v518_v14 = vld [vmem:[%s779_s0 + $0x50] sm:$0xff]   ;;  %v519_v15 = vld [vmem:[%s779_s0 + $0x20] sm:$0xff]   ;;  %v520_v16 = vld [vmem:[%s779_s0 + $0x58] sm:$0xff]  }
   0x6   :  { %v521_v17 = vld [vmem:[%s779_s0 + $0x28] sm:$0xff]   ;;  %v522_v18 = vld [vmem:[%s779_s0 + $0x60] ss:$0 sps:$4 sm:$0x33]   ;;  %v523_v19 = vld [vmem:[%s779_s0 + $0x30] sm:$0xff]  }
   0x7   :  { %435 = vmatpush3.bf16.msra.mxu0 %v507_v3  ;;  %500 = vmatpush3.bf16.msra.mxu1 %v507_v3  ;;  %v652_v20 = vld [vmem:[%s780_s2] ss:$0 sm:$0xff] }
   0x8   :  { %436 = vmatprep.subr.bf16.mxu0 %v524_v0  ;;  %496 = vmatprep.subr.bf16.mxu1 %v524_v0 }
   0xb   :  { %437 = vmatpush3.bf16.msra.mxu0 %v508_v4  ;;  %501 = vmatpush3.bf16.msra.mxu1 %v508_v4 }
   0xc   :  { %438 = vmatprep.subr.bf16.mxu0 %v524_v0  ;;  %497 = vmatprep.subr.bf16.mxu1 %v524_v0 }
   0xf   :  { %439 = vmatpush3.bf16.msra.mxu0 %v509_v5  ;;  %502 = vmatpush3.bf16.msra.mxu1 %v509_v5 }
  0x10   :  { %440 = vmatprep.subr.bf16.mxu0 %v524_v0  ;;  %498 = vmatprep.subr.bf16.mxu1 %v524_v0 }
  0x13   :  { %441 = vmatpush3.bf16.msra.mxu0 %v510_v6  ;;  %503 = vmatpush3.bf16.msra.mxu1 %v510_v6 }
  0x16   :  { %443 = vmatmul.mubr.msk.bf16.vlgmr.msra.gmra.mxu0 %vm146_vm2, %v511_v7  ;;  %471 = vmatmul.mubr.msk.bf16.vlgmr.msra.gmra.mxu1 %vm146_vm2, %v512_v8 }
  0x17   :  { %446 = vmatprep.mubr.msk.bf16.mxu0 %vm525_vm1, %v524_v0  ;;  %474 = vmatprep.mubr.msk.bf16.mxu1 %vm525_vm1, %v524_v0 }
  0x1e   :  { %447 = vmatmul.mubr.msk.bf16.gmra.mxu0 %vm146_vm2, %v513_v9  ;;  %475 = vmatmul.mubr.msk.bf16.gmra.mxu1 %vm146_vm2, %v514_v10 }
  0x1f   :  { %450 = vmatprep.mubr.msk.bf16.mxu0 %vm525_vm1, %v524_v0  ;;  %478 = vmatprep.mubr.msk.bf16.mxu1 %vm525_vm1, %v524_v0 }
  0x26   :  { %451 = vmatmul.mubr.msk.bf16.gmra.mxu0 %vm146_vm2, %v515_v11  ;;  %479 = vmatmul.mubr.msk.bf16.gmra.mxu1 %vm146_vm2, %v516_v12 }
  0x27   :  { %454 = vmatprep.mubr.msk.bf16.mxu0 %vm525_vm1, %v524_v0  ;;  %482 = vmatprep.mubr.msk.bf16.mxu1 %vm525_vm1, %v524_v0 }
  0x2e   :  { %455 = vmatmul.mubr.msk.bf16.gmra.mxu0 %vm146_vm2, %v517_v13  ;;  %483 = vmatmul.mubr.msk.bf16.gmra.mxu1 %vm146_vm2, %v518_v14 }
  0x2f   :  { %458 = vmatprep.mubr.msk.bf16.mxu0 %vm525_vm1, %v524_v0  ;;  %486 = vmatprep.mubr.msk.bf16.mxu1 %vm525_vm1, %v524_v0 }
  0x36   :  { %459 = vmatmul.mubr.msk.bf16.gmra.mxu0 %vm146_vm2, %v519_v15  ;;  %487 = vmatmul.mubr.msk.bf16.gmra.mxu1 %vm146_vm2, %v520_v16 }
  0x37   :  { %462 = vmatprep.mubr.msk.bf16.mxu0 %vm525_vm1, %v524_v0  ;;  %490 = vmatprep.mubr.msk.bf16.mxu1 %vm525_vm1, %v524_v0 }
  0x3e   :  { %463 = vmatmul.mubr.msk.bf16.gmra.mxu0 %vm146_vm2, %v521_v17  ;;  %491 = vmatmul.mubr.msk.bf16.gmra.mxu1 %vm146_vm2, %v522_v18 }
  0x3f   :  { %466 = vmatprep.mubr.msk.bf16.mxu0 %vm525_vm1, %v524_v0 }
  0x46   :  { %467 = vmatmul.mubr.msk.bf16.gmra.mxu0 %vm146_vm2, %v523_v19 }
  0xd6   :  { %v224_v21 = vpop.f32.mrf.mxu0  ;;  %v280_v22 = vpop.f32.mrf.mxu1 }
  0xd7   :  { %v225_v23 = vadd.f32 %v652_v20, %v224_v21  ;;  %v281_v24 = vadd.f32 %v652_v20, %v280_v22 }
  0xd8   :  { %v444_v25 = vpop.f32.mrf.mxu0  ;;  %v472_v26 = vpop.f32.mrf.mxu1 }
  0xd9   :  { %v326_v27 = vmax.f32 %v225_v23, 0.0  ;;  %v340_v28 = vmax.f32 %v281_v24, 0.0 }
  0xda   :  { %v227_v29 = vpop.f32.mrf.mxu0  ;;  %v283_v30 = vpop.f32.mrf.mxu1 }
  0xdb   :  { %352 = vst.msk [vmem:[%s781_s3] sm:$0xff] %vm351_vm3, %v326_v27  ;;  %v228_v31 = vadd.f32 %v652_v20, %v227_v29  ;;  %366 = vst.msk [vmem:[%s781_s3 + $0x70] sm:$0xff] %vm351_vm3, %v340_v28  ;;  %v284_v32 = vadd.f32 %v652_v20, %v283_v30 }
  0xdc   :  { %v445_v33 = vpop.f32.mrf.mxu0  ;;  %v473_v34 = vpop.f32.mrf.mxu1 }
  0xdd   :  { %v327_v35 = vmax.f32 %v228_v31, 0.0  ;;  %v341_v36 = vmax.f32 %v284_v32, 0.0 }
  0xde   :  { %v232_v37 = vpop.f32.mrf.mxu0  ;;  %v288_v38 = vpop.f32.mrf.mxu1 }
  0xdf   :  { %353 = vst.msk [vmem:[%s781_s3 + $0x8] sm:$0xff] %vm351_vm3, %v327_v35  ;;  %v233_v39 = vadd.f32 %v652_v20, %v232_v37  ;;  %367 = vst.msk [vmem:[%s781_s3 + $0x78] sm:$0xff] %vm351_vm3, %v341_v36  ;;  %v289_v40 = vadd.f32 %v652_v20, %v288_v38 }
  0xe0   :  { %v448_v41 = vpop.f32.mrf.mxu0  ;;  %v476_v42 = vpop.f32.mrf.mxu1 }
  0xe1   :  { %v328_v43 = vmax.f32 %v233_v39, 0.0  ;;  %v342_v44 = vmax.f32 %v289_v40, 0.0 }
  0xe2   :  { %v235_v45 = vpop.f32.mrf.mxu0  ;;  %v291_v46 = vpop.f32.mrf.mxu1 }
  0xe3   :  { %354 = vst.msk [vmem:[%s781_s3 + $0x10] sm:$0xff] %vm351_vm3, %v328_v43  ;;  %v236_v47 = vadd.f32 %v652_v20, %v235_v45  ;;  %368 = vst.msk [vmem:[%s781_s3 + $0x80] sm:$0xff] %vm351_vm3, %v342_v44  ;;  %v292_v48 = vadd.f32 %v652_v20, %v291_v46 }
  0xe4   :  { %v449_v49 = vpop.f32.mrf.mxu0  ;;  %v477_v50 = vpop.f32.mrf.mxu1 }
  0xe5   :  { %v329_v51 = vmax.f32 %v236_v47, 0.0  ;;  %v343_v52 = vmax.f32 %v292_v48, 0.0 }
  0xe6   :  { %v240_v53 = vpop.f32.mrf.mxu0  ;;  %v296_v54 = vpop.f32.mrf.mxu1 }
  0xe7   :  { %355 = vst.msk [vmem:[%s781_s3 + $0x18] sm:$0xff] %vm351_vm3, %v329_v51  ;;  %v241_v55 = vadd.f32 %v652_v20, %v240_v53  ;;  %369 = vst.msk [vmem:[%s781_s3 + $0x88] sm:$0xff] %vm351_vm3, %v343_v52  ;;  %v297_v56 = vadd.f32 %v652_v20, %v296_v54 }
  0xe8   :  { %v452_v57 = vpop.f32.mrf.mxu0  ;;  %v480_v58 = vpop.f32.mrf.mxu1 }
  0xe9   :  { %v330_v59 = vmax.f32 %v241_v55, 0.0  ;;  %v344_v60 = vmax.f32 %v297_v56, 0.0 }
  0xea   :  { %v243_v61 = vpop.f32.mrf.mxu0  ;;  %v299_v62 = vpop.f32.mrf.mxu1 }
  0xeb   :  { %356 = vst.msk [vmem:[%s781_s3 + $0x20] sm:$0xff] %vm351_vm3, %v330_v59  ;;  %v244_v63 = vadd.f32 %v652_v20, %v243_v61  ;;  %370 = vst.msk [vmem:[%s781_s3 + $0x90] sm:$0xff] %vm351_vm3, %v344_v60  ;;  %v300_v0 = vadd.f32 %v652_v20, %v299_v62 }
  0xec   :  { %v453_v1 = vpop.f32.mrf.mxu0  ;;  %v481_v2 = vpop.f32.mrf.mxu1 }
  0xed   :  { %v331_v3 = vmax.f32 %v244_v63, 0.0  ;;  %v345_v4 = vmax.f32 %v300_v0, 0.0 }
  0xee   :  { %v248_v5 = vpop.f32.mrf.mxu0  ;;  %v304_v6 = vpop.f32.mrf.mxu1 }
  0xef   :  { %357 = vst.msk [vmem:[%s781_s3 + $0x28] sm:$0xff] %vm351_vm3, %v331_v3  ;;  %v249_v7 = vadd.f32 %v652_v20, %v248_v5  ;;  %371 = vst.msk [vmem:[%s781_s3 + $0x98] sm:$0xff] %vm351_vm3, %v345_v4  ;;  %v305_v8 = vadd.f32 %v652_v20, %v304_v6 }
  0xf0   :  { %v456_v9 = vpop.f32.mrf.mxu0  ;;  %v484_v10 = vpop.f32.mrf.mxu1 }
  0xf1   :  { %v332_v11 = vmax.f32 %v249_v7, 0.0  ;;  %v346_v12 = vmax.f32 %v305_v8, 0.0 }
  0xf2   :  { %v251_v13 = vpop.f32.mrf.mxu0  ;;  %v307_v14 = vpop.f32.mrf.mxu1 }
  0xf3   :  { %358 = vst.msk [vmem:[%s781_s3 + $0x30] sm:$0xff] %vm351_vm3, %v332_v11  ;;  %v252_v15 = vadd.f32 %v652_v20, %v251_v13  ;;  %372 = vst.msk [vmem:[%s781_s3 + $0xa0] sm:$0xff] %vm351_vm3, %v346_v12  ;;  %v308_v16 = vadd.f32 %v652_v20, %v307_v14 }
  0xf4   :  { %v457_v17 = vpop.f32.mrf.mxu0  ;;  %v485_v18 = vpop.f32.mrf.mxu1 }
  0xf5   :  { %v333_v19 = vmax.f32 %v252_v15, 0.0  ;;  %v347_v21 = vmax.f32 %v308_v16, 0.0 }
  0xf6   :  { %v256_v22 = vpop.f32.mrf.mxu0  ;;  %v312_v23 = vpop.f32.mrf.mxu1 }
  0xf7   :  { %359 = vst.msk [vmem:[%s781_s3 + $0x38] sm:$0xff] %vm351_vm3, %v333_v19  ;;  %v257_v24 = vadd.f32 %v652_v20, %v256_v22  ;;  %373 = vst.msk [vmem:[%s781_s3 + $0xa8] sm:$0xff] %vm351_vm3, %v347_v21  ;;  %v313_v25 = vadd.f32 %v652_v20, %v312_v23 }
  0xf8   :  { %v460_v26 = vpop.f32.mrf.mxu0  ;;  %v488_v27 = vpop.f32.mrf.mxu1 }
  0xf9   :  { %v334_v28 = vmax.f32 %v257_v24, 0.0  ;;  %v348_v29 = vmax.f32 %v313_v25, 0.0 }
  0xfa   :  { %v259_v30 = vpop.f32.mrf.mxu0  ;;  %v315_v31 = vpop.f32.mrf.mxu1 }
  0xfb   :  { %360 = vst.msk [vmem:[%s781_s3 + $0x40] sm:$0xff] %vm351_vm3, %v334_v28  ;;  %v260_v32 = vadd.f32 %v652_v20, %v259_v30  ;;  %374 = vst.msk [vmem:[%s781_s3 + $0xb0] sm:$0xff] %vm351_vm3, %v348_v29  ;;  %v316_v33 = vadd.f32 %v652_v20, %v315_v31 }
  0xfc   :  { %v461_v34 = vpop.f32.mrf.mxu0  ;;  %v489_v35 = vpop.f32.mrf.mxu1 }
  0xfd   :  { %v335_v36 = vmax.f32 %v260_v32, 0.0  ;;  %v349_v37 = vmax.f32 %v316_v33, 0.0 }
  0xfe   :  { %v264_v38 = vpop.f32.mrf.mxu0  ;;  %v320_v39 = vpop.f32.mrf.mxu1 }
  0xff   :  { %361 = vst.msk [vmem:[%s781_s3 + $0x48] sm:$0xff] %vm351_vm3, %v335_v36  ;;  %v265_v40 = vadd.f32 %v652_v20, %v264_v38  ;;  %375 = vst.msk [vmem:[%s781_s3 + $0xb8] sm:$0xff] %vm351_vm3, %v349_v37  ;;  %v321_v41 = vadd.f32 %v652_v20, %v320_v39 }
 0x100   :  { %v464_v42 = vpop.f32.mrf.mxu0  ;;  %v492_v43 = vpop.f32.mrf.mxu1 }
 0x101   :  { %v336_v44 = vmax.f32 %v265_v40, 0.0  ;;  %v350_v45 = vmax.f32 %v321_v41, 0.0 }
 0x102   :  { %v267_v46 = vpop.f32.mrf.mxu0  ;;  %v323_v47 = vpop.f32.mrf.mxu1 }
 0x103   :  { %362 = vst.msk [vmem:[%s781_s3 + $0x50] sm:$0xff] %vm351_vm3, %v336_v44  ;;  %v268_v48 = vadd.f32 %v652_v20, %v267_v46 }
 0x104   :  { %377 = vst.msk [vmem:[%s781_s3 + $0xc0] sm:$0xf] %vm376_vm4, %v350_v45  ;;  %v465_v49 = vpop.f32.mrf.mxu0  ;;  %v493_v50 = vpop.f32.mrf.mxu1 }
 0x105   :  { %v337_v51 = vmax.f32 %v268_v48, 0.0 }
 0x106   :  { %v272_v52 = vpop.f32.mrf.mxu0 }
 0x107   :  { %363 = vst.msk [vmem:[%s781_s3 + $0x58] sm:$0xff] %vm351_vm3, %v337_v51  ;;  %v273_v53 = vadd.f32 %v652_v20, %v272_v52 }
 0x108   :  { %v468_v54 = vpop.f32.mrf.mxu0 }
 0x109   :  { %v338_v55 = vmax.f32 %v273_v53, 0.0 }
 0x10a   :  { %v275_v56 = vpop.f32.mrf.mxu0 }
 0x10b   :  { %364 = vst.msk [vmem:[%s781_s3 + $0x60] sm:$0xff] %vm351_vm3, %v338_v55  ;;  %v276_v57 = vadd.f32 %v652_v20, %v275_v56 }
 0x10c   :  { %v469_v58 = vpop.f32.mrf.mxu0 }
 0x10d   :  { %v339_v59 = vmax.f32 %v276_v57, 0.0 }
 0x10f   :  { %365 = vst.msk [vmem:[%s781_s3 + $0x68] sm:$0xff] %vm351_vm3, %v339_v59 }

// kernel: npi_forward.57
= control target key start
LH: loop header
LB: loop body
LE: loop exit
PB: predicated region body
PF: predicated region fallthrough
CT: control target
= control target key end

     0   :  { %vm189_vm0 = vcmask 1043456   ;;  %v769_v0 = vmov 0.0   ;;  %vm770_vm1 = vmmov 0   ;;  %vm149_vm2 = vcmask 588800   ;;  %s1514_s1 = inlined_call_operand.vmem [shape: bf16[72,8], index: 1, kind: input, shape index: {}]   ;;  %s1515_s0 = inlined_call_operand.vmem [shape: bf16[1,196,72], index: 0, kind: input, shape index: {}]   ;;  %s1516_s2 = inlined_call_operand.vmem [shape: f32[1,8], index: 2, kind: input, shape index: {}]   ;;  %s1517_s3 = inlined_call_operand.vmem [shape: f32[1,196,8], index: 3, kind: input, shape index: {}]   ;;  %s1518_s4 = inlined_call_operand.vmem [shape: f32[1,196,8], index: 4, kind: output, shape index: {}]  }
   0x1   :  { %675 = vmatprep.subr.bf16.mxu0 %v769_v0  ;;  %v749_v1 = vld [vmem:[%s1514_s1 + $0x20] ss:$0 sps:$4 sm:$0xff]   ;;  %685 = vmatprep.mubr.msk.bf16.mxu0 %vm770_vm1, %v769_v0  ;;  %v750_v3 = vld [vmem:[%s1514_s1 + $0x18] sm:$0xff]   ;;  %v751_v4 = vld [vmem:[%s1514_s1 + $0x10] sm:$0xff]   ;;  %vm404_vm3 = vcmask 64512   ;;  %vm452_vm4 = vcmask 60416  }
   0x2   :  { %737 = vmatprep.subr.bf16.mxu1 %v769_v0  ;;  %713 = vmatprep.mubr.msk.bf16.mxu1 %vm770_vm1, %v769_v0  ;;  %v191_v2 = vsel %vm189_vm0, %v749_v1, 0  ;;  %v752_v5 = vld [vmem:[%s1514_s1 + $0x8] sm:$0xff]   ;;  %v753_v6 = vld [vmem:[%s1514_s1] sm:$0xff]   ;;  %v758_v8 = vld [vmem:[%s1515_s0 + $0x38] sm:$0xff]  }
   0x3   :  { %676 = vmatpush3.bf16.msra.mxu0 %v191_v2  ;;  %742 = vmatpush3.bf16.msra.mxu1 %v191_v2  ;;  %v754_v7 = vld [vmem:[%s1515_s0] sm:$0xff]   ;;  %v755_v9 = vld [vmem:[%s1515_s0 + $0x8] sm:$0xff]   ;;  %v756_v11 = vld [vmem:[%s1515_s0 + $0x10] sm:$0xff]  }
   0x4   :  { %677 = vmatprep.subr.bf16.mxu0 %v769_v0  ;;  %738 = vmatprep.subr.bf16.mxu1 %v769_v0  ;;  %v760_v10 = vld [vmem:[%s1515_s0 + $0x40] sm:$0xff]   ;;  %v762_v12 = vld [vmem:[%s1515_s0 + $0x48] sm:$0xff]   ;;  %v757_v13 = vld [vmem:[%s1515_s0 + $0x18] sm:$0xff]  }
   0x5   :  { %v764_v14 = vld [vmem:[%s1515_s0 + $0x50] sm:$0xff]   ;;  %v759_v15 = vld [vmem:[%s1515_s0 + $0x20] sm:$0xff]   ;;  %v765_v16 = vld [vmem:[%s1515_s0 + $0x58] sm:$0xff]  }
   0x6   :  { %v761_v17 = vld [vmem:[%s1515_s0 + $0x28] sm:$0xff]   ;;  %v766_v18 = vld [vmem:[%s1515_s0 + $0x60] ss:$0 sps:$4 sm:$0x33]   ;;  %v763_v19 = vld [vmem:[%s1515_s0 + $0x30] sm:$0xff]  }
   0x7   :  { %678 = vmatpush3.bf16.msra.mxu0 %v750_v3  ;;  %743 = vmatpush3.bf16.msra.mxu1 %v750_v3  ;;  %v912_v40 = vld [vmem:[%s1516_s2] ss:$0 sm:$0xff]  ;;  %v330_v45 = vld [vmem:[%s1517_s3 + $0x8] sm:$0xff]  ;;  %v331_v50 = vld [vmem:[%s1517_s3 + $0x10] sm:$0xff] }
   0x8   :  { %679 = vmatprep.subr.bf16.mxu0 %v769_v0  ;;  %739 = vmatprep.subr.bf16.mxu1 %v769_v0  ;;  %v329_v48 = vld [vmem:[%s1517_s3] sm:$0xff]  ;;  %v332_v56 = vld [vmem:[%s1517_s3 + $0x18] sm:$0xff] }
   0x9   :  { %v333_v61 = vld [vmem:[%s1517_s3 + $0x20] sm:$0xff] }
   0xb   :  { %680 = vmatpush3.bf16.msra.mxu0 %v751_v4  ;;  %744 = vmatpush3.bf16.msra.mxu1 %v751_v4  ;;  %v334_v4 = vld [vmem:[%s1517_s3 + $0x28] sm:$0xff] }
   0xc   :  { %681 = vmatprep.subr.bf16.mxu0 %v769_v0  ;;  %740 = vmatprep.subr.bf16.mxu1 %v769_v0 }
   0xf   :  { %682 = vmatpush3.bf16.msra.mxu0 %v752_v5  ;;  %745 = vmatpush3.bf16.msra.mxu1 %v752_v5 }
  0x10   :  { %683 = vmatprep.subr.bf16.mxu0 %v769_v0  ;;  %741 = vmatprep.subr.bf16.mxu1 %v769_v0 }
  0x13   :  { %684 = vmatpush3.bf16.msra.mxu0 %v753_v6  ;;  %746 = vmatpush3.bf16.msra.mxu1 %v753_v6 }
  0x16   :  { %686 = vmatmul.mubr.msk.bf16.vlgmr.msra.gmra.mxu0 %vm149_vm2, %v754_v7  ;;  %714 = vmatmul.mubr.msk.bf16.vlgmr.msra.gmra.mxu1 %vm149_vm2, %v758_v8 }
  0x17   :  { %689 = vmatprep.mubr.msk.bf16.mxu0 %vm770_vm1, %v769_v0  ;;  %717 = vmatprep.mubr.msk.bf16.mxu1 %vm770_vm1, %v769_v0 }
  0x1e   :  { %690 = vmatmul.mubr.msk.bf16.gmra.mxu0 %vm149_vm2, %v755_v9  ;;  %718 = vmatmul.mubr.msk.bf16.gmra.mxu1 %vm149_vm2, %v760_v10  ;;  %v335_v10 = vld [vmem:[%s1517_s3 + $0x30] sm:$0xff] }
  0x1f   :  { %693 = vmatprep.mubr.msk.bf16.mxu0 %vm770_vm1, %v769_v0  ;;  %721 = vmatprep.mubr.msk.bf16.mxu1 %vm770_vm1, %v769_v0 }
  0x26   :  { %694 = vmatmul.mubr.msk.bf16.gmra.mxu0 %vm149_vm2, %v756_v11  ;;  %722 = vmatmul.mubr.msk.bf16.gmra.mxu1 %vm149_vm2, %v762_v12 }
  0x27   :  { %697 = vmatprep.mubr.msk.bf16.mxu0 %vm770_vm1, %v769_v0  ;;  %725 = vmatprep.mubr.msk.bf16.mxu1 %vm770_vm1, %v769_v0 }
  0x2e   :  { %698 = vmatmul.mubr.msk.bf16.gmra.mxu0 %vm149_vm2, %v757_v13  ;;  %726 = vmatmul.mubr.msk.bf16.gmra.mxu1 %vm149_vm2, %v764_v14 }
  0x2f   :  { %701 = vmatprep.mubr.msk.bf16.mxu0 %vm770_vm1, %v769_v0  ;;  %729 = vmatprep.mubr.msk.bf16.mxu1 %vm770_vm1, %v769_v0 }
  0x36   :  { %702 = vmatmul.mubr.msk.bf16.gmra.mxu0 %vm149_vm2, %v759_v15  ;;  %730 = vmatmul.mubr.msk.bf16.gmra.mxu1 %vm149_vm2, %v765_v16 }
  0x37   :  { %705 = vmatprep.mubr.msk.bf16.mxu0 %vm770_vm1, %v769_v0  ;;  %733 = vmatprep.mubr.msk.bf16.mxu1 %vm770_vm1, %v769_v0 }
  0x3e   :  { %706 = vmatmul.mubr.msk.bf16.gmra.mxu0 %vm149_vm2, %v761_v17  ;;  %734 = vmatmul.mubr.msk.bf16.gmra.mxu1 %vm149_vm2, %v766_v18  ;;  %v336_v18 = vld [vmem:[%s1517_s3 + $0x38] sm:$0xff] }
  0x3f   :  { %709 = vmatprep.mubr.msk.bf16.mxu0 %vm770_vm1, %v769_v0 }
  0x46   :  { %710 = vmatmul.mubr.msk.bf16.gmra.mxu0 %vm149_vm2, %v763_v19 }
  0xd6   :  { %v227_v20 = vpop.f32.mrf.mxu0  ;;  %v899_v21 = vpop.f32.mrf.mxu1 }
  0xd7   :  { %v228_v44 = vadd.f32 %v912_v40, %v227_v20 }
  0xd8   :  { %v687_v22 = vpop.f32.mrf.mxu0  ;;  %v715_v23 = vpop.f32.mrf.mxu1 }
  0xd9   :  { %v933_v55 = vadd.f32 %v329_v48, %v228_v44 }
  0xda   :  { %v230_v24 = vpop.f32.mrf.mxu0  ;;  %v901_v25 = vpop.f32.mrf.mxu1 }
  0xdb   :  { %v231_v43 = vadd.f32 %v912_v40, %v230_v24  ;;  %v379_v3 = vmax.f32 %v933_v55, 0.0 }
  0xdc   :  { %v688_v26 = vpop.f32.mrf.mxu0  ;;  %v716_v27 = vpop.f32.mrf.mxu1 }
  0xdd   :  { %v930_v53 = vadd.f32 %v330_v45, %v231_v43  ;;  %v405_v17 = vsel %vm404_vm3, %v379_v3, 0.0 }
  0xde   :  { %v235_v28 = vpop.f32.mrf.mxu0  ;;  %v903_v29 = vpop.f32.mrf.mxu1 }
  0xdf   :  { %v236_v49 = vadd.f32 %v912_v40, %v235_v28  ;;  %v380_v0 = vmax.f32 %v930_v53, 0.0  ;;  %v337_v28 = vld [vmem:[%s1517_s3 + $0x40] sm:$0xff] }
  0xe0   :  { %v691_v30 = vpop.f32.mrf.mxu0  ;;  %v719_v31 = vpop.f32.mrf.mxu1 }
  0xe1   :  { %v938_v59 = vadd.f32 %v331_v50, %v236_v49  ;;  %v406_v13 = vsel %vm404_vm3, %v380_v0, 0.0  ;;  %v339_v49 = vld [vmem:[%s1517_s3 + $0x50] sm:$0xff] }
  0xe2   :  { %v238_v32 = vpop.f32.mrf.mxu0  ;;  %v905_v33 = vpop.f32.mrf.mxu1  ;;  %v407_v27 = vadd.f32 %v406_v13, %v405_v17 }
  0xe3   :  { %v239_v54 = vadd.f32 %v912_v40, %v238_v32  ;;  %v381_v7 = vmax.f32 %v938_v59, 0.0 }
  0xe4   :  { %v692_v34 = vpop.f32.mrf.mxu0  ;;  %v720_v35 = vpop.f32.mrf.mxu1 }
  0xe5   :  { %v947_v1 = vadd.f32 %v332_v56, %v239_v54  ;;  %v408_v22 = vsel %vm404_vm3, %v381_v7, 0.0 }
  0xe6   :  { %v243_v36 = vpop.f32.mrf.mxu0  ;;  %v907_v37 = vpop.f32.mrf.mxu1 }
  0xe7   :  { %v244_v60 = vadd.f32 %v912_v40, %v243_v36  ;;  %v382_v14 = vmax.f32 %v947_v1, 0.0 }
  0xe8   :  { %v695_v38 = vpop.f32.mrf.mxu0  ;;  %v723_v39 = vpop.f32.mrf.mxu1 }
  0xe9   :  { %v955_v8 = vadd.f32 %v333_v61, %v244_v60  ;;  %v410_v32 = vsel %vm404_vm3, %v382_v14, 0.0  ;;  %v409_v38 = vadd.f32 %v408_v22, %v407_v27  ;;  %v338_v39 = vld [vmem:[%s1517_s3 + $0x48] sm:$0xff] }
  0xea   :  { %v246_v41 = vpop.f32.mrf.mxu0  ;;  %v914_v42 = vpop.f32.mrf.mxu1 }
  0xeb   :  { %v247_v2 = vadd.f32 %v912_v40, %v246_v41  ;;  %v383_v23 = vmax.f32 %v955_v8, 0.0 }
  0xec   :  { %v696_v46 = vpop.f32.mrf.mxu0  ;;  %v724_v47 = vpop.f32.mrf.mxu1 }
  0xed   :  { %v967_v15 = vadd.f32 %v334_v4, %v247_v2  ;;  %v412_v44 = vsel %vm404_vm3, %v383_v23, 0.0  ;;  %v411_v47 = vadd.f32 %v410_v32, %v409_v38  ;;  %v341_v32 = vld [vmem:[%s1517_s3 + $0x60] sm:$0xff] }
  0xee   :  { %v251_v51 = vpop.f32.mrf.mxu0  ;;  %v928_v52 = vpop.f32.mrf.mxu1 }
  0xef   :  { %v252_v9 = vadd.f32 %v912_v40, %v251_v51  ;;  %v384_v34 = vmax.f32 %v967_v15, 0.0 }
  0xf0   :  { %v699_v57 = vpop.f32.mrf.mxu0  ;;  %v727_v58 = vpop.f32.mrf.mxu1 }
  0xf1   :  { %v980_v24 = vadd.f32 %v335_v10, %v252_v9  ;;  %v414_v51 = vsel %vm404_vm3, %v384_v34, 0.0  ;;  %v413_v58 = vadd.f32 %v412_v44, %v411_v47  ;;  %v340_v9 = vld [vmem:[%s1517_s3 + $0x58] sm:$0xff] }
  0xf2   :  { %v254_v62 = vpop.f32.mrf.mxu0  ;;  %v944_v63 = vpop.f32.mrf.mxu1 }
  0xf3   :  { %v255_v16 = vadd.f32 %v912_v40, %v254_v62  ;;  %v385_v45 = vmax.f32 %v980_v24, 0.0 }
  0xf4   :  { %v700_v5 = vpop.f32.mrf.mxu0  ;;  %v728_v6 = vpop.f32.mrf.mxu1 }
  0xf5   :  { %v992_v35 = vadd.f32 %v336_v18, %v255_v16  ;;  %v416_v62 = vsel %vm404_vm3, %v385_v45, 0.0  ;;  %v415_v5 = vadd.f32 %v414_v51, %v413_v58  ;;  %v344_v51 = vld [vmem:[%s1517_s3 + $0x78] sm:$0xff] }
  0xf6   :  { %v259_v11 = vpop.f32.mrf.mxu0  ;;  %v961_v12 = vpop.f32.mrf.mxu1 }
  0xf7   :  { %v260_v26 = vadd.f32 %v912_v40, %v259_v11  ;;  %v386_v54 = vmax.f32 %v992_v35, 0.0  ;;  %v417_v17 = vadd.f32 %v416_v62, %v415_v5 }
  0xf8   :  { %v703_v19 = vpop.f32.mrf.mxu0  ;;  %v731_v20 = vpop.f32.mrf.mxu1 }
  0xf9   :  { %v1002_v46 = vadd.f32 %v337_v28, %v260_v26  ;;  %v418_v11 = vsel %vm404_vm3, %v386_v54, 0.0  ;;  %v284_v28 = vadd.f32 %v912_v40, %v899_v21  ;;  %v287_v21 = vadd.f32 %v912_v40, %v901_v25 }
  0xfa   :  { %v262_v30 = vpop.f32.mrf.mxu0  ;;  %v986_v31 = vpop.f32.mrf.mxu1  ;;  %v419_v27 = vadd.f32 %v418_v11, %v417_v17  ;;  %v292_v25 = vadd.f32 %v912_v40, %v903_v29  ;;  %v346_v29 = vld [vmem:[%s1517_s3 + $0x88] sm:$0xff] }
  0xfb   :  { %v263_v36 = vadd.f32 %v912_v40, %v262_v30  ;;  %v387_v2 = vmax.f32 %v1002_v46, 0.0 }
  0xfc   :  { %v704_v41 = vpop.f32.mrf.mxu0  ;;  %v732_v43 = vpop.f32.mrf.mxu1 }
  0xfd   :  { %v1013_v56 = vadd.f32 %v338_v39, %v263_v36  ;;  %v420_v20 = vsel %vm404_vm3, %v387_v2, 0.0  ;;  %v343_v36 = vld [vmem:[%s1517_s3 + $0x70] sm:$0xff] }
  0xfe   :  { %v267_v48 = vpop.f32.mrf.mxu0  ;;  %v1007_v50 = vpop.f32.mrf.mxu1  ;;  %v421_v43 = vadd.f32 %v420_v20, %v419_v27 }
  0xff   :  { %v268_v57 = vadd.f32 %v912_v40, %v267_v48  ;;  %v388_v13 = vmax.f32 %v1013_v56, 0.0 }
 0x100   :  { %v707_v60 = vpop.f32.mrf.mxu0  ;;  %v735_v61 = vpop.f32.mrf.mxu1 }
 0x101   :  { %v1020_v4 = vadd.f32 %v339_v49, %v268_v57  ;;  %v422_v38 = vsel %vm404_vm3, %v388_v13, 0.0  ;;  %v1056_v49 = vadd.f32 %v343_v36, %v284_v28  ;;  %v342_v60 = vld [vmem:[%s1517_s3 + $0x68] sm:$0xff] }
 0x102   :  { %v270_v6 = vpop.f32.mrf.mxu0  ;;  %v326_v10 = vpop.f32.mrf.mxu1  ;;  %v423_v57 = vadd.f32 %v422_v38, %v421_v43 }
 0x103   :  { %v271_v16 = vadd.f32 %v912_v40, %v270_v6  ;;  %v389_v22 = vmax.f32 %v1020_v4, 0.0  ;;  %v345_v6 = vld [vmem:[%s1517_s3 + $0x80] sm:$0xff]  ;;  %v295_v10 = vadd.f32 %v912_v40, %v905_v33  ;;  %v393_v20 = vmax.f32 %v1056_v49, 0.0 }
 0x104   :  { %v708_v18 = vpop.f32.mrf.mxu0  ;;  %v736_v19 = vpop.f32.mrf.mxu1  ;;  %v1087_v27 = vadd.f32 %v345_v6, %v292_v25  ;;  %v300_v33 = vadd.f32 %v912_v40, %v907_v37  ;;  %v348_v37 = vld [vmem:[%s1517_s3 + $0x98] sm:$0xff] }
 0x105   :  { %v1034_v26 = vadd.f32 %v340_v9, %v271_v16  ;;  %v424_v47 = vsel %vm404_vm3, %v389_v22, 0.0  ;;  %v1076_v16 = vadd.f32 %v344_v51, %v287_v21  ;;  %v432_v21 = vsel %vm404_vm3, %v393_v20, 0.0 }
 0x106   :  { %v275_v30 = vpop.f32.mrf.mxu0  ;;  %v425_v9 = vadd.f32 %v424_v47, %v423_v57  ;;  %v395_v47 = vmax.f32 %v1087_v27, 0.0 }
 0x107   :  { %v390_v39 = vmax.f32 %v1034_v26, 0.0  ;;  %v276_v41 = vadd.f32 %v912_v40, %v275_v30  ;;  %v1092_v30 = vadd.f32 %v346_v29, %v295_v10  ;;  %v394_v38 = vmax.f32 %v1076_v16, 0.0 }
 0x108   :  { %v711_v44 = vpop.f32.mrf.mxu0  ;;  %v316_v29 = vadd.f32 %v912_v40, %v961_v12 }
 0x109   :  { %v1054_v48 = vadd.f32 %v341_v32, %v276_v41  ;;  %v426_v61 = vsel %vm404_vm3, %v390_v39, 0.0  ;;  %v347_v32 = vld [vmem:[%s1517_s3 + $0x90] sm:$0xff]  ;;  %v303_v41 = vadd.f32 %v912_v40, %v914_v42  ;;  %v308_v42 = vadd.f32 %v912_v40, %v928_v52  ;;  %v350_v52 = vld [vmem:[%s1517_s3 + $0xa8] sm:$0xff] }
 0x10a   :  { %v278_v58 = vpop.f32.mrf.mxu0  ;;  %v427_v19 = vadd.f32 %v426_v61, %v425_v9  ;;  %v1110_v51 = vadd.f32 %v347_v32, %v300_v33  ;;  %v396_v57 = vmax.f32 %v1092_v30, 0.0  ;;  %v434_v25 = vsel %vm404_vm3, %v394_v38, 0.0 }
 0x10b   :  { %v391_v62 = vmax.f32 %v1054_v48, 0.0  ;;  %v279_v5 = vadd.f32 %v912_v40, %v278_v58  ;;  %v1121_v61 = vadd.f32 %v348_v37, %v303_v41  ;;  %v436_v9 = vsel %vm404_vm3, %v395_v47, 0.0  ;;  %v353_v37 = vld [vmem:[%s1517_s3 + $0xc0] sm:$0xf] }
 0x10c   :  { %v712_v11 = vpop.f32.mrf.mxu0  ;;  %v397_v10 = vmax.f32 %v1110_v51, 0.0  ;;  %v324_v41 = vadd.f32 %v912_v40, %v1007_v50 }
 0x10d   :  { %v428_v17 = vsel %vm404_vm3, %v391_v62, 0.0  ;;  %v1084_v18 = vadd.f32 %v342_v60, %v279_v5  ;;  %v349_v60 = vld [vmem:[%s1517_s3 + $0xa0] sm:$0xff]  ;;  %v311_v5 = vadd.f32 %v912_v40, %v944_v63  ;;  %v438_v63 = vsel %vm404_vm3, %v396_v57, 0.0 }
 0x10e   :  { %v429_v36 = vadd.f32 %v428_v17, %v427_v19  ;;  %v1132_v11 = vadd.f32 %v349_v60, %v308_v42  ;;  %v351_v19 = vld [vmem:[%s1517_s3 + $0xb0] sm:$0xff]  ;;  %v398_v33 = vmax.f32 %v1121_v61, 0.0  ;;  %v1167_v60 = vadd.f32 %v353_v37, %v324_v41 }
 0x10f   :  { %v392_v28 = vmax.f32 %v1084_v18, 0.0  ;;  %v1143_v32 = vadd.f32 %v350_v52, %v311_v5  ;;  %v1159_v42 = vadd.f32 %v351_v19, %v316_v29 }
 0x111   :  { %v430_v43 = vsel %vm404_vm3, %v392_v28, 0.0  ;;  %v400_v50 = vmax.f32 %v1143_v32, 0.0 }
 0x112   :  { %v431_v44 = vadd.f32 %v430_v43, %v429_v36  ;;  %v319_v36 = vadd.f32 %v912_v40, %v986_v31  ;;  %v352_v43 = vld [vmem:[%s1517_s3 + $0xb8] sm:$0xff]  ;;  %v442_v40 = vsel %vm404_vm3, %v398_v33, 0.0 }
 0x114   :  { %v433_v58 = vadd.f32 %v432_v21, %v431_v44  ;;  %v440_v44 = vsel %vm404_vm3, %v397_v10, 0.0  ;;  %v399_v21 = vmax.f32 %v1132_v11, 0.0 }
 0x116   :  { %v435_v6 = vadd.f32 %v434_v25, %v433_v58  ;;  %v1165_v58 = vadd.f32 %v352_v43, %v319_v36  ;;  %v444_v5 = vsel %vm404_vm3, %v399_v21, 0.0 }
 0x118   :  { %v437_v17 = vadd.f32 %v436_v9, %v435_v6  ;;  %v401_v6 = vmax.f32 %v1159_v42, 0.0  ;;  %v446_v9 = vsel %vm404_vm3, %v400_v50, 0.0  ;;  %v402_v29 = vmax.f32 %v1165_v58, 0.0 }
 0x11a   :  { %v439_v12 = vadd.f32 %v438_v63, %v437_v17  ;;  %v403_v63 = vmax.f32 %v1167_v60, 0.0  ;;  %v448_v19 = vsel %vm404_vm3, %v401_v6, 0.0  ;;  %v450_v41 = vsel %vm404_vm3, %v402_v29, 0.0 }
 0x11c   :  { %v441_v31 = vadd.f32 %v440_v44, %v439_v12  ;;  %v453_v12 = vsel %vm452_vm4, %v403_v63, 0.0 }
 0x11e   :  { %v443_v25 = vadd.f32 %v442_v40, %v441_v31 }
 0x120   :  { %v445_v52 = vadd.f32 %v444_v5, %v443_v25 }
 0x122   :  { %v447_v17 = vadd.f32 %v446_v9, %v445_v52 }
 0x124   :  { %v449_v36 = vadd.f32 %v448_v19, %v447_v17 }
 0x126   :  { %v451_v43 = vadd.f32 %v450_v41, %v449_v36 }
 0x128   :  { %v454_v37 = vadd.f32 %v453_v12, %v451_v43 }
 0x12a   :  { %v455_v44 = vrot.slane %v454_v37, 4 }
 0x12c   :  { %v456_v31 = vadd.f32 %v455_v44, %v454_v37 }
 0x12e   :  { %v457_v40 = vrot.slane %v456_v31, 2 }
 0x130   :  { %v458_v25 = vadd.f32 %v457_v40, %v456_v31 }
 0x132   :  { %v459_v5 = vrot.slane %v458_v25, 1 }
 0x134   :  { %v460_v52 = vadd.f32 %v459_v5, %v458_v25 }
 0x136   :  { %v1187_v9 = vmul.f32 0.0051020407, %v460_v52 }
 0x138   :  { %v1192_v17 = vsub.f32 %v379_v3, %v1187_v9  ;;  %v1197_v19 = vsub.f32 %v380_v0, %v1187_v9  ;;  %v1202_v36 = vsub.f32 %v381_v7, %v1187_v9  ;;  %v1207_v41 = vsub.f32 %v382_v14, %v1187_v9 }
 0x139   :  { %v1216_v53 = vsub.f32 %v383_v23, %v1187_v9  ;;  %v1223_v0 = vsub.f32 %v384_v34, %v1187_v9  ;;  %v1232_v8 = vsub.f32 %v385_v45, %v1187_v9  ;;  %v1240_v43 = vsub.f32 %v386_v54, %v1187_v9 }
 0x13a   :  { %v488_v55 = vmul.f32 %v1192_v17, %v1192_v17  ;;  %v489_v3 = vmul.f32 %v1197_v19, %v1197_v19  ;;  %v490_v59 = vmul.f32 %v1202_v36, %v1202_v36  ;;  %v491_v1 = vmul.f32 %v1207_v41, %v1207_v41 }
 0x13b   :  { %v492_v23 = vmul.f32 %v1216_v53, %v1216_v53  ;;  %v493_v37 = vmul.f32 %v1223_v0, %v1223_v0  ;;  %v1248_v24 = vsub.f32 %v387_v2, %v1187_v9  ;;  %v494_v45 = vmul.f32 %v1232_v8, %v1232_v8 }
 0x13c   :  { %v513_v7 = vsel %vm404_vm3, %v488_v55, 0.0  ;;  %v514_v14 = vsel %vm404_vm3, %v489_v3, 0.0  ;;  %v516_v15 = vsel %vm404_vm3, %v490_v59, 0.0  ;;  %v518_v44 = vsel %vm404_vm3, %v491_v1, 0.0 }
 0x13d   :  { %v515_v12 = vadd.f32 %v514_v14, %v513_v7  ;;  %v520_v40 = vsel %vm404_vm3, %v492_v23, 0.0  ;;  %v1256_v35 = vsub.f32 %v388_v13, %v1187_v9  ;;  %v495_v54 = vmul.f32 %v1240_v43, %v1240_v43 }
 0x13e   :  { %v522_v5 = vsel %vm404_vm3, %v493_v37, 0.0  ;;  %v1264_v46 = vsub.f32 %v389_v22, %v1187_v9  ;;  %v496_v2 = vmul.f32 %v1248_v24, %v1248_v24  ;;  %v524_v55 = vsel %vm404_vm3, %v494_v45, 0.0 }
 0x13f   :  { %v517_v34 = vadd.f32 %v516_v15, %v515_v12  ;;  %v1272_v56 = vsub.f32 %v390_v39, %v1187_v9  ;;  %v497_v13 = vmul.f32 %v1256_v35, %v1256_v35  ;;  %v526_v59 = vsel %vm404_vm3, %v495_v54, 0.0 }
 0x140   :  { %v1280_v4 = vsub.f32 %v391_v62, %v1187_v9  ;;  %v498_v22 = vmul.f32 %v1264_v46, %v1264_v46  ;;  %v528_v7 = vsel %vm404_vm3, %v496_v2, 0.0  ;;  %v1288_v26 = vsub.f32 %v392_v28, %v1187_v9 }
 0x141   :  { %v519_v31 = vadd.f32 %v518_v44, %v517_v34  ;;  %v499_v39 = vmul.f32 %v1272_v56, %v1272_v56  ;;  %v530_v12 = vsel %vm404_vm3, %v497_v13, 0.0  ;;  %v1296_v48 = vsub.f32 %v393_v20, %v1187_v9 }
 0x142   :  { %v500_v62 = vmul.f32 %v1280_v4, %v1280_v4  ;;  %v532_v15 = vsel %vm404_vm3, %v498_v22, 0.0  ;;  %v1304_v18 = vsub.f32 %v394_v38, %v1187_v9  ;;  %v501_v28 = vmul.f32 %v1288_v26, %v1288_v26 }
 0x143   :  { %v521_v25 = vadd.f32 %v520_v40, %v519_v31  ;;  %v534_v37 = vsel %vm404_vm3, %v499_v39, 0.0  ;;  %v1312_v49 = vsub.f32 %v395_v47, %v1187_v9  ;;  %v502_v20 = vmul.f32 %v1296_v48, %v1296_v48 }
 0x144   :  { %v536_v31 = vsel %vm404_vm3, %v500_v62, 0.0  ;;  %v1320_v16 = vsub.f32 %v396_v57, %v1187_v9  ;;  %v503_v38 = vmul.f32 %v1304_v18, %v1304_v18  ;;  %v538_v40 = vsel %vm404_vm3, %v501_v28, 0.0 }
 0x145   :  { %v523_v52 = vadd.f32 %v522_v5, %v521_v25  ;;  %v1328_v27 = vsub.f32 %v397_v10, %v1187_v9  ;;  %v504_v47 = vmul.f32 %v1312_v49, %v1312_v49  ;;  %v540_v54 = vsel %vm404_vm3, %v502_v20, 0.0 }
 0x146   :  { %v1336_v30 = vsub.f32 %v398_v33, %v1187_v9  ;;  %v505_v57 = vmul.f32 %v1320_v16, %v1320_v16  ;;  %v1344_v51 = vsub.f32 %v399_v21, %v1187_v9  ;;  %v1352_v61 = vsub.f32 %v400_v50, %v1187_v9 }
 0x147   :  { %v525_v3 = vadd.f32 %v524_v55, %v523_v52  ;;  %v542_v52 = vsel %vm404_vm3, %v503_v38, 0.0  ;;  %v506_v10 = vmul.f32 %v1328_v27, %v1328_v27  ;;  %v544_v55 = vsel %vm404_vm3, %v504_v47, 0.0 }
 0x148   :  { %v507_v33 = vmul.f32 %v1336_v30, %v1336_v30  ;;  %v546_v13 = vsel %vm404_vm3, %v505_v57, 0.0  ;;  %v1360_v11 = vsub.f32 %v401_v6, %v1187_v9  ;;  %v508_v21 = vmul.f32 %v1344_v51, %v1344_v51 }
 0x149   :  { %v527_v1 = vadd.f32 %v526_v59, %v525_v3  ;;  %v1368_v32 = vsub.f32 %v402_v29, %v1187_v9  ;;  %v509_v50 = vmul.f32 %v1352_v61, %v1352_v61  ;;  %v1376_v42 = vsub.f32 %v403_v63, %v1187_v9 }
 0x14a   :  { %v510_v6 = vmul.f32 %v1360_v11, %v1360_v11  ;;  %v552_v39 = vsel %vm404_vm3, %v508_v21, 0.0 }
 0x14b   :  { %v529_v14 = vadd.f32 %v528_v7, %v527_v1  ;;  %v548_v1 = vsel %vm404_vm3, %v506_v10, 0.0  ;;  %v550_v7 = vsel %vm404_vm3, %v507_v33, 0.0  ;;  %v511_v58 = vmul.f32 %v1368_v32, %v1368_v32 }
 0x14c   :  { %v554_v29 = vsel %vm404_vm3, %v509_v50, 0.0  ;;  %v512_v62 = vmul.f32 %v1376_v42, %v1376_v42 }
 0x14d   :  { %v531_v23 = vadd.f32 %v530_v12, %v529_v14  ;;  %v558_v63 = vsel %vm404_vm3, %v511_v58, 0.0 }
 0x14f   :  { %v533_v34 = vadd.f32 %v532_v15, %v531_v23  ;;  %v556_v15 = vsel %vm404_vm3, %v510_v6, 0.0 }
 0x151   :  { %v535_v44 = vadd.f32 %v534_v37, %v533_v34  ;;  %v560_v34 = vsel %vm452_vm4, %v512_v62, 0.0 }
 0x153   :  { %v537_v45 = vadd.f32 %v536_v31, %v535_v44 }
 0x155   :  { %v539_v25 = vadd.f32 %v538_v40, %v537_v45 }
 0x157   :  { %v541_v5 = vadd.f32 %v540_v54, %v539_v25 }
 0x159   :  { %v543_v2 = vadd.f32 %v542_v52, %v541_v5 }
 0x15b   :  { %v545_v3 = vadd.f32 %v544_v55, %v543_v2 }
 0x15d   :  { %v547_v59 = vadd.f32 %v546_v13, %v545_v3 }
 0x15f   :  { %v549_v22 = vadd.f32 %v548_v1, %v547_v59 }
 0x161   :  { %v551_v14 = vadd.f32 %v550_v7, %v549_v22 }
 0x163   :  { %v553_v12 = vadd.f32 %v552_v39, %v551_v14 }
 0x165   :  { %v555_v23 = vadd.f32 %v554_v29, %v553_v12 }
 0x167   :  { %v557_v60 = vadd.f32 %v556_v15, %v555_v23 }
 0x169   :  { %v559_v9 = vadd.f32 %v558_v63, %v557_v60 }
 0x16b   :  { %v561_v28 = vadd.f32 %v560_v34, %v559_v9 }
 0x16d   :  { %v562_v37 = vrot.slane %v561_v28, 4 }
 0x16f   :  { %v563_v44 = vadd.f32 %v562_v37, %v561_v28 }
 0x171   :  { %v564_v20 = vrot.slane %v563_v44, 2 }
 0x173   :  { %v565_v31 = vadd.f32 %v564_v20, %v563_v44 }
 0x175   :  { %v566_v45 = vrot.slane %v565_v31, 1 }
 0x177   :  { %v567_v38 = vadd.f32 %v566_v45, %v565_v31 }
 0x179   :  { %v568_v40 = vmul.f32 0.0051020407, %v567_v38 }
 0x17b   :  { %v569_v25 = vadd.f32 1e-05, %v568_v40 }
 0x17d   :  { %767 = vrsqrt.f32 %v569_v25 }
 0x18a   :  { %v768_v47 = vpop.eup %767 }
 0x18b   :  { %v571_v54 = vmul.f32 %v768_v47, %v1192_v17  ;;  %v572_v5 = vmul.f32 %v768_v47, %v1197_v19  ;;  %v573_v57 = vmul.f32 %v768_v47, %v1202_v36  ;;  %v574_v52 = vmul.f32 %v768_v47, %v1207_v41 }
 0x18c   :  { %v575_v2 = vmul.f32 %v768_v47, %v1216_v53  ;;  %v576_v10 = vmul.f32 %v768_v47, %v1223_v0  ;;  %v577_v55 = vmul.f32 %v768_v47, %v1232_v8  ;;  %v578_v3 = vmul.f32 %v768_v47, %v1240_v43 }
 0x18d   :  { %v579_v33 = vmul.f32 %v768_v47, %v1248_v24  ;;  %v580_v13 = vmul.f32 %v768_v47, %v1256_v35  ;;  %v581_v17 = vmul.f32 %v768_v47, %v1264_v46  ;;  %v582_v19 = vmul.f32 %v768_v47, %v1272_v56  ;;  %596 = vst.msk [vmem:[%s1518_s4] sm:$0xff] %vm404_vm3, %v571_v54 }
 0x18e   :  { %597 = vst.msk [vmem:[%s1518_s4 + $0x8] sm:$0xff] %vm404_vm3, %v572_v5  ;;  %598 = vst.msk [vmem:[%s1518_s4 + $0x10] sm:$0xff] %vm404_vm3, %v573_v57  ;;  %v583_v36 = vmul.f32 %v768_v47, %v1280_v4  ;;  %v584_v41 = vmul.f32 %v768_v47, %v1288_v26  ;;  %v585_v53 = vmul.f32 %v768_v47, %v1296_v48 }
 0x18f   :  { %599 = vst.msk [vmem:[%s1518_s4 + $0x18] sm:$0xff] %vm404_vm3, %v574_v52  ;;  %v586_v0 = vmul.f32 %v768_v47, %v1304_v18  ;;  %600 = vst.msk [vmem:[%s1518_s4 + $0x20] sm:$0xff] %vm404_vm3, %v575_v2  ;;  %v587_v8 = vmul.f32 %v768_v47, %v1312_v49  ;;  %v588_v43 = vmul.f32 %v768_v47, %v1320_v16 }
 0x190   :  { %601 = vst.msk [vmem:[%s1518_s4 + $0x28] sm:$0xff] %vm404_vm3, %v576_v10  ;;  %602 = vst.msk [vmem:[%s1518_s4 + $0x30] sm:$0xff] %vm404_vm3, %v577_v55  ;;  %v589_v24 = vmul.f32 %v768_v47, %v1328_v27  ;;  %v590_v35 = vmul.f32 %v768_v47, %v1336_v30  ;;  %v591_v46 = vmul.f32 %v768_v47, %v1344_v51 }
 0x191   :  { %603 = vst.msk [vmem:[%s1518_s4 + $0x38] sm:$0xff] %vm404_vm3, %v578_v3  ;;  %604 = vst.msk [vmem:[%s1518_s4 + $0x40] sm:$0xff] %vm404_vm3, %v579_v33  ;;  %v592_v56 = vmul.f32 %v768_v47, %v1352_v61  ;;  %v593_v4 = vmul.f32 %v768_v47, %v1360_v11  ;;  %v594_v26 = vmul.f32 %v768_v47, %v1368_v32 }
 0x192   :  { %605 = vst.msk [vmem:[%s1518_s4 + $0x48] sm:$0xff] %vm404_vm3, %v580_v13  ;;  %606 = vst.msk [vmem:[%s1518_s4 + $0x50] sm:$0xff] %vm404_vm3, %v581_v17  ;;  %v595_v48 = vmul.f32 %v768_v47, %v1376_v42 }
 0x193   :  { %607 = vst.msk [vmem:[%s1518_s4 + $0x58] sm:$0xff] %vm404_vm3, %v582_v19  ;;  %608 = vst.msk [vmem:[%s1518_s4 + $0x60] sm:$0xff] %vm404_vm3, %v583_v36 }
 0x194   :  { %609 = vst.msk [vmem:[%s1518_s4 + $0x68] sm:$0xff] %vm404_vm3, %v584_v41  ;;  %610 = vst.msk [vmem:[%s1518_s4 + $0x70] sm:$0xff] %vm404_vm3, %v585_v53 }
 0x195   :  { %611 = vst.msk [vmem:[%s1518_s4 + $0x78] sm:$0xff] %vm404_vm3, %v586_v0  ;;  %612 = vst.msk [vmem:[%s1518_s4 + $0x80] sm:$0xff] %vm404_vm3, %v587_v8 }
 0x196   :  { %613 = vst.msk [vmem:[%s1518_s4 + $0x88] sm:$0xff] %vm404_vm3, %v588_v43  ;;  %614 = vst.msk [vmem:[%s1518_s4 + $0x90] sm:$0xff] %vm404_vm3, %v589_v24 }
 0x197   :  { %615 = vst.msk [vmem:[%s1518_s4 + $0x98] sm:$0xff] %vm404_vm3, %v590_v35  ;;  %616 = vst.msk [vmem:[%s1518_s4 + $0xa0] sm:$0xff] %vm404_vm3, %v591_v46 }
 0x198   :  { %617 = vst.msk [vmem:[%s1518_s4 + $0xa8] sm:$0xff] %vm404_vm3, %v592_v56  ;;  %618 = vst.msk [vmem:[%s1518_s4 + $0xb0] sm:$0xff] %vm404_vm3, %v593_v4 }
 0x199   :  { %619 = vst.msk [vmem:[%s1518_s4 + $0xb8] sm:$0xff] %vm404_vm3, %v594_v26 }
 0x19a   :  { %620 = vst.msk [vmem:[%s1518_s4 + $0xc0] sm:$0xf] %vm452_vm4, %v595_v48 }

// kernel: npi_forward.75
= control target key start
LH: loop header
LB: loop body
LE: loop exit
PB: predicated region body
PF: predicated region fallthrough
CT: control target
= control target key end

     0   :  { %s781_s12 = smov 0   ;;  %s962_s0 = inlined_call_operand.vmem [shape: bf16[2,196,72], index: 0, kind: input, shape index: {}]   ;;  %s963_s1 = inlined_call_operand.vmem [shape: bf16[72,8], index: 1, kind: input, shape index: {}]   ;;  %s964_s2 = inlined_call_operand.vmem [shape: f32[1,8], index: 2, kind: input, shape index: {}]   ;;  %s965_s3 = inlined_call_operand.vmem [shape: f32[2,196,8], index: 3, kind: output, shape index: {}]  }
   0x1 LB: > { %s590_s13 = sadd.s32 4294967295, %s757_s12   ;;  %p594_p0 = scmp.ge.s32.totalorder %s757_s12, 1  ;;  %s757_s12 = sphi %s781_s12, %s13_s12  }
   0x2   : > { %p137_p1 = scmp.lt.s32.totalorder %s757_s12, 3 }
   0x4   : > { %p138_p2 = pnand %p594_p0, %p137_p1 }
   0x5   : > { %p161_p3 = scmp.lt.s32.totalorder (!%p138_p2), %s590_s13, 1 }
   0x6   : > { %141 = sbr.rel (%p138_p2) target bundleno = 283 (0x11b), region = 32 }
   0xb   : > { %v733_v0 = vld [vmem:[%s963_s1 + $0x20] ss:$0 sps:$4 sm:$0xff]   ;;  %vm343_vm0 = vcmask 1043456   ;;  %v759_v1 = vmov 0.0   ;;  %vm760_vm1 = vmmov 0   ;;  %v734_v3 = vld [vmem:[%s963_s1 + $0x18] sm:$0xff]  }
   0xc   : > { %649 = vmatprep.subr.bf16.mxu0 %v759_v1  ;;  %711 = vmatprep.subr.bf16.mxu1 %v759_v1  ;;  %v345_v2 = vsel %vm343_vm0, %v733_v0, 0  ;;  %s967_s13 = smov (!%p161_p3, %s590_s13), 1  ;;  %v735_v4 = vld [vmem:[%s963_s1 + $0x10] sm:$0xff]   ;;  %v736_v5 = vld [vmem:[%s963_s1 + $0x8] sm:$0xff]   ;;  %v737_v6 = vld [vmem:[%s963_s1] sm:$0xff]   ;;  %vm303_vm2 = vcmask 588800  }
   0xd   : > { %659 = vmatprep.mubr.msk.bf16.mxu0 %vm760_vm1, %v759_v1  ;;  %687 = vmatprep.mubr.msk.bf16.mxu1 %vm760_vm1, %v759_v1  ;;  %s721_s20 = smul.u32 100, %s967_s13  ;;  %v878_v20 = vld [vmem:[%s964_s2] ss:$0 sm:$0xff]  ;;  %vm508_vm3 = vcmask 64512   ;;  %vm533_vm4 = vcmask 60416  }
   0xe   : > { %650 = vmatpush3.bf16.msra.mxu0 %v345_v2  ;;  %716 = vmatpush3.bf16.msra.mxu1 %v345_v2  ;;  %s722_s28 = smul.u32 200, %s967_s13 }
   0xf   : > { %651 = vmatprep.subr.bf16.mxu0 %v759_v1  ;;  %712 = vmatprep.subr.bf16.mxu1 %v759_v1  ;;  %s814_s23 = scalar_lea.vmem %s962_s0, %s721_s20 }
  0x10   : > { %v738_v7 = vld [vmem:[%s814_s23] sm:$0xff]   ;;  %v739_v8 = vld [vmem:[%s814_s23 + $0x38] sm:$0xff]   ;;  %v740_v9 = vld [vmem:[%s814_s23 + $0x8] sm:$0xff]   ;;  %s885_s6 = scalar_lea.vmem %s965_s3, %s722_s28 }
  0x11   : > { %v741_v10 = vld [vmem:[%s814_s23 + $0x40] sm:$0xff]   ;;  %v742_v11 = vld [vmem:[%s814_s23 + $0x10] sm:$0xff]   ;;  %v743_v12 = vld [vmem:[%s814_s23 + $0x48] sm:$0xff]  }
  0x12   : > { %652 = vmatpush3.bf16.msra.mxu0 %v734_v3  ;;  %717 = vmatpush3.bf16.msra.mxu1 %v734_v3  ;;  %v744_v13 = vld [vmem:[%s814_s23 + $0x18] sm:$0xff]   ;;  %v745_v14 = vld [vmem:[%s814_s23 + $0x50] sm:$0xff]   ;;  %v746_v15 = vld [vmem:[%s814_s23 + $0x20] sm:$0xff]  }
  0x13   : > { %653 = vmatprep.subr.bf16.mxu0 %v759_v1  ;;  %713 = vmatprep.subr.bf16.mxu1 %v759_v1  ;;  %v747_v16 = vld [vmem:[%s814_s23 + $0x58] sm:$0xff]   ;;  %v748_v17 = vld [vmem:[%s814_s23 + $0x28] sm:$0xff]   ;;  %v749_v18 = vld [vmem:[%s814_s23 + $0x60] ss:$0 sps:$4 sm:$0x33]  }
  0x14   : > { %v750_v19 = vld [vmem:[%s814_s23 + $0x30] sm:$0xff]  }
  0x16   : > { %654 = vmatpush3.bf16.msra.mxu0 %v735_v4  ;;  %718 = vmatpush3.bf16.msra.mxu1 %v735_v4 }
  0x17   : > { %655 = vmatprep.subr.bf16.mxu0 %v759_v1  ;;  %714 = vmatprep.subr.bf16.mxu1 %v759_v1 }
  0x1a   : > { %656 = vmatpush3.bf16.msra.mxu0 %v736_v5  ;;  %719 = vmatpush3.bf16.msra.mxu1 %v736_v5 }
  0x1b   : > { %657 = vmatprep.subr.bf16.mxu0 %v759_v1  ;;  %715 = vmatprep.subr.bf16.mxu1 %v759_v1 }
  0x1e   : > { %658 = vmatpush3.bf16.msra.mxu0 %v737_v6  ;;  %720 = vmatpush3.bf16.msra.mxu1 %v737_v6 }
  0x21   : > { %660 = vmatmul.mubr.msk.bf16.vlgmr.msra.gmra.mxu0 %vm303_vm2, %v738_v7  ;;  %688 = vmatmul.mubr.msk.bf16.vlgmr.msra.gmra.mxu1 %vm303_vm2, %v739_v8 }
  0x22   : > { %663 = vmatprep.mubr.msk.bf16.mxu0 %vm760_vm1, %v759_v1  ;;  %691 = vmatprep.mubr.msk.bf16.mxu1 %vm760_vm1, %v759_v1 }
  0x29   : > { %664 = vmatmul.mubr.msk.bf16.gmra.mxu0 %vm303_vm2, %v740_v9  ;;  %692 = vmatmul.mubr.msk.bf16.gmra.mxu1 %vm303_vm2, %v741_v10 }
  0x2a   : > { %667 = vmatprep.mubr.msk.bf16.mxu0 %vm760_vm1, %v759_v1  ;;  %695 = vmatprep.mubr.msk.bf16.mxu1 %vm760_vm1, %v759_v1 }
  0x31   : > { %668 = vmatmul.mubr.msk.bf16.gmra.mxu0 %vm303_vm2, %v742_v11  ;;  %696 = vmatmul.mubr.msk.bf16.gmra.mxu1 %vm303_vm2, %v743_v12 }
  0x32   : > { %671 = vmatprep.mubr.msk.bf16.mxu0 %vm760_vm1, %v759_v1  ;;  %699 = vmatprep.mubr.msk.bf16.mxu1 %vm760_vm1, %v759_v1 }
  0x39   : > { %672 = vmatmul.mubr.msk.bf16.gmra.mxu0 %vm303_vm2, %v744_v13  ;;  %700 = vmatmul.mubr.msk.bf16.gmra.mxu1 %vm303_vm2, %v745_v14 }
  0x3a   : > { %675 = vmatprep.mubr.msk.bf16.mxu0 %vm760_vm1, %v759_v1  ;;  %703 = vmatprep.mubr.msk.bf16.mxu1 %vm760_vm1, %v759_v1 }
  0x41   : > { %676 = vmatmul.mubr.msk.bf16.gmra.mxu0 %vm303_vm2, %v746_v15  ;;  %704 = vmatmul.mubr.msk.bf16.gmra.mxu1 %vm303_vm2, %v747_v16 }
  0x42   : > { %679 = vmatprep.mubr.msk.bf16.mxu0 %vm760_vm1, %v759_v1  ;;  %707 = vmatprep.mubr.msk.bf16.mxu1 %vm760_vm1, %v759_v1 }
  0x49   : > { %680 = vmatmul.mubr.msk.bf16.gmra.mxu0 %vm303_vm2, %v748_v17  ;;  %708 = vmatmul.mubr.msk.bf16.gmra.mxu1 %vm303_vm2, %v749_v18 }
  0x4a   : > { %683 = vmatprep.mubr.msk.bf16.mxu0 %vm760_vm1, %v759_v1 }
  0x51   : > { %684 = vmatmul.mubr.msk.bf16.gmra.mxu0 %vm303_vm2, %v750_v19 }
  0xe1   : > { %v381_v21 = vpop.f32.mrf.mxu0  ;;  %v437_v22 = vpop.f32.mrf.mxu1 }
  0xe2   : > { %v382_v23 = vadd.f32 %v878_v20, %v381_v21  ;;  %v438_v24 = vadd.f32 %v878_v20, %v437_v22 }
  0xe3   : > { %v661_v25 = vpop.f32.mrf.mxu0  ;;  %v689_v26 = vpop.f32.mrf.mxu1 }
  0xe4   : > { %v483_v27 = vmax.f32 %v382_v23, 0.0  ;;  %v497_v28 = vmax.f32 %v438_v24, 0.0 }
  0xe5   : > { %v384_v29 = vpop.f32.mrf.mxu0  ;;  %v440_v30 = vpop.f32.mrf.mxu1 }
  0xe6   : > { %509 = vst.msk [vmem:[%s885_s6] sm:$0xff] %vm508_vm3, %v483_v27  ;;  %v385_v31 = vadd.f32 %v878_v20, %v384_v29  ;;  %523 = vst.msk [vmem:[%s885_s6 + $0x70] sm:$0xff] %vm508_vm3, %v497_v28  ;;  %v441_v32 = vadd.f32 %v878_v20, %v440_v30 }
  0xe7   : > { %v662_v33 = vpop.f32.mrf.mxu0  ;;  %v690_v34 = vpop.f32.mrf.mxu1 }
  0xe8   : > { %v484_v35 = vmax.f32 %v385_v31, 0.0  ;;  %v498_v36 = vmax.f32 %v441_v32, 0.0 }
  0xe9   : > { %v389_v37 = vpop.f32.mrf.mxu0  ;;  %v445_v38 = vpop.f32.mrf.mxu1 }
  0xea   : > { %510 = vst.msk [vmem:[%s885_s6 + $0x8] sm:$0xff] %vm508_vm3, %v484_v35  ;;  %v390_v39 = vadd.f32 %v878_v20, %v389_v37  ;;  %524 = vst.msk [vmem:[%s885_s6 + $0x78] sm:$0xff] %vm508_vm3, %v498_v36  ;;  %v446_v40 = vadd.f32 %v878_v20, %v445_v38 }
  0xeb   : > { %v665_v41 = vpop.f32.mrf.mxu0  ;;  %v693_v42 = vpop.f32.mrf.mxu1 }
  0xec   : > { %v485_v43 = vmax.f32 %v390_v39, 0.0  ;;  %v499_v44 = vmax.f32 %v446_v40, 0.0 }
  0xed   : > { %v392_v45 = vpop.f32.mrf.mxu0  ;;  %v448_v46 = vpop.f32.mrf.mxu1 }
  0xee   : > { %511 = vst.msk [vmem:[%s885_s6 + $0x10] sm:$0xff] %vm508_vm3, %v485_v43  ;;  %v393_v47 = vadd.f32 %v878_v20, %v392_v45  ;;  %525 = vst.msk [vmem:[%s885_s6 + $0x80] sm:$0xff] %vm508_vm3, %v499_v44  ;;  %v449_v48 = vadd.f32 %v878_v20, %v448_v46 }
  0xef   : > { %v666_v49 = vpop.f32.mrf.mxu0  ;;  %v694_v50 = vpop.f32.mrf.mxu1 }
  0xf0   : > { %v486_v51 = vmax.f32 %v393_v47, 0.0  ;;  %v500_v52 = vmax.f32 %v449_v48, 0.0 }
  0xf1   : > { %v397_v53 = vpop.f32.mrf.mxu0  ;;  %v453_v54 = vpop.f32.mrf.mxu1 }
  0xf2   : > { %512 = vst.msk [vmem:[%s885_s6 + $0x18] sm:$0xff] %vm508_vm3, %v486_v51  ;;  %v398_v55 = vadd.f32 %v878_v20, %v397_v53  ;;  %526 = vst.msk [vmem:[%s885_s6 + $0x88] sm:$0xff] %vm508_vm3, %v500_v52  ;;  %v454_v56 = vadd.f32 %v878_v20, %v453_v54 }
  0xf3   : > { %v669_v57 = vpop.f32.mrf.mxu0  ;;  %v697_v58 = vpop.f32.mrf.mxu1 }
  0xf4   : > { %v487_v59 = vmax.f32 %v398_v55, 0.0  ;;  %v501_v60 = vmax.f32 %v454_v56, 0.0 }
  0xf5   : > { %v400_v61 = vpop.f32.mrf.mxu0  ;;  %v456_v62 = vpop.f32.mrf.mxu1 }
  0xf6   : > { %513 = vst.msk [vmem:[%s885_s6 + $0x20] sm:$0xff] %vm508_vm3, %v487_v59  ;;  %v401_v63 = vadd.f32 %v878_v20, %v400_v61  ;;  %527 = vst.msk [vmem:[%s885_s6 + $0x90] sm:$0xff] %vm508_vm3, %v501_v60  ;;  %v457_v0 = vadd.f32 %v878_v20, %v456_v62 }
  0xf7   : > { %v670_v1 = vpop.f32.mrf.mxu0  ;;  %v698_v2 = vpop.f32.mrf.mxu1 }
  0xf8   : > { %v488_v3 = vmax.f32 %v401_v63, 0.0  ;;  %v502_v4 = vmax.f32 %v457_v0, 0.0 }
  0xf9   : > { %v405_v5 = vpop.f32.mrf.mxu0  ;;  %v461_v6 = vpop.f32.mrf.mxu1 }
  0xfa   : > { %514 = vst.msk [vmem:[%s885_s6 + $0x28] sm:$0xff] %vm508_vm3, %v488_v3  ;;  %v406_v7 = vadd.f32 %v878_v20, %v405_v5  ;;  %528 = vst.msk [vmem:[%s885_s6 + $0x98] sm:$0xff] %vm508_vm3, %v502_v4  ;;  %v462_v8 = vadd.f32 %v878_v20, %v461_v6 }
  0xfb   : > { %v673_v9 = vpop.f32.mrf.mxu0  ;;  %v701_v10 = vpop.f32.mrf.mxu1 }
  0xfc   : > { %v489_v11 = vmax.f32 %v406_v7, 0.0  ;;  %v503_v12 = vmax.f32 %v462_v8, 0.0 }
  0xfd   : > { %v408_v13 = vpop.f32.mrf.mxu0  ;;  %v464_v14 = vpop.f32.mrf.mxu1 }
  0xfe   : > { %515 = vst.msk [vmem:[%s885_s6 + $0x30] sm:$0xff] %vm508_vm3, %v489_v11  ;;  %v409_v15 = vadd.f32 %v878_v20, %v408_v13  ;;  %529 = vst.msk [vmem:[%s885_s6 + $0xa0] sm:$0xff] %vm508_vm3, %v503_v12  ;;  %v465_v16 = vadd.f32 %v878_v20, %v464_v14 }
  0xff   : > { %v674_v17 = vpop.f32.mrf.mxu0  ;;  %v702_v18 = vpop.f32.mrf.mxu1 }
 0x100   : > { %v490_v19 = vmax.f32 %v409_v15, 0.0  ;;  %v504_v21 = vmax.f32 %v465_v16, 0.0 }
 0x101   : > { %v413_v22 = vpop.f32.mrf.mxu0  ;;  %v469_v23 = vpop.f32.mrf.mxu1 }
 0x102   : > { %516 = vst.msk [vmem:[%s885_s6 + $0x38] sm:$0xff] %vm508_vm3, %v490_v19  ;;  %v414_v24 = vadd.f32 %v878_v20, %v413_v22  ;;  %530 = vst.msk [vmem:[%s885_s6 + $0xa8] sm:$0xff] %vm508_vm3, %v504_v21  ;;  %v470_v25 = vadd.f32 %v878_v20, %v469_v23 }
 0x103   : > { %v677_v26 = vpop.f32.mrf.mxu0  ;;  %v705_v27 = vpop.f32.mrf.mxu1 }
 0x104   : > { %v491_v28 = vmax.f32 %v414_v24, 0.0  ;;  %v505_v29 = vmax.f32 %v470_v25, 0.0 }
 0x105   : > { %v416_v30 = vpop.f32.mrf.mxu0  ;;  %v472_v31 = vpop.f32.mrf.mxu1 }
 0x106   : > { %517 = vst.msk [vmem:[%s885_s6 + $0x40] sm:$0xff] %vm508_vm3, %v491_v28  ;;  %v417_v32 = vadd.f32 %v878_v20, %v416_v30  ;;  %531 = vst.msk [vmem:[%s885_s6 + $0xb0] sm:$0xff] %vm508_vm3, %v505_v29  ;;  %v473_v33 = vadd.f32 %v878_v20, %v472_v31 }
 0x107   : > { %v678_v34 = vpop.f32.mrf.mxu0  ;;  %v706_v35 = vpop.f32.mrf.mxu1 }
 0x108   : > { %v492_v36 = vmax.f32 %v417_v32, 0.0  ;;  %v506_v37 = vmax.f32 %v473_v33, 0.0 }
 0x109   : > { %v421_v38 = vpop.f32.mrf.mxu0  ;;  %v477_v39 = vpop.f32.mrf.mxu1 }
 0x10a   : > { %518 = vst.msk [vmem:[%s885_s6 + $0x48] sm:$0xff] %vm508_vm3, %v492_v36  ;;  %v422_v40 = vadd.f32 %v878_v20, %v421_v38  ;;  %532 = vst.msk [vmem:[%s885_s6 + $0xb8] sm:$0xff] %vm508_vm3, %v506_v37  ;;  %v478_v41 = vadd.f32 %v878_v20, %v477_v39 }
 0x10b   : > { %v681_v42 = vpop.f32.mrf.mxu0  ;;  %v709_v43 = vpop.f32.mrf.mxu1 }
 0x10c   : > { %v493_v44 = vmax.f32 %v422_v40, 0.0  ;;  %v507_v45 = vmax.f32 %v478_v41, 0.0 }
 0x10d   : > { %v424_v46 = vpop.f32.mrf.mxu0  ;;  %v480_v47 = vpop.f32.mrf.mxu1 }
 0x10e   : > { %519 = vst.msk [vmem:[%s885_s6 + $0x50] sm:$0xff] %vm508_vm3, %v493_v44  ;;  %v425_v48 = vadd.f32 %v878_v20, %v424_v46 }
 0x10f   : > { %534 = vst.msk [vmem:[%s885_s6 + $0xc0] sm:$0xf] %vm533_vm4, %v507_v45  ;;  %v682_v49 = vpop.f32.mrf.mxu0  ;;  %v710_v50 = vpop.f32.mrf.mxu1 }
 0x110   : > { %v494_v51 = vmax.f32 %v425_v48, 0.0 }
 0x111   : > { %v429_v52 = vpop.f32.mrf.mxu0 }
 0x112   : > { %520 = vst.msk [vmem:[%s885_s6 + $0x58] sm:$0xff] %vm508_vm3, %v494_v51  ;;  %v430_v53 = vadd.f32 %v878_v20, %v429_v52 }
 0x113   : > { %v685_v54 = vpop.f32.mrf.mxu0 }
 0x114   : > { %v495_v55 = vmax.f32 %v430_v53, 0.0 }
 0x115   : > { %v432_v56 = vpop.f32.mrf.mxu0 }
 0x116   : > { %521 = vst.msk [vmem:[%s885_s6 + $0x60] sm:$0xff] %vm508_vm3, %v495_v55  ;;  %v433_v57 = vadd.f32 %v878_v20, %v432_v56 }
 0x117   : > { %v686_v58 = vpop.f32.mrf.mxu0 }
 0x118   : > { %v496_v59 = vmax.f32 %v433_v57, 0.0 }
 0x11a   : > { %522 = vst.msk [vmem:[%s885_s6 + $0x68] sm:$0xff] %vm508_vm3, %v496_v59 }
 0x11b PF: > { %s13_s12 = sadd.s32 1, %s757_s12  }
 0x11c   : > { %p10_p4 = scmp.ge.s32.totalorder %s13_s12, 4  }
 0x11e   :  { %12 = sbr.rel (!%p10_p4) target bundleno = 1 (0x1), region = 62 }

// kernel: npi_forward.76
= control target key start
LH: loop header
LB: loop body
LE: loop exit
PB: predicated region body
PF: predicated region fallthrough
CT: control target
= control target key end

     0   :  { %s896_s15 = smov 0   ;;  %s1107_s0 = inlined_call_operand.vmem [shape: bf16[2,196,72], index: 0, kind: input, shape index: {}]   ;;  %s1108_s1 = inlined_call_operand.vmem [shape: bf16[72,8], index: 1, kind: input, shape index: {}]   ;;  %s1109_s2 = inlined_call_operand.vmem [shape: f32[1,8], index: 2, kind: input, shape index: {}]   ;;  %s1110_s3 = inlined_call_operand.vmem [shape: f32[2,196,8], index: 3, kind: input, shape index: {}]   ;;  %s1111_s4 = inlined_call_operand.vmem [shape: f32[2,196,8], index: 4, kind: output, shape index: {}]  }
   0x1 LB: > { %s699_s16 = sadd.s32 4294967295, %s867_s15   ;;  %p703_p0 = scmp.ge.s32.totalorder %s867_s15, 1  ;;  %s867_s15 = sphi %s896_s15, %s14_s15  }
   0x2   : > { %p172_p1 = scmp.lt.s32.totalorder %s867_s15, 3 }
   0x4   : > { %p173_p2 = pnand %p703_p0, %p172_p1 }
   0x5   : > { %p203_p3 = scmp.lt.s32.totalorder (!%p173_p2), %s699_s16, 1 }
   0x6   : > { %176 = sbr.rel (%p173_p2) target bundleno = 285 (0x11d), region = 36 }
   0xb   : > { %v843_v0 = vld [vmem:[%s1108_s1 + $0x20] ss:$0 sps:$4 sm:$0xff]   ;;  %vm390_vm0 = vcmask 1043456   ;;  %v869_v1 = vmov 0.0   ;;  %vm870_vm1 = vmmov 0   ;;  %v844_v3 = vld [vmem:[%s1108_s1 + $0x18] sm:$0xff]  }
   0xc   : > { %759 = vmatprep.subr.bf16.mxu0 %v869_v1  ;;  %821 = vmatprep.subr.bf16.mxu1 %v869_v1  ;;  %v392_v2 = vsel %vm390_vm0, %v843_v0, 0  ;;  %s1113_s16 = smov (!%p203_p3, %s699_s16), 1  ;;  %v845_v4 = vld [vmem:[%s1108_s1 + $0x10] sm:$0xff]   ;;  %v846_v5 = vld [vmem:[%s1108_s1 + $0x8] sm:$0xff]   ;;  %v847_v6 = vld [vmem:[%s1108_s1] sm:$0xff]   ;;  %vm350_vm2 = vcmask 588800  }
   0xd   : > { %769 = vmatprep.mubr.msk.bf16.mxu0 %vm870_vm1, %v869_v1  ;;  %797 = vmatprep.mubr.msk.bf16.mxu1 %vm870_vm1, %v869_v1  ;;  %s831_s23 = smul.u32 100, %s1113_s16  ;;  %v998_v20 = vld [vmem:[%s1109_s2] ss:$0 sm:$0xff]  ;;  %vm605_vm3 = vcmask 64512   ;;  %vm630_vm4 = vcmask 60416  }
   0xe   : > { %760 = vmatpush3.bf16.msra.mxu0 %v392_v2  ;;  %826 = vmatpush3.bf16.msra.mxu1 %v392_v2  ;;  %s832_s5 = smul.u32 200, %s1113_s16 }
   0xf   : > { %761 = vmatprep.subr.bf16.mxu0 %v869_v1  ;;  %822 = vmatprep.subr.bf16.mxu1 %v869_v1  ;;  %s929_s26 = scalar_lea.vmem %s1107_s0, %s831_s23 }
  0x10   : > { %v848_v7 = vld [vmem:[%s929_s26] sm:$0xff]   ;;  %v849_v8 = vld [vmem:[%s929_s26 + $0x38] sm:$0xff]   ;;  %v850_v9 = vld [vmem:[%s929_s26 + $0x8] sm:$0xff]   ;;  %s993_s8 = scalar_lea.vmem %s1110_s3, %s832_s5  ;;  %s1007_s13 = scalar_lea.vmem %s1111_s4, %s832_s5 }
  0x11   : > { %v851_v10 = vld [vmem:[%s929_s26 + $0x40] sm:$0xff]   ;;  %v852_v11 = vld [vmem:[%s929_s26 + $0x10] sm:$0xff]   ;;  %v853_v12 = vld [vmem:[%s929_s26 + $0x48] sm:$0xff]  }
  0x12   : > { %762 = vmatpush3.bf16.msra.mxu0 %v844_v3  ;;  %827 = vmatpush3.bf16.msra.mxu1 %v844_v3  ;;  %v854_v13 = vld [vmem:[%s929_s26 + $0x18] sm:$0xff]   ;;  %v855_v14 = vld [vmem:[%s929_s26 + $0x50] sm:$0xff]   ;;  %v856_v15 = vld [vmem:[%s929_s26 + $0x20] sm:$0xff]  }
  0x13   : > { %763 = vmatprep.subr.bf16.mxu0 %v869_v1  ;;  %823 = vmatprep.subr.bf16.mxu1 %v869_v1  ;;  %v857_v16 = vld [vmem:[%s929_s26 + $0x58] sm:$0xff]   ;;  %v858_v17 = vld [vmem:[%s929_s26 + $0x28] sm:$0xff]   ;;  %v859_v18 = vld [vmem:[%s929_s26 + $0x60] ss:$0 sps:$4 sm:$0x33]  }
  0x14   : > { %v860_v19 = vld [vmem:[%s929_s26 + $0x30] sm:$0xff]   ;;  %v530_v22 = vld [vmem:[%s993_s8] sm:$0xff]  ;;  %v531_v32 = vld [vmem:[%s993_s8 + $0x8] sm:$0xff] }
  0x15   : > { %v544_v24 = vld [vmem:[%s993_s8 + $0x70] sm:$0xff]  ;;  %v545_v34 = vld [vmem:[%s993_s8 + $0x78] sm:$0xff]  ;;  %v546_v46 = vld [vmem:[%s993_s8 + $0x80] sm:$0xff] }
  0x16   : > { %764 = vmatpush3.bf16.msra.mxu0 %v845_v4  ;;  %828 = vmatpush3.bf16.msra.mxu1 %v845_v4  ;;  %v532_v44 = vld [vmem:[%s993_s8 + $0x10] sm:$0xff]  ;;  %v533_v56 = vld [vmem:[%s993_s8 + $0x18] sm:$0xff]  ;;  %v547_v58 = vld [vmem:[%s993_s8 + $0x88] sm:$0xff] }
  0x17   : > { %765 = vmatprep.subr.bf16.mxu0 %v869_v1  ;;  %824 = vmatprep.subr.bf16.mxu1 %v869_v1  ;;  %v534_v4 = vld [vmem:[%s993_s8 + $0x20] sm:$0xff] }
  0x1a   : > { %766 = vmatpush3.bf16.msra.mxu0 %v846_v5  ;;  %829 = vmatpush3.bf16.msra.mxu1 %v846_v5 }
  0x1b   : > { %767 = vmatprep.subr.bf16.mxu0 %v869_v1  ;;  %825 = vmatprep.subr.bf16.mxu1 %v869_v1 }
  0x1e   : > { %768 = vmatpush3.bf16.msra.mxu0 %v847_v6  ;;  %830 = vmatpush3.bf16.msra.mxu1 %v847_v6  ;;  %v548_v6 = vld [vmem:[%s993_s8 + $0x90] sm:$0xff] }
  0x21   : > { %770 = vmatmul.mubr.msk.bf16.vlgmr.msra.gmra.mxu0 %vm350_vm2, %v848_v7  ;;  %798 = vmatmul.mubr.msk.bf16.vlgmr.msra.gmra.mxu1 %vm350_vm2, %v849_v8 }
  0x22   : > { %773 = vmatprep.mubr.msk.bf16.mxu0 %vm870_vm1, %v869_v1  ;;  %801 = vmatprep.mubr.msk.bf16.mxu1 %vm870_vm1, %v869_v1 }
  0x29   : > { %774 = vmatmul.mubr.msk.bf16.gmra.mxu0 %vm350_vm2, %v850_v9  ;;  %802 = vmatmul.mubr.msk.bf16.gmra.mxu1 %vm350_vm2, %v851_v10 }
  0x2a   : > { %777 = vmatprep.mubr.msk.bf16.mxu0 %vm870_vm1, %v869_v1  ;;  %805 = vmatprep.mubr.msk.bf16.mxu1 %vm870_vm1, %v869_v1 }
  0x31   : > { %778 = vmatmul.mubr.msk.bf16.gmra.mxu0 %vm350_vm2, %v852_v11  ;;  %806 = vmatmul.mubr.msk.bf16.gmra.mxu1 %vm350_vm2, %v853_v12 }
  0x32   : > { %781 = vmatprep.mubr.msk.bf16.mxu0 %vm870_vm1, %v869_v1  ;;  %809 = vmatprep.mubr.msk.bf16.mxu1 %vm870_vm1, %v869_v1 }
  0x39   : > { %782 = vmatmul.mubr.msk.bf16.gmra.mxu0 %vm350_vm2, %v854_v13  ;;  %810 = vmatmul.mubr.msk.bf16.gmra.mxu1 %vm350_vm2, %v855_v14 }
  0x3a   : > { %785 = vmatprep.mubr.msk.bf16.mxu0 %vm870_vm1, %v869_v1  ;;  %813 = vmatprep.mubr.msk.bf16.mxu1 %vm870_vm1, %v869_v1 }
  0x41   : > { %786 = vmatmul.mubr.msk.bf16.gmra.mxu0 %vm350_vm2, %v856_v15  ;;  %814 = vmatmul.mubr.msk.bf16.gmra.mxu1 %vm350_vm2, %v857_v16  ;;  %v535_v16 = vld [vmem:[%s993_s8 + $0x28] sm:$0xff] }
  0x42   : > { %789 = vmatprep.mubr.msk.bf16.mxu0 %vm870_vm1, %v869_v1  ;;  %817 = vmatprep.mubr.msk.bf16.mxu1 %vm870_vm1, %v869_v1 }
  0x49   : > { %790 = vmatmul.mubr.msk.bf16.gmra.mxu0 %vm350_vm2, %v858_v17  ;;  %818 = vmatmul.mubr.msk.bf16.gmra.mxu1 %vm350_vm2, %v859_v18  ;;  %v549_v18 = vld [vmem:[%s993_s8 + $0x98] sm:$0xff] }
  0x4a   : > { %793 = vmatprep.mubr.msk.bf16.mxu0 %vm870_vm1, %v869_v1 }
  0x51   : > { %794 = vmatmul.mubr.msk.bf16.gmra.mxu0 %vm350_vm2, %v860_v19 }
  0xe1   : > { %v428_v21 = vpop.f32.mrf.mxu0  ;;  %v484_v23 = vpop.f32.mrf.mxu1 }
  0xe2   : > { %v429_v25 = vadd.f32 %v998_v20, %v428_v21  ;;  %v485_v26 = vadd.f32 %v998_v20, %v484_v23 }
  0xe3   : > { %v771_v27 = vpop.f32.mrf.mxu0  ;;  %v799_v28 = vpop.f32.mrf.mxu1 }
  0xe4   : > { %v555_v29 = vadd.f32 %v530_v22, %v429_v25  ;;  %v569_v30 = vadd.f32 %v544_v24, %v485_v26 }
  0xe5   : > { %v431_v31 = vpop.f32.mrf.mxu0  ;;  %v487_v33 = vpop.f32.mrf.mxu1 }
  0xe6   : > { %v580_v35 = vmax.f32 %v555_v29, 0.0  ;;  %v432_v36 = vadd.f32 %v998_v20, %v431_v31  ;;  %v594_v37 = vmax.f32 %v569_v30, 0.0  ;;  %v488_v38 = vadd.f32 %v998_v20, %v487_v33  ;;  %v536_v29 = vld [vmem:[%s993_s8 + $0x30] sm:$0xff]  ;;  %v550_v31 = vld [vmem:[%s993_s8 + $0xa0] sm:$0xff] }
  0xe7   : > { %v772_v39 = vpop.f32.mrf.mxu0  ;;  %v800_v40 = vpop.f32.mrf.mxu1 }
  0xe8   : > { %606 = vst.msk [vmem:[%s1007_s13] sm:$0xff] %vm605_vm3, %v580_v35  ;;  %v556_v41 = vadd.f32 %v531_v32, %v432_v36  ;;  %620 = vst.msk [vmem:[%s1007_s13 + $0x70] sm:$0xff] %vm605_vm3, %v594_v37  ;;  %v570_v42 = vadd.f32 %v545_v34, %v488_v38 }
  0xe9   : > { %v436_v43 = vpop.f32.mrf.mxu0  ;;  %v492_v45 = vpop.f32.mrf.mxu1 }
  0xea   : > { %v581_v47 = vmax.f32 %v556_v41, 0.0  ;;  %v437_v48 = vadd.f32 %v998_v20, %v436_v43  ;;  %v595_v49 = vmax.f32 %v570_v42, 0.0  ;;  %v493_v50 = vadd.f32 %v998_v20, %v492_v45  ;;  %v537_v41 = vld [vmem:[%s993_s8 + $0x38] sm:$0xff]  ;;  %v551_v43 = vld [vmem:[%s993_s8 + $0xa8] sm:$0xff] }
  0xeb   : > { %v775_v51 = vpop.f32.mrf.mxu0  ;;  %v803_v52 = vpop.f32.mrf.mxu1 }
  0xec   : > { %607 = vst.msk [vmem:[%s1007_s13 + $0x8] sm:$0xff] %vm605_vm3, %v581_v47  ;;  %v557_v53 = vadd.f32 %v532_v44, %v437_v48  ;;  %621 = vst.msk [vmem:[%s1007_s13 + $0x78] sm:$0xff] %vm605_vm3, %v595_v49  ;;  %v571_v54 = vadd.f32 %v546_v46, %v493_v50 }
  0xed   : > { %v439_v55 = vpop.f32.mrf.mxu0  ;;  %v495_v57 = vpop.f32.mrf.mxu1 }
  0xee   : > { %v582_v59 = vmax.f32 %v557_v53, 0.0  ;;  %v440_v60 = vadd.f32 %v998_v20, %v439_v55  ;;  %v596_v61 = vmax.f32 %v571_v54, 0.0  ;;  %v496_v62 = vadd.f32 %v998_v20, %v495_v57  ;;  %v538_v53 = vld [vmem:[%s993_s8 + $0x40] sm:$0xff]  ;;  %v552_v55 = vld [vmem:[%s993_s8 + $0xb0] sm:$0xff] }
  0xef   : > { %v776_v63 = vpop.f32.mrf.mxu0  ;;  %v804_v0 = vpop.f32.mrf.mxu1 }
  0xf0   : > { %608 = vst.msk [vmem:[%s1007_s13 + $0x10] sm:$0xff] %vm605_vm3, %v582_v59  ;;  %v558_v1 = vadd.f32 %v533_v56, %v440_v60  ;;  %622 = vst.msk [vmem:[%s1007_s13 + $0x80] sm:$0xff] %vm605_vm3, %v596_v61  ;;  %v572_v2 = vadd.f32 %v547_v58, %v496_v62 }
  0xf1   : > { %v444_v3 = vpop.f32.mrf.mxu0  ;;  %v500_v5 = vpop.f32.mrf.mxu1 }
  0xf2   : > { %v583_v7 = vmax.f32 %v558_v1, 0.0  ;;  %v445_v8 = vadd.f32 %v998_v20, %v444_v3  ;;  %v597_v9 = vmax.f32 %v572_v2, 0.0  ;;  %v501_v10 = vadd.f32 %v998_v20, %v500_v5  ;;  %v539_v1 = vld [vmem:[%s993_s8 + $0x48] sm:$0xff]  ;;  %v553_v3 = vld [vmem:[%s993_s8 + $0xb8] sm:$0xff] }
  0xf3   : > { %v779_v11 = vpop.f32.mrf.mxu0  ;;  %v807_v12 = vpop.f32.mrf.mxu1 }
  0xf4   : > { %609 = vst.msk [vmem:[%s1007_s13 + $0x18] sm:$0xff] %vm605_vm3, %v583_v7  ;;  %v559_v13 = vadd.f32 %v534_v4, %v445_v8  ;;  %623 = vst.msk [vmem:[%s1007_s13 + $0x88] sm:$0xff] %vm605_vm3, %v597_v9  ;;  %v573_v14 = vadd.f32 %v548_v6, %v501_v10 }
  0xf5   : > { %v447_v15 = vpop.f32.mrf.mxu0  ;;  %v503_v17 = vpop.f32.mrf.mxu1 }
  0xf6   : > { %v584_v19 = vmax.f32 %v559_v13, 0.0  ;;  %v448_v21 = vadd.f32 %v998_v20, %v447_v15  ;;  %v598_v22 = vmax.f32 %v573_v14, 0.0  ;;  %v504_v23 = vadd.f32 %v998_v20, %v503_v17  ;;  %v540_v13 = vld [vmem:[%s993_s8 + $0x50] sm:$0xff]  ;;  %v554_v15 = vld [vmem:[%s993_s8 + $0xc0] sm:$0xf] }
  0xf7   : > { %v780_v24 = vpop.f32.mrf.mxu0  ;;  %v808_v25 = vpop.f32.mrf.mxu1 }
  0xf8   : > { %610 = vst.msk [vmem:[%s1007_s13 + $0x20] sm:$0xff] %vm605_vm3, %v584_v19  ;;  %v560_v26 = vadd.f32 %v535_v16, %v448_v21  ;;  %624 = vst.msk [vmem:[%s1007_s13 + $0x90] sm:$0xff] %vm605_vm3, %v598_v22  ;;  %v574_v27 = vadd.f32 %v549_v18, %v504_v23 }
  0xf9   : > { %v452_v28 = vpop.f32.mrf.mxu0  ;;  %v508_v30 = vpop.f32.mrf.mxu1 }
  0xfa   : > { %v585_v32 = vmax.f32 %v560_v26, 0.0  ;;  %v453_v33 = vadd.f32 %v998_v20, %v452_v28  ;;  %v599_v34 = vmax.f32 %v574_v27, 0.0  ;;  %v509_v35 = vadd.f32 %v998_v20, %v508_v30  ;;  %v541_v26 = vld [vmem:[%s993_s8 + $0x58] sm:$0xff] }
  0xfb   : > { %v783_v36 = vpop.f32.mrf.mxu0  ;;  %v811_v37 = vpop.f32.mrf.mxu1 }
  0xfc   : > { %611 = vst.msk [vmem:[%s1007_s13 + $0x28] sm:$0xff] %vm605_vm3, %v585_v32  ;;  %v561_v38 = vadd.f32 %v536_v29, %v453_v33  ;;  %625 = vst.msk [vmem:[%s1007_s13 + $0x98] sm:$0xff] %vm605_vm3, %v599_v34  ;;  %v575_v39 = vadd.f32 %v550_v31, %v509_v35  ;;  %v542_v35 = vld [vmem:[%s993_s8 + $0x60] sm:$0xff] }
  0xfd   : > { %v455_v40 = vpop.f32.mrf.mxu0  ;;  %v511_v42 = vpop.f32.mrf.mxu1 }
  0xfe   : > { %v586_v44 = vmax.f32 %v561_v38, 0.0  ;;  %v456_v45 = vadd.f32 %v998_v20, %v455_v40  ;;  %v600_v46 = vmax.f32 %v575_v39, 0.0  ;;  %v512_v47 = vadd.f32 %v998_v20, %v511_v42 }
  0xff   : > { %v784_v48 = vpop.f32.mrf.mxu0  ;;  %v812_v49 = vpop.f32.mrf.mxu1 }
 0x100   : > { %612 = vst.msk [vmem:[%s1007_s13 + $0x30] sm:$0xff] %vm605_vm3, %v586_v44  ;;  %v562_v50 = vadd.f32 %v537_v41, %v456_v45  ;;  %626 = vst.msk [vmem:[%s1007_s13 + $0xa0] sm:$0xff] %vm605_vm3, %v600_v46  ;;  %v576_v51 = vadd.f32 %v551_v43, %v512_v47  ;;  %v543_v41 = vld [vmem:[%s993_s8 + $0x68] sm:$0xff] }
 0x101   : > { %v460_v52 = vpop.f32.mrf.mxu0  ;;  %v516_v54 = vpop.f32.mrf.mxu1 }
 0x102   : > { %v587_v56 = vmax.f32 %v562_v50, 0.0  ;;  %v461_v57 = vadd.f32 %v998_v20, %v460_v52  ;;  %v601_v58 = vmax.f32 %v576_v51, 0.0  ;;  %v517_v59 = vadd.f32 %v998_v20, %v516_v54 }
 0x103   : > { %v787_v60 = vpop.f32.mrf.mxu0  ;;  %v815_v61 = vpop.f32.mrf.mxu1 }
 0x104   : > { %613 = vst.msk [vmem:[%s1007_s13 + $0x38] sm:$0xff] %vm605_vm3, %v587_v56  ;;  %v563_v62 = vadd.f32 %v538_v53, %v461_v57  ;;  %627 = vst.msk [vmem:[%s1007_s13 + $0xa8] sm:$0xff] %vm605_vm3, %v601_v58  ;;  %v577_v63 = vadd.f32 %v552_v55, %v517_v59 }
 0x105   : > { %v463_v0 = vpop.f32.mrf.mxu0  ;;  %v519_v2 = vpop.f32.mrf.mxu1 }
 0x106   : > { %v588_v4 = vmax.f32 %v563_v62, 0.0  ;;  %v464_v5 = vadd.f32 %v998_v20, %v463_v0  ;;  %v602_v6 = vmax.f32 %v577_v63, 0.0  ;;  %v520_v7 = vadd.f32 %v998_v20, %v519_v2 }
 0x107   : > { %v788_v8 = vpop.f32.mrf.mxu0  ;;  %v816_v9 = vpop.f32.mrf.mxu1 }
 0x108   : > { %614 = vst.msk [vmem:[%s1007_s13 + $0x40] sm:$0xff] %vm605_vm3, %v588_v4  ;;  %v564_v10 = vadd.f32 %v539_v1, %v464_v5  ;;  %628 = vst.msk [vmem:[%s1007_s13 + $0xb0] sm:$0xff] %vm605_vm3, %v602_v6  ;;  %v578_v11 = vadd.f32 %v553_v3, %v520_v7 }
 0x109   : > { %v468_v12 = vpop.f32.mrf.mxu0  ;;  %v524_v14 = vpop.f32.mrf.mxu1 }
 0x10a   : > { %v589_v16 = vmax.f32 %v564_v10, 0.0  ;;  %v469_v17 = vadd.f32 %v998_v20, %v468_v12  ;;  %v603_v18 = vmax.f32 %v578_v11, 0.0  ;;  %v525_v19 = vadd.f32 %v998_v20, %v524_v14 }
 0x10b   : > { %v791_v21 = vpop.f32.mrf.mxu0  ;;  %v819_v22 = vpop.f32.mrf.mxu1 }
 0x10c   : > { %615 = vst.msk [vmem:[%s1007_s13 + $0x48] sm:$0xff] %vm605_vm3, %v589_v16  ;;  %v565_v23 = vadd.f32 %v540_v13, %v469_v17  ;;  %629 = vst.msk [vmem:[%s1007_s13 + $0xb8] sm:$0xff] %vm605_vm3, %v603_v18  ;;  %v579_v24 = vadd.f32 %v554_v15, %v525_v19 }
 0x10d   : > { %v471_v25 = vpop.f32.mrf.mxu0  ;;  %v527_v27 = vpop.f32.mrf.mxu1 }
 0x10e   : > { %v590_v28 = vmax.f32 %v565_v23, 0.0  ;;  %v472_v29 = vadd.f32 %v998_v20, %v471_v25  ;;  %v604_v30 = vmax.f32 %v579_v24, 0.0 }
 0x10f   : > { %v792_v31 = vpop.f32.mrf.mxu0  ;;  %v820_v32 = vpop.f32.mrf.mxu1 }
 0x110   : > { %616 = vst.msk [vmem:[%s1007_s13 + $0x50] sm:$0xff] %vm605_vm3, %v590_v28  ;;  %v566_v33 = vadd.f32 %v541_v26, %v472_v29 }
 0x111   : > { %631 = vst.msk [vmem:[%s1007_s13 + $0xc0] sm:$0xf] %vm630_vm4, %v604_v30  ;;  %v476_v34 = vpop.f32.mrf.mxu0 }
 0x112   : > { %v591_v36 = vmax.f32 %v566_v33, 0.0  ;;  %v477_v37 = vadd.f32 %v998_v20, %v476_v34 }
 0x113   : > { %v795_v38 = vpop.f32.mrf.mxu0 }
 0x114   : > { %617 = vst.msk [vmem:[%s1007_s13 + $0x58] sm:$0xff] %vm605_vm3, %v591_v36  ;;  %v567_v39 = vadd.f32 %v542_v35, %v477_v37 }
 0x115   : > { %v479_v40 = vpop.f32.mrf.mxu0 }
 0x116   : > { %v592_v42 = vmax.f32 %v567_v39, 0.0  ;;  %v480_v43 = vadd.f32 %v998_v20, %v479_v40 }
 0x117   : > { %v796_v44 = vpop.f32.mrf.mxu0 }
 0x118   : > { %618 = vst.msk [vmem:[%s1007_s13 + $0x60] sm:$0xff] %vm605_vm3, %v592_v42  ;;  %v568_v45 = vadd.f32 %v543_v41, %v480_v43 }
 0x11a   : > { %v593_v46 = vmax.f32 %v568_v45, 0.0 }
 0x11c   : > { %619 = vst.msk [vmem:[%s1007_s13 + $0x68] sm:$0xff] %vm605_vm3, %v593_v46 }
 0x11d PF: > { %s14_s15 = sadd.s32 1, %s867_s15  }
 0x11e   : > { %p11_p4 = scmp.ge.s32.totalorder %s14_s15, 4  }
 0x120   :  { %13 = sbr.rel (!%p11_p4) target bundleno = 1 (0x1), region = 69 }

// kernel: npi_forward.77
= control target key start
LH: loop header
LB: loop body
LE: loop exit
PB: predicated region body
PF: predicated region fallthrough
CT: control target
= control target key end

     0   :  { %s438_s12 = smov 0   ;;  %s473_s0 = inlined_call_operand.vmem [shape: bf16[2,25,72], index: 0, kind: input, shape index: {}]   ;;  %s474_s1 = inlined_call_operand.vmem [shape: bf16[72,4], index: 1, kind: input, shape index: {}]   ;;  %s475_s2 = inlined_call_operand.vmem [shape: f32[1,4], index: 2, kind: input, shape index: {}]   ;;  %s476_s3 = inlined_call_operand.vmem [shape: f32[2,25,4], index: 3, kind: output, shape index: {}]  }
   0x1 LB: > { %s350_s13 = sadd.s32 4294967295, %s416_s12   ;;  %p354_p0 = scmp.ge.s32.totalorder %s416_s12, 1  ;;  %s416_s12 = sphi %s438_s12, %s13_s12  }
   0x2   : > { %p137_p1 = scmp.lt.s32.totalorder %s416_s12, 3 }
   0x4   : > { %p138_p2 = pnand %p354_p0, %p137_p1 }
   0x5   : > { %p161_p3 = scmp.lt.s32.totalorder (!%p138_p2), %s350_s13, 1 }
   0x6   : > { %141 = sbr.rel (%p138_p2) target bundleno = 234 (0xea), region = 32 }
   0xb   : > { %v403_v0 = vld [vmem:[%s474_s1 + $0x20] ss:$0 sps:$4 sm:$0xff]   ;;  %vm236_vm0 = vcmask 1043456   ;;  %v404_v1 = vld [vmem:[%s474_s1 + $0x18] sm:$0xff]   ;;  %v405_v3 = vld [vmem:[%s474_s1 + $0x10] sm:$0xff]   ;;  %s478_s13 = smov (!%p161_p3, %s350_s13), 1 }
   0xc   : > { %394 = vmatprep.subr.msk.bf16.mxu0 %vm236_vm0, %v403_v0  ;;  %v238_v2 = vsel %vm236_vm0, %v403_v0, 0  ;;  %s371_s20 = sshll.u32 %s478_s13, 4  ;;  %v406_v4 = vld [vmem:[%s474_s1 + $0x8] sm:$0xff]   ;;  %vm229_vm1 = vcmask 588800   ;;  %v407_v6 = vld [vmem:[%s474_s1] sm:$0xff]   ;;  %s372_s28 = sshll.u32 %s478_s13, 5 }
   0xd   : > { %381 = vmatpush3.bf16.msra.mxu0 %v238_v2  ;;  %s165_s25 = scalar_lea.vmem %s473_s0, %s371_s20  ;;  %v359_v8 = vld [vmem:[%s475_s2] ss:$0 sm:$0xff]  ;;  %s170_s6 = scalar_lea.vmem %s476_s3, %s372_s28  ;;  %vm289_vm2 = vcmask 31744   ;;  %vm293_vm3 = vcmask 24576  }
   0xe   : > { %382 = vmatprep.subr.bf16.mxu0 %v404_v1  ;;  %v408_v5 = vld [vmem:[%s165_s25] sm:$0xff]   ;;  %v409_v7 = vld [vmem:[%s165_s25 + $0x8] sm:$0x1f]  }
   0xf   : > { %390 = vmatprep.mubr.msk.bf16.mxu0 %vm229_vm1, %v408_v5 }
  0x11   : > { %383 = vmatpush3.bf16.msra.mxu0 %v404_v1 }
  0x12   : > { %384 = vmatprep.subr.bf16.mxu0 %v405_v3 }
  0x15   : > { %385 = vmatpush3.bf16.msra.mxu0 %v405_v3 }
  0x16   : > { %386 = vmatprep.subr.bf16.mxu0 %v406_v4 }
  0x19   : > { %387 = vmatpush3.bf16.msra.mxu0 %v406_v4 }
  0x1a   : > { %388 = vmatprep.subr.bf16.mxu0 %v407_v6 }
  0x1d   : > { %389 = vmatpush3.bf16.msra.mxu0 %v407_v6 }
  0x20   : > { %391 = vmatmul.mubr.msk.bf16.vlgmr.msra.gmra.mxu0 %vm229_vm1, %v409_v7 }
  0xe0   : > { %v392_v9 = vpop.f32.mrf.mxu0 }
  0xe1   : > { %v283_v10 = vadd.f32 %v392_v9, %v359_v8 }
  0xe2   : > { %v274_v11 = vpop.f32.mrf.mxu0 }
  0xe3   : > { %292 = vst.msk [vmem:[%s170_s6 + $0x10] sm:$0xff] %vm289_vm2, %v283_v10  ;;  %v275_v12 = vadd.f32 %v359_v8, %v274_v11 }
  0xe4   : > { %v393_v13 = vpop.f32.mrf.mxu0 }
  0xe5   : > { %290 = vst.msk [vmem:[%s170_s6] sm:$0xff] %vm289_vm2, %v275_v12  ;;  %v286_v14 = vadd.f32 %v393_v13, %v359_v8 }
  0xe6   : > { %v277_v15 = vpop.f32.mrf.mxu0 }
  0xe7   : > { %294 = vst.msk [vmem:[%s170_s6 + $0x18] sm:$0x1] %vm293_vm3, %v286_v14  ;;  %v278_v16 = vadd.f32 %v359_v8, %v277_v15 }
  0xe9   : > { %291 = vst.msk [vmem:[%s170_s6 + $0x8] sm:$0xff] %vm289_vm2, %v278_v16 }
  0xea PF: > { %s13_s12 = sadd.s32 1, %s416_s12  }
  0xeb   : > { %p10_p4 = scmp.ge.s32.totalorder %s13_s12, 4  }
  0xed   :  { %12 = sbr.rel (!%p10_p4) target bundleno = 1 (0x1), region = 62 }

// kernel: npi_forward.78
= control target key start
LH: loop header
LB: loop body
LE: loop exit
PB: predicated region body
PF: predicated region fallthrough
CT: control target
= control target key end

     0   :  { %vm374_vm0 = vcmask 1041408   ;;  %v695_v3 = vmov 0   ;;  %vm370_vm1 = vcmask 818176   ;;  %s907_s1 = inlined_call_operand.vmem [shape: bf16[100,1024], index: 1, kind: input, shape index: {}]   ;;  %s908_s0 = inlined_call_operand.vmem [shape: bf16[2,100], index: 0, kind: input, shape index: {}]   ;;  %s909_s2 = inlined_call_operand.vmem [shape: f32[1,1024], index: 2, kind: input, shape index: {}]   ;;  %s910_s3 = inlined_call_operand.vmem [shape: f32[2,1024], index: 3, kind: output, shape index: {}]  }
   0x1   :  { %v64_v0 = vld [vmem:[%s907_s1 + $0x180] sm:$0x33]  ;;  %v65_v1 = vld [vmem:[%s907_s1 + $0x188] sm:$0x33]  ;;  %431 = vmatprep.mubr.bf16.mxu0 %v695_v3  ;;  %472 = vmatprep.mubr.bf16.mxu1 %v695_v3  ;;  %v66_v55 = vld [vmem:[%s907_s1 + $0x190] sm:$0x33] }
   0x2   :  { %v56_v2 = vld [vmem:[%s907_s1 + $0x140] sm:$0xff]  ;;  %v670_v4 = vcombine.high %v64_v0, %v64_v0  ;;  %v672_v5 = vcombine.high %v65_v1, %v65_v1  ;;  %v669_v6 = vcombine.low %v64_v0, %v64_v0  ;;  %v671_v7 = vcombine.low %v65_v1, %v65_v1  ;;  %v57_v9 = vld [vmem:[%s907_s1 + $0x148] sm:$0xff]  ;;  %v67_v56 = vld [vmem:[%s907_s1 + $0x198] sm:$0x33] }
   0x3   :  { %v60_v8 = vld [vmem:[%s907_s1 + $0x160] sm:$0xff]  ;;  %v61_v10 = vld [vmem:[%s907_s1 + $0x168] sm:$0xff]  ;;  %v674_v59 = vcombine.high %v66_v55, %v66_v55  ;;  %v676_v60 = vcombine.high %v67_v56, %v67_v56  ;;  %v673_v61 = vcombine.low %v66_v55, %v66_v55  ;;  %v675_v62 = vcombine.low %v67_v56, %v67_v56  ;;  %v58_v63 = vld [vmem:[%s907_s1 + $0x150] sm:$0xff] }
   0x4   :  { %v662_v11 = vcombine.high %v56_v2, %v60_v8  ;;  %v664_v12 = vcombine.high %v57_v9, %v61_v10  ;;  %v48_v13 = vld [vmem:[%s907_s1 + $0x100] sm:$0xff]  ;;  %v49_v15 = vld [vmem:[%s907_s1 + $0x108] sm:$0xff]  ;;  %677 = vmatprep.subr.msk.bf16.mxu0 %vm374_vm0, %v670_v4  ;;  %679 = vmatprep.subr.msk.bf16.mxu1 %vm374_vm0, %v672_v5  ;;  %v376_v16 = vsel %vm374_vm0, %v669_v6, 0  ;;  %v382_v17 = vsel %vm374_vm0, %v671_v7, 0  ;;  %v62_v0 = vld [vmem:[%s907_s1 + $0x170] sm:$0xff] }
   0x5   :  { %v52_v14 = vld [vmem:[%s907_s1 + $0x120] sm:$0xff]  ;;  %v53_v18 = vld [vmem:[%s907_s1 + $0x128] sm:$0xff]  ;;  %402 = vmatpush1.bf16.msra.mxu0 %v376_v16  ;;  %443 = vmatpush1.bf16.msra.mxu1 %v382_v17  ;;  %v661_v19 = vcombine.low %v56_v2, %v60_v8  ;;  %v663_v20 = vcombine.low %v57_v9, %v61_v10  ;;  %v59_v1 = vld [vmem:[%s907_s1 + $0x158] sm:$0xff]  ;;  %v388_v5 = vsel %vm374_vm0, %v673_v61, 0  ;;  %v394_v6 = vsel %vm374_vm0, %v675_v62, 0 }
   0x6   :  { %403 = vmatprep.subr.bf16.mxu0 %v662_v11  ;;  %444 = vmatprep.subr.bf16.mxu1 %v664_v12  ;;  %v654_v21 = vcombine.high %v48_v13, %v52_v14  ;;  %v656_v22 = vcombine.high %v49_v15, %v53_v18  ;;  %v40_v23 = vld [vmem:[%s907_s1 + $0xc0] sm:$0xff]  ;;  %v41_v25 = vld [vmem:[%s907_s1 + $0xc8] sm:$0xff]  ;;  %v653_v27 = vcombine.low %v48_v13, %v52_v14  ;;  %v63_v2 = vld [vmem:[%s907_s1 + $0x178] sm:$0xff] }
   0x7   :  { %v44_v24 = vld [vmem:[%s907_s1 + $0xe0] sm:$0xff]  ;;  %v45_v26 = vld [vmem:[%s907_s1 + $0xe8] sm:$0xff]  ;;  %v655_v28 = vcombine.low %v49_v15, %v53_v18  ;;  %v666_v7 = vcombine.high %v58_v63, %v62_v0  ;;  %v668_v8 = vcombine.high %v59_v1, %v63_v2  ;;  %v50_v9 = vld [vmem:[%s907_s1 + $0x110] sm:$0xff]  ;;  %v665_v13 = vcombine.low %v58_v63, %v62_v0 }
   0x8   :  { %v646_v29 = vcombine.high %v40_v23, %v44_v24  ;;  %v648_v30 = vcombine.high %v41_v25, %v45_v26  ;;  %v32_v31 = vld [vmem:[%s907_s1 + $0x80] sm:$0xff]  ;;  %v33_v33 = vld [vmem:[%s907_s1 + $0x88] sm:$0xff]  ;;  %v645_v35 = vcombine.low %v40_v23, %v44_v24  ;;  %v647_v36 = vcombine.low %v41_v25, %v45_v26  ;;  %v54_v10 = vld [vmem:[%s907_s1 + $0x130] sm:$0xff] }
   0x9   :  { %404 = vmatpush1.bf16.msra.mxu0 %v661_v19  ;;  %445 = vmatpush1.bf16.msra.mxu1 %v663_v20  ;;  %v36_v32 = vld [vmem:[%s907_s1 + $0xa0] sm:$0xff]  ;;  %v37_v34 = vld [vmem:[%s907_s1 + $0xa8] sm:$0xff]  ;;  %v51_v11 = vld [vmem:[%s907_s1 + $0x118] sm:$0xff]  ;;  %v667_v14 = vcombine.low %v59_v1, %v63_v2  ;;  %v658_v15 = vcombine.high %v50_v9, %v54_v10 }
   0xa   :  { %405 = vmatprep.subr.bf16.mxu0 %v654_v21  ;;  %446 = vmatprep.subr.bf16.mxu1 %v656_v22  ;;  %v638_v37 = vcombine.high %v32_v31, %v36_v32  ;;  %v640_v38 = vcombine.high %v33_v33, %v37_v34  ;;  %v24_v39 = vld [vmem:[%s907_s1 + $0x40] sm:$0xff]  ;;  %v25_v41 = vld [vmem:[%s907_s1 + $0x48] sm:$0xff]  ;;  %v637_v43 = vcombine.low %v32_v31, %v36_v32  ;;  %v55_v12 = vld [vmem:[%s907_s1 + $0x138] sm:$0xff] }
   0xb   :  { %v28_v40 = vld [vmem:[%s907_s1 + $0x60] sm:$0xff]  ;;  %v29_v42 = vld [vmem:[%s907_s1 + $0x68] sm:$0xff]  ;;  %v639_v44 = vcombine.low %v33_v33, %v37_v34  ;;  %v660_v16 = vcombine.high %v51_v11, %v55_v12  ;;  %v42_v17 = vld [vmem:[%s907_s1 + $0xd0] sm:$0xff]  ;;  %v657_v21 = vcombine.low %v50_v9, %v54_v10  ;;  %v659_v22 = vcombine.low %v51_v11, %v55_v12 }
   0xc   :  { %v630_v45 = vcombine.high %v24_v39, %v28_v40  ;;  %v632_v46 = vcombine.high %v25_v41, %v29_v42  ;;  %v16_v47 = vld [vmem:[%s907_s1] sm:$0xff]  ;;  %v17_v49 = vld [vmem:[%s907_s1 + $0x8] sm:$0xff]  ;;  %v629_v51 = vcombine.low %v24_v39, %v28_v40  ;;  %v631_v52 = vcombine.low %v25_v41, %v29_v42  ;;  %v46_v18 = vld [vmem:[%s907_s1 + $0xf0] sm:$0xff] }
   0xd   :  { %406 = vmatpush1.bf16.msra.mxu0 %v653_v27  ;;  %447 = vmatpush1.bf16.msra.mxu1 %v655_v28  ;;  %v20_v48 = vld [vmem:[%s907_s1 + $0x20] sm:$0xff]  ;;  %v21_v50 = vld [vmem:[%s907_s1 + $0x28] sm:$0xff]  ;;  %v43_v19 = vld [vmem:[%s907_s1 + $0xd8] sm:$0xff]  ;;  %v650_v23 = vcombine.high %v42_v17, %v46_v18  ;;  %v649_v28 = vcombine.low %v42_v17, %v46_v18 }
   0xe   :  { %407 = vmatprep.subr.bf16.mxu0 %v646_v29  ;;  %448 = vmatprep.subr.bf16.mxu1 %v648_v30  ;;  %v622_v53 = vcombine.high %v16_v47, %v20_v48  ;;  %v624_v54 = vcombine.high %v17_v49, %v21_v50  ;;  %v621_v57 = vcombine.low %v16_v47, %v20_v48  ;;  %v822_v4 = vld [vmem:[%s908_s0] sm:$0x1]  ;;  %v47_v20 = vld [vmem:[%s907_s1 + $0xf8] sm:$0xff]  ;;  %v34_v25 = vld [vmem:[%s907_s1 + $0x90] sm:$0xff] }
   0xf   :  { %v623_v58 = vcombine.low %v17_v49, %v21_v50  ;;  %v652_v24 = vcombine.high %v43_v19, %v47_v20  ;;  %v38_v26 = vld [vmem:[%s907_s1 + $0xb0] sm:$0xff]  ;;  %v39_v27 = vld [vmem:[%s907_s1 + $0xb8] sm:$0xff]  ;;  %v651_v29 = vcombine.low %v43_v19, %v47_v20  ;;  %v70_v50 = vlaneseq }
  0x10   :  { %v642_v30 = vcombine.high %v34_v25, %v38_v26  ;;  %v26_v32 = vld [vmem:[%s907_s1 + $0x50] sm:$0xff]  ;;  %v27_v34 = vld [vmem:[%s907_s1 + $0x58] sm:$0xff] }
  0x11   :  { %408 = vmatpush1.bf16.msra.mxu0 %v645_v35  ;;  %449 = vmatpush1.bf16.msra.mxu1 %v647_v36  ;;  %v30_v33 = vld [vmem:[%s907_s1 + $0x70] sm:$0xff]  ;;  %v31_v35 = vld [vmem:[%s907_s1 + $0x78] sm:$0xff]  ;;  %v641_v36 = vcombine.low %v34_v25, %v38_v26 }
  0x12   :  { %409 = vmatprep.subr.bf16.mxu0 %v638_v37  ;;  %450 = vmatprep.subr.bf16.mxu1 %v640_v38  ;;  %v634_v38 = vcombine.high %v26_v32, %v30_v33  ;;  %v636_v39 = vcombine.high %v27_v34, %v31_v35  ;;  %v18_v40 = vld [vmem:[%s907_s1 + $0x10] sm:$0xff]  ;;  %v19_v42 = vld [vmem:[%s907_s1 + $0x18] sm:$0xff] }
  0x13   :  { %v22_v41 = vld [vmem:[%s907_s1 + $0x30] sm:$0xff] }
  0x14   :  { %v625_v48 = vcombine.low %v18_v40, %v22_v41 }
  0x15   :  { %410 = vmatpush1.bf16.msra.mxu0 %v637_v43  ;;  %451 = vmatpush1.bf16.msra.mxu1 %v639_v44  ;;  %v23_v43 = vld [vmem:[%s907_s1 + $0x38] sm:$0xff]  ;;  %v633_v44 = vcombine.low %v26_v32, %v30_v33 }
  0x16   :  { %411 = vmatprep.subr.bf16.mxu0 %v630_v45  ;;  %452 = vmatprep.subr.bf16.mxu1 %v632_v46  ;;  %v635_v45 = vcombine.low %v27_v34, %v31_v35  ;;  %v626_v46 = vcombine.high %v18_v40, %v22_v41  ;;  %v628_v47 = vcombine.high %v19_v42, %v23_v43 }
  0x17   :  { %v627_v49 = vcombine.low %v19_v42, %v23_v43 }
  0x19   :  { %412 = vmatpush1.bf16.msra.mxu0 %v629_v51  ;;  %453 = vmatpush1.bf16.msra.mxu1 %v631_v52  ;;  %v71_v51 = vshrl.u32 %v70_v50, 7 }
  0x1a   :  { %413 = vmatprep.subr.bf16.mxu0 %v622_v53  ;;  %454 = vmatprep.subr.bf16.mxu1 %v624_v54  ;;  %v68_v54 = vld [vmem:[%s909_s2] sm:$0xff] }
  0x1b   :  { %v72_v52 = vsub.s32 0, %v71_v51  ;;  %v80_v53 = vsub.s32 2, %v71_v51  ;;  %v76_v55 = vsub.s32 1, %v71_v51  ;;  %v84_v56 = vsub.s32 3, %v71_v51 }
  0x1c   :  { %v92_v25 = vsub.s32 5, %v71_v51  ;;  %v100_v26 = vsub.s32 7, %v71_v51 }
  0x1d   :  { %414 = vmatpush1.bf16.msra.mxu0 %v621_v57  ;;  %455 = vmatpush1.bf16.msra.mxu1 %v623_v58  ;;  %v73_v57 = vrot.slane %v68_v54, %v72_v52  ;;  %v81_v58 = vrot.slane %v68_v54, %v80_v53  ;;  %v77_v61 = vrot.slane %v68_v54, %v76_v55 }
  0x1e   :  { %681 = vmatprep.subr.msk.bf16.mxu0 %vm374_vm0, %v674_v59  ;;  %683 = vmatprep.subr.msk.bf16.mxu1 %vm374_vm0, %v676_v60  ;;  %v696_v59 = vmov 1983009808   ;;  %v85_v62 = vrot.slane %v68_v54, %v84_v56 }
  0x1f   :  { %v582_v60 = vunpack.c.l.s4 %v696_v59 }
  0x20   :  { %678 = vmatmul.mubr.msk.bf16.vlgmr.msra.gmra.mxu0 %vm370_vm1, %v822_v4  ;;  %680 = vmatmul.mubr.msk.bf16.vlgmr.msra.gmra.mxu1 %vm370_vm1, %v822_v4 }
  0x21   :  { %484 = vmatpush1.bf16.msra.mxu0 %v388_v5  ;;  %525 = vmatpush1.bf16.msra.mxu1 %v394_v6 }
  0x22   :  { %485 = vmatprep.subr.bf16.mxu0 %v666_v7  ;;  %526 = vmatprep.subr.bf16.mxu1 %v668_v8 }
  0x23   :  { %513 = vmatprep.mubr.bf16.mxu0 %v695_v3  ;;  %554 = vmatprep.mubr.bf16.mxu1 %v695_v3  ;;  %v35_v3 = vld [vmem:[%s907_s1 + $0x98] sm:$0xff] }
  0x24   :  { %v644_v31 = vcombine.high %v35_v3, %v39_v27  ;;  %v643_v37 = vcombine.low %v35_v3, %v39_v27 }
  0x25   :  { %486 = vmatpush1.bf16.msra.mxu0 %v665_v13  ;;  %527 = vmatpush1.bf16.msra.mxu1 %v667_v14 }
  0x26   :  { %487 = vmatprep.subr.bf16.mxu0 %v658_v15  ;;  %528 = vmatprep.subr.bf16.mxu1 %v660_v16 }
  0x29   :  { %488 = vmatpush1.bf16.msra.mxu0 %v657_v21  ;;  %529 = vmatpush1.bf16.msra.mxu1 %v659_v22 }
  0x2a   :  { %489 = vmatprep.subr.bf16.mxu0 %v650_v23  ;;  %530 = vmatprep.subr.bf16.mxu1 %v652_v24  ;;  %v88_v23 = vsub.s32 4, %v71_v51  ;;  %v96_v24 = vsub.s32 6, %v71_v51 }
  0x2c   :  { %v89_v3 = vrot.slane %v68_v54, %v88_v23  ;;  %v97_v27 = vrot.slane %v68_v54, %v96_v24 }
  0x2d   :  { %490 = vmatpush1.bf16.msra.mxu0 %v649_v28  ;;  %531 = vmatpush1.bf16.msra.mxu1 %v651_v29  ;;  %v93_v28 = vrot.slane %v68_v54, %v92_v25  ;;  %v101_v29 = vrot.slane %v68_v54, %v100_v26 }
  0x2e   :  { %491 = vmatprep.subr.bf16.mxu0 %v642_v30  ;;  %532 = vmatprep.subr.bf16.mxu1 %v644_v31 }
  0x31   :  { %492 = vmatpush1.bf16.msra.mxu0 %v641_v36  ;;  %533 = vmatpush1.bf16.msra.mxu1 %v643_v37 }
  0x32   :  { %493 = vmatprep.subr.bf16.mxu0 %v634_v38  ;;  %534 = vmatprep.subr.bf16.mxu1 %v636_v39 }
  0x35   :  { %494 = vmatpush1.bf16.msra.mxu0 %v633_v44  ;;  %535 = vmatpush1.bf16.msra.mxu1 %v635_v45 }
  0x36   :  { %495 = vmatprep.subr.bf16.mxu0 %v626_v46  ;;  %536 = vmatprep.subr.bf16.mxu1 %v628_v47 }
  0x39   :  { %496 = vmatpush1.bf16.msra.mxu0 %v625_v48  ;;  %537 = vmatpush1.bf16.msra.mxu1 %v627_v49 }
  0x3c   :  { %682 = vmatmul.mubr.msk.bf16.vlgmr.msra.gmra.mxu0 %vm370_vm1, %v822_v4  ;;  %684 = vmatmul.mubr.msk.bf16.vlgmr.msra.gmra.mxu1 %vm370_vm1, %v822_v4  ;;  %v583_v4 = vunpack.c.0.s8 %v582_v60 }
  0x3e   :  { %v586_v14 = vsub.s32 %v583_v4, %v71_v51 }
  0xe0   :  { %v433_v63 = vpop.f32.mrf.mxu0  ;;  %v474_v0 = vpop.f32.mrf.mxu1 }
  0xe1   :  { %v434_v1 = vadd.f32 %v433_v63, %v73_v57  ;;  %v475_v2 = vadd.f32 %v474_v0, %v81_v58 }
  0xe2   :  { %v435_v5 = vpop.f32.mrf.mxu0  ;;  %v476_v6 = vpop.f32.mrf.mxu1 }
  0xe3   :  { %v563_v7 = vmax.f32 %v434_v1, 0.0  ;;  %v565_v8 = vmax.f32 %v475_v2, 0.0  ;;  %v436_v9 = vadd.f32 %v435_v5, %v77_v61  ;;  %v477_v10 = vadd.f32 %v476_v6, %v85_v62 }
  0xe4   :  { %v437_v11 = vpop.f32.mrf.mxu0  ;;  %v478_v12 = vpop.f32.mrf.mxu1 }
  0xe5   :  { %v564_v13 = vmax.f32 %v436_v9, 0.0  ;;  %v566_v15 = vmax.f32 %v477_v10, 0.0 }
  0xe6   :  { %v438_v16 = vpop.f32.mrf.mxu0  ;;  %v479_v17 = vpop.f32.mrf.mxu1 }
  0xe7   :  { %v579_v18 = vcombine.low %v563_v7, %v564_v13  ;;  %v580_v19 = vcombine.low %v565_v8, %v566_v15 }
  0xe9   :  { %v587_v20 = vrot.slane %v579_v18, %v586_v14  ;;  %v594_v21 = vrot.slane %v580_v19, %v586_v14 }
  0xeb   :  { %v595_v22 = vcombine.low %v587_v20, %v594_v21 }
  0xed   :  { %615 = vst [vmem:[%s910_s3] sm:$0xff] %v595_v22 }
  0xfc   :  { %v515_v30 = vpop.f32.mrf.mxu0  ;;  %v556_v31 = vpop.f32.mrf.mxu1 }
  0xfd   :  { %v516_v32 = vadd.f32 %v515_v30, %v89_v3  ;;  %v557_v33 = vadd.f32 %v556_v31, %v97_v27 }
  0xfe   :  { %v517_v34 = vpop.f32.mrf.mxu0  ;;  %v558_v35 = vpop.f32.mrf.mxu1 }
  0xff   :  { %v518_v36 = vadd.f32 %v517_v34, %v93_v28  ;;  %v559_v37 = vadd.f32 %v558_v35, %v101_v29  ;;  %v567_v40 = vmax.f32 %v516_v32, 0.0  ;;  %v569_v41 = vmax.f32 %v557_v33, 0.0 }
 0x100   :  { %v519_v38 = vpop.f32.mrf.mxu0  ;;  %v560_v39 = vpop.f32.mrf.mxu1 }
 0x101   :  { %v568_v42 = vmax.f32 %v518_v36, 0.0  ;;  %v570_v43 = vmax.f32 %v559_v37, 0.0 }
 0x102   :  { %v520_v44 = vpop.f32.mrf.mxu0  ;;  %v561_v45 = vpop.f32.mrf.mxu1 }
 0x103   :  { %v596_v46 = vcombine.low %v567_v40, %v568_v42  ;;  %v597_v47 = vcombine.low %v569_v41, %v570_v43 }
 0x105   :  { %v604_v48 = vrot.slane %v596_v46, %v586_v14  ;;  %v611_v49 = vrot.slane %v597_v47, %v586_v14 }
 0x107   :  { %v612_v50 = vcombine.low %v604_v48, %v611_v49 }
 0x109   :  { %616 = vst [vmem:[%s910_s3 + $0x8] sm:$0xff] %v612_v50 }

// kernel: npi_forward.79
= control target key start
LH: loop header
LB: loop body
LE: loop exit
PB: predicated region body
PF: predicated region fallthrough
CT: control target
= control target key end

     0   :  { %v157_v28 = vlaneseq  ;;  %v1012_v36 = vmov 1966171168   ;;  %s1248_s0 = inlined_call_operand.vmem [shape: bf16[2,1024], index: 0, kind: input, shape index: {}]   ;;  %s1249_s1 = inlined_call_operand.vmem [shape: bf16[1024,10], index: 1, kind: input, shape index: {}]   ;;  %s1250_s2 = inlined_call_operand.vmem [shape: f32[1,10], index: 2, kind: input, shape index: {}]   ;;  %s1251_s3 = inlined_call_operand.hbm [shape: f32[2,10], index: 3, kind: output, shape index: {}]  }
   0x1   :  { %v925_v0 = vld [vmem:[%s1249_s1 + $0x78] sm:$0xff]   ;;  %v929_v4 = vld [vmem:[%s1249_s1 + $0x70] sm:$0xff]   ;;  %v933_v8 = vld [vmem:[%s1249_s1 + $0x68] sm:$0xff]   ;;  %v155_v37 = vunpack.c.l.s4 %v1012_v36 }
   0x2   :  { %v926_v1 = vld [vmem:[%s1249_s1 + $0xf8] sm:$0xff]   ;;  %835 = vmatprep.subr.bf16.mxu0 %v925_v0  ;;  %v930_v5 = vld [vmem:[%s1249_s1 + $0xf0] sm:$0xff]   ;;  %v934_v9 = vld [vmem:[%s1249_s1 + $0xe8] sm:$0xff]   ;;  %v158_v33 = vshrl.u32 %v157_v28, 7 }
   0x3   :  { %v927_v2 = vld [vmem:[%s1249_s1 + $0x38] sm:$0xff]   ;;  %857 = vmatprep.subr.bf16.mxu1 %v926_v1  ;;  %v931_v6 = vld [vmem:[%s1249_s1 + $0x30] sm:$0xff]   ;;  %v935_v10 = vld [vmem:[%s1249_s1 + $0x28] sm:$0xff]   ;;  %v156_v40 = vunpack.c.0.s8 %v155_v37 }
   0x4   :  { %v928_v3 = vld [vmem:[%s1249_s1 + $0xb8] sm:$0xff]   ;;  %836 = vmatpush3.bf16.msra.mxu0 %v927_v2  ;;  %v932_v7 = vld [vmem:[%s1249_s1 + $0xb0] sm:$0xff]   ;;  %v936_v11 = vld [vmem:[%s1249_s1 + $0xa8] sm:$0xff]  }
   0x5   :  { %858 = vmatpush3.bf16.msra.mxu1 %v928_v3  ;;  %837 = vmatprep.subr.bf16.mxu0 %v929_v4  ;;  %v937_v12 = vld [vmem:[%s1249_s1 + $0x60] sm:$0xff]   ;;  %v941_v16 = vld [vmem:[%s1249_s1 + $0x58] sm:$0xff]   ;;  %v945_v20 = vld [vmem:[%s1249_s1 + $0x50] sm:$0xff]   ;;  %v1139_v41 = vsub.s32 %v156_v40, %v158_v33 }
   0x6   :  { %859 = vmatprep.subr.bf16.mxu1 %v930_v5  ;;  %v938_v13 = vld [vmem:[%s1249_s1 + $0xe0] sm:$0xff]   ;;  %v942_v17 = vld [vmem:[%s1249_s1 + $0xd8] sm:$0xff]   ;;  %v946_v21 = vld [vmem:[%s1249_s1 + $0xd0] sm:$0xff]  }
   0x7   :  { %v939_v14 = vld [vmem:[%s1249_s1 + $0x20] sm:$0xff]   ;;  %v943_v18 = vld [vmem:[%s1249_s1 + $0x18] sm:$0xff]   ;;  %v947_v22 = vld [vmem:[%s1249_s1 + $0x10] sm:$0xff]  }
   0x8   :  { %838 = vmatpush3.bf16.msra.mxu0 %v931_v6  ;;  %v940_v15 = vld [vmem:[%s1249_s1 + $0xa0] sm:$0xff]   ;;  %v944_v19 = vld [vmem:[%s1249_s1 + $0x98] sm:$0xff]   ;;  %v948_v23 = vld [vmem:[%s1249_s1 + $0x90] sm:$0xff]  }
   0x9   :  { %860 = vmatpush3.bf16.msra.mxu1 %v932_v7  ;;  %839 = vmatprep.subr.bf16.mxu0 %v933_v8  ;;  %v949_v24 = vld [vmem:[%s1249_s1 + $0x48] sm:$0xff]   ;;  %v953_v29 = vld [vmem:[%s1249_s1 + $0x40] sm:$0xff]   ;;  %v958_v35 = vld [vmem:[%s1249_s1 + $0x178] sm:$0xff]  }
   0xa   :  { %861 = vmatprep.subr.bf16.mxu1 %v934_v9  ;;  %v950_v25 = vld [vmem:[%s1249_s1 + $0xc8] sm:$0xff]   ;;  %v954_v30 = vld [vmem:[%s1249_s1 + $0xc0] sm:$0xff]   ;;  %v959_v38 = vld [vmem:[%s1249_s1 + $0x1f8] sm:$0xff]  }
   0xb   :  { %v951_v26 = vld [vmem:[%s1249_s1 + $0x8] sm:$0xff]   ;;  %v955_v31 = vld [vmem:[%s1249_s1] sm:$0xff]   ;;  %v960_v48 = vld [vmem:[%s1249_s1 + $0x138] sm:$0xff]  }
   0xc   :  { %840 = vmatpush3.bf16.msra.mxu0 %v935_v10  ;;  %v952_v27 = vld [vmem:[%s1249_s1 + $0x88] sm:$0xff]   ;;  %v956_v32 = vld [vmem:[%s1249_s1 + $0x80] sm:$0xff]   ;;  %v962_v51 = vld [vmem:[%s1249_s1 + $0x170] sm:$0xff]  }
   0xd   :  { %862 = vmatpush3.bf16.msra.mxu1 %v936_v11  ;;  %841 = vmatprep.subr.bf16.mxu0 %v937_v12  ;;  %v16_v34 = vld [vmem:[%s1248_s0] sm:$0xff]  ;;  %v961_v53 = vld [vmem:[%s1249_s1 + $0x1b8] sm:$0xff]   ;;  %v963_v54 = vld [vmem:[%s1249_s1 + $0x1f0] sm:$0xff]  }
   0xe   :  { %863 = vmatprep.subr.bf16.mxu1 %v938_v13  ;;  %v153_v39 = vcombine.high %v16_v34, %v16_v34  ;;  %v160_v42 = vrot.slane %v16_v34, %v1139_v41  ;;  %v964_v56 = vld [vmem:[%s1249_s1 + $0x130] sm:$0xff]   ;;  %v966_v57 = vld [vmem:[%s1249_s1 + $0x168] sm:$0xff]   ;;  %v970_v61 = vld [vmem:[%s1249_s1 + $0x160] sm:$0xff]  }
   0xf   :  { %v965_v58 = vld [vmem:[%s1249_s1 + $0x1b0] sm:$0xff]   ;;  %v967_v59 = vld [vmem:[%s1249_s1 + $0x1e8] sm:$0xff]   ;;  %v971_v63 = vld [vmem:[%s1249_s1 + $0x1e0] sm:$0xff]  }
  0x10   :  { %842 = vmatpush3.bf16.msra.mxu0 %v939_v14  ;;  %v1143_v43 = vrot.slane %v153_v39, %v1139_v41  ;;  %v168_v44 = vcombine.high %v160_v42, %v160_v42  ;;  %v176_v45 = vrot.slane %v160_v42, %v1139_v41  ;;  %v968_v60 = vld [vmem:[%s1249_s1 + $0x128] sm:$0xff]   ;;  %v972_v0 = vld [vmem:[%s1249_s1 + $0x120] sm:$0xff]   ;;  %v974_v1 = vld [vmem:[%s1249_s1 + $0x158] sm:$0xff]  }
  0x11   :  { %864 = vmatpush3.bf16.msra.mxu1 %v940_v15  ;;  %843 = vmatprep.subr.bf16.mxu0 %v941_v16  ;;  %v969_v62 = vld [vmem:[%s1249_s1 + $0x1a8] sm:$0xff]   ;;  %v973_v2 = vld [vmem:[%s1249_s1 + $0x1a0] sm:$0xff]   ;;  %v975_v3 = vld [vmem:[%s1249_s1 + $0x1d8] sm:$0xff]  }
  0x12   :  { %865 = vmatprep.subr.bf16.mxu1 %v942_v17  ;;  %v169_v46 = vcombine.high %v1143_v43, %v1143_v43  ;;  %v190_v47 = vrot.slane %v168_v44, %v1139_v41  ;;  %v198_v50 = vcombine.high %v176_v45, %v176_v45  ;;  %v976_v4 = vld [vmem:[%s1249_s1 + $0x118] sm:$0xff]   ;;  %v978_v5 = vld [vmem:[%s1249_s1 + $0x150] sm:$0xff]   ;;  %v982_v9 = vld [vmem:[%s1249_s1 + $0x148] sm:$0xff]  }
  0x13   :  { %v977_v6 = vld [vmem:[%s1249_s1 + $0x198] sm:$0xff]   ;;  %v979_v7 = vld [vmem:[%s1249_s1 + $0x1d0] sm:$0xff]  }
  0x14   :  { %844 = vmatpush3.bf16.msra.mxu0 %v943_v18  ;;  %v197_v49 = vrot.slane %v169_v46, %v1139_v41  ;;  %626 = vmatprep.mubr.bf16.mxu0 %v190_v47  ;;  %v200_v52 = vcombine.high %v190_v47, %v190_v47  ;;  %v980_v8 = vld [vmem:[%s1249_s1 + $0x110] sm:$0xff]  }
  0x15   :  { %866 = vmatpush3.bf16.msra.mxu1 %v944_v19  ;;  %845 = vmatprep.subr.bf16.mxu0 %v945_v20 }
  0x16   :  { %867 = vmatprep.subr.bf16.mxu1 %v946_v21  ;;  %v201_v55 = vcombine.high %v197_v49, %v197_v49  ;;  %666 = vmatprep.mubr.bf16.mxu1 %v200_v52 }
  0x18   :  { %846 = vmatpush3.bf16.msra.mxu0 %v947_v22 }
  0x19   :  { %868 = vmatpush3.bf16.msra.mxu1 %v948_v23  ;;  %847 = vmatprep.subr.bf16.mxu0 %v949_v24 }
  0x1a   :  { %869 = vmatprep.subr.bf16.mxu1 %v950_v25 }
  0x1c   :  { %848 = vmatpush3.bf16.msra.mxu0 %v951_v26 }
  0x1d   :  { %870 = vmatpush3.bf16.msra.mxu1 %v952_v27  ;;  %849 = vmatprep.subr.bf16.mxu0 %v953_v29 }
  0x1e   :  { %871 = vmatprep.subr.bf16.mxu1 %v954_v30 }
  0x20   :  { %850 = vmatpush3.bf16.msra.mxu0 %v955_v31 }
  0x21   :  { %872 = vmatpush3.bf16.msra.mxu1 %v956_v32  ;;  %879 = vmatprep.subr.bf16.mxu0 %v958_v35 }
  0x22   :  { %901 = vmatprep.subr.bf16.mxu1 %v959_v38 }
  0x23   :  { %627 = vmatmul.mubr.bf16.vlgmr.msra.gmra.mxu0 %v176_v45 }
  0x24   :  { %880 = vmatpush3.bf16.msra.mxu0 %v960_v48  ;;  %667 = vmatmul.mubr.bf16.vlgmr.msra.gmra.mxu1 %v198_v50 }
  0x25   :  { %881 = vmatprep.subr.bf16.mxu0 %v962_v51  ;;  %902 = vmatpush3.bf16.msra.mxu1 %v961_v53 }
  0x26   :  { %706 = vmatprep.mubr.bf16.mxu0 %v197_v49  ;;  %903 = vmatprep.subr.bf16.mxu1 %v963_v54 }
  0x27   :  { %746 = vmatprep.mubr.bf16.mxu1 %v201_v55 }
  0x28   :  { %882 = vmatpush3.bf16.msra.mxu0 %v964_v56 }
  0x29   :  { %883 = vmatprep.subr.bf16.mxu0 %v966_v57  ;;  %904 = vmatpush3.bf16.msra.mxu1 %v965_v58 }
  0x2a   :  { %905 = vmatprep.subr.bf16.mxu1 %v967_v59 }
  0x2c   :  { %884 = vmatpush3.bf16.msra.mxu0 %v968_v60 }
  0x2d   :  { %885 = vmatprep.subr.bf16.mxu0 %v970_v61  ;;  %906 = vmatpush3.bf16.msra.mxu1 %v969_v62 }
  0x2e   :  { %907 = vmatprep.subr.bf16.mxu1 %v971_v63 }
  0x30   :  { %886 = vmatpush3.bf16.msra.mxu0 %v972_v0 }
  0x31   :  { %887 = vmatprep.subr.bf16.mxu0 %v974_v1  ;;  %908 = vmatpush3.bf16.msra.mxu1 %v973_v2 }
  0x32   :  { %909 = vmatprep.subr.bf16.mxu1 %v975_v3 }
  0x34   :  { %888 = vmatpush3.bf16.msra.mxu0 %v976_v4 }
  0x35   :  { %889 = vmatprep.subr.bf16.mxu0 %v978_v5 }
  0x36   :  { %8 = vsyncpa [#allocation3], 0  ;;  %910 = vmatpush3.bf16.msra.mxu1 %v977_v6  ;;  %v981_v10 = vld [vmem:[%s1249_s1 + $0x190] sm:$0xff]   ;;  %v983_v11 = vld [vmem:[%s1249_s1 + $0x1c8] sm:$0xff]   ;;  %v183_v17 = vrot.slane %v1143_v43, %v1139_v41  ;;  %vm754_vm0 = vcmask 74752  }
  0x37   :  { %911 = vmatprep.subr.bf16.mxu1 %v979_v7  ;;  %v984_v12 = vld [vmem:[%s1249_s1 + $0x108] sm:$0xff]   ;;  %v986_v13 = vld [vmem:[%s1249_s1 + $0x140] sm:$0xff]  }
  0x38   :  { %890 = vmatpush3.bf16.msra.mxu0 %v980_v8  ;;  %v985_v14 = vld [vmem:[%s1249_s1 + $0x188] sm:$0xff]   ;;  %v987_v15 = vld [vmem:[%s1249_s1 + $0x1c0] sm:$0xff]   ;;  %v199_v19 = vcombine.high %v183_v17, %v183_v17 }
  0x39   :  { %891 = vmatprep.subr.bf16.mxu0 %v982_v9  ;;  %v988_v16 = vld [vmem:[%s1249_s1 + $0x100] sm:$0xff]  }
  0x3a   :  { %912 = vmatpush3.bf16.msra.mxu1 %v981_v10  ;;  %v989_v18 = vld [vmem:[%s1249_s1 + $0x180] sm:$0xff]   ;;  %s1013_s1 = smov [#allocation2]  }
  0x3b   :  { %913 = vmatprep.subr.bf16.mxu1 %v983_v11  ;;  %v770_v29 = vld [vmem:[%s1250_s2] ss:$0 sm:$0xff]  ;;  %s762_s6 = sshll.u32 %s1013_s1, 4  ;;  %s763_s6 = int_to_ptr.vmem [resolvable:$true] %s762_s6 }
  0x3c   :  { %892 = vmatpush3.bf16.msra.mxu0 %v984_v12  ;;  %s990_s2 = scalar_lea.vmem %s763_s6, 32  ;;  %p995_p1 = scmp.lt.s32.totalorder %s763_s6, %s763_s6 }
  0x3d   :  { %893 = vmatprep.subr.bf16.mxu0 %v986_v13  ;;  %p991_p0 = scmp.ne.s32.totalorder %s763_s6, %s990_s2  ;;  %p996_p2 = scmp.lt.s32.totalorder %s990_s2, %s990_s2 }
  0x3e   :  { %914 = vmatpush3.bf16.msra.mxu1 %v985_v14 }
  0x3f   :  { %915 = vmatprep.subr.bf16.mxu1 %v987_v15  ;;  %p997_p3 = por %p996_p2, %p995_p1 }
  0x40   :  { %894 = vmatpush3.bf16.msra.mxu0 %v988_v16 }
  0x41   :  { %p998_p4 = pnand %p997_p3, %p991_p0 }
  0x42   :  { %916 = vmatpush3.bf16.msra.mxu1 %v989_v18 }
  0x43   :  { %707 = vmatmul.mubr.bf16.vlgmr.msra.gmra.mxu0 %v183_v17 }
  0x45   :  { %747 = vmatmul.mubr.bf16.vlgmr.msra.gmra.mxu1 %v199_v19 }
  0xe3   :  { %v851_v20 = vpop.f32.mrf.mxu0 }
  0xe4   :  { %v873_v21 = vpop.f32.mrf.mxu1 }
  0xe5   :  { %v852_v22 = vpop.f32.mrf.mxu0 }
  0xe6   :  { %v874_v23 = vpop.f32.mrf.mxu1  ;;  %v853_v28 = vadd.f32 %v852_v22, %v851_v20 }
  0xe7   :  { %v854_v24 = vpop.f32.mrf.mxu0  ;;  %v875_v31 = vadd.f32 %v874_v23, %v873_v21 }
  0xe8   :  { %v876_v25 = vpop.f32.mrf.mxu1  ;;  %v629_v30 = vadd.f32 %v853_v28, %v770_v29 }
  0xe9   :  { %v855_v26 = vpop.f32.mrf.mxu0 }
  0xea   :  { %v877_v27 = vpop.f32.mrf.mxu1  ;;  %v669_v35 = vadd.f32 %v875_v31, %v629_v30 }
 0x103   :  { %v895_v32 = vpop.f32.mrf.mxu0 }
 0x105   :  { %v917_v33 = vpop.f32.mrf.mxu1  ;;  %v896_v34 = vpop.f32.mrf.mxu0 }
 0x106   :  { %v897_v36 = vadd.f32 %v896_v34, %v895_v32 }
 0x107   :  { %v918_v37 = vpop.f32.mrf.mxu1  ;;  %v898_v38 = vpop.f32.mrf.mxu0 }
 0x108   :  { %v709_v39 = vadd.f32 %v897_v36, %v669_v35  ;;  %v919_v40 = vadd.f32 %v918_v37, %v917_v33 }
 0x109   :  { %v920_v41 = vpop.f32.mrf.mxu1  ;;  %v899_v42 = vpop.f32.mrf.mxu0 }
 0x10a   :  { %v749_v43 = vadd.f32 %v919_v40, %v709_v39 }
 0x10b   :  { %v921_v44 = vpop.f32.mrf.mxu1 }
 0x10c   :  { %755 = vst.msk [vmem:[#allocation2] sm:$0x3] %vm754_vm0, %v749_v43 }
 0x10d   :  { %1001 = shalt.err (!%p998_p4)
}
 0x10e   :  { %765 = dma.vmem_to_hbm [thread:$0]  %s763_s6, 32, %s1251_s3, [#allocation3]  }
 0x10f   :  { %1010 = dma.done.wait [#allocation3], 32  }
 0x110   :  { %1011 = vsyncadd [#allocation3], 4294967264 }
 0x111   :  { %769 = vsyncpa [#allocation3], 1 }

// kernel: npi_forward.49
= control target key start
LH: loop header
LB: loop body
LE: loop exit
PB: predicated region body
PF: predicated region fallthrough
CT: control target
= control target key end

     0   :  { %v978_v22 = vmov 1966171168   ;;  %v156_v24 = vlaneseq  ;;  %vm753_vm0 = vcmask 58368   ;;  %s1213_s1 = inlined_call_operand.vmem [shape: bf16[1024,8], index: 1, kind: input, shape index: {}]   ;;  %s1214_s0 = inlined_call_operand.vmem [shape: bf16[2,1024], index: 0, kind: input, shape index: {}]   ;;  %s1215_s2 = inlined_call_operand.vmem [shape: f32[1,8], index: 2, kind: input, shape index: {}]   ;;  %s1216_s3 = inlined_call_operand.vmem [shape: f32[2,8], index: 3, kind: output, shape index: {}]  }
   0x1   :  { %v913_v0 = vld [vmem:[%s1213_s1 + $0x78] sm:$0xff]   ;;  %v917_v4 = vld [vmem:[%s1213_s1 + $0x70] sm:$0xff]   ;;  %v921_v8 = vld [vmem:[%s1213_s1 + $0x68] sm:$0xff]   ;;  %v154_v23 = vunpack.c.l.s4 %v978_v22 }
   0x2   :  { %v914_v1 = vld [vmem:[%s1213_s1 + $0xf8] sm:$0xff]   ;;  %824 = vmatprep.subr.bf16.mxu0 %v913_v0  ;;  %v918_v5 = vld [vmem:[%s1213_s1 + $0xf0] sm:$0xff]   ;;  %v922_v9 = vld [vmem:[%s1213_s1 + $0xe8] sm:$0xff]   ;;  %v157_v30 = vshrl.u32 %v156_v24, 7 }
   0x3   :  { %v915_v2 = vld [vmem:[%s1213_s1 + $0x38] sm:$0xff]   ;;  %846 = vmatprep.subr.bf16.mxu1 %v914_v1  ;;  %v919_v6 = vld [vmem:[%s1213_s1 + $0x30] sm:$0xff]   ;;  %v923_v10 = vld [vmem:[%s1213_s1 + $0x28] sm:$0xff]   ;;  %v155_v29 = vunpack.c.0.s8 %v154_v23 }
   0x4   :  { %v916_v3 = vld [vmem:[%s1213_s1 + $0xb8] sm:$0xff]   ;;  %825 = vmatpush3.bf16.msra.mxu0 %v915_v2  ;;  %v920_v7 = vld [vmem:[%s1213_s1 + $0xb0] sm:$0xff]   ;;  %v924_v11 = vld [vmem:[%s1213_s1 + $0xa8] sm:$0xff]  }
   0x5   :  { %847 = vmatpush3.bf16.msra.mxu1 %v916_v3  ;;  %826 = vmatprep.subr.bf16.mxu0 %v917_v4  ;;  %v925_v12 = vld [vmem:[%s1213_s1 + $0x60] sm:$0xff]   ;;  %v929_v16 = vld [vmem:[%s1213_s1 + $0x58] sm:$0xff]   ;;  %v933_v20 = vld [vmem:[%s1213_s1 + $0x50] sm:$0xff]   ;;  %v1089_v35 = vsub.s32 %v155_v29, %v157_v30 }
   0x6   :  { %848 = vmatprep.subr.bf16.mxu1 %v918_v5  ;;  %v926_v13 = vld [vmem:[%s1213_s1 + $0xe0] sm:$0xff]   ;;  %v930_v17 = vld [vmem:[%s1213_s1 + $0xd8] sm:$0xff]   ;;  %v934_v21 = vld [vmem:[%s1213_s1 + $0xd0] sm:$0xff]  }
   0x7   :  { %v927_v14 = vld [vmem:[%s1213_s1 + $0x20] sm:$0xff]   ;;  %v931_v18 = vld [vmem:[%s1213_s1 + $0x18] sm:$0xff]   ;;  %v935_v25 = vld [vmem:[%s1213_s1 + $0x10] sm:$0xff]  }
   0x8   :  { %827 = vmatpush3.bf16.msra.mxu0 %v919_v6  ;;  %v928_v15 = vld [vmem:[%s1213_s1 + $0xa0] sm:$0xff]   ;;  %v932_v19 = vld [vmem:[%s1213_s1 + $0x98] sm:$0xff]   ;;  %v936_v26 = vld [vmem:[%s1213_s1 + $0x90] sm:$0xff]  }
   0x9   :  { %849 = vmatpush3.bf16.msra.mxu1 %v920_v7  ;;  %828 = vmatprep.subr.bf16.mxu0 %v921_v8  ;;  %v937_v27 = vld [vmem:[%s1213_s1 + $0x48] sm:$0xff]   ;;  %v941_v33 = vld [vmem:[%s1213_s1 + $0x40] sm:$0xff]   ;;  %v946_v41 = vld [vmem:[%s1213_s1 + $0x178] sm:$0xff]  }
   0xa   :  { %850 = vmatprep.subr.bf16.mxu1 %v922_v9  ;;  %v938_v28 = vld [vmem:[%s1213_s1 + $0xc8] sm:$0xff]   ;;  %v942_v34 = vld [vmem:[%s1213_s1 + $0xc0] sm:$0xff]   ;;  %v947_v42 = vld [vmem:[%s1213_s1 + $0x1f8] sm:$0xff]  }
   0xb   :  { %v939_v31 = vld [vmem:[%s1213_s1 + $0x8] sm:$0xff]   ;;  %v943_v36 = vld [vmem:[%s1213_s1] sm:$0xff]   ;;  %v948_v47 = vld [vmem:[%s1213_s1 + $0x138] sm:$0xff]  }
   0xc   :  { %829 = vmatpush3.bf16.msra.mxu0 %v923_v10  ;;  %v940_v32 = vld [vmem:[%s1213_s1 + $0x88] sm:$0xff]   ;;  %v944_v37 = vld [vmem:[%s1213_s1 + $0x80] sm:$0xff]   ;;  %v950_v50 = vld [vmem:[%s1213_s1 + $0x170] sm:$0xff]  }
   0xd   :  { %851 = vmatpush3.bf16.msra.mxu1 %v924_v11  ;;  %830 = vmatprep.subr.bf16.mxu0 %v925_v12  ;;  %v15_v38 = vld [vmem:[%s1214_s0] sm:$0xff]  ;;  %v949_v52 = vld [vmem:[%s1213_s1 + $0x1b8] sm:$0xff]   ;;  %v951_v54 = vld [vmem:[%s1213_s1 + $0x1f0] sm:$0xff]  }
   0xe   :  { %852 = vmatprep.subr.bf16.mxu1 %v926_v13  ;;  %v152_v39 = vcombine.high %v15_v38, %v15_v38  ;;  %v159_v40 = vrot.slane %v15_v38, %v1089_v35  ;;  %v952_v55 = vld [vmem:[%s1213_s1 + $0x130] sm:$0xff]   ;;  %v954_v57 = vld [vmem:[%s1213_s1 + $0x168] sm:$0xff]   ;;  %v958_v61 = vld [vmem:[%s1213_s1 + $0x160] sm:$0xff]  }
   0xf   :  { %v953_v58 = vld [vmem:[%s1213_s1 + $0x1b0] sm:$0xff]   ;;  %v955_v59 = vld [vmem:[%s1213_s1 + $0x1e8] sm:$0xff]   ;;  %v959_v63 = vld [vmem:[%s1213_s1 + $0x1e0] sm:$0xff]  }
  0x10   :  { %831 = vmatpush3.bf16.msra.mxu0 %v927_v14  ;;  %v167_v43 = vcombine.high %v159_v40, %v159_v40  ;;  %v175_v44 = vrot.slane %v159_v40, %v1089_v35  ;;  %v1109_v45 = vrot.slane %v152_v39, %v1089_v35  ;;  %v956_v60 = vld [vmem:[%s1213_s1 + $0x128] sm:$0xff]   ;;  %v960_v0 = vld [vmem:[%s1213_s1 + $0x120] sm:$0xff]   ;;  %v962_v1 = vld [vmem:[%s1213_s1 + $0x158] sm:$0xff]  }
  0x11   :  { %853 = vmatpush3.bf16.msra.mxu1 %v928_v15  ;;  %832 = vmatprep.subr.bf16.mxu0 %v929_v16  ;;  %v957_v62 = vld [vmem:[%s1213_s1 + $0x1a8] sm:$0xff]   ;;  %v961_v2 = vld [vmem:[%s1213_s1 + $0x1a0] sm:$0xff]   ;;  %v963_v3 = vld [vmem:[%s1213_s1 + $0x1d8] sm:$0xff]  }
  0x12   :  { %854 = vmatprep.subr.bf16.mxu1 %v930_v17  ;;  %v189_v46 = vrot.slane %v167_v43, %v1089_v35  ;;  %v168_v48 = vcombine.high %v1109_v45, %v1109_v45  ;;  %v197_v49 = vcombine.high %v175_v44, %v175_v44  ;;  %v964_v4 = vld [vmem:[%s1213_s1 + $0x118] sm:$0xff]   ;;  %v966_v5 = vld [vmem:[%s1213_s1 + $0x150] sm:$0xff]   ;;  %v970_v9 = vld [vmem:[%s1213_s1 + $0x148] sm:$0xff]   ;;  %v182_v17 = vrot.slane %v1109_v45, %v1089_v35 }
  0x13   :  { %v965_v6 = vld [vmem:[%s1213_s1 + $0x198] sm:$0xff]   ;;  %v967_v7 = vld [vmem:[%s1213_s1 + $0x1d0] sm:$0xff]   ;;  %v971_v11 = vld [vmem:[%s1213_s1 + $0x1c8] sm:$0xff]  }
  0x14   :  { %833 = vmatpush3.bf16.msra.mxu0 %v931_v18  ;;  %625 = vmatprep.mubr.bf16.mxu0 %v189_v46  ;;  %v199_v51 = vcombine.high %v189_v46, %v189_v46  ;;  %v196_v53 = vrot.slane %v168_v48, %v1089_v35  ;;  %v968_v8 = vld [vmem:[%s1213_s1 + $0x110] sm:$0xff]   ;;  %v972_v12 = vld [vmem:[%s1213_s1 + $0x108] sm:$0xff]   ;;  %v974_v13 = vld [vmem:[%s1213_s1 + $0x140] sm:$0xff]  }
  0x15   :  { %855 = vmatpush3.bf16.msra.mxu1 %v932_v19  ;;  %834 = vmatprep.subr.bf16.mxu0 %v933_v20  ;;  %v969_v10 = vld [vmem:[%s1213_s1 + $0x190] sm:$0xff]   ;;  %v973_v14 = vld [vmem:[%s1213_s1 + $0x188] sm:$0xff]   ;;  %v975_v15 = vld [vmem:[%s1213_s1 + $0x1c0] sm:$0xff]   ;;  %v198_v19 = vcombine.high %v182_v17, %v182_v17 }
  0x16   :  { %856 = vmatprep.subr.bf16.mxu1 %v934_v21  ;;  %665 = vmatprep.mubr.bf16.mxu1 %v199_v51  ;;  %v200_v56 = vcombine.high %v196_v53, %v196_v53  ;;  %v976_v16 = vld [vmem:[%s1213_s1 + $0x100] sm:$0xff]  }
  0x17   :  { %v977_v18 = vld [vmem:[%s1213_s1 + $0x180] sm:$0xff]  }
  0x18   :  { %835 = vmatpush3.bf16.msra.mxu0 %v935_v25  ;;  %v759_v29 = vld [vmem:[%s1215_s2] ss:$0 sm:$0xff] }
  0x19   :  { %857 = vmatpush3.bf16.msra.mxu1 %v936_v26  ;;  %836 = vmatprep.subr.bf16.mxu0 %v937_v27 }
  0x1a   :  { %858 = vmatprep.subr.bf16.mxu1 %v938_v28 }
  0x1c   :  { %837 = vmatpush3.bf16.msra.mxu0 %v939_v31 }
  0x1d   :  { %859 = vmatpush3.bf16.msra.mxu1 %v940_v32  ;;  %838 = vmatprep.subr.bf16.mxu0 %v941_v33 }
  0x1e   :  { %860 = vmatprep.subr.bf16.mxu1 %v942_v34 }
  0x20   :  { %839 = vmatpush3.bf16.msra.mxu0 %v943_v36 }
  0x21   :  { %861 = vmatpush3.bf16.msra.mxu1 %v944_v37  ;;  %868 = vmatprep.subr.bf16.mxu0 %v946_v41 }
  0x22   :  { %890 = vmatprep.subr.bf16.mxu1 %v947_v42 }
  0x23   :  { %626 = vmatmul.mubr.bf16.vlgmr.msra.gmra.mxu0 %v175_v44 }
  0x24   :  { %869 = vmatpush3.bf16.msra.mxu0 %v948_v47  ;;  %666 = vmatmul.mubr.bf16.vlgmr.msra.gmra.mxu1 %v197_v49 }
  0x25   :  { %870 = vmatprep.subr.bf16.mxu0 %v950_v50  ;;  %891 = vmatpush3.bf16.msra.mxu1 %v949_v52 }
  0x26   :  { %705 = vmatprep.mubr.bf16.mxu0 %v196_v53  ;;  %892 = vmatprep.subr.bf16.mxu1 %v951_v54 }
  0x27   :  { %745 = vmatprep.mubr.bf16.mxu1 %v200_v56 }
  0x28   :  { %871 = vmatpush3.bf16.msra.mxu0 %v952_v55 }
  0x29   :  { %872 = vmatprep.subr.bf16.mxu0 %v954_v57  ;;  %893 = vmatpush3.bf16.msra.mxu1 %v953_v58 }
  0x2a   :  { %894 = vmatprep.subr.bf16.mxu1 %v955_v59 }
  0x2c   :  { %873 = vmatpush3.bf16.msra.mxu0 %v956_v60 }
  0x2d   :  { %874 = vmatprep.subr.bf16.mxu0 %v958_v61  ;;  %895 = vmatpush3.bf16.msra.mxu1 %v957_v62 }
  0x2e   :  { %896 = vmatprep.subr.bf16.mxu1 %v959_v63 }
  0x30   :  { %875 = vmatpush3.bf16.msra.mxu0 %v960_v0 }
  0x31   :  { %876 = vmatprep.subr.bf16.mxu0 %v962_v1  ;;  %897 = vmatpush3.bf16.msra.mxu1 %v961_v2 }
  0x32   :  { %898 = vmatprep.subr.bf16.mxu1 %v963_v3 }
  0x34   :  { %877 = vmatpush3.bf16.msra.mxu0 %v964_v4 }
  0x35   :  { %878 = vmatprep.subr.bf16.mxu0 %v966_v5  ;;  %899 = vmatpush3.bf16.msra.mxu1 %v965_v6 }
  0x36   :  { %900 = vmatprep.subr.bf16.mxu1 %v967_v7 }
  0x38   :  { %879 = vmatpush3.bf16.msra.mxu0 %v968_v8 }
  0x39   :  { %880 = vmatprep.subr.bf16.mxu0 %v970_v9  ;;  %901 = vmatpush3.bf16.msra.mxu1 %v969_v10 }
  0x3a   :  { %902 = vmatprep.subr.bf16.mxu1 %v971_v11 }
  0x3c   :  { %881 = vmatpush3.bf16.msra.mxu0 %v972_v12 }
  0x3d   :  { %882 = vmatprep.subr.bf16.mxu0 %v974_v13  ;;  %903 = vmatpush3.bf16.msra.mxu1 %v973_v14 }
  0x3e   :  { %904 = vmatprep.subr.bf16.mxu1 %v975_v15 }
  0x40   :  { %883 = vmatpush3.bf16.msra.mxu0 %v976_v16 }
  0x41   :  { %905 = vmatpush3.bf16.msra.mxu1 %v977_v18 }
  0x43   :  { %706 = vmatmul.mubr.bf16.vlgmr.msra.gmra.mxu0 %v182_v17 }
  0x44   :  { %746 = vmatmul.mubr.bf16.vlgmr.msra.gmra.mxu1 %v198_v19 }
  0xe3   :  { %v840_v20 = vpop.f32.mrf.mxu0 }
  0xe4   :  { %v862_v21 = vpop.f32.mrf.mxu1 }
  0xe5   :  { %v841_v22 = vpop.f32.mrf.mxu0 }
  0xe6   :  { %v863_v23 = vpop.f32.mrf.mxu1  ;;  %v842_v28 = vadd.f32 %v841_v22, %v840_v20 }
  0xe7   :  { %v843_v24 = vpop.f32.mrf.mxu0  ;;  %v864_v31 = vadd.f32 %v863_v23, %v862_v21 }
  0xe8   :  { %v865_v25 = vpop.f32.mrf.mxu1  ;;  %v628_v30 = vadd.f32 %v842_v28, %v759_v29 }
  0xe9   :  { %v844_v26 = vpop.f32.mrf.mxu0 }
  0xea   :  { %v866_v27 = vpop.f32.mrf.mxu1  ;;  %v668_v35 = vadd.f32 %v864_v31, %v628_v30 }
 0x103   :  { %v884_v32 = vpop.f32.mrf.mxu0 }
 0x104   :  { %v906_v33 = vpop.f32.mrf.mxu1 }
 0x105   :  { %v885_v34 = vpop.f32.mrf.mxu0 }
 0x106   :  { %v886_v36 = vadd.f32 %v885_v34, %v884_v32  ;;  %v907_v37 = vpop.f32.mrf.mxu1 }
 0x107   :  { %v887_v38 = vpop.f32.mrf.mxu0  ;;  %v908_v40 = vadd.f32 %v907_v37, %v906_v33 }
 0x108   :  { %v708_v39 = vadd.f32 %v886_v36, %v668_v35  ;;  %v909_v41 = vpop.f32.mrf.mxu1 }
 0x109   :  { %v888_v42 = vpop.f32.mrf.mxu0 }
 0x10a   :  { %v748_v43 = vadd.f32 %v908_v40, %v708_v39  ;;  %v910_v44 = vpop.f32.mrf.mxu1 }
 0x10c   :  { %754 = vst.msk [vmem:[%s1216_s3] sm:$0x3] %vm753_vm0, %v748_v43 }

// kernel: npi_forward.40
= control target key start
LH: loop header
LB: loop body
LE: loop exit
PB: predicated region body
PF: predicated region fallthrough
CT: control target
= control target key end

     0   :  { %vm25_vm0 = vcmask 130048   ;;  %s168_s1 = inlined_call_operand.vmem [shape: f32[16,128], index: 1, kind: input, shape index: {}]   ;;  %s169_s0 = inlined_call_operand.vmem [shape: f32[12,16], index: 0, kind: input, shape index: {}]   ;;  %s170_s2 = inlined_call_operand.vmem [shape: f32[1,128], index: 2, kind: input, shape index: {}]   ;;  %s171_s3 = inlined_call_operand.vmem [shape: f32[12,128], index: 3, kind: output, shape index: {}]  }
   0x1   :  { %v17_v0 = vld [vmem:[%s168_s1 + $0x8] sm:$0xff]  ;;  %v16_v1 = vld [vmem:[%s168_s1] sm:$0xff] }
   0x2   :  { %v14_v2 = vld [vmem:[%s169_s0] sm:$0xff]  ;;  %120 = vmatprep.subr.mxu0 %v17_v0  ;;  %v15_v3 = vld [vmem:[%s169_s0 + $0x8] sm:$0xf] }
   0x3   :  { %124 = vmatprep.mubr.msk.f32.mxu0 %vm25_vm0, %v14_v2  ;;  %121 = vmatpush3.msra.mxu0 %v17_v0  ;;  %v113_v4 = vld [vmem:[%s170_s2] ss:$0 sm:$0xff] }
   0x4   :  { %122 = vmatprep.subr.mxu0 %v16_v1 }
   0x5   :  { %123 = vmatpush3.msra.mxu0 %v16_v1 }
   0x6   :  { %125 = vmatmul.mubr.msk.f32.vlgmr.msra.gmra.mxu0 %vm25_vm0, %v15_v3 }
  0xc6   :  { %v126_v5 = vpop.f32.mrf.mxu0 }
  0xc7   :  { %v104_v6 = vadd.f32 %v126_v5, %v113_v4 }
  0xc8   :  { %v98_v7 = vpop.f32.mrf.mxu0 }
  0xc9   :  { %108 = vst [vmem:[%s171_s3 + $0x8] sm:$0xf] %v104_v6  ;;  %v99_v8 = vadd.f32 %v113_v4, %v98_v7 }
  0xcb   :  { %107 = vst [vmem:[%s171_s3] sm:$0xff] %v99_v8 }

// kernel: npi_forward.41
= control target key start
LH: loop header
LB: loop body
LE: loop exit
PB: predicated region body
PF: predicated region fallthrough
CT: control target
= control target key end

     0   :  { %10 = vsyncpa [#allocation5], 0  ;;  %s534_s15 = smov 0   ;;  %s593_s0 = inlined_call_operand.vmem [shape: f32[6,2,128], index: 0, kind: input, shape index: {}]   ;;  %s594_s1 = inlined_call_operand.vmem [shape: f32[32,128], index: 1, kind: input, shape index: {}]   ;;  %s595_s2 = inlined_call_operand.vmem [shape: f32[1,128], index: 2, kind: input, shape index: {}]   ;;  %s596_s3 = inlined_call_operand.vmem [shape: f32[6,2,32], index: 3, kind: output, shape index: {0}]   ;;  %s597_s4 = inlined_call_operand.hbm [shape: f32[2,32], index: 4, kind: output, shape index: {1}]  }
   0x1 LB: > { %s540_s16 = sadd.s32 4294967295, %s500_s15   ;;  %p411_p0 = scmp.ge.s32.totalorder %s500_s15, 1  ;;  %s500_s15 = sphi %s534_s15, %s16_s15  }
   0x2   : > { %p160_p1 = scmp.lt.s32.totalorder %s500_s15, 7 }
   0x4   : > { %p161_p2 = pnand %p411_p0, %p160_p1 }
   0x5   : > { %p184_p3 = scmp.lt.s32.totalorder (!%p161_p2), %s540_s16, 5  ;;  %p414_p4 = scmp.ne.s32.totalorder (!%p161_p2), %s540_s16, 0 }
   0x6   : > { %164 = sbr.rel (%p161_p2) target bundleno = 722 (0x2d2), region = 32 }
   0xb   : > { %s185_s17 = scalar_select %p184_p3, %s540_s16, 5 }
   0xc   : > { %195 = sbr.rel (%p414_p4) target bundleno = 19 (0x13), region = 36 }
   0xd   : > { %s412_s18 = sshll.u32 %s185_s17, 1 }
   0xe   : > { %s187_s21 = scalar_lea.vmem %s593_s0, %s412_s18  ;;  %s552_s24 = scalar_lea.vmem %s596_s3, %s412_s18 }
  0x11   : > { %vm196_vm0 = vcmask 254976   ;;  %v502_v0 = vmov 0.0  }
  0x12   : > { %197 = vst.msk [vmem:[#allocation2] sm:$0x3] %vm196_vm0, %v502_v0  ;;  %198 = vst.msk [vmem:[#allocation3] sm:$0x3] %vm196_vm0, %v502_v0 }
  0x13 PF: > { %v204_v1 = vld [vmem:[%s594_s1 + $0x18] sm:$0xff]  ;;  %v503_v2 = vmov 0.0   ;;  %v203_v3 = vld [vmem:[%s594_s1 + $0x10] sm:$0xff]  ;;  %vm504_vm1 = vmmov 0   ;;  %v202_v4 = vld [vmem:[%s594_s1 + $0x8] sm:$0xff]  ;;  %vm205_vm2 = vcmask 261120  }
  0x14   : > { %426 = vmatprep.subr.mxu0 %v503_v2  ;;  %434 = vmatprep.mubr.msk.f32.mxu0 %vm504_vm1, %v503_v2  ;;  %v201_v5 = vld [vmem:[%s594_s1] sm:$0xff]  ;;  %s505_s9 = smov 64   ;;  %s506_s10 = smov 32   ;;  %vm321_vm3 = vcmask 254976  }
  0x15   : > { %427 = vmatpush3.msra.mxu0 %v204_v1  ;;  %v199_v7 = vld [vmem:[%s187_s21] sm:$0x3]  ;;  %s507_s11 = smov 96   ;;  %p441_p5 = scmp.eq.s32.totalorder %s540_s16, 5 }
  0x16   : > { %428 = vmatprep.subr.mxu0 %v503_v2  ;;  %v416_v9 = vld [vmem:[%s595_s2] ss:$0 sm:$0xff]  ;;  %s508_s12 = smov [#allocation4]  }
  0x17   : > { %429 = vmatpush3.msra.mxu0 %v203_v3  ;;  %s344_s13 = sshll.u32 %s508_s12, 4  ;;  %s345_s13 = int_to_ptr.vmem [resolvable:$true] %s344_s13 }
  0x18   : > { %430 = vmatprep.subr.mxu0 %v503_v2  ;;  %s466_s14 = scalar_lea.vmem %s345_s13, 32  ;;  %p473_p9 = scmp.lt.s32.totalorder %s345_s13, %s345_s13 }
  0x19   : > { %431 = vmatpush3.msra.mxu0 %v202_v4  ;;  %v200_v6 = vld [vmem:[#allocation2] sm:$0x3]  ;;  %v295_v14 = vld [vmem:[#allocation3] sm:$0x3]  ;;  %p467_p6 = scmp.ne.s32.totalorder %s345_s13, %s466_s14  ;;  %p474_p10 = scmp.lt.s32.totalorder %s466_s14, %s466_s14 }
  0x1a   : > { %432 = vmatprep.subr.mxu0 %v503_v2 }
  0x1b   : > { %433 = vmatpush3.msra.mxu0 %v201_v5  ;;  %p468_p7 = pnand %p467_p6, %p441_p5  ;;  %p475_p11 = por %p474_p10, %p473_p9 }
  0x1c   : > { %435 = vmatmul.mubr.msk.f32.vlgmr.msra.gmra.mxu0 %vm205_vm2, %v200_v6 }
  0x1d   : > { %p469_p8 = pneg %p468_p7 }
  0x1f   : > { %p476_p12 = pnand %p475_p11, %p469_p8 }
  0xdc   : > { %v275_v8 = vpop.f32.mrf.mxu0 }
  0xdd   : > { %v279_v10 = vadd.f32 %v275_v8, %v199_v7 }
  0xde   : > { %v436_v11 = vpop.f32.mrf.mxu0 }
  0xdf   : > { %v287_v12 = vadd.f32 %v416_v9, %v279_v10 }
  0xe1   : > { %458 = vtanh.f32 %v287_v12  ;;  %v288_v15 = vsub.f32 0.0, %v287_v12 }
  0xe3   : > { %v289_v16 = vmul.f32 1.442695, %v288_v15 }
  0xe5   : > { %460 = vpow2.f32 %v289_v16 }
  0xee   : > { %v459_v13 = vpop.eup %458 }
  0xef   : > { %302 = vrot.lane.b32.xlu0 %v459_v13, %s505_s9 }
  0xf2   : > { %v461_v17 = vpop.eup %460 }
  0xf3   : > { %297 = vrot.lane.b32.xlu0 %v295_v14, %s506_s10  ;;  %v291_v18 = vadd.f32 1.0, %v461_v17 }
  0xf5   : > { %462 = vrcp.f32 %v291_v18 }
 0x102   : > { %v463_v19 = vpop.eup %462 }
 0x161   : > { %v303_v20 = vpop.permute.xlu0 %302 }
 0x162   : > { %v305_v21 = vmul.f32 %v463_v19, %v303_v20 }
 0x164   : > { %307 = vrot.lane.b32.xlu1 %v305_v21, %s506_s10 }
 0x165   : > { %v298_v22 = vpop.permute.xlu0 %297 }
 0x166   : > { %v300_v23 = vmul.f32 %v463_v19, %v298_v22 }
 0x1d6   : > { %v308_v24 = vpop.permute.xlu1 %307 }
 0x1d7   : > { %v310_v25 = vadd.f32 %v308_v24, %v300_v23 }
 0x1d9   : > { %464 = vtanh.f32 %v310_v25  ;;  %324 = vrot.lane.b32.xlu0 %v310_v25, %s507_s11 }
 0x1e6   : > { %v465_v26 = vpop.eup %464 }
 0x1e7   : > { %313 = vrot.lane.b32.xlu1 %v465_v26, %s505_s9 }
 0x24b   : > { %v325_v27 = vpop.permute.xlu0 %324 }
 0x24c   : > { %327 = vst.msk [vmem:[#allocation3] sm:$0x3] %vm321_vm3, %v325_v27  ;;  %329 = vst.msk [vmem:[#allocation4] sm:$0x3] %vm321_vm3, %v325_v27 }
 0x24d   : > { %479 = shalt.err (!%p476_p12)
}
 0x24e   : > { %438 = dma.vmem_to_hbm [thread:$0]  (%p441_p5), %s345_s13, 32, %s597_s4, [#allocation5]  }
 0x259   : > { %v314_v28 = vpop.permute.xlu1 %313 }
 0x25a   : > { %v316_v29 = vmul.f32 %v463_v19, %v314_v28 }
 0x25c   : > { %318 = vrot.lane.b32.xlu1 %v316_v29, %s506_s10 }
 0x2ce   : > { %v319_v30 = vpop.permute.xlu1 %318 }
 0x2cf   : > { %322 = vst.msk [vmem:[#allocation2] sm:$0x3] %vm321_vm3, %v319_v30  ;;  %328 = vst.msk [vmem:[%s552_s24] sm:$0x3] %vm321_vm3, %v319_v30 }
 0x2d0   : > { %495 = dma.done.wait (%p441_p5), [#allocation5], 32  }
 0x2d1   : > { %497 = vsyncadd (%p441_p5), [#allocation5], 4294967264 }
 0x2d2 PF: > { %s16_s15 = sadd.s32 1, %s500_s15  }
 0x2d3   : > { %p13_p13 = scmp.ge.s32.totalorder %s16_s15, 8  }
 0x2d5   :  { %15 = sbr.rel (!%p13_p13) target bundleno = 1 (0x1), region = 75 }
 0x2da   :  { %364 = vsyncpa [#allocation5], 1 }
 0x2db   :  { %366 = vsyncpa [#allocation5 + $0x1], 1 }

// kernel: npi_forward.42
= control target key start
LH: loop header
LB: loop body
LE: loop exit
PB: predicated region body
PF: predicated region fallthrough
CT: control target
= control target key end

     0   :  { %vm27_vm0 = vcmask 261120   ;;  %s184_s1 = inlined_call_operand.vmem [shape: f32[32,128], index: 1, kind: input, shape index: {}]   ;;  %s185_s0 = inlined_call_operand.vmem [shape: f32[12,32], index: 0, kind: input, shape index: {}]   ;;  %s186_s2 = inlined_call_operand.vmem [shape: f32[1,128], index: 2, kind: input, shape index: {}]   ;;  %s187_s3 = inlined_call_operand.vmem [shape: f32[12,128], index: 3, kind: output, shape index: {}]  }
   0x1   :  { %v19_v0 = vld [vmem:[%s184_s1 + $0x18] sm:$0xff]  ;;  %v18_v1 = vld [vmem:[%s184_s1 + $0x10] sm:$0xff]  ;;  %v14_v2 = vld [vmem:[%s185_s0] sm:$0xff] }
   0x2   :  { %124 = vmatprep.subr.mxu0 %v19_v0  ;;  %v17_v3 = vld [vmem:[%s184_s1 + $0x8] sm:$0xff]  ;;  %132 = vmatprep.mubr.msk.f32.mxu0 %vm27_vm0, %v14_v2  ;;  %v16_v4 = vld [vmem:[%s184_s1] sm:$0xff] }
   0x3   :  { %125 = vmatpush3.msra.mxu0 %v19_v0  ;;  %v15_v5 = vld [vmem:[%s185_s0 + $0x8] sm:$0xf]  ;;  %v115_v6 = vld [vmem:[%s186_s2] ss:$0 sm:$0xff] }
   0x4   :  { %126 = vmatprep.subr.mxu0 %v18_v1 }
   0x5   :  { %127 = vmatpush3.msra.mxu0 %v18_v1 }
   0x6   :  { %128 = vmatprep.subr.mxu0 %v17_v3 }
   0x7   :  { %129 = vmatpush3.msra.mxu0 %v17_v3 }
   0x8   :  { %130 = vmatprep.subr.mxu0 %v16_v4 }
   0x9   :  { %131 = vmatpush3.msra.mxu0 %v16_v4 }
   0xa   :  { %133 = vmatmul.mubr.msk.f32.vlgmr.msra.gmra.mxu0 %vm27_vm0, %v15_v5 }
  0xca   :  { %v134_v7 = vpop.f32.mrf.mxu0 }
  0xcb   :  { %v106_v8 = vadd.f32 %v134_v7, %v115_v6 }
  0xcc   :  { %v100_v9 = vpop.f32.mrf.mxu0 }
  0xcd   :  { %110 = vst [vmem:[%s187_s3 + $0x8] sm:$0xf] %v106_v8  ;;  %v101_v10 = vadd.f32 %v115_v6, %v100_v9 }
  0xcf   :  { %109 = vst [vmem:[%s187_s3] sm:$0xff] %v101_v10 }

// kernel: npi_forward.43
= control target key start
LH: loop header
LB: loop body
LE: loop exit
PB: predicated region body
PF: predicated region fallthrough
CT: control target
= control target key end

     0   :  { %10 = vsyncpa [#allocation5], 0  ;;  %s713_s0 = inlined_call_operand.vmem [shape: f32[6,2,128], index: 0, kind: input, shape index: {}]   ;;  %s714_s1 = inlined_call_operand.vmem [shape: f32[32,128], index: 1, kind: input, shape index: {}]   ;;  %s715_s2 = inlined_call_operand.vmem [shape: f32[1,128], index: 2, kind: input, shape index: {}]   ;;  %s716_s3 = inlined_call_operand.hbm [shape: f32[6,2,32], index: 3, kind: output, shape index: {0}]   ;;  %s717_s4 = inlined_call_operand.vmem [shape: f32[2,32], index: 4, kind: output, shape index: {1}]  }
   0x1   :  { %12 = vsyncpa [#allocation5 + $0x1], 0  ;;  %s584_s15 = smov 0   ;;  %s586_s16 = smov 0  }
   0x2   :  { %s588_s17 = smov 0   ;;  %s590_s18 = smov 0  }
   0x3 LB: > { %s605_s19 = sadd.s32 4294967295, %s550_s18   ;;  %s408_s20 = sadd.s32 4294967294, %s550_s18   ;;  %s550_s18 = sphi %s590_s18, %s723_s18   ;;  %s546_s17 = sphi %s588_s17, %s722_s17   ;;  %s542_s16 = sphi %s586_s16, %s721_s16   ;;  %s538_s15 = sphi %s584_s15, %s720_s15  }
   0x4   : > { %s609_s21 = sadd.s32 1, %s550_s18   ;;  %s93_s22 = sadd.s32 1, %s546_s17 }
   0x5   : > { %s90_s23 = ssub.s32 %s550_s18, %s609_s21  ;;  %p103_p0 = scmp.ne.s32.totalorder %s546_s17, %s542_s16 }
   0x6   : > { %p91_p1 = scmp.eq.s32.totalorder %s90_s23, 0  ;;  %p104_p2 = scmp.eq.s32.totalorder %s605_s19, 5 }
   0x7   : > { %p109_p3 = scmp.ne.s32.totalorder %s542_s16, %s538_s15  ;;  %p110_p4 = scmp.eq.s32.totalorder %s408_s20, 5 }
   0x8   : > { %s620_s24 = scalar_select %p91_p1, %s546_s17, %s93_s22  }
   0x9   : > { %p622_p5 = por %p104_p2, %p103_p0  ;;  %p626_p6 = por %p110_p4, %p109_p3 }
   0xa   : > { %p411_p7 = scmp.ge.s32.totalorder %s550_s18, 1  ;;  %p162_p8 = scmp.lt.s32.totalorder %s550_s18, 7 }
   0xc   : > { %p163_p9 = pnand %p411_p7, %p162_p8 }
   0xd   : > { %s182_s27 = sand.u32 (!%p163_p9), 1, %s542_s16   ;;  %p187_p10 = scmp.lt.s32.totalorder (!%p163_p9), %s605_s19, 5 }
   0xe   : > { %166 = sbr.rel (%p163_p9) target bundleno = 740 (0x2e4), region = 32  ;;  %s636_s28 = sshll.u32 (!%p163_p9), %s182_s27, 1 }
   0xf   : > { %s184_s8 = scalar_lea.vmem (!%p163_p9), [#allocation4], %s636_s28  ;;  %p414_p11 = scmp.ne.s32.totalorder (!%p163_p9), %s605_s19, 0 }
  0x13   : > { %s188_s29 = scalar_select %p187_p10, %s605_s19, 5 }
  0x14   : > { %194 = sbr.rel (%p414_p11) target bundleno = 27 (0x1b), region = 36 }
  0x15   : > { %s413_s30 = sshll.u32 %s188_s29, 1 }
  0x16   : > { %s190_s7 = scalar_lea.vmem %s713_s0, %s413_s30 }
  0x19   : > { %vm195_vm0 = vcmask 254976   ;;  %v552_v0 = vmov 0.0  }
  0x1a   : > { %196 = vst.msk [vmem:[#allocation2] sm:$0x3] %vm195_vm0, %v552_v0  ;;  %197 = vst.msk [vmem:[#allocation3] sm:$0x3] %vm195_vm0, %v552_v0 }
  0x1b PF: > { %v203_v1 = vld [vmem:[%s714_s1 + $0x18] sm:$0xff]  ;;  %v553_v2 = vmov 0.0   ;;  %v202_v3 = vld [vmem:[%s714_s1 + $0x10] sm:$0xff]  ;;  %vm554_vm1 = vmmov 0   ;;  %v201_v4 = vld [vmem:[%s714_s1 + $0x8] sm:$0xff]  ;;  %vm204_vm2 = vcmask 261120  }
  0x1c   : > { %426 = vmatprep.subr.mxu0 %v553_v2  ;;  %434 = vmatprep.mubr.msk.f32.mxu0 %vm554_vm1, %v553_v2  ;;  %v200_v5 = vld [vmem:[%s714_s1] sm:$0xff]  ;;  %s555_s30 = smov 64   ;;  %s556_s5 = smov 32   ;;  %vm320_vm3 = vcmask 254976  }
  0x1d   : > { %427 = vmatpush3.msra.mxu0 %v203_v1  ;;  %v198_v7 = vld [vmem:[%s190_s7] sm:$0x3]  ;;  %s557_s6 = smov 96   ;;  %s418_s10 = sshll.u32 %s605_s19, 5 }
  0x1e   : > { %428 = vmatprep.subr.mxu0 %v553_v2  ;;  %v416_v9 = vld [vmem:[%s715_s2] ss:$0 sm:$0xff]  ;;  %s343_s11 = sshll.u32 %s184_s8, 4  ;;  %s668_s14 = scalar_lea.hbm %s716_s3, %s418_s10  ;;  %s670_s11 = int_to_ptr.vmem [resolvable:$true] %s343_s11 }
  0x1f   : > { %429 = vmatpush3.msra.mxu0 %v202_v3  ;;  %s330_s20 = scalar_lea.sflag [#allocation5], %s182_s27  ;;  %s490_s22 = scalar_lea.vmem %s670_s11, 32 }
  0x20   : > { %430 = vmatprep.subr.mxu0 %v553_v2  ;;  %p491_p12 = scmp.ne.s32.totalorder %s670_s11, %s490_s22  ;;  %s558_s19 = smov [#allocation4]  }
  0x21   : > { %431 = vmatpush3.msra.mxu0 %v201_v4  ;;  %v199_v6 = vld [vmem:[#allocation2] sm:$0x3]  ;;  %v294_v14 = vld [vmem:[#allocation3] sm:$0x3]  ;;  %s494_s23 = sshll.u32 %s558_s19, 4  ;;  %s495_s23 = int_to_ptr.vmem [resolvable:$false] %s494_s23 }
  0x22   : > { %432 = vmatprep.subr.mxu0 %v553_v2  ;;  %p492_p13 = pnand %p491_p12, %p622_p5  ;;  %s496_s29 = scalar_lea.vmem %s495_s23, 64 }
  0x23   : > { %433 = vmatpush3.msra.mxu0 %v200_v5  ;;  %p497_p1 = scmp.lt.s32.totalorder %s670_s11, %s495_s23  ;;  %p498_p2 = scmp.lt.s32.totalorder %s496_s29, %s490_s22 }
  0x24   : > { %435 = vmatmul.mubr.msk.f32.vlgmr.msra.gmra.mxu0 %vm204_vm2, %v199_v6  ;;  %p493_p0 = pneg %p492_p13 }
  0x25   : > { %p499_p3 = por %p498_p2, %p497_p1 }
  0x27   : > { %p500_p4 = pnand %p499_p3, %p493_p0 }
  0xe4   : > { %v274_v8 = vpop.f32.mrf.mxu0 }
  0xe5   : > { %v278_v10 = vadd.f32 %v274_v8, %v198_v7 }
  0xe6   : > { %v436_v11 = vpop.f32.mrf.mxu0 }
  0xe7   : > { %v286_v12 = vadd.f32 %v416_v9, %v278_v10 }
  0xe9   : > { %482 = vtanh.f32 %v286_v12  ;;  %v287_v15 = vsub.f32 0.0, %v286_v12 }
  0xeb   : > { %v288_v16 = vmul.f32 1.442695, %v287_v15 }
  0xed   : > { %484 = vpow2.f32 %v288_v16 }
  0xf6   : > { %v483_v13 = vpop.eup %482 }
  0xf7   : > { %301 = vrot.lane.b32.xlu0 %v483_v13, %s555_s30 }
  0xfa   : > { %v485_v17 = vpop.eup %484 }
  0xfb   : > { %296 = vrot.lane.b32.xlu0 %v294_v14, %s556_s5  ;;  %v290_v18 = vadd.f32 1.0, %v485_v17 }
  0xfd   : > { %486 = vrcp.f32 %v290_v18 }
 0x10a   : > { %v487_v19 = vpop.eup %486 }
 0x169   : > { %v302_v20 = vpop.permute.xlu0 %301 }
 0x16a   : > { %v304_v21 = vmul.f32 %v487_v19, %v302_v20 }
 0x16c   : > { %306 = vrot.lane.b32.xlu1 %v304_v21, %s556_s5 }
 0x16d   : > { %v297_v22 = vpop.permute.xlu0 %296 }
 0x16e   : > { %v299_v23 = vmul.f32 %v487_v19, %v297_v22 }
 0x1de   : > { %v307_v24 = vpop.permute.xlu1 %306 }
 0x1df   : > { %v309_v25 = vadd.f32 %v307_v24, %v299_v23 }
 0x1e1   : > { %488 = vtanh.f32 %v309_v25 }
 0x1ee   : > { %v489_v26 = vpop.eup %488 }
 0x1ef   : > { %312 = vrot.lane.b32.xlu1 %v489_v26, %s555_s30 }
 0x1f3   : > { %323 = vrot.lane.b32.xlu1 %v309_v25, %s557_s6 }
 0x261   : > { %v313_v27 = vpop.permute.xlu1 %312 }
 0x262   : > { %v315_v28 = vmul.f32 %v487_v19, %v313_v27 }
 0x264   : > { %317 = vrot.lane.b32.xlu0 %v315_v28, %s556_s5 }
 0x265   : > { %v324_v29 = vpop.permute.xlu1 %323 }
 0x266   : > { %326 = vst.msk [vmem:[#allocation3] sm:$0x3] %vm320_vm3, %v324_v29  ;;  %328 = vst.msk [vmem:[%s717_s4] sm:$0x3] %vm320_vm3, %v324_v29 }
 0x2d6   : > { %v318_v30 = vpop.permute.xlu0 %317 }
 0x2d7   : > { %321 = vst.msk [vmem:[#allocation2] sm:$0x3] %vm320_vm3, %v318_v30  ;;  %327 = vst.msk [vmem:[%s184_s8] sm:$0x3] %vm320_vm3, %v318_v30 }
 0x2d8   : > { %503 = shalt.err (!%p500_p4)
}
 0x2d9   : > { %s504_s28 = scalar_lea.hbm %s668_s14, 32  ;;  %s508_s30 = scalar_lea.hbm %s716_s3, 192 }
 0x2da   : > { %p505_p7 = scmp.ne.s32.totalorder %s668_s14, %s504_s28  ;;  %p509_p10 = scmp.lt.s32.totalorder %s668_s14, %s716_s3 }
 0x2db   : > { %p510_p11 = scmp.lt.s32.totalorder %s508_s30, %s504_s28 }
 0x2dc   : > { %p506_p8 = pnand %p505_p7, %p622_p5 }
 0x2dd   : > { %p511_p12 = por %p510_p11, %p509_p10 }
 0x2de   : > { %p507_p9 = pneg %p506_p8 }
 0x2e0   : > { %p512_p13 = pnand %p511_p12, %p507_p9 }
 0x2e2   : > { %515 = shalt.err (!%p512_p13)
}
 0x2e3   : > { %437 = dma.vmem_to_hbm [thread:$0]  (%p622_p5), %s670_s11, 32, %s668_s14, %s330_s20  }
 0x2e4 PF: > { %p443_p0 = scmp.ge.s32.totalorder %s550_s18, 2  ;;  %s361_s7 = sand.u32 1, %s538_s15  }
 0x2e5   : > { %s362_s9 = scalar_lea.sflag [#allocation5], %s361_s7 }
 0x2e6   : > { %p440_p1 = pnand %p443_p0, %p626_p6 }
 0x2e8   : > { %p441_p2 = pneg %p440_p1 }
 0x2ea   : > { %533 = dma.done.wait (%p441_p2), %s362_s9, 32  }
 0x2eb   : > { %535 = vsyncadd (%p441_p2), %s362_s9, 4294967264  ;;  %p15_p3 = scmp.ge.s32.totalorder %s609_s21, 8   ;;  %s720_s15 = smov %s542_s16 }
 0x2ec   : > { %s721_s16 = smov %s546_s17  ;;  %s722_s17 = smov %s620_s24 }
 0x2ed   : > { %s723_s18 = smov %s609_s21  ;;  %17 = sbr.rel (!%p15_p3) target bundleno = 3 (0x3), region = 79 }
 0x2f2   :  { %367 = vsyncpa [#allocation5], 1 }
 0x2f3   :  { %369 = vsyncpa [#allocation5 + $0x1], 1 }

// kernel: npi_forward.51
= control target key start
LH: loop header
LB: loop body
LE: loop exit
PB: predicated region body
PF: predicated region fallthrough
CT: control target
= control target key end

     0   :  { %v108_v0 = vmov 0.0   ;;  %vm109_vm0 = vmmov 0   ;;  %vm39_vm1 = vcmask 261120   ;;  %vm83_vm2 = vcmask 279552   ;;  %s145_s1 = inlined_call_operand.vmem [shape: bf16[32,35], index: 1, kind: input, shape index: {}]   ;;  %s146_s0 = inlined_call_operand.vmem [shape: bf16[2,32], index: 0, kind: input, shape index: {}]   ;;  %s147_s2 = inlined_call_operand.vmem [shape: f32[1,35], index: 2, kind: input, shape index: {}]   ;;  %s148_s3 = inlined_call_operand.vmem [shape: f32[2,35], index: 3, kind: output, shape index: {}]  }
   0x1   :  { %96 = vmatprep.subr.bf16.mxu0 %v108_v0  ;;  %v106_v1 = vld [vmem:[%s145_s1 + $0x8] sm:$0xff]   ;;  %100 = vmatprep.mubr.msk.bf16.mxu0 %vm109_vm0, %v108_v0  ;;  %v107_v2 = vld [vmem:[%s145_s1] sm:$0xff]  }
   0x2   :  { %97 = vmatpush3.bf16.msra.mxu0 %v106_v1  ;;  %v15_v3 = vld [vmem:[%s146_s0] sm:$0x1] }
   0x3   :  { %98 = vmatprep.subr.bf16.mxu0 %v108_v0  ;;  %v89_v4 = vld [vmem:[%s147_s2] ss:$0 sm:$0xff] }
   0x6   :  { %99 = vmatpush3.bf16.msra.mxu0 %v107_v2 }
   0x9   :  { %101 = vmatmul.mubr.msk.bf16.vlgmr.msra.gmra.mxu0 %vm39_vm1, %v15_v3 }
  0xc9   :  { %v77_v5 = vpop.f32.mrf.mxu0 }
  0xca   :  { %v78_v6 = vadd.f32 %v89_v4, %v77_v5 }
  0xcb   :  { %v102_v7 = vpop.f32.mrf.mxu0 }
  0xcc   :  { %84 = vst.msk [vmem:[%s148_s3] sm:$0x3] %vm83_vm2, %v78_v6 }
  0xcd   :  { %v80_v8 = vpop.f32.mrf.mxu0 }
  0xcf   :  { %v103_v9 = vpop.f32.mrf.mxu0 }

// kernel: npi_forward.50
= control target key start
LH: loop header
LB: loop body
LE: loop exit
PB: predicated region body
PF: predicated region fallthrough
CT: control target
= control target key end

     0   :  { %v511_v0 = vmov 0.0   ;;  %vm512_vm0 = vmmov 0   ;;  %vm22_vm1 = vcmask 64512   ;;  %vm108_vm2 = vcmask 261120   ;;  %s513_s14 = smov 96   ;;  %s631_s3 = inlined_call_operand.vmem [shape: f32[3,32,64], index: 3, kind: input, shape index: {}]   ;;  %s632_s2 = inlined_call_operand.vmem [shape: f32[8,64], index: 2, kind: input, shape index: {}]   ;;  %s633_s0 = inlined_call_operand.vmem [shape: f32[2,8], index: 0, kind: input, shape index: {}]   ;;  %s634_s1 = inlined_call_operand.vmem [shape: f32[2,32], index: 1, kind: input, shape index: {}]   ;;  %s635_s4 = inlined_call_operand.vmem [shape: f32[3,1,64], index: 4, kind: input, shape index: {}]   ;;  %s636_s5 = inlined_call_operand.vmem [shape: f32[2,32], index: 5, kind: output, shape index: {}]  }
   0x1   :  { %457 = vmatprep.subr.mxu1 %v511_v0  ;;  %v100_v1 = vld [vmem:[%s631_s3 + $0x18] sm:$0xff]  ;;  %v99_v2 = vld [vmem:[%s631_s3 + $0x10] sm:$0xff]  ;;  %452 = vmatprep.subr.mxu0 %v511_v0  ;;  %v21_v3 = vld [vmem:[%s632_s2] sm:$0xff]  ;;  %vm412_vm3 = vcmask 254976  }
   0x2   :  { %458 = vmatpush3.msra.mxu1 %v100_v1  ;;  %454 = vmatprep.mubr.msk.f32.mxu0 %vm512_vm0, %v511_v0  ;;  %v20_v4 = vld [vmem:[%s633_s0] sm:$0x3]  ;;  %v98_v5 = vld [vmem:[%s631_s3 + $0x8] sm:$0xff]  ;;  %v424_v19 = vld [vmem:[%s631_s3 + $0x38] sm:$0xff] }
   0x3   :  { %459 = vmatprep.subr.mxu1 %v511_v0  ;;  %453 = vmatpush3.msra.mxu0 %v21_v3  ;;  %v97_v6 = vld [vmem:[%s631_s3] sm:$0xff]  ;;  %v423_v20 = vld [vmem:[%s631_s3 + $0x30] sm:$0xff]  ;;  %v422_v21 = vld [vmem:[%s631_s3 + $0x28] sm:$0xff] }
   0x4   :  { %460 = vmatpush3.msra.mxu1 %v99_v2  ;;  %465 = vmatprep.mubr.msk.f32.mxu1 %vm512_vm0, %v511_v0  ;;  %v96_v7 = vld [vmem:[%s634_s1] sm:$0x3]  ;;  %v431_v39 = vld [vmem:[%s631_s3 + $0x58] sm:$0xff]  ;;  %v430_v40 = vld [vmem:[%s631_s3 + $0x50] sm:$0xff] }
   0x5   :  { %461 = vmatprep.subr.mxu1 %v511_v0  ;;  %455 = vmatmul.mubr.msk.f32.vlgmr.msra.gmra.mxu0 %vm22_vm1, %v20_v4  ;;  %v419_v9 = vld [vmem:[%s635_s4] ss:$0 sm:$0xff]  ;;  %v426_v31 = vld [vmem:[%s635_s4 + $0x1] ss:$0 sm:$0xff]  ;;  %v429_v41 = vld [vmem:[%s631_s3 + $0x48] sm:$0xff] }
   0x6   :  { %462 = vmatpush3.msra.mxu1 %v98_v5  ;;  %468 = vmatprep.subr.mxu0 %v511_v0  ;;  %v421_v22 = vld [vmem:[%s631_s3 + $0x20] sm:$0xff] }
   0x7   :  { %463 = vmatprep.subr.mxu1 %v511_v0  ;;  %476 = vmatprep.mubr.msk.f32.mxu0 %vm512_vm0, %v511_v0  ;;  %v428_v42 = vld [vmem:[%s631_s3 + $0x40] sm:$0xff] }
   0x8   :  { %464 = vmatpush3.msra.mxu1 %v97_v6  ;;  %469 = vmatpush3.msra.mxu0 %v424_v19  ;;  %v433_v51 = vld [vmem:[%s635_s4 + $0x2] ss:$0 sm:$0xff] }
   0x9   :  { %466 = vmatmul.mubr.msk.f32.vlgmr.msra.gmra.mxu1 %vm108_vm2, %v96_v7  ;;  %479 = vmatprep.subr.mxu1 %v511_v0 }
   0xa   :  { %487 = vmatprep.mubr.msk.f32.mxu1 %vm512_vm0, %v511_v0  ;;  %470 = vmatprep.subr.mxu0 %v511_v0 }
   0xb   :  { %471 = vmatpush3.msra.mxu0 %v423_v20  ;;  %480 = vmatpush3.msra.mxu1 %v431_v39 }
   0xc   :  { %472 = vmatprep.subr.mxu0 %v511_v0  ;;  %481 = vmatprep.subr.mxu1 %v511_v0 }
   0xd   :  { %473 = vmatpush3.msra.mxu0 %v422_v21  ;;  %482 = vmatpush3.msra.mxu1 %v430_v40 }
   0xe   :  { %474 = vmatprep.subr.mxu0 %v511_v0  ;;  %483 = vmatprep.subr.mxu1 %v511_v0 }
   0xf   :  { %475 = vmatpush3.msra.mxu0 %v421_v22  ;;  %484 = vmatpush3.msra.mxu1 %v429_v41 }
  0x10   :  { %485 = vmatprep.subr.mxu1 %v511_v0 }
  0x11   :  { %486 = vmatpush3.msra.mxu1 %v428_v42 }
  0xc5   :  { %v92_v8 = vpop.f32.mrf.mxu0 }
  0xc7   :  { %v456_v10 = vpop.f32.mrf.mxu0 }
  0xc9   :  { %v178_v11 = vpop.f32.mrf.mxu1 }
  0xca   :  { %v179_v12 = vadd.f32 %v419_v9, %v178_v11 }
  0xcb   :  { %v467_v13 = vpop.f32.mrf.mxu1 }
  0xcc   :  { %v182_v14 = vadd.f32 %v179_v12, %v92_v8 }
  0xce   :  { %v184_v15 = vsub.f32 0.0, %v182_v14 }
  0xd0   :  { %v185_v16 = vmul.f32 1.442695, %v184_v15 }
  0xd2   :  { %493 = vpow2.f32 %v185_v16 }
  0xdf   :  { %v494_v17 = vpop.eup %493 }
  0xe0   :  { %v187_v18 = vadd.f32 1.0, %v494_v17 }
  0xe2   :  { %495 = vrcp.f32 %v187_v18 }
  0xe3   :  { %497 = vtanh.f32 %v182_v14 }
  0xef   :  { %v496_v23 = vpop.eup %495 }
  0xf0   :  { %191 = vrot.lane.b32.xlu0 %v496_v23, %s513_s14  ;;  %v195_v24 = vsub.f32 1.0, %v496_v23  ;;  %v498_v26 = vpop.eup %497 }
  0xf4   :  { %197 = vrot.lane.b32.xlu0 %v195_v24, %s513_s14 }
 0x162   :  { %v192_v25 = vpop.permute.xlu0 %191 }
 0x163   :  { %v194_v28 = vmul.f32 %v498_v26, %v192_v25 }
 0x166   :  { %v198_v27 = vpop.permute.xlu0 %197 }
 0x167   :  { %v200_v29 = vmul.f32 %v198_v27, %v96_v7 }
 0x169   :  { %v201_v30 = vadd.f32 %v200_v29, %v194_v28 }
 0x16b   :  { %477 = vmatmul.mubr.msk.f32.vlgmr.msra.gmra.mxu0 %vm108_vm2, %v201_v30 }
 0x22b   :  { %v284_v32 = vpop.f32.mrf.mxu0 }
 0x22c   :  { %v285_v33 = vadd.f32 %v426_v31, %v284_v32 }
 0x22d   :  { %v478_v34 = vpop.f32.mrf.mxu0 }
 0x22e   :  { %v289_v35 = vsub.f32 0.0, %v285_v33 }
 0x230   :  { %v290_v36 = vmul.f32 1.442695, %v289_v35 }
 0x232   :  { %499 = vpow2.f32 %v290_v36 }
 0x23f   :  { %v500_v37 = vpop.eup %499 }
 0x240   :  { %v292_v38 = vadd.f32 1.0, %v500_v37 }
 0x242   :  { %501 = vrcp.f32 %v292_v38 }
 0x243   :  { %503 = vtanh.f32 %v285_v33 }
 0x24f   :  { %v502_v43 = vpop.eup %501 }
 0x250   :  { %296 = vrot.lane.b32.xlu1 %v502_v43, %s513_s14  ;;  %v300_v44 = vsub.f32 1.0, %v502_v43  ;;  %v504_v46 = vpop.eup %503 }
 0x254   :  { %302 = vrot.lane.b32.xlu1 %v300_v44, %s513_s14 }
 0x2c2   :  { %v297_v45 = vpop.permute.xlu1 %296 }
 0x2c3   :  { %v299_v48 = vmul.f32 %v504_v46, %v297_v45 }
 0x2c6   :  { %v303_v47 = vpop.permute.xlu1 %302 }
 0x2c7   :  { %v305_v49 = vmul.f32 %v303_v47, %v201_v30 }
 0x2c9   :  { %v306_v50 = vadd.f32 %v305_v49, %v299_v48 }
 0x2cb   :  { %488 = vmatmul.mubr.msk.f32.vlgmr.msra.gmra.mxu1 %vm108_vm2, %v306_v50 }
 0x38b   :  { %v389_v52 = vpop.f32.mrf.mxu1 }
 0x38c   :  { %v390_v53 = vadd.f32 %v433_v51, %v389_v52 }
 0x38d   :  { %v489_v54 = vpop.f32.mrf.mxu1 }
 0x38e   :  { %v394_v55 = vsub.f32 0.0, %v390_v53 }
 0x390   :  { %v395_v56 = vmul.f32 1.442695, %v394_v55 }
 0x392   :  { %505 = vpow2.f32 %v395_v56 }
 0x39f   :  { %v506_v57 = vpop.eup %505 }
 0x3a0   :  { %v397_v58 = vadd.f32 1.0, %v506_v57 }
 0x3a2   :  { %507 = vrcp.f32 %v397_v58 }
 0x3a3   :  { %509 = vtanh.f32 %v390_v53 }
 0x3af   :  { %v508_v59 = vpop.eup %507 }
 0x3b0   :  { %401 = vrot.lane.b32.xlu0 %v508_v59, %s513_s14  ;;  %v405_v60 = vsub.f32 1.0, %v508_v59  ;;  %v510_v62 = vpop.eup %509 }
 0x3b2   :  { %407 = vrot.lane.b32.xlu1 %v405_v60, %s513_s14 }
 0x422   :  { %v402_v61 = vpop.permute.xlu0 %401 }
 0x423   :  { %v404_v0 = vmul.f32 %v510_v62, %v402_v61 }
 0x424   :  { %v408_v63 = vpop.permute.xlu1 %407 }
 0x425   :  { %v410_v1 = vmul.f32 %v408_v63, %v306_v50 }
 0x427   :  { %v411_v2 = vadd.f32 %v410_v1, %v404_v0 }
 0x429   :  { %413 = vst.msk [vmem:[%s636_s5] sm:$0x3] %vm412_vm3, %v411_v2 }

</bundles_post_ra>
